<compile_context>
chip_gen: v7x
topology: tpu7x:2x2x1
jax: 0.10.0
libtpu: 0.0.40
codegen_flags: <defaults>
</compile_context>

<pallas_src>
import functools

import jax
import jax.numpy as jnp
import numpy as np
from jax import lax
from jax.experimental import pallas as pl
from jax.experimental.pallas import tpu as pltpu


def _round_up(v, m):
    return (v + m - 1) // m * m


def _choose_chunk(Cp, cap):
    """Largest multiple of 128 that divides Cp and is <= cap (at least 128)."""
    cc = 128
    for cand in range(128, min(cap, Cp) + 1, 128):
        if Cp % cand == 0:
            cc = cand
    return cc


# -----------------------------------------------------------------------------
# Kernel: one (batch, row-tile, channel-chunk) grid step.
# -----------------------------------------------------------------------------
def _aspp_kernel(x_hbm,     # (N, H_pad+2*dmax, Wp, Cp) bf16 in HBM (pl.ANY)
                 w1_ref,    # (CC, HIDp)           bf16  1x1 conv, chunk slab
                 w2_ref,    # (9*CC, HIDp)         bf16  dilated conv d0 slab
                 w3_ref,    # (9*CC, HIDp)         bf16  dilated conv d1 slab
                 w4_ref,    # (9*CC, HIDp)         bf16  dilated conv d2 slab
                 wo_ref,    # (4*HIDp, OUTp)       bf16  fused final conv (BN folded)
                 cst_ref,   # (1, OUTp)            f32   per-batch constant row
                 o_ref,     # (TILE_H*W_out, OUTp) bf16
                 buf,       # VMEM (2, THH, Wp, CC) bf16  halo double buffer
                 sem,       # DMA semaphores (2,)
                 acc_ref,   # VMEM (4, TILE_H*W_out, HIDp) f32 branch accumulators
                 *, W_out, TILE_H, dilations, d_max, CC, n_chunks):
    n = pl.program_id(0)
    t = pl.program_id(1)
    c = pl.program_id(2)
    THH = TILE_H + 2 * d_max
    HIDp = wo_ref.shape[0] // 4
    slot = c % 2
    row0 = t * TILE_H

    def start_fetch(chunk_idx, s):
        pltpu.make_async_copy(
            x_hbm.at[n, pl.ds(row0, THH), :, pl.ds(chunk_idx * CC, CC)],
            buf.at[s], sem.at[s]).start()

    # Each (n, t) block is self-contained: prime its chunk-0 halo fetch here
    # (keeps both the batch and row-tile grid axes safe to shard across cores).
    @pl.when(c == 0)
    def _():
        start_fetch(0, 0)

    if n_chunks > 1:
        @pl.when(c == 0)
        def _():
            acc_ref[...] = jnp.zeros_like(acc_ref)

    # Wait for the current chunk's halo slab (same dst shape / sem as start).
    pltpu.make_async_copy(
        x_hbm.at[0, pl.ds(0, THH), :, pl.ds(0, CC)],
        buf.at[slot], sem.at[slot]).wait()

    # Prefetch the next channel chunk of the same (n, t) into the other slot.
    @pl.when(c + 1 < n_chunks)
    def _():
        start_fetch(c + 1, 1 - slot)

    xw = buf.at[slot]                              # (THH, Wp, CC) bf16 view

    def tap(r0, c0):
        # Static-offset window -> (TILE_H*W_out, CC).  W_out % 16 == 0, so the
        # row-merge reshape is layout-free (only the column slice relayouts).
        return xw[r0:r0 + TILE_H, c0:c0 + W_out, :].reshape(TILE_H * W_out, CC)

    # --- per-branch partial sums for this channel chunk ----------------------
    # branch 0: 1x1 conv (center window).
    parts = [jnp.dot(tap(d_max, d_max), w1_ref[...],
                     preferred_element_type=jnp.float32)]
    # branches 1..3: dilated 3x3 convs as 9 accumulating dots (no tap concat).
    for d, w_ref in zip(dilations, (w2_ref, w3_ref, w4_ref)):
        p = None
        for k in range(9):
            ky, kx = divmod(k, 3)
            contrib = jnp.dot(
                tap(d_max + (ky - 1) * d, d_max + (kx - 1) * d),
                w_ref[k * CC:(k + 1) * CC, :],
                preferred_element_type=jnp.float32)
            p = contrib if p is None else p + contrib
        parts.append(p)

    if n_chunks > 1:
        for b in range(4):
            acc_ref[b] = acc_ref[b] + parts[b]

    # --- last chunk: fused final 1x1 conv (4 accumulating dots) + constant ---
    @pl.when(c == n_chunks - 1)
    def _():
        feats = parts if n_chunks == 1 else [acc_ref[b] for b in range(4)]
        out = cst_ref[...]                         # (1, OUTp) broadcasts over rows
        for b in range(4):
            out = out + jnp.dot(feats[b].astype(jnp.bfloat16),
                                wo_ref[b * HIDp:(b + 1) * HIDp, :],
                                preferred_element_type=jnp.float32)
        o_ref[...] = out.astype(o_ref.dtype)


# -----------------------------------------------------------------------------
# Wrapper: layout conversion, BN/weight folding, sizing, pallas_call.
# -----------------------------------------------------------------------------
def aspp_forward(x_nchw, params, dilations=(12, 24, 36), tile_h=16, chunk_c=256):
    N, C, H, W = x_nchw.shape
    HID = params["w1"].shape[1]
    OUT = params["wo"].shape[2]
    d_max = max(dilations)
    f32, bf16 = jnp.float32, jnp.bfloat16

    # lane-dense channel dims (no-ops at realistic ASPP sizes 256..2048).
    Cp = _round_up(C, 128)
    HIDp = _round_up(HID, 128)
    OUTp = _round_up(OUT, 128)

    # compute width padded to 16 -> layout-free (TILE_H, W_out, C) reshape.
    W_out = _round_up(W, 16)
    Wp = _round_up(W_out + 2 * d_max, 16)

    # --- VMEM budget -> pick channel chunk + row tile that fit ---------------
    try:
        info = pltpu.get_tpu_info()
        vmem_cap = int(getattr(info, "vmem_capacity_bytes", 64 << 20))
    except Exception:  # pragma: no cover - emulator / older runtimes
        vmem_cap = 64 << 20
    vmem_limit = int(min(max(vmem_cap * 3 // 4, 32 << 20), 100 << 20))
    budget = int(vmem_limit * 0.85)

    TILE_H = max(1, min(tile_h, H))
    CC = _choose_chunk(Cp, chunk_c)
    while True:
        THH = TILE_H + 2 * d_max
        T = TILE_H * W_out
        est = (2 * THH * Wp * CC * 2                 # halo double buffer
               + 2 * (CC + 3 * 9 * CC) * HIDp * 2    # chunked conv weights (x2 bufs)
               + 2 * 4 * HIDp * OUTp * 2             # fused final conv weight
               + 4 * T * HIDp * 4                    # branch accumulators (f32)
               + 2 * T * OUTp * 2                    # output block (x2 bufs)
               + 4 * T * CC * 2)                     # tap-relayout transients
        if est <= budget:
            break
        if CC > 128:
            CC = _choose_chunk(Cp, CC // 2)
            continue
        if TILE_H > 8:
            TILE_H = max(8, TILE_H // 2)
            continue
        break

    n_chunks = Cp // CC
    THH = TILE_H + 2 * d_max
    H_pad = _round_up(H, TILE_H)
    n_tiles = H_pad // TILE_H
    T = TILE_H * W_out

    # ---- single max-padded, channels-last, bf16 copy of the input ----------
    x_nhwc = jnp.transpose(x_nchw, (0, 2, 3, 1)).astype(bf16)   # (N, H, W, C)
    x_pad = jnp.pad(
        x_nhwc,
        ((0, 0),
         (d_max, d_max + H_pad - H),
         (d_max, Wp - W - d_max),
         (0, Cp - C)))                          # (N, H_pad+2*dmax, Wp, Cp)

    # ---- fold eval-mode SyncBatchNorm into weights / per-batch constant ----
    sb = params["sb"].astype(f32)               # (5, HID) scales
    bb = params["bb"].astype(f32)               # (5, HID) biases
    so = params["so"][0].astype(f32)            # (OUT,)
    bo = params["bo"][0].astype(f32)            # (OUT,)
    wo = params["wo"].astype(f32)               # (5, HID, OUT)

    # 1x1 branch weight, chunked along input channels.
    w1p = jnp.pad(params["w1"].astype(f32), ((0, Cp - C), (0, HIDp - HID)))
    w1c = w1p.reshape(n_chunks, CC, HIDp).astype(bf16)

    def chunk_taps(w9):                         # (9, C, HID) -> (n_chunks, 9*CC, HIDp)
        wpd = jnp.pad(w9.astype(f32), ((0, 0), (0, Cp - C), (0, HIDp - HID)))
        wpd = wpd.reshape(9, n_chunks, CC, HIDp).transpose(1, 0, 2, 3)
        return wpd.reshape(n_chunks, 9 * CC, HIDp).astype(bf16)

    w2c, w3c, w4c = (chunk_taps(params[k]) for k in ("w2", "w3", "w4"))

    # final 1x1 conv: fold branch-BN scales and output-BN scale into weight.
    wo_s = wo[:4] * sb[:4, :, None] * so[None, None, :]          # (4, HID, OUT)
    wo_s = jnp.pad(wo_s, ((0, 0), (0, HIDp - HID), (0, OUTp - OUT)))
    wof = wo_s.reshape(4 * HIDp, OUTp).astype(bf16)

    # per-batch constant row: image-pooling branch (exact broadcast of the 1x1
    # bilinear upsample) + branch-BN biases through wo + output-BN affine.
    pooled = jnp.mean(x_nhwc.astype(f32), axis=(1, 2))           # (N, C)
    gi = (pooled @ params["wp"].astype(f32)) * sb[4] + bb[4]     # (N, HID)
    pool_out = gi @ wo[4]                                        # (N, OUT)
    branch_bias = jnp.einsum("bh,bho->o", bb[:4], wo[:4])        # (OUT,)
    const = (pool_out + branch_bias[None, :]) * so[None, :] + bo[None, :]
    const_p = jnp.zeros((N, 1, OUTp), f32).at[:, 0, :OUT].set(const)

    kernel = functools.partial(
        _aspp_kernel, W_out=W_out, TILE_H=TILE_H, dilations=tuple(dilations),
        d_max=d_max, CC=CC, n_chunks=n_chunks)

    out_flat = pl.pallas_call(
        kernel,
        out_shape=jax.ShapeDtypeStruct((N, H_pad * W_out, OUTp), bf16),
        grid=(N, n_tiles, n_chunks),
        in_specs=[
            pl.BlockSpec(memory_space=pl.ANY),                       # padded x, HBM
            pl.BlockSpec((None, CC, HIDp), lambda n, t, c: (c, 0, 0)),
            pl.BlockSpec((None, 9 * CC, HIDp), lambda n, t, c: (c, 0, 0)),
            pl.BlockSpec((None, 9 * CC, HIDp), lambda n, t, c: (c, 0, 0)),
            pl.BlockSpec((None, 9 * CC, HIDp), lambda n, t, c: (c, 0, 0)),
            pl.BlockSpec((4 * HIDp, OUTp), lambda n, t, c: (0, 0)),
            pl.BlockSpec((None, 1, OUTp), lambda n, t, c: (n, 0, 0)),
        ],
        out_specs=pl.BlockSpec((None, T, OUTp), lambda n, t, c: (n, t, 0)),
        scratch_shapes=[
            pltpu.VMEM((2, THH, Wp, CC), bf16),                      # halo slabs
            pltpu.SemaphoreType.DMA((2,)),
            pltpu.VMEM((4, T, HIDp), jnp.float32),                   # branch accs
        ],
        compiler_params=pltpu.CompilerParams(
            dimension_semantics=("parallel", "parallel", "arbitrary"),
            vmem_limit_bytes=vmem_limit),
    )(x_pad, w1c, w2c, w3c, w4c, wof, const_p)

    out = out_flat[:, :, :OUT].reshape(N, H_pad, W_out, OUT)[:, :H, :W, :]
    return jnp.transpose(out, (0, 3, 1, 2)).astype(x_nchw.dtype)     # NCHW


# -----------------------------------------------------------------------------
# Pure-JAX f32 reference (NCHW, lax convs) for a correctness check.
# -----------------------------------------------------------------------------
def reference_forward(x_nchw, params, dilations):
    C = x_nchw.shape[1]
    HID = params["w1"].shape[1]
    OUT = params["wo"].shape[2]

    def bn(y, s, b):
        return y * s[None, :, None, None] + b[None, :, None, None]

    def conv1x1(x, w_mat):  # w_mat: (C_in, C_out)
        w = jnp.transpose(w_mat, (1, 0))[:, :, None, None]
        return lax.conv_general_dilated(
            x, w, (1, 1), 'VALID',
            dimension_numbers=('NCHW', 'OIHW', 'NCHW'))

    def conv3x3(x, w9, d):  # w9: (9, C_in, C_out)
        w = jnp.transpose(w9.reshape(3, 3, C, HID), (3, 2, 0, 1))
        return lax.conv_general_dilated(
            x, w, (1, 1), [(d, d), (d, d)], rhs_dilation=(d, d),
            dimension_numbers=('NCHW', 'OIHW', 'NCHW'))

    f1 = bn(conv1x1(x_nchw, params["w1"]), params["sb"][0], params["bb"][0])
    f2 = bn(conv3x3(x_nchw, params["w2"], dilations[0]),
            params["sb"][1], params["bb"][1])
    f3 = bn(conv3x3(x_nchw, params["w3"], dilations[1]),
            params["sb"][2], params["bb"][2])
    f4 = bn(conv3x3(x_nchw, params["w4"], dilations[2]),
            params["sb"][3], params["bb"][3])
    pooled = jnp.mean(x_nchw, axis=(2, 3), keepdims=True)
    fi = bn(conv1x1(pooled, params["wp"]), params["sb"][4], params["bb"][4])
    fi = jnp.broadcast_to(fi, f1.shape)     # 1x1 -> HxW bilinear, align_corners
    cat = jnp.concatenate([f1, f2, f3, f4, fi], axis=1)
    out = conv1x1(cat, params["wo"].reshape(5 * HID, OUT))
    out = (out * params["so"][0][None, :, None, None]
           + params["bo"][0][None, :, None, None])
    return out


# -----------------------------------------------------------------------------
# Main
# -----------------------------------------------------------------------------
if __name__ == "__main__":
    # Small but forward-consistent shapes (features=8, hidden=32, out=32).
    N, C, H, W = 2, 8, 16, 16
    HID, OUT = 32, 32
    DIL = (12, 24, 36)

    key = jax.random.PRNGKey(0)
    ks = jax.random.split(key, 11)
    params = {
        "w1": 0.1 * jax.random.normal(ks[0], (C, HID), jnp.float32),
        "w2": 0.1 * jax.random.normal(ks[1], (9, C, HID), jnp.float32),
        "w3": 0.1 * jax.random.normal(ks[2], (9, C, HID), jnp.float32),
        "w4": 0.1 * jax.random.normal(ks[3], (9, C, HID), jnp.float32),
        "wp": 0.1 * jax.random.normal(ks[4], (C, HID), jnp.float32),
        "wo": 0.1 * jax.random.normal(ks[5], (5, HID, OUT), jnp.float32),
        # folded eval-mode SyncBatchNorm: scale = gamma/sqrt(var+eps),
        #                                 bias  = beta - mean*scale
        "sb": 1.0 + 0.1 * jax.random.normal(ks[6], (5, HID), jnp.float32),
        "bb": 0.1 * jax.random.normal(ks[7], (5, HID), jnp.float32),
        "so": 1.0 + 0.1 * jax.random.normal(ks[8], (1, OUT), jnp.float32),
        "bo": 0.1 * jax.random.normal(ks[9], (1, OUT), jnp.float32),
    }
    x = jax.random.normal(ks[10], (N, C, H, W), jnp.float32)

    out = jax.block_until_ready(aspp_forward(x, params, DIL, tile_h=16))
    assert out.shape == (N, OUT, H, W), out.shape

    ref = jax.block_until_ready(reference_forward(x, params, DIL))
    # bf16 activations/weights/output with f32 MXU accumulation -> relaxed tol.
    np.testing.assert_allclose(np.asarray(out), np.asarray(ref),
                               rtol=2e-2, atol=3e-2)
    print("KERNEL_OK")
</pallas_src>

<mosaic_0001>
module attributes {stable_mosaic.version = 11 : i64} {
  func.func @_aspp_kernel(%arg0: i32, %arg1: i32, %arg2: i32, %arg3: memref<2x88x96x128xbf16, #tpu.memory_space<any>>, %arg4: memref<1x128x128xbf16, #tpu.memory_space<vmem>>, %arg5: memref<1x1152x128xbf16, #tpu.memory_space<vmem>>, %arg6: memref<1x1152x128xbf16, #tpu.memory_space<vmem>>, %arg7: memref<1x1152x128xbf16, #tpu.memory_space<vmem>>, %arg8: memref<512x128xbf16, #tpu.memory_space<vmem>>, %arg9: memref<1x1x128xf32, #tpu.memory_space<vmem>>, %arg10: memref<1x256x128xbf16, #tpu.memory_space<vmem>>, %arg11: memref<2x88x96x128xbf16, #tpu.memory_space<vmem>>, %arg12: memref<2x!tpu.dma_semaphore, #tpu.memory_space<semaphore_mem>>, %arg13: memref<4x256x128xf32, #tpu.memory_space<vmem>>) attributes {dimension_semantics = [#tpu.dimension_semantics<parallel>, #tpu.dimension_semantics<parallel>, #tpu.dimension_semantics<arbitrary>], iteration_bounds = array<i64: 2, 1, 1>, scalar_prefetch = 0 : i64, scratch_operands = 3 : i64, tpu.core_type = #tpu.core_type<tc>, window_params = [{}, {transform_indices = @transform_1, window_bounds = array<i64: 1, 128, 128>}, {transform_indices = @transform_2, window_bounds = array<i64: 1, 1152, 128>}, {transform_indices = @transform_3, window_bounds = array<i64: 1, 1152, 128>}, {transform_indices = @transform_4, window_bounds = array<i64: 1, 1152, 128>}, {pipeline_mode = #tpu.pipeline_mode<synchronous>, transform_indices = @transform_5, window_bounds = array<i64: 512, 128>}, {transform_indices = @transform_6, window_bounds = array<i64: 1, 1, 128>}, {transform_indices = @transform_7, window_bounds = array<i64: 1, 256, 128>}]} {
    %c2_i32 = arith.constant 2 : i32
    %c0_i32 = arith.constant 0 : i32
    %0 = arith.cmpi eq, %c2_i32, %c0_i32 : i32
    %c1_i32 = arith.constant 1 : i32
    %1 = arith.select %0, %c1_i32, %c2_i32 : i32
    %2 = arith.remsi %arg2, %1 : i32
    %c0_i32_0 = arith.constant 0 : i32
    %3 = arith.cmpi ne, %2, %c0_i32_0 : i32
    %c0_i32_1 = arith.constant 0 : i32
    %4 = arith.cmpi slt, %2, %c0_i32_1 : i32
    %c0_i32_2 = arith.constant 0 : i32
    %5 = arith.cmpi slt, %1, %c0_i32_2 : i32
    %6 = arith.xori %4, %5 : i1
    %7 = arith.andi %6, %3 : i1
    %8 = arith.addi %2, %1 : i32
    %9 = arith.select %7, %8, %2 : i32
    %c16_i32 = arith.constant 16 : i32
    %10 = arith.muli %arg1, %c16_i32 : i32
    %c0_i32_3 = arith.constant 0 : i32
    %11 = arith.cmpi eq, %arg2, %c0_i32_3 : i32
    %12 = arith.extui %11 : i1 to i32
    %c0_i32_4 = arith.constant 0 : i32
    %13 = arith.cmpi ne, %12, %c0_i32_4 : i32
    scf.if %13 {
      %c0_i32_281 = arith.constant 0 : i32
      %c0_i32_282 = arith.constant 0 : i32
      %c0_i32_283 = arith.constant 0 : i32
      %c0_i32_284 = arith.constant 0 : i32
      %247 = tpu.memref_slice %arg3[%arg0, %10, %c0_i32_283, %c0_i32_284] : memref<2x88x96x128xbf16, #tpu.memory_space<any>> -> memref<1x88x96x128xbf16, #tpu.memory_space<any>>
      %248 = tpu.memref_squeeze %247 : memref<1x88x96x128xbf16, #tpu.memory_space<any>> -> memref<88x96x128xbf16, #tpu.memory_space<any>>
      %c0_i32_285 = arith.constant 0 : i32
      %c0_i32_286 = arith.constant 0 : i32
      %c0_i32_287 = arith.constant 0 : i32
      %249 = tpu.memref_slice %arg11[%c0_i32_281, %c0_i32_285, %c0_i32_286, %c0_i32_287] : memref<2x88x96x128xbf16, #tpu.memory_space<vmem>> -> memref<1x88x96x128xbf16, #tpu.memory_space<vmem>>
      %250 = tpu.memref_squeeze %249 : memref<1x88x96x128xbf16, #tpu.memory_space<vmem>> -> memref<88x96x128xbf16, #tpu.memory_space<vmem>>
      %251 = tpu.memref_slice %arg12[%c0_i32_282] : memref<2x!tpu.dma_semaphore, #tpu.memory_space<semaphore_mem>> -> memref<1x!tpu.dma_semaphore, #tpu.memory_space<semaphore_mem>>
      %252 = tpu.memref_squeeze %251 : memref<1x!tpu.dma_semaphore, #tpu.memory_space<semaphore_mem>> -> memref<!tpu.dma_semaphore, #tpu.memory_space<semaphore_mem>>
      tpu.enqueue_dma source(%248 : memref<88x96x128xbf16, #tpu.memory_space<any>>) target(%250 : memref<88x96x128xbf16, #tpu.memory_space<vmem>>) target_semaphore(%252 : memref<!tpu.dma_semaphore, #tpu.memory_space<semaphore_mem>>)
    } else {
    }
    %c0_i32_5 = arith.constant 0 : i32
    %c0_i32_6 = arith.constant 0 : i32
    %c0_i32_7 = arith.constant 0 : i32
    %c0_i32_8 = arith.constant 0 : i32
    %14 = tpu.memref_slice %arg3[%c0_i32_5, %c0_i32_6, %c0_i32_7, %c0_i32_8] : memref<2x88x96x128xbf16, #tpu.memory_space<any>> -> memref<1x88x96x128xbf16, #tpu.memory_space<any>>
    %15 = tpu.memref_squeeze %14 : memref<1x88x96x128xbf16, #tpu.memory_space<any>> -> memref<88x96x128xbf16, #tpu.memory_space<any>>
    %c0_i32_9 = arith.constant 0 : i32
    %c0_i32_10 = arith.constant 0 : i32
    %c0_i32_11 = arith.constant 0 : i32
    %16 = tpu.memref_slice %arg11[%9, %c0_i32_9, %c0_i32_10, %c0_i32_11] : memref<2x88x96x128xbf16, #tpu.memory_space<vmem>> -> memref<1x88x96x128xbf16, #tpu.memory_space<vmem>>
    %17 = tpu.memref_squeeze %16 : memref<1x88x96x128xbf16, #tpu.memory_space<vmem>> -> memref<88x96x128xbf16, #tpu.memory_space<vmem>>
    %18 = tpu.memref_slice %arg12[%9] : memref<2x!tpu.dma_semaphore, #tpu.memory_space<semaphore_mem>> -> memref<1x!tpu.dma_semaphore, #tpu.memory_space<semaphore_mem>>
    %19 = tpu.memref_squeeze %18 : memref<1x!tpu.dma_semaphore, #tpu.memory_space<semaphore_mem>> -> memref<!tpu.dma_semaphore, #tpu.memory_space<semaphore_mem>>
    tpu.wait_dma2 semaphore(%19 : memref<!tpu.dma_semaphore, #tpu.memory_space<semaphore_mem>>) src(%15 : memref<88x96x128xbf16, #tpu.memory_space<any>>) dst(%17 : memref<88x96x128xbf16, #tpu.memory_space<vmem>>)
    %c1_i32_12 = arith.constant 1 : i32
    %20 = arith.addi %arg2, %c1_i32_12 : i32
    %c1_i32_13 = arith.constant 1 : i32
    %21 = arith.cmpi slt, %20, %c1_i32_13 : i32
    %22 = arith.extui %21 : i1 to i32
    %c0_i32_14 = arith.constant 0 : i32
    %23 = arith.cmpi ne, %22, %c0_i32_14 : i32
    scf.if %23 {
      %c1_i32_281 = arith.constant 1 : i32
      %247 = arith.addi %arg2, %c1_i32_281 : i32
      %c1_i32_282 = arith.constant 1 : i32
      %248 = arith.subi %c1_i32_282, %9 : i32
      %c128_i32 = arith.constant 128 : i32
      %249 = arith.muli %247, %c128_i32 : i32
      %c0_i32_283 = arith.constant 0 : i32
      %250 = tpu.memref_slice %arg3[%arg0, %10, %c0_i32_283, %249] : memref<2x88x96x128xbf16, #tpu.memory_space<any>> -> memref<1x88x96x128xbf16, #tpu.memory_space<any>>
      %251 = tpu.memref_squeeze %250 : memref<1x88x96x128xbf16, #tpu.memory_space<any>> -> memref<88x96x128xbf16, #tpu.memory_space<any>>
      %c0_i32_284 = arith.constant 0 : i32
      %c0_i32_285 = arith.constant 0 : i32
      %c0_i32_286 = arith.constant 0 : i32
      %252 = tpu.memref_slice %arg11[%248, %c0_i32_284, %c0_i32_285, %c0_i32_286] : memref<2x88x96x128xbf16, #tpu.memory_space<vmem>> -> memref<1x88x96x128xbf16, #tpu.memory_space<vmem>>
      %253 = tpu.memref_squeeze %252 : memref<1x88x96x128xbf16, #tpu.memory_space<vmem>> -> memref<88x96x128xbf16, #tpu.memory_space<vmem>>
      %254 = tpu.memref_slice %arg12[%248] : memref<2x!tpu.dma_semaphore, #tpu.memory_space<semaphore_mem>> -> memref<1x!tpu.dma_semaphore, #tpu.memory_space<semaphore_mem>>
      %255 = tpu.memref_squeeze %254 : memref<1x!tpu.dma_semaphore, #tpu.memory_space<semaphore_mem>> -> memref<!tpu.dma_semaphore, #tpu.memory_space<semaphore_mem>>
      tpu.enqueue_dma source(%251 : memref<88x96x128xbf16, #tpu.memory_space<any>>) target(%253 : memref<88x96x128xbf16, #tpu.memory_space<vmem>>) target_semaphore(%255 : memref<!tpu.dma_semaphore, #tpu.memory_space<semaphore_mem>>)
    } else {
    }
    %c0_i32_15 = arith.constant 0 : i32
    %c0_i32_16 = arith.constant 0 : i32
    %c0_i32_17 = arith.constant 0 : i32
    %24 = tpu.memref_slice %arg11[%9, %c0_i32_15, %c0_i32_16, %c0_i32_17] : memref<2x88x96x128xbf16, #tpu.memory_space<vmem>> -> memref<1x88x96x128xbf16, #tpu.memory_space<vmem>>
    %25 = tpu.memref_squeeze %24 : memref<1x88x96x128xbf16, #tpu.memory_space<vmem>> -> memref<88x96x128xbf16, #tpu.memory_space<vmem>>
    %c36 = arith.constant 36 : index
    %c36_18 = arith.constant 36 : index
    %c0 = arith.constant 0 : index
    %26 = vector.load %25[%c36, %c36_18, %c0] : memref<88x96x128xbf16, #tpu.memory_space<vmem>>, vector<16x16x128xbf16>
    %27 = vector.shape_cast %26 : vector<16x16x128xbf16> to vector<256x128xbf16>
    %c0_19 = arith.constant 0 : index
    %c0_20 = arith.constant 0 : index
    %c0_21 = arith.constant 0 : index
    %28 = vector.load %arg4[%c0_19, %c0_20, %c0_21] : memref<1x128x128xbf16, #tpu.memory_space<vmem>>, vector<1x128x128xbf16>
    %29 = vector.shape_cast %28 : vector<1x128x128xbf16> to vector<128x128xbf16>
    %cst = arith.constant dense<0.000000e+00> : vector<256x128xf32>
    %30 = tpu.matmul %27, %29, %cst {dimension_numbers = #tpu.dot_dimension_numbers<[1], [0], [0], [1], [0, 0, 1, 1], [], []>} : vector<256x128xbf16>, vector<128x128xbf16>, vector<256x128xf32> -> vector<256x128xf32>
    %c0_i32_22 = arith.constant 0 : i32
    %c0_i32_23 = arith.constant 0 : i32
    %c0_i32_24 = arith.constant 0 : i32
    %31 = tpu.memref_slice %arg11[%9, %c0_i32_22, %c0_i32_23, %c0_i32_24] : memref<2x88x96x128xbf16, #tpu.memory_space<vmem>> -> memref<1x88x96x128xbf16, #tpu.memory_space<vmem>>
    %32 = tpu.memref_squeeze %31 : memref<1x88x96x128xbf16, #tpu.memory_space<vmem>> -> memref<88x96x128xbf16, #tpu.memory_space<vmem>>
    %c24 = arith.constant 24 : index
    %c24_25 = arith.constant 24 : index
    %c0_26 = arith.constant 0 : index
    %33 = vector.load %32[%c24, %c24_25, %c0_26] : memref<88x96x128xbf16, #tpu.memory_space<vmem>>, vector<16x16x128xbf16>
    %34 = vector.shape_cast %33 : vector<16x16x128xbf16> to vector<256x128xbf16>
    %c0_27 = arith.constant 0 : index
    %c0_28 = arith.constant 0 : index
    %c0_29 = arith.constant 0 : index
    %35 = vector.load %arg5[%c0_27, %c0_28, %c0_29] : memref<1x1152x128xbf16, #tpu.memory_space<vmem>>, vector<1x128x128xbf16>
    %36 = vector.shape_cast %35 : vector<1x128x128xbf16> to vector<128x128xbf16>
    %cst_30 = arith.constant dense<0.000000e+00> : vector<256x128xf32>
    %37 = tpu.matmul %34, %36, %cst_30 {dimension_numbers = #tpu.dot_dimension_numbers<[1], [0], [0], [1], [0, 0, 1, 1], [], []>} : vector<256x128xbf16>, vector<128x128xbf16>, vector<256x128xf32> -> vector<256x128xf32>
    %c0_i32_31 = arith.constant 0 : i32
    %c0_i32_32 = arith.constant 0 : i32
    %c0_i32_33 = arith.constant 0 : i32
    %38 = tpu.memref_slice %arg11[%9, %c0_i32_31, %c0_i32_32, %c0_i32_33] : memref<2x88x96x128xbf16, #tpu.memory_space<vmem>> -> memref<1x88x96x128xbf16, #tpu.memory_space<vmem>>
    %39 = tpu.memref_squeeze %38 : memref<1x88x96x128xbf16, #tpu.memory_space<vmem>> -> memref<88x96x128xbf16, #tpu.memory_space<vmem>>
    %c24_34 = arith.constant 24 : index
    %c36_35 = arith.constant 36 : index
    %c0_36 = arith.constant 0 : index
    %40 = vector.load %39[%c24_34, %c36_35, %c0_36] : memref<88x96x128xbf16, #tpu.memory_space<vmem>>, vector<16x16x128xbf16>
    %41 = vector.shape_cast %40 : vector<16x16x128xbf16> to vector<256x128xbf16>
    %c0_37 = arith.constant 0 : index
    %c128 = arith.constant 128 : index
    %c0_38 = arith.constant 0 : index
    %42 = vector.load %arg5[%c0_37, %c128, %c0_38] : memref<1x1152x128xbf16, #tpu.memory_space<vmem>>, vector<1x128x128xbf16>
    %43 = vector.shape_cast %42 : vector<1x128x128xbf16> to vector<128x128xbf16>
    %cst_39 = arith.constant dense<0.000000e+00> : vector<256x128xf32>
    %44 = tpu.matmul %41, %43, %cst_39 {dimension_numbers = #tpu.dot_dimension_numbers<[1], [0], [0], [1], [0, 0, 1, 1], [], []>} : vector<256x128xbf16>, vector<128x128xbf16>, vector<256x128xf32> -> vector<256x128xf32>
    %45 = arith.addf %37, %44 : vector<256x128xf32>
    %c0_i32_40 = arith.constant 0 : i32
    %c0_i32_41 = arith.constant 0 : i32
    %c0_i32_42 = arith.constant 0 : i32
    %46 = tpu.memref_slice %arg11[%9, %c0_i32_40, %c0_i32_41, %c0_i32_42] : memref<2x88x96x128xbf16, #tpu.memory_space<vmem>> -> memref<1x88x96x128xbf16, #tpu.memory_space<vmem>>
    %47 = tpu.memref_squeeze %46 : memref<1x88x96x128xbf16, #tpu.memory_space<vmem>> -> memref<88x96x128xbf16, #tpu.memory_space<vmem>>
    %c24_43 = arith.constant 24 : index
    %c48 = arith.constant 48 : index
    %c0_44 = arith.constant 0 : index
    %48 = vector.load %47[%c24_43, %c48, %c0_44] : memref<88x96x128xbf16, #tpu.memory_space<vmem>>, vector<16x16x128xbf16>
    %49 = vector.shape_cast %48 : vector<16x16x128xbf16> to vector<256x128xbf16>
    %c0_45 = arith.constant 0 : index
    %c256 = arith.constant 256 : index
    %c0_46 = arith.constant 0 : index
    %50 = vector.load %arg5[%c0_45, %c256, %c0_46] : memref<1x1152x128xbf16, #tpu.memory_space<vmem>>, vector<1x128x128xbf16>
    %51 = vector.shape_cast %50 : vector<1x128x128xbf16> to vector<128x128xbf16>
    %cst_47 = arith.constant dense<0.000000e+00> : vector<256x128xf32>
    %52 = tpu.matmul %49, %51, %cst_47 {dimension_numbers = #tpu.dot_dimension_numbers<[1], [0], [0], [1], [0, 0, 1, 1], [], []>} : vector<256x128xbf16>, vector<128x128xbf16>, vector<256x128xf32> -> vector<256x128xf32>
    %53 = arith.addf %45, %52 : vector<256x128xf32>
    %c0_i32_48 = arith.constant 0 : i32
    %c0_i32_49 = arith.constant 0 : i32
    %c0_i32_50 = arith.constant 0 : i32
    %54 = tpu.memref_slice %arg11[%9, %c0_i32_48, %c0_i32_49, %c0_i32_50] : memref<2x88x96x128xbf16, #tpu.memory_space<vmem>> -> memref<1x88x96x128xbf16, #tpu.memory_space<vmem>>
    %55 = tpu.memref_squeeze %54 : memref<1x88x96x128xbf16, #tpu.memory_space<vmem>> -> memref<88x96x128xbf16, #tpu.memory_space<vmem>>
    %c36_51 = arith.constant 36 : index
    %c24_52 = arith.constant 24 : index
    %c0_53 = arith.constant 0 : index
    %56 = vector.load %55[%c36_51, %c24_52, %c0_53] : memref<88x96x128xbf16, #tpu.memory_space<vmem>>, vector<16x16x128xbf16>
    %57 = vector.shape_cast %56 : vector<16x16x128xbf16> to vector<256x128xbf16>
    %c0_54 = arith.constant 0 : index
    %c384 = arith.constant 384 : index
    %c0_55 = arith.constant 0 : index
    %58 = vector.load %arg5[%c0_54, %c384, %c0_55] : memref<1x1152x128xbf16, #tpu.memory_space<vmem>>, vector<1x128x128xbf16>
    %59 = vector.shape_cast %58 : vector<1x128x128xbf16> to vector<128x128xbf16>
    %cst_56 = arith.constant dense<0.000000e+00> : vector<256x128xf32>
    %60 = tpu.matmul %57, %59, %cst_56 {dimension_numbers = #tpu.dot_dimension_numbers<[1], [0], [0], [1], [0, 0, 1, 1], [], []>} : vector<256x128xbf16>, vector<128x128xbf16>, vector<256x128xf32> -> vector<256x128xf32>
    %61 = arith.addf %53, %60 : vector<256x128xf32>
    %c0_i32_57 = arith.constant 0 : i32
    %c0_i32_58 = arith.constant 0 : i32
    %c0_i32_59 = arith.constant 0 : i32
    %62 = tpu.memref_slice %arg11[%9, %c0_i32_57, %c0_i32_58, %c0_i32_59] : memref<2x88x96x128xbf16, #tpu.memory_space<vmem>> -> memref<1x88x96x128xbf16, #tpu.memory_space<vmem>>
    %63 = tpu.memref_squeeze %62 : memref<1x88x96x128xbf16, #tpu.memory_space<vmem>> -> memref<88x96x128xbf16, #tpu.memory_space<vmem>>
    %c36_60 = arith.constant 36 : index
    %c36_61 = arith.constant 36 : index
    %c0_62 = arith.constant 0 : index
    %64 = vector.load %63[%c36_60, %c36_61, %c0_62] : memref<88x96x128xbf16, #tpu.memory_space<vmem>>, vector<16x16x128xbf16>
    %65 = vector.shape_cast %64 : vector<16x16x128xbf16> to vector<256x128xbf16>
    %c0_63 = arith.constant 0 : index
    %c512 = arith.constant 512 : index
    %c0_64 = arith.constant 0 : index
    %66 = vector.load %arg5[%c0_63, %c512, %c0_64] : memref<1x1152x128xbf16, #tpu.memory_space<vmem>>, vector<1x128x128xbf16>
    %67 = vector.shape_cast %66 : vector<1x128x128xbf16> to vector<128x128xbf16>
    %cst_65 = arith.constant dense<0.000000e+00> : vector<256x128xf32>
    %68 = tpu.matmul %65, %67, %cst_65 {dimension_numbers = #tpu.dot_dimension_numbers<[1], [0], [0], [1], [0, 0, 1, 1], [], []>} : vector<256x128xbf16>, vector<128x128xbf16>, vector<256x128xf32> -> vector<256x128xf32>
    %69 = arith.addf %61, %68 : vector<256x128xf32>
    %c0_i32_66 = arith.constant 0 : i32
    %c0_i32_67 = arith.constant 0 : i32
    %c0_i32_68 = arith.constant 0 : i32
    %70 = tpu.memref_slice %arg11[%9, %c0_i32_66, %c0_i32_67, %c0_i32_68] : memref<2x88x96x128xbf16, #tpu.memory_space<vmem>> -> memref<1x88x96x128xbf16, #tpu.memory_space<vmem>>
    %71 = tpu.memref_squeeze %70 : memref<1x88x96x128xbf16, #tpu.memory_space<vmem>> -> memref<88x96x128xbf16, #tpu.memory_space<vmem>>
    %c36_69 = arith.constant 36 : index
    %c48_70 = arith.constant 48 : index
    %c0_71 = arith.constant 0 : index
    %72 = vector.load %71[%c36_69, %c48_70, %c0_71] : memref<88x96x128xbf16, #tpu.memory_space<vmem>>, vector<16x16x128xbf16>
    %73 = vector.shape_cast %72 : vector<16x16x128xbf16> to vector<256x128xbf16>
    %c0_72 = arith.constant 0 : index
    %c640 = arith.constant 640 : index
    %c0_73 = arith.constant 0 : index
    %74 = vector.load %arg5[%c0_72, %c640, %c0_73] : memref<1x1152x128xbf16, #tpu.memory_space<vmem>>, vector<1x128x128xbf16>
    %75 = vector.shape_cast %74 : vector<1x128x128xbf16> to vector<128x128xbf16>
    %cst_74 = arith.constant dense<0.000000e+00> : vector<256x128xf32>
    %76 = tpu.matmul %73, %75, %cst_74 {dimension_numbers = #tpu.dot_dimension_numbers<[1], [0], [0], [1], [0, 0, 1, 1], [], []>} : vector<256x128xbf16>, vector<128x128xbf16>, vector<256x128xf32> -> vector<256x128xf32>
    %77 = arith.addf %69, %76 : vector<256x128xf32>
    %c0_i32_75 = arith.constant 0 : i32
    %c0_i32_76 = arith.constant 0 : i32
    %c0_i32_77 = arith.constant 0 : i32
    %78 = tpu.memref_slice %arg11[%9, %c0_i32_75, %c0_i32_76, %c0_i32_77] : memref<2x88x96x128xbf16, #tpu.memory_space<vmem>> -> memref<1x88x96x128xbf16, #tpu.memory_space<vmem>>
    %79 = tpu.memref_squeeze %78 : memref<1x88x96x128xbf16, #tpu.memory_space<vmem>> -> memref<88x96x128xbf16, #tpu.memory_space<vmem>>
    %c48_78 = arith.constant 48 : index
    %c24_79 = arith.constant 24 : index
    %c0_80 = arith.constant 0 : index
    %80 = vector.load %79[%c48_78, %c24_79, %c0_80] : memref<88x96x128xbf16, #tpu.memory_space<vmem>>, vector<16x16x128xbf16>
    %81 = vector.shape_cast %80 : vector<16x16x128xbf16> to vector<256x128xbf16>
    %c0_81 = arith.constant 0 : index
    %c768 = arith.constant 768 : index
    %c0_82 = arith.constant 0 : index
    %82 = vector.load %arg5[%c0_81, %c768, %c0_82] : memref<1x1152x128xbf16, #tpu.memory_space<vmem>>, vector<1x128x128xbf16>
    %83 = vector.shape_cast %82 : vector<1x128x128xbf16> to vector<128x128xbf16>
    %cst_83 = arith.constant dense<0.000000e+00> : vector<256x128xf32>
    %84 = tpu.matmul %81, %83, %cst_83 {dimension_numbers = #tpu.dot_dimension_numbers<[1], [0], [0], [1], [0, 0, 1, 1], [], []>} : vector<256x128xbf16>, vector<128x128xbf16>, vector<256x128xf32> -> vector<256x128xf32>
    %85 = arith.addf %77, %84 : vector<256x128xf32>
    %c0_i32_84 = arith.constant 0 : i32
    %c0_i32_85 = arith.constant 0 : i32
    %c0_i32_86 = arith.constant 0 : i32
    %86 = tpu.memref_slice %arg11[%9, %c0_i32_84, %c0_i32_85, %c0_i32_86] : memref<2x88x96x128xbf16, #tpu.memory_space<vmem>> -> memref<1x88x96x128xbf16, #tpu.memory_space<vmem>>
    %87 = tpu.memref_squeeze %86 : memref<1x88x96x128xbf16, #tpu.memory_space<vmem>> -> memref<88x96x128xbf16, #tpu.memory_space<vmem>>
    %c48_87 = arith.constant 48 : index
    %c36_88 = arith.constant 36 : index
    %c0_89 = arith.constant 0 : index
    %88 = vector.load %87[%c48_87, %c36_88, %c0_89] : memref<88x96x128xbf16, #tpu.memory_space<vmem>>, vector<16x16x128xbf16>
    %89 = vector.shape_cast %88 : vector<16x16x128xbf16> to vector<256x128xbf16>
    %c0_90 = arith.constant 0 : index
    %c896 = arith.constant 896 : index
    %c0_91 = arith.constant 0 : index
    %90 = vector.load %arg5[%c0_90, %c896, %c0_91] : memref<1x1152x128xbf16, #tpu.memory_space<vmem>>, vector<1x128x128xbf16>
    %91 = vector.shape_cast %90 : vector<1x128x128xbf16> to vector<128x128xbf16>
    %cst_92 = arith.constant dense<0.000000e+00> : vector<256x128xf32>
    %92 = tpu.matmul %89, %91, %cst_92 {dimension_numbers = #tpu.dot_dimension_numbers<[1], [0], [0], [1], [0, 0, 1, 1], [], []>} : vector<256x128xbf16>, vector<128x128xbf16>, vector<256x128xf32> -> vector<256x128xf32>
    %93 = arith.addf %85, %92 : vector<256x128xf32>
    %c0_i32_93 = arith.constant 0 : i32
    %c0_i32_94 = arith.constant 0 : i32
    %c0_i32_95 = arith.constant 0 : i32
    %94 = tpu.memref_slice %arg11[%9, %c0_i32_93, %c0_i32_94, %c0_i32_95] : memref<2x88x96x128xbf16, #tpu.memory_space<vmem>> -> memref<1x88x96x128xbf16, #tpu.memory_space<vmem>>
    %95 = tpu.memref_squeeze %94 : memref<1x88x96x128xbf16, #tpu.memory_space<vmem>> -> memref<88x96x128xbf16, #tpu.memory_space<vmem>>
    %c48_96 = arith.constant 48 : index
    %c48_97 = arith.constant 48 : index
    %c0_98 = arith.constant 0 : index
    %96 = vector.load %95[%c48_96, %c48_97, %c0_98] : memref<88x96x128xbf16, #tpu.memory_space<vmem>>, vector<16x16x128xbf16>
    %97 = vector.shape_cast %96 : vector<16x16x128xbf16> to vector<256x128xbf16>
    %c0_99 = arith.constant 0 : index
    %c1024 = arith.constant 1024 : index
    %c0_100 = arith.constant 0 : index
    %98 = vector.load %arg5[%c0_99, %c1024, %c0_100] : memref<1x1152x128xbf16, #tpu.memory_space<vmem>>, vector<1x128x128xbf16>
    %99 = vector.shape_cast %98 : vector<1x128x128xbf16> to vector<128x128xbf16>
    %cst_101 = arith.constant dense<0.000000e+00> : vector<256x128xf32>
    %100 = tpu.matmul %97, %99, %cst_101 {dimension_numbers = #tpu.dot_dimension_numbers<[1], [0], [0], [1], [0, 0, 1, 1], [], []>} : vector<256x128xbf16>, vector<128x128xbf16>, vector<256x128xf32> -> vector<256x128xf32>
    %101 = arith.addf %93, %100 : vector<256x128xf32>
    %c0_i32_102 = arith.constant 0 : i32
    %c0_i32_103 = arith.constant 0 : i32
    %c0_i32_104 = arith.constant 0 : i32
    %102 = tpu.memref_slice %arg11[%9, %c0_i32_102, %c0_i32_103, %c0_i32_104] : memref<2x88x96x128xbf16, #tpu.memory_space<vmem>> -> memref<1x88x96x128xbf16, #tpu.memory_space<vmem>>
    %103 = tpu.memref_squeeze %102 : memref<1x88x96x128xbf16, #tpu.memory_space<vmem>> -> memref<88x96x128xbf16, #tpu.memory_space<vmem>>
    %c12 = arith.constant 12 : index
    %c12_105 = arith.constant 12 : index
    %c0_106 = arith.constant 0 : index
    %104 = vector.load %103[%c12, %c12_105, %c0_106] : memref<88x96x128xbf16, #tpu.memory_space<vmem>>, vector<16x16x128xbf16>
    %105 = vector.shape_cast %104 : vector<16x16x128xbf16> to vector<256x128xbf16>
    %c0_107 = arith.constant 0 : index
    %c0_108 = arith.constant 0 : index
    %c0_109 = arith.constant 0 : index
    %106 = vector.load %arg6[%c0_107, %c0_108, %c0_109] : memref<1x1152x128xbf16, #tpu.memory_space<vmem>>, vector<1x128x128xbf16>
    %107 = vector.shape_cast %106 : vector<1x128x128xbf16> to vector<128x128xbf16>
    %cst_110 = arith.constant dense<0.000000e+00> : vector<256x128xf32>
    %108 = tpu.matmul %105, %107, %cst_110 {dimension_numbers = #tpu.dot_dimension_numbers<[1], [0], [0], [1], [0, 0, 1, 1], [], []>} : vector<256x128xbf16>, vector<128x128xbf16>, vector<256x128xf32> -> vector<256x128xf32>
    %c0_i32_111 = arith.constant 0 : i32
    %c0_i32_112 = arith.constant 0 : i32
    %c0_i32_113 = arith.constant 0 : i32
    %109 = tpu.memref_slice %arg11[%9, %c0_i32_111, %c0_i32_112, %c0_i32_113] : memref<2x88x96x128xbf16, #tpu.memory_space<vmem>> -> memref<1x88x96x128xbf16, #tpu.memory_space<vmem>>
    %110 = tpu.memref_squeeze %109 : memref<1x88x96x128xbf16, #tpu.memory_space<vmem>> -> memref<88x96x128xbf16, #tpu.memory_space<vmem>>
    %c12_114 = arith.constant 12 : index
    %c36_115 = arith.constant 36 : index
    %c0_116 = arith.constant 0 : index
    %111 = vector.load %110[%c12_114, %c36_115, %c0_116] : memref<88x96x128xbf16, #tpu.memory_space<vmem>>, vector<16x16x128xbf16>
    %112 = vector.shape_cast %111 : vector<16x16x128xbf16> to vector<256x128xbf16>
    %c0_117 = arith.constant 0 : index
    %c128_118 = arith.constant 128 : index
    %c0_119 = arith.constant 0 : index
    %113 = vector.load %arg6[%c0_117, %c128_118, %c0_119] : memref<1x1152x128xbf16, #tpu.memory_space<vmem>>, vector<1x128x128xbf16>
    %114 = vector.shape_cast %113 : vector<1x128x128xbf16> to vector<128x128xbf16>
    %cst_120 = arith.constant dense<0.000000e+00> : vector<256x128xf32>
    %115 = tpu.matmul %112, %114, %cst_120 {dimension_numbers = #tpu.dot_dimension_numbers<[1], [0], [0], [1], [0, 0, 1, 1], [], []>} : vector<256x128xbf16>, vector<128x128xbf16>, vector<256x128xf32> -> vector<256x128xf32>
    %116 = arith.addf %108, %115 : vector<256x128xf32>
    %c0_i32_121 = arith.constant 0 : i32
    %c0_i32_122 = arith.constant 0 : i32
    %c0_i32_123 = arith.constant 0 : i32
    %117 = tpu.memref_slice %arg11[%9, %c0_i32_121, %c0_i32_122, %c0_i32_123] : memref<2x88x96x128xbf16, #tpu.memory_space<vmem>> -> memref<1x88x96x128xbf16, #tpu.memory_space<vmem>>
    %118 = tpu.memref_squeeze %117 : memref<1x88x96x128xbf16, #tpu.memory_space<vmem>> -> memref<88x96x128xbf16, #tpu.memory_space<vmem>>
    %c12_124 = arith.constant 12 : index
    %c60 = arith.constant 60 : index
    %c0_125 = arith.constant 0 : index
    %119 = vector.load %118[%c12_124, %c60, %c0_125] : memref<88x96x128xbf16, #tpu.memory_space<vmem>>, vector<16x16x128xbf16>
    %120 = vector.shape_cast %119 : vector<16x16x128xbf16> to vector<256x128xbf16>
    %c0_126 = arith.constant 0 : index
    %c256_127 = arith.constant 256 : index
    %c0_128 = arith.constant 0 : index
    %121 = vector.load %arg6[%c0_126, %c256_127, %c0_128] : memref<1x1152x128xbf16, #tpu.memory_space<vmem>>, vector<1x128x128xbf16>
    %122 = vector.shape_cast %121 : vector<1x128x128xbf16> to vector<128x128xbf16>
    %cst_129 = arith.constant dense<0.000000e+00> : vector<256x128xf32>
    %123 = tpu.matmul %120, %122, %cst_129 {dimension_numbers = #tpu.dot_dimension_numbers<[1], [0], [0], [1], [0, 0, 1, 1], [], []>} : vector<256x128xbf16>, vector<128x128xbf16>, vector<256x128xf32> -> vector<256x128xf32>
    %124 = arith.addf %116, %123 : vector<256x128xf32>
    %c0_i32_130 = arith.constant 0 : i32
    %c0_i32_131 = arith.constant 0 : i32
    %c0_i32_132 = arith.constant 0 : i32
    %125 = tpu.memref_slice %arg11[%9, %c0_i32_130, %c0_i32_131, %c0_i32_132] : memref<2x88x96x128xbf16, #tpu.memory_space<vmem>> -> memref<1x88x96x128xbf16, #tpu.memory_space<vmem>>
    %126 = tpu.memref_squeeze %125 : memref<1x88x96x128xbf16, #tpu.memory_space<vmem>> -> memref<88x96x128xbf16, #tpu.memory_space<vmem>>
    %c36_133 = arith.constant 36 : index
    %c12_134 = arith.constant 12 : index
    %c0_135 = arith.constant 0 : index
    %127 = vector.load %126[%c36_133, %c12_134, %c0_135] : memref<88x96x128xbf16, #tpu.memory_space<vmem>>, vector<16x16x128xbf16>
    %128 = vector.shape_cast %127 : vector<16x16x128xbf16> to vector<256x128xbf16>
    %c0_136 = arith.constant 0 : index
    %c384_137 = arith.constant 384 : index
    %c0_138 = arith.constant 0 : index
    %129 = vector.load %arg6[%c0_136, %c384_137, %c0_138] : memref<1x1152x128xbf16, #tpu.memory_space<vmem>>, vector<1x128x128xbf16>
    %130 = vector.shape_cast %129 : vector<1x128x128xbf16> to vector<128x128xbf16>
    %cst_139 = arith.constant dense<0.000000e+00> : vector<256x128xf32>
    %131 = tpu.matmul %128, %130, %cst_139 {dimension_numbers = #tpu.dot_dimension_numbers<[1], [0], [0], [1], [0, 0, 1, 1], [], []>} : vector<256x128xbf16>, vector<128x128xbf16>, vector<256x128xf32> -> vector<256x128xf32>
    %132 = arith.addf %124, %131 : vector<256x128xf32>
    %c0_i32_140 = arith.constant 0 : i32
    %c0_i32_141 = arith.constant 0 : i32
    %c0_i32_142 = arith.constant 0 : i32
    %133 = tpu.memref_slice %arg11[%9, %c0_i32_140, %c0_i32_141, %c0_i32_142] : memref<2x88x96x128xbf16, #tpu.memory_space<vmem>> -> memref<1x88x96x128xbf16, #tpu.memory_space<vmem>>
    %134 = tpu.memref_squeeze %133 : memref<1x88x96x128xbf16, #tpu.memory_space<vmem>> -> memref<88x96x128xbf16, #tpu.memory_space<vmem>>
    %c36_143 = arith.constant 36 : index
    %c36_144 = arith.constant 36 : index
    %c0_145 = arith.constant 0 : index
    %135 = vector.load %134[%c36_143, %c36_144, %c0_145] : memref<88x96x128xbf16, #tpu.memory_space<vmem>>, vector<16x16x128xbf16>
    %136 = vector.shape_cast %135 : vector<16x16x128xbf16> to vector<256x128xbf16>
    %c0_146 = arith.constant 0 : index
    %c512_147 = arith.constant 512 : index
    %c0_148 = arith.constant 0 : index
    %137 = vector.load %arg6[%c0_146, %c512_147, %c0_148] : memref<1x1152x128xbf16, #tpu.memory_space<vmem>>, vector<1x128x128xbf16>
    %138 = vector.shape_cast %137 : vector<1x128x128xbf16> to vector<128x128xbf16>
    %cst_149 = arith.constant dense<0.000000e+00> : vector<256x128xf32>
    %139 = tpu.matmul %136, %138, %cst_149 {dimension_numbers = #tpu.dot_dimension_numbers<[1], [0], [0], [1], [0, 0, 1, 1], [], []>} : vector<256x128xbf16>, vector<128x128xbf16>, vector<256x128xf32> -> vector<256x128xf32>
    %140 = arith.addf %132, %139 : vector<256x128xf32>
    %c0_i32_150 = arith.constant 0 : i32
    %c0_i32_151 = arith.constant 0 : i32
    %c0_i32_152 = arith.constant 0 : i32
    %141 = tpu.memref_slice %arg11[%9, %c0_i32_150, %c0_i32_151, %c0_i32_152] : memref<2x88x96x128xbf16, #tpu.memory_space<vmem>> -> memref<1x88x96x128xbf16, #tpu.memory_space<vmem>>
    %142 = tpu.memref_squeeze %141 : memref<1x88x96x128xbf16, #tpu.memory_space<vmem>> -> memref<88x96x128xbf16, #tpu.memory_space<vmem>>
    %c36_153 = arith.constant 36 : index
    %c60_154 = arith.constant 60 : index
    %c0_155 = arith.constant 0 : index
    %143 = vector.load %142[%c36_153, %c60_154, %c0_155] : memref<88x96x128xbf16, #tpu.memory_space<vmem>>, vector<16x16x128xbf16>
    %144 = vector.shape_cast %143 : vector<16x16x128xbf16> to vector<256x128xbf16>
    %c0_156 = arith.constant 0 : index
    %c640_157 = arith.constant 640 : index
    %c0_158 = arith.constant 0 : index
    %145 = vector.load %arg6[%c0_156, %c640_157, %c0_158] : memref<1x1152x128xbf16, #tpu.memory_space<vmem>>, vector<1x128x128xbf16>
    %146 = vector.shape_cast %145 : vector<1x128x128xbf16> to vector<128x128xbf16>
    %cst_159 = arith.constant dense<0.000000e+00> : vector<256x128xf32>
    %147 = tpu.matmul %144, %146, %cst_159 {dimension_numbers = #tpu.dot_dimension_numbers<[1], [0], [0], [1], [0, 0, 1, 1], [], []>} : vector<256x128xbf16>, vector<128x128xbf16>, vector<256x128xf32> -> vector<256x128xf32>
    %148 = arith.addf %140, %147 : vector<256x128xf32>
    %c0_i32_160 = arith.constant 0 : i32
    %c0_i32_161 = arith.constant 0 : i32
    %c0_i32_162 = arith.constant 0 : i32
    %149 = tpu.memref_slice %arg11[%9, %c0_i32_160, %c0_i32_161, %c0_i32_162] : memref<2x88x96x128xbf16, #tpu.memory_space<vmem>> -> memref<1x88x96x128xbf16, #tpu.memory_space<vmem>>
    %150 = tpu.memref_squeeze %149 : memref<1x88x96x128xbf16, #tpu.memory_space<vmem>> -> memref<88x96x128xbf16, #tpu.memory_space<vmem>>
    %c60_163 = arith.constant 60 : index
    %c12_164 = arith.constant 12 : index
    %c0_165 = arith.constant 0 : index
    %151 = vector.load %150[%c60_163, %c12_164, %c0_165] : memref<88x96x128xbf16, #tpu.memory_space<vmem>>, vector<16x16x128xbf16>
    %152 = vector.shape_cast %151 : vector<16x16x128xbf16> to vector<256x128xbf16>
    %c0_166 = arith.constant 0 : index
    %c768_167 = arith.constant 768 : index
    %c0_168 = arith.constant 0 : index
    %153 = vector.load %arg6[%c0_166, %c768_167, %c0_168] : memref<1x1152x128xbf16, #tpu.memory_space<vmem>>, vector<1x128x128xbf16>
    %154 = vector.shape_cast %153 : vector<1x128x128xbf16> to vector<128x128xbf16>
    %cst_169 = arith.constant dense<0.000000e+00> : vector<256x128xf32>
    %155 = tpu.matmul %152, %154, %cst_169 {dimension_numbers = #tpu.dot_dimension_numbers<[1], [0], [0], [1], [0, 0, 1, 1], [], []>} : vector<256x128xbf16>, vector<128x128xbf16>, vector<256x128xf32> -> vector<256x128xf32>
    %156 = arith.addf %148, %155 : vector<256x128xf32>
    %c0_i32_170 = arith.constant 0 : i32
    %c0_i32_171 = arith.constant 0 : i32
    %c0_i32_172 = arith.constant 0 : i32
    %157 = tpu.memref_slice %arg11[%9, %c0_i32_170, %c0_i32_171, %c0_i32_172] : memref<2x88x96x128xbf16, #tpu.memory_space<vmem>> -> memref<1x88x96x128xbf16, #tpu.memory_space<vmem>>
    %158 = tpu.memref_squeeze %157 : memref<1x88x96x128xbf16, #tpu.memory_space<vmem>> -> memref<88x96x128xbf16, #tpu.memory_space<vmem>>
    %c60_173 = arith.constant 60 : index
    %c36_174 = arith.constant 36 : index
    %c0_175 = arith.constant 0 : index
    %159 = vector.load %158[%c60_173, %c36_174, %c0_175] : memref<88x96x128xbf16, #tpu.memory_space<vmem>>, vector<16x16x128xbf16>
    %160 = vector.shape_cast %159 : vector<16x16x128xbf16> to vector<256x128xbf16>
    %c0_176 = arith.constant 0 : index
    %c896_177 = arith.constant 896 : index
    %c0_178 = arith.constant 0 : index
    %161 = vector.load %arg6[%c0_176, %c896_177, %c0_178] : memref<1x1152x128xbf16, #tpu.memory_space<vmem>>, vector<1x128x128xbf16>
    %162 = vector.shape_cast %161 : vector<1x128x128xbf16> to vector<128x128xbf16>
    %cst_179 = arith.constant dense<0.000000e+00> : vector<256x128xf32>
    %163 = tpu.matmul %160, %162, %cst_179 {dimension_numbers = #tpu.dot_dimension_numbers<[1], [0], [0], [1], [0, 0, 1, 1], [], []>} : vector<256x128xbf16>, vector<128x128xbf16>, vector<256x128xf32> -> vector<256x128xf32>
    %164 = arith.addf %156, %163 : vector<256x128xf32>
    %c0_i32_180 = arith.constant 0 : i32
    %c0_i32_181 = arith.constant 0 : i32
    %c0_i32_182 = arith.constant 0 : i32
    %165 = tpu.memref_slice %arg11[%9, %c0_i32_180, %c0_i32_181, %c0_i32_182] : memref<2x88x96x128xbf16, #tpu.memory_space<vmem>> -> memref<1x88x96x128xbf16, #tpu.memory_space<vmem>>
    %166 = tpu.memref_squeeze %165 : memref<1x88x96x128xbf16, #tpu.memory_space<vmem>> -> memref<88x96x128xbf16, #tpu.memory_space<vmem>>
    %c60_183 = arith.constant 60 : index
    %c60_184 = arith.constant 60 : index
    %c0_185 = arith.constant 0 : index
    %167 = vector.load %166[%c60_183, %c60_184, %c0_185] : memref<88x96x128xbf16, #tpu.memory_space<vmem>>, vector<16x16x128xbf16>
    %168 = vector.shape_cast %167 : vector<16x16x128xbf16> to vector<256x128xbf16>
    %c0_186 = arith.constant 0 : index
    %c1024_187 = arith.constant 1024 : index
    %c0_188 = arith.constant 0 : index
    %169 = vector.load %arg6[%c0_186, %c1024_187, %c0_188] : memref<1x1152x128xbf16, #tpu.memory_space<vmem>>, vector<1x128x128xbf16>
    %170 = vector.shape_cast %169 : vector<1x128x128xbf16> to vector<128x128xbf16>
    %cst_189 = arith.constant dense<0.000000e+00> : vector<256x128xf32>
    %171 = tpu.matmul %168, %170, %cst_189 {dimension_numbers = #tpu.dot_dimension_numbers<[1], [0], [0], [1], [0, 0, 1, 1], [], []>} : vector<256x128xbf16>, vector<128x128xbf16>, vector<256x128xf32> -> vector<256x128xf32>
    %172 = arith.addf %164, %171 : vector<256x128xf32>
    %c0_i32_190 = arith.constant 0 : i32
    %c0_i32_191 = arith.constant 0 : i32
    %c0_i32_192 = arith.constant 0 : i32
    %173 = tpu.memref_slice %arg11[%9, %c0_i32_190, %c0_i32_191, %c0_i32_192] : memref<2x88x96x128xbf16, #tpu.memory_space<vmem>> -> memref<1x88x96x128xbf16, #tpu.memory_space<vmem>>
    %174 = tpu.memref_squeeze %173 : memref<1x88x96x128xbf16, #tpu.memory_space<vmem>> -> memref<88x96x128xbf16, #tpu.memory_space<vmem>>
    %c0_193 = arith.constant 0 : index
    %c0_194 = arith.constant 0 : index
    %c0_195 = arith.constant 0 : index
    %175 = vector.load %174[%c0_193, %c0_194, %c0_195] : memref<88x96x128xbf16, #tpu.memory_space<vmem>>, vector<16x16x128xbf16>
    %176 = vector.shape_cast %175 : vector<16x16x128xbf16> to vector<256x128xbf16>
    %c0_196 = arith.constant 0 : index
    %c0_197 = arith.constant 0 : index
    %c0_198 = arith.constant 0 : index
    %177 = vector.load %arg7[%c0_196, %c0_197, %c0_198] : memref<1x1152x128xbf16, #tpu.memory_space<vmem>>, vector<1x128x128xbf16>
    %178 = vector.shape_cast %177 : vector<1x128x128xbf16> to vector<128x128xbf16>
    %cst_199 = arith.constant dense<0.000000e+00> : vector<256x128xf32>
    %179 = tpu.matmul %176, %178, %cst_199 {dimension_numbers = #tpu.dot_dimension_numbers<[1], [0], [0], [1], [0, 0, 1, 1], [], []>} : vector<256x128xbf16>, vector<128x128xbf16>, vector<256x128xf32> -> vector<256x128xf32>
    %c0_i32_200 = arith.constant 0 : i32
    %c0_i32_201 = arith.constant 0 : i32
    %c0_i32_202 = arith.constant 0 : i32
    %180 = tpu.memref_slice %arg11[%9, %c0_i32_200, %c0_i32_201, %c0_i32_202] : memref<2x88x96x128xbf16, #tpu.memory_space<vmem>> -> memref<1x88x96x128xbf16, #tpu.memory_space<vmem>>
    %181 = tpu.memref_squeeze %180 : memref<1x88x96x128xbf16, #tpu.memory_space<vmem>> -> memref<88x96x128xbf16, #tpu.memory_space<vmem>>
    %c0_203 = arith.constant 0 : index
    %c36_204 = arith.constant 36 : index
    %c0_205 = arith.constant 0 : index
    %182 = vector.load %181[%c0_203, %c36_204, %c0_205] : memref<88x96x128xbf16, #tpu.memory_space<vmem>>, vector<16x16x128xbf16>
    %183 = vector.shape_cast %182 : vector<16x16x128xbf16> to vector<256x128xbf16>
    %c0_206 = arith.constant 0 : index
    %c128_207 = arith.constant 128 : index
    %c0_208 = arith.constant 0 : index
    %184 = vector.load %arg7[%c0_206, %c128_207, %c0_208] : memref<1x1152x128xbf16, #tpu.memory_space<vmem>>, vector<1x128x128xbf16>
    %185 = vector.shape_cast %184 : vector<1x128x128xbf16> to vector<128x128xbf16>
    %cst_209 = arith.constant dense<0.000000e+00> : vector<256x128xf32>
    %186 = tpu.matmul %183, %185, %cst_209 {dimension_numbers = #tpu.dot_dimension_numbers<[1], [0], [0], [1], [0, 0, 1, 1], [], []>} : vector<256x128xbf16>, vector<128x128xbf16>, vector<256x128xf32> -> vector<256x128xf32>
    %187 = arith.addf %179, %186 : vector<256x128xf32>
    %c0_i32_210 = arith.constant 0 : i32
    %c0_i32_211 = arith.constant 0 : i32
    %c0_i32_212 = arith.constant 0 : i32
    %188 = tpu.memref_slice %arg11[%9, %c0_i32_210, %c0_i32_211, %c0_i32_212] : memref<2x88x96x128xbf16, #tpu.memory_space<vmem>> -> memref<1x88x96x128xbf16, #tpu.memory_space<vmem>>
    %189 = tpu.memref_squeeze %188 : memref<1x88x96x128xbf16, #tpu.memory_space<vmem>> -> memref<88x96x128xbf16, #tpu.memory_space<vmem>>
    %c0_213 = arith.constant 0 : index
    %c72 = arith.constant 72 : index
    %c0_214 = arith.constant 0 : index
    %190 = vector.load %189[%c0_213, %c72, %c0_214] : memref<88x96x128xbf16, #tpu.memory_space<vmem>>, vector<16x16x128xbf16>
    %191 = vector.shape_cast %190 : vector<16x16x128xbf16> to vector<256x128xbf16>
    %c0_215 = arith.constant 0 : index
    %c256_216 = arith.constant 256 : index
    %c0_217 = arith.constant 0 : index
    %192 = vector.load %arg7[%c0_215, %c256_216, %c0_217] : memref<1x1152x128xbf16, #tpu.memory_space<vmem>>, vector<1x128x128xbf16>
    %193 = vector.shape_cast %192 : vector<1x128x128xbf16> to vector<128x128xbf16>
    %cst_218 = arith.constant dense<0.000000e+00> : vector<256x128xf32>
    %194 = tpu.matmul %191, %193, %cst_218 {dimension_numbers = #tpu.dot_dimension_numbers<[1], [0], [0], [1], [0, 0, 1, 1], [], []>} : vector<256x128xbf16>, vector<128x128xbf16>, vector<256x128xf32> -> vector<256x128xf32>
    %195 = arith.addf %187, %194 : vector<256x128xf32>
    %c0_i32_219 = arith.constant 0 : i32
    %c0_i32_220 = arith.constant 0 : i32
    %c0_i32_221 = arith.constant 0 : i32
    %196 = tpu.memref_slice %arg11[%9, %c0_i32_219, %c0_i32_220, %c0_i32_221] : memref<2x88x96x128xbf16, #tpu.memory_space<vmem>> -> memref<1x88x96x128xbf16, #tpu.memory_space<vmem>>
    %197 = tpu.memref_squeeze %196 : memref<1x88x96x128xbf16, #tpu.memory_space<vmem>> -> memref<88x96x128xbf16, #tpu.memory_space<vmem>>
    %c36_222 = arith.constant 36 : index
    %c0_223 = arith.constant 0 : index
    %c0_224 = arith.constant 0 : index
    %198 = vector.load %197[%c36_222, %c0_223, %c0_224] : memref<88x96x128xbf16, #tpu.memory_space<vmem>>, vector<16x16x128xbf16>
    %199 = vector.shape_cast %198 : vector<16x16x128xbf16> to vector<256x128xbf16>
    %c0_225 = arith.constant 0 : index
    %c384_226 = arith.constant 384 : index
    %c0_227 = arith.constant 0 : index
    %200 = vector.load %arg7[%c0_225, %c384_226, %c0_227] : memref<1x1152x128xbf16, #tpu.memory_space<vmem>>, vector<1x128x128xbf16>
    %201 = vector.shape_cast %200 : vector<1x128x128xbf16> to vector<128x128xbf16>
    %cst_228 = arith.constant dense<0.000000e+00> : vector<256x128xf32>
    %202 = tpu.matmul %199, %201, %cst_228 {dimension_numbers = #tpu.dot_dimension_numbers<[1], [0], [0], [1], [0, 0, 1, 1], [], []>} : vector<256x128xbf16>, vector<128x128xbf16>, vector<256x128xf32> -> vector<256x128xf32>
    %203 = arith.addf %195, %202 : vector<256x128xf32>
    %c0_i32_229 = arith.constant 0 : i32
    %c0_i32_230 = arith.constant 0 : i32
    %c0_i32_231 = arith.constant 0 : i32
    %204 = tpu.memref_slice %arg11[%9, %c0_i32_229, %c0_i32_230, %c0_i32_231] : memref<2x88x96x128xbf16, #tpu.memory_space<vmem>> -> memref<1x88x96x128xbf16, #tpu.memory_space<vmem>>
    %205 = tpu.memref_squeeze %204 : memref<1x88x96x128xbf16, #tpu.memory_space<vmem>> -> memref<88x96x128xbf16, #tpu.memory_space<vmem>>
    %c36_232 = arith.constant 36 : index
    %c36_233 = arith.constant 36 : index
    %c0_234 = arith.constant 0 : index
    %206 = vector.load %205[%c36_232, %c36_233, %c0_234] : memref<88x96x128xbf16, #tpu.memory_space<vmem>>, vector<16x16x128xbf16>
    %207 = vector.shape_cast %206 : vector<16x16x128xbf16> to vector<256x128xbf16>
    %c0_235 = arith.constant 0 : index
    %c512_236 = arith.constant 512 : index
    %c0_237 = arith.constant 0 : index
    %208 = vector.load %arg7[%c0_235, %c512_236, %c0_237] : memref<1x1152x128xbf16, #tpu.memory_space<vmem>>, vector<1x128x128xbf16>
    %209 = vector.shape_cast %208 : vector<1x128x128xbf16> to vector<128x128xbf16>
    %cst_238 = arith.constant dense<0.000000e+00> : vector<256x128xf32>
    %210 = tpu.matmul %207, %209, %cst_238 {dimension_numbers = #tpu.dot_dimension_numbers<[1], [0], [0], [1], [0, 0, 1, 1], [], []>} : vector<256x128xbf16>, vector<128x128xbf16>, vector<256x128xf32> -> vector<256x128xf32>
    %211 = arith.addf %203, %210 : vector<256x128xf32>
    %c0_i32_239 = arith.constant 0 : i32
    %c0_i32_240 = arith.constant 0 : i32
    %c0_i32_241 = arith.constant 0 : i32
    %212 = tpu.memref_slice %arg11[%9, %c0_i32_239, %c0_i32_240, %c0_i32_241] : memref<2x88x96x128xbf16, #tpu.memory_space<vmem>> -> memref<1x88x96x128xbf16, #tpu.memory_space<vmem>>
    %213 = tpu.memref_squeeze %212 : memref<1x88x96x128xbf16, #tpu.memory_space<vmem>> -> memref<88x96x128xbf16, #tpu.memory_space<vmem>>
    %c36_242 = arith.constant 36 : index
    %c72_243 = arith.constant 72 : index
    %c0_244 = arith.constant 0 : index
    %214 = vector.load %213[%c36_242, %c72_243, %c0_244] : memref<88x96x128xbf16, #tpu.memory_space<vmem>>, vector<16x16x128xbf16>
    %215 = vector.shape_cast %214 : vector<16x16x128xbf16> to vector<256x128xbf16>
    %c0_245 = arith.constant 0 : index
    %c640_246 = arith.constant 640 : index
    %c0_247 = arith.constant 0 : index
    %216 = vector.load %arg7[%c0_245, %c640_246, %c0_247] : memref<1x1152x128xbf16, #tpu.memory_space<vmem>>, vector<1x128x128xbf16>
    %217 = vector.shape_cast %216 : vector<1x128x128xbf16> to vector<128x128xbf16>
    %cst_248 = arith.constant dense<0.000000e+00> : vector<256x128xf32>
    %218 = tpu.matmul %215, %217, %cst_248 {dimension_numbers = #tpu.dot_dimension_numbers<[1], [0], [0], [1], [0, 0, 1, 1], [], []>} : vector<256x128xbf16>, vector<128x128xbf16>, vector<256x128xf32> -> vector<256x128xf32>
    %219 = arith.addf %211, %218 : vector<256x128xf32>
    %c0_i32_249 = arith.constant 0 : i32
    %c0_i32_250 = arith.constant 0 : i32
    %c0_i32_251 = arith.constant 0 : i32
    %220 = tpu.memref_slice %arg11[%9, %c0_i32_249, %c0_i32_250, %c0_i32_251] : memref<2x88x96x128xbf16, #tpu.memory_space<vmem>> -> memref<1x88x96x128xbf16, #tpu.memory_space<vmem>>
    %221 = tpu.memref_squeeze %220 : memref<1x88x96x128xbf16, #tpu.memory_space<vmem>> -> memref<88x96x128xbf16, #tpu.memory_space<vmem>>
    %c72_252 = arith.constant 72 : index
    %c0_253 = arith.constant 0 : index
    %c0_254 = arith.constant 0 : index
    %222 = vector.load %221[%c72_252, %c0_253, %c0_254] : memref<88x96x128xbf16, #tpu.memory_space<vmem>>, vector<16x16x128xbf16>
    %223 = vector.shape_cast %222 : vector<16x16x128xbf16> to vector<256x128xbf16>
    %c0_255 = arith.constant 0 : index
    %c768_256 = arith.constant 768 : index
    %c0_257 = arith.constant 0 : index
    %224 = vector.load %arg7[%c0_255, %c768_256, %c0_257] : memref<1x1152x128xbf16, #tpu.memory_space<vmem>>, vector<1x128x128xbf16>
    %225 = vector.shape_cast %224 : vector<1x128x128xbf16> to vector<128x128xbf16>
    %cst_258 = arith.constant dense<0.000000e+00> : vector<256x128xf32>
    %226 = tpu.matmul %223, %225, %cst_258 {dimension_numbers = #tpu.dot_dimension_numbers<[1], [0], [0], [1], [0, 0, 1, 1], [], []>} : vector<256x128xbf16>, vector<128x128xbf16>, vector<256x128xf32> -> vector<256x128xf32>
    %227 = arith.addf %219, %226 : vector<256x128xf32>
    %c0_i32_259 = arith.constant 0 : i32
    %c0_i32_260 = arith.constant 0 : i32
    %c0_i32_261 = arith.constant 0 : i32
    %228 = tpu.memref_slice %arg11[%9, %c0_i32_259, %c0_i32_260, %c0_i32_261] : memref<2x88x96x128xbf16, #tpu.memory_space<vmem>> -> memref<1x88x96x128xbf16, #tpu.memory_space<vmem>>
    %229 = tpu.memref_squeeze %228 : memref<1x88x96x128xbf16, #tpu.memory_space<vmem>> -> memref<88x96x128xbf16, #tpu.memory_space<vmem>>
    %c72_262 = arith.constant 72 : index
    %c36_263 = arith.constant 36 : index
    %c0_264 = arith.constant 0 : index
    %230 = vector.load %229[%c72_262, %c36_263, %c0_264] : memref<88x96x128xbf16, #tpu.memory_space<vmem>>, vector<16x16x128xbf16>
    %231 = vector.shape_cast %230 : vector<16x16x128xbf16> to vector<256x128xbf16>
    %c0_265 = arith.constant 0 : index
    %c896_266 = arith.constant 896 : index
    %c0_267 = arith.constant 0 : index
    %232 = vector.load %arg7[%c0_265, %c896_266, %c0_267] : memref<1x1152x128xbf16, #tpu.memory_space<vmem>>, vector<1x128x128xbf16>
    %233 = vector.shape_cast %232 : vector<1x128x128xbf16> to vector<128x128xbf16>
    %cst_268 = arith.constant dense<0.000000e+00> : vector<256x128xf32>
    %234 = tpu.matmul %231, %233, %cst_268 {dimension_numbers = #tpu.dot_dimension_numbers<[1], [0], [0], [1], [0, 0, 1, 1], [], []>} : vector<256x128xbf16>, vector<128x128xbf16>, vector<256x128xf32> -> vector<256x128xf32>
    %235 = arith.addf %227, %234 : vector<256x128xf32>
    %c0_i32_269 = arith.constant 0 : i32
    %c0_i32_270 = arith.constant 0 : i32
    %c0_i32_271 = arith.constant 0 : i32
    %236 = tpu.memref_slice %arg11[%9, %c0_i32_269, %c0_i32_270, %c0_i32_271] : memref<2x88x96x128xbf16, #tpu.memory_space<vmem>> -> memref<1x88x96x128xbf16, #tpu.memory_space<vmem>>
    %237 = tpu.memref_squeeze %236 : memref<1x88x96x128xbf16, #tpu.memory_space<vmem>> -> memref<88x96x128xbf16, #tpu.memory_space<vmem>>
    %c72_272 = arith.constant 72 : index
    %c72_273 = arith.constant 72 : index
    %c0_274 = arith.constant 0 : index
    %238 = vector.load %237[%c72_272, %c72_273, %c0_274] : memref<88x96x128xbf16, #tpu.memory_space<vmem>>, vector<16x16x128xbf16>
    %239 = vector.shape_cast %238 : vector<16x16x128xbf16> to vector<256x128xbf16>
    %c0_275 = arith.constant 0 : index
    %c1024_276 = arith.constant 1024 : index
    %c0_277 = arith.constant 0 : index
    %240 = vector.load %arg7[%c0_275, %c1024_276, %c0_277] : memref<1x1152x128xbf16, #tpu.memory_space<vmem>>, vector<1x128x128xbf16>
    %241 = vector.shape_cast %240 : vector<1x128x128xbf16> to vector<128x128xbf16>
    %cst_278 = arith.constant dense<0.000000e+00> : vector<256x128xf32>
    %242 = tpu.matmul %239, %241, %cst_278 {dimension_numbers = #tpu.dot_dimension_numbers<[1], [0], [0], [1], [0, 0, 1, 1], [], []>} : vector<256x128xbf16>, vector<128x128xbf16>, vector<256x128xf32> -> vector<256x128xf32>
    %243 = arith.addf %235, %242 : vector<256x128xf32>
    %c0_i32_279 = arith.constant 0 : i32
    %244 = arith.cmpi eq, %arg2, %c0_i32_279 : i32
    %245 = arith.extui %244 : i1 to i32
    %c0_i32_280 = arith.constant 0 : i32
    %246 = arith.cmpi ne, %245, %c0_i32_280 : i32
    scf.if %246 {
      %c0_281 = arith.constant 0 : index
      %c0_282 = arith.constant 0 : index
      %c0_283 = arith.constant 0 : index
      %247 = vector.load %arg9[%c0_281, %c0_282, %c0_283] : memref<1x1x128xf32, #tpu.memory_space<vmem>>, vector<1x1x128xf32>
      %248 = vector.shape_cast %247 : vector<1x1x128xf32> to vector<1x128xf32>
      %249 = arith.truncf %30 : vector<256x128xf32> to vector<256x128xbf16>
      %c0_284 = arith.constant 0 : index
      %c0_285 = arith.constant 0 : index
      %250 = vector.load %arg8[%c0_284, %c0_285] : memref<512x128xbf16, #tpu.memory_space<vmem>>, vector<128x128xbf16>
      %cst_286 = arith.constant dense<0.000000e+00> : vector<256x128xf32>
      %251 = tpu.matmul %249, %250, %cst_286 {dimension_numbers = #tpu.dot_dimension_numbers<[1], [0], [0], [1], [0, 0, 1, 1], [], []>} : vector<256x128xbf16>, vector<128x128xbf16>, vector<256x128xf32> -> vector<256x128xf32>
      %252 = vector.broadcast %248 : vector<1x128xf32> to vector<256x128xf32>
      %253 = arith.addf %252, %251 : vector<256x128xf32>
      %254 = arith.truncf %101 : vector<256x128xf32> to vector<256x128xbf16>
      %c128_287 = arith.constant 128 : index
      %c0_288 = arith.constant 0 : index
      %255 = vector.load %arg8[%c128_287, %c0_288] : memref<512x128xbf16, #tpu.memory_space<vmem>>, vector<128x128xbf16>
      %cst_289 = arith.constant dense<0.000000e+00> : vector<256x128xf32>
      %256 = tpu.matmul %254, %255, %cst_289 {dimension_numbers = #tpu.dot_dimension_numbers<[1], [0], [0], [1], [0, 0, 1, 1], [], []>} : vector<256x128xbf16>, vector<128x128xbf16>, vector<256x128xf32> -> vector<256x128xf32>
      %257 = arith.addf %253, %256 : vector<256x128xf32>
      %258 = arith.truncf %172 : vector<256x128xf32> to vector<256x128xbf16>
      %c256_290 = arith.constant 256 : index
      %c0_291 = arith.constant 0 : index
      %259 = vector.load %arg8[%c256_290, %c0_291] : memref<512x128xbf16, #tpu.memory_space<vmem>>, vector<128x128xbf16>
      %cst_292 = arith.constant dense<0.000000e+00> : vector<256x128xf32>
      %260 = tpu.matmul %258, %259, %cst_292 {dimension_numbers = #tpu.dot_dimension_numbers<[1], [0], [0], [1], [0, 0, 1, 1], [], []>} : vector<256x128xbf16>, vector<128x128xbf16>, vector<256x128xf32> -> vector<256x128xf32>
      %261 = arith.addf %257, %260 : vector<256x128xf32>
      %262 = arith.truncf %243 : vector<256x128xf32> to vector<256x128xbf16>
      %c384_293 = arith.constant 384 : index
      %c0_294 = arith.constant 0 : index
      %263 = vector.load %arg8[%c384_293, %c0_294] : memref<512x128xbf16, #tpu.memory_space<vmem>>, vector<128x128xbf16>
      %cst_295 = arith.constant dense<0.000000e+00> : vector<256x128xf32>
      %264 = tpu.matmul %262, %263, %cst_295 {dimension_numbers = #tpu.dot_dimension_numbers<[1], [0], [0], [1], [0, 0, 1, 1], [], []>} : vector<256x128xbf16>, vector<128x128xbf16>, vector<256x128xf32> -> vector<256x128xf32>
      %265 = arith.addf %261, %264 : vector<256x128xf32>
      %266 = arith.truncf %265 : vector<256x128xf32> to vector<256x128xbf16>
      %c0_296 = arith.constant 0 : index
      %c0_297 = arith.constant 0 : index
      %c0_298 = arith.constant 0 : index
      %267 = vector.load %arg10[%c0_296, %c0_297, %c0_298] : memref<1x256x128xbf16, #tpu.memory_space<vmem>>, vector<1x256x128xbf16>
      %268 = vector.shape_cast %267 : vector<1x256x128xbf16> to vector<256x128xbf16>
      %269 = vector.shape_cast %266 : vector<256x128xbf16> to vector<1x256x128xbf16>
      tpu.vector_store %arg10[%c0_296, %c0_297, %c0_298], %269 {strides = array<i32>} : memref<1x256x128xbf16, #tpu.memory_space<vmem>>, vector<1x256x128xbf16>,
    } else {
    }
    return
  }
  func.func @transform_1(%arg0: i32, %arg1: i32, %arg2: i32) -> (i32, i32, i32) {
    %c0_i32 = arith.constant 0 : i32
    %c0_i32_0 = arith.constant 0 : i32
    %c0_i32_1 = arith.constant 0 : i32
    return %arg2, %c0_i32, %c0_i32_0 : i32, i32, i32
  }
  func.func @transform_2(%arg0: i32, %arg1: i32, %arg2: i32) -> (i32, i32, i32) {
    %c0_i32 = arith.constant 0 : i32
    %c0_i32_0 = arith.constant 0 : i32
    %c0_i32_1 = arith.constant 0 : i32
    return %arg2, %c0_i32, %c0_i32_0 : i32, i32, i32
  }
  func.func @transform_3(%arg0: i32, %arg1: i32, %arg2: i32) -> (i32, i32, i32) {
    %c0_i32 = arith.constant 0 : i32
    %c0_i32_0 = arith.constant 0 : i32
    %c0_i32_1 = arith.constant 0 : i32
    return %arg2, %c0_i32, %c0_i32_0 : i32, i32, i32
  }
  func.func @transform_4(%arg0: i32, %arg1: i32, %arg2: i32) -> (i32, i32, i32) {
    %c0_i32 = arith.constant 0 : i32
    %c0_i32_0 = arith.constant 0 : i32
    %c0_i32_1 = arith.constant 0 : i32
    return %arg2, %c0_i32, %c0_i32_0 : i32, i32, i32
  }
  func.func @transform_5(%arg0: i32, %arg1: i32, %arg2: i32) -> (i32, i32) {
    %c0_i32 = arith.constant 0 : i32
    %c0_i32_0 = arith.constant 0 : i32
    %c0_i32_1 = arith.constant 0 : i32
    return %c0_i32, %c0_i32_0 : i32, i32
  }
  func.func @transform_6(%arg0: i32, %arg1: i32, %arg2: i32) -> (i32, i32, i32) {
    %c0_i32 = arith.constant 0 : i32
    %c0_i32_0 = arith.constant 0 : i32
    %c0_i32_1 = arith.constant 0 : i32
    return %arg0, %c0_i32, %c0_i32_0 : i32, i32, i32
  }
  func.func @transform_7(%arg0: i32, %arg1: i32, %arg2: i32) -> (i32, i32, i32) {
    %c0_i32 = arith.constant 0 : i32
    %c0_i32_0 = arith.constant 0 : i32
    return %arg0, %arg1, %c0_i32 : i32, i32, i32
  }
}

</mosaic_0001>

<bundles_post_ra>
// kernel: tpu_custom_call.1
= control target key start
LH: loop header
LB: loop body
LE: loop exit
PB: predicated region body
PF: predicated region fallthrough
CT: control target
= control target key end

     0   :  { %s17771_s0 = inlined_call_operand.hbm [shape: bf16[2,88,96,128], index: 0, kind: input, shape index: {}]   ;;  %s17772_s1 = inlined_call_operand.hbm [shape: bf16[1,128,128], index: 1, kind: input, shape index: {}]   ;;  %s17773_s2 = inlined_call_operand.hbm [shape: bf16[1,1152,128], index: 2, kind: input, shape index: {}]   ;;  %s17774_s3 = inlined_call_operand.hbm [shape: bf16[1,1152,128], index: 3, kind: input, shape index: {}]   ;;  %s17775_s4 = inlined_call_operand.hbm [shape: bf16[1,1152,128], index: 4, kind: input, shape index: {}]   ;;  %s17776_s5 = inlined_call_operand.hbm [shape: bf16[512,128], index: 5, kind: input, shape index: {}]   ;;  %s17777_s6 = inlined_call_operand.hbm [shape: f32[2,1,128], index: 6, kind: input, shape index: {}]   ;;  %s17778_s7 = inlined_call_operand.hbm [shape: bf16[2,256,128], index: 7, kind: output, shape index: {}]  }
   0x1   :  { %17823 = sst [smem:[#allocation72_spill]] %s17773_s2 }
   0x2   :  { %17824 = sst [smem:[#allocation73_spill]] %s17778_s7 }
   0x3   :  { %12 = vsyncpa [#allocation6], 0 }
   0x4   :  { %13 = vsyncpa [#allocation9], 0 }
   0x5   :  { %14 = vsyncpa [#allocation12], 0 }
   0x6   :  { %15 = vsyncpa [#allocation15], 0 }
   0x7   :  { %17 = vsyncpa [#allocation15 + $0x1], 0 }
   0x8   :  { %18 = vsyncpa [#allocation7], 0 }
   0x9   :  { %20 = vsyncpa [#allocation7 + $0x1], 0  ;;  %s16414_s24 = smov 0   ;;  %s16416_s25 = smov 0  }
   0xa   :  { %s16418_s26 = smov 0   ;;  %s16420_s27 = smov 0  }
   0xb   :  { %s16422_s28 = smov 0   ;;  %s16424_s29 = smov 0  }
   0xc LB: > { %s17779_s30 = sadd.s32 4294967295, %s16360_s29   ;;  %p11426_p0 = scmp.ge.s32.totalorder %s16360_s29, 1  ;;  %s16360_s29 = sphi %s16424_s29, %s26_s29   ;;  %s16356_s28 = sphi %s16422_s28, %s17970_s28   ;;  %s16352_s27 = sphi %s16420_s27, %s17969_s27   ;;  %s16348_s26 = sphi %s16418_s26, %s17968_s26   ;;  %s16344_s25 = sphi %s16416_s25, %s17967_s25   ;;  %s16340_s24 = sphi %s16414_s24, %s17966_s24  }
   0xd   : > { %p16448_p1 = scmp.eq.s32.totalorder %s17779_s30, 0  ;;  %p229_p2 = scmp.lt.s32.totalorder %s16360_s29, 3 }
   0xe   : > { %s16362_s10 = smov [#allocation8]   ;;  %s16363_s12 = smov [#allocation11]  }
   0xf   : > { %s17825_s8 = scalar_select %p16448_p1, 1, 0 }
  0x10   : > { %p16453_p3 = pnand %p11426_p0, %p229_p2  ;;  %s260_s11 = sshll.u32 %s16362_s10, 4  ;;  %s16457_s11 = int_to_ptr.vmem [resolvable:$true] %s260_s11 }
  0x11   : > { %s292_s13 = sshll.u32 %s16363_s12, 4  ;;  %s16364_s15 = smov [#allocation5]   ;;  %s16468_s13 = int_to_ptr.vmem [resolvable:$true] %s292_s13 }
  0x12   : > { %s17826_s9 = scalar_select %p16453_p3, 1, 0 }
  0x13   : > { %p15718_p5 = pneg %p16453_p3  ;;  %s16470_s16 = sshll.u32 %s16364_s15, 4  ;;  %s245_s16 = int_to_ptr.vmem [resolvable:$true] %s16470_s16 }
  0x14   : > { %s17828_s2 = sld [smem:[#allocation72_spill]] }
  0x15   : > { %p16464_p6 = pnand %p15718_p5, %p16448_p1 }
  0x17   : > { %p16480_p8 = pneg %p16464_p6 }
  0x1a   : > { %s16070_s19 = scalar_lea.hbm %s17828_s2, 9216 }
  0x1b   : > { %p16071_p7 = scmp.ne.s32.totalorder %s17828_s2, %s16070_s19  ;;  %p16077_p11 = scmp.lt.u32.totalorder %s16070_s19, %s17828_s2 }
  0x1d   : > { %p16073_p9 = pnand %p16480_p8, %p16071_p7 }
  0x1f   : > { %p16074_p10 = pneg %p16073_p9 }
  0x21   : > { %p16079_p12 = pnand %p16077_p11, %p16074_p10 }
  0x23   : > { %16082 = shalt.err (!%p16079_p12)
}
  0x24   : > { %s16083_s12 = scalar_lea.vmem %s16457_s11, 9216  ;;  %p16091_p5 = scmp.lt.s32.totalorder %s16457_s11, %s16457_s11 }
  0x25   : > { %p16084_p13 = scmp.ne.s32.totalorder %s16457_s11, %s16083_s12  ;;  %p16092_p4 = scmp.lt.s32.totalorder %s16083_s12, %s16083_s12 }
  0x27   : > { %p16086_p0 = pnand %p16084_p13, %p16480_p8  ;;  %p16093_p7 = por %p16092_p4, %p16091_p5 }
  0x29   : > { %p16087_p2 = pneg %p16086_p0 }
  0x2b   : > { %p16094_p9 = pnand %p16093_p7, %p16087_p2 }
  0x2d   : > { %16097 = shalt.err (!%p16094_p9)
}
  0x2e   : > { %s16365_s15 = smov 64   ;;  %s16366_s17 = smov 4  }
  0x2f   : > { %15724 = dma.hbm_to_vmem [thread:$0]  (!%p16464_p6), %s17828_s2, 9216, %s16457_s11, [#allocation9], %s16365_s15, %s16365_s15, %s16366_s17  }
  0x30   : > { %s16098_s23 = scalar_lea.hbm %s17775_s4, 9216 }
  0x31   : > { %p16099_p4 = scmp.ne.s32.totalorder %s17775_s4, %s16098_s23  ;;  %p16105_p12 = scmp.lt.u32.totalorder %s16098_s23, %s17775_s4 }
  0x33   : > { %p16101_p10 = pnand %p16099_p4, %p16480_p8 }
  0x35   : > { %p16102_p11 = pneg %p16101_p10 }
  0x37   : > { %p16107_p13 = pnand %p16105_p12, %p16102_p11 }
  0x39   : > { %16110 = shalt.err (!%p16107_p13)
}
  0x3a   : > { %s16111_s11 = scalar_lea.vmem %s16468_s13, 9216  ;;  %p16119_p7 = scmp.lt.s32.totalorder %s16468_s13, %s16468_s13 }
  0x3b   : > { %p16112_p0 = scmp.ne.s32.totalorder %s16468_s13, %s16111_s11  ;;  %p16120_p9 = scmp.lt.s32.totalorder %s16111_s11, %s16111_s11 }
  0x3d   : > { %p16114_p2 = pnand %p16112_p0, %p16480_p8  ;;  %p16121_p4 = por %p16120_p9, %p16119_p7 }
  0x3f   : > { %p16115_p5 = pneg %p16114_p2 }
  0x41   : > { %p16122_p10 = pnand %p16121_p4, %p16115_p5 }
  0x43   : > { %16125 = shalt.err (!%p16122_p10)
}
  0x44   : > { %15730 = dma.hbm_to_vmem [thread:$0]  (!%p16464_p6), %s17775_s4, 9216, %s16468_s13, [#allocation12], %s16365_s15, %s16365_s15, %s16366_s17  }
  0x45   : > { %s16126_s20 = scalar_lea.hbm %s17772_s1, 1024 }
  0x46   : > { %p16127_p11 = scmp.ne.s32.totalorder %s17772_s1, %s16126_s20  ;;  %p16133_p0 = scmp.lt.u32.totalorder %s16126_s20, %s17772_s1 }
  0x48   : > { %p16129_p12 = pnand %p16127_p11, %p16480_p8 }
  0x4a   : > { %p16130_p13 = pneg %p16129_p12 }
  0x4c   : > { %p16135_p2 = pnand %p16133_p0, %p16130_p13 }
  0x4e   : > { %16138 = shalt.err (!%p16135_p2)
}
  0x4f   : > { %s16139_s11 = scalar_lea.vmem %s245_s16, 1024  ;;  %p16147_p4 = scmp.lt.s32.totalorder %s245_s16, %s245_s16 }
  0x50   : > { %p16140_p5 = scmp.ne.s32.totalorder %s245_s16, %s16139_s11  ;;  %p16148_p10 = scmp.lt.s32.totalorder %s16139_s11, %s16139_s11 }
  0x52   : > { %p16142_p7 = pnand %p16140_p5, %p16480_p8  ;;  %p16149_p3 = por %p16148_p10, %p16147_p4 }
  0x54   : > { %p16143_p9 = pneg %p16142_p7 }
  0x56   : > { %p16150_p1 = pnand %p16149_p3, %p16143_p9 }
  0x58   : > { %16153 = shalt.err (!%p16150_p1)
}
  0x59   : > { %15721 = dma.hbm_to_vmem [thread:$0]  (!%p16464_p6), %s17772_s1, 1024, %s245_s16, [#allocation6], %s16365_s15, %s16365_s15, %s16366_s17  }
  0x5a   : > { %s16367_s30 = smov [#allocation10]   ;;  %s16368_s19 = smov [#allocation13]  }
  0x5b   : > { %s276_s18 = sshll.u32 %s16367_s30, 4  ;;  %s305_s20 = sshll.u32 %s16368_s19, 4  ;;  %s277_s18 = int_to_ptr.vmem [resolvable:$true] %s276_s18  ;;  %s306_s20 = int_to_ptr.vmem [resolvable:$true] %s305_s20 }
  0x5c   : > { %s16154_s10 = scalar_lea.hbm %s17774_s3, 9216 }
  0x5d   : > { %p16155_p1 = scmp.ne.s32.totalorder %s17774_s3, %s16154_s10  ;;  %p16161_p12 = scmp.lt.u32.totalorder %s16154_s10, %s17774_s3 }
  0x5f   : > { %p16157_p3 = pnand %p16155_p1, %p16480_p8 }
  0x61   : > { %p16158_p11 = pneg %p16157_p3 }
  0x63   : > { %p16163_p13 = pnand %p16161_p12, %p16158_p11 }
  0x65   : > { %16166 = shalt.err (!%p16163_p13)
}
  0x66   : > { %s16167_s16 = scalar_lea.vmem %s277_s18, 9216  ;;  %p16175_p7 = scmp.lt.s32.totalorder %s277_s18, %s277_s18 }
  0x67   : > { %p16168_p0 = scmp.ne.s32.totalorder %s277_s18, %s16167_s16  ;;  %p16176_p9 = scmp.lt.s32.totalorder %s16167_s16, %s16167_s16 }
  0x69   : > { %p16170_p2 = pnand %p16168_p0, %p16480_p8  ;;  %p16177_p4 = por %p16176_p9, %p16175_p7 }
  0x6b   : > { %p16171_p5 = pneg %p16170_p2 }
  0x6d   : > { %p16178_p10 = pnand %p16177_p4, %p16171_p5 }
  0x6f   : > { %16181 = shalt.err (!%p16178_p10)
}
  0x70   : > { %15727 = dma.hbm_to_vmem [thread:$0]  (!%p16464_p6), %s17774_s3, 9216, %s277_s18, [#allocation9], %s16365_s15, %s16365_s15, %s16366_s17  }
  0x71   : > { %s16182_s21 = scalar_lea.hbm %s17776_s5, 4096 }
  0x72   : > { %p16183_p1 = scmp.ne.s32.totalorder %s17776_s5, %s16182_s21  ;;  %p16189_p12 = scmp.lt.u32.totalorder %s16182_s21, %s17776_s5 }
  0x74   : > { %p16185_p3 = pnand %p16183_p1, %p16480_p8 }
  0x76   : > { %p16186_p11 = pneg %p16185_p3 }
  0x78   : > { %p16191_p13 = pnand %p16189_p12, %p16186_p11 }
  0x7a   : > { %16194 = shalt.err (!%p16191_p13)
}
  0x7b   : > { %s16195_s13 = scalar_lea.vmem %s306_s20, 4096  ;;  %p16203_p7 = scmp.lt.s32.totalorder %s306_s20, %s306_s20 }
  0x7c   : > { %p16196_p0 = scmp.ne.s32.totalorder %s306_s20, %s16195_s13  ;;  %p16204_p9 = scmp.lt.s32.totalorder %s16195_s13, %s16195_s13 }
  0x7e   : > { %p16198_p2 = pnand %p16196_p0, %p16480_p8  ;;  %p16205_p4 = por %p16204_p9, %p16203_p7 }
  0x80   : > { %p16199_p5 = pneg %p16198_p2 }
  0x82   : > { %p16206_p10 = pnand %p16205_p4, %p16199_p5 }
  0x84   : > { %16209 = shalt.err (!%p16206_p10)
}
  0x85   : > { %15733 = dma.hbm_to_vmem [thread:$0]  (!%p16464_p6), %s17776_s5, 4096, %s306_s20, [#allocation12], %s16365_s15, %s16365_s15, %s16366_s17  }
  0x86   : > { %s11425_s14 = sadd.s32 4294967294, %s16360_s29   ;;  %s45_s22 = sadd.s32 1, %s16356_s28 }
  0x87   : > { %s177_s2 = sadd.s32 1, %s16348_s26  ;;  %p47_p8 = scmp.ge.s32.totalorder %s45_s22, 2 }
  0x88   : > { %p184_p1 = scmp.ne.s32.totalorder %s16348_s26, %s16344_s25  ;;  %p185_p3 = scmp.eq.s32.totalorder %s16360_s29, 0 }
  0x89   : > { %p190_p11 = scmp.ne.s32.totalorder %s16344_s25, %s16340_s24  ;;  %s17972_s22 = smov (%p47_p8, %s45_s22), 0 }
  0x8a   : > { %p16604_p12 = por %p185_p3, %p184_p1  ;;  %p17831_p13 = scmp.ne.s32.totalorder %s17825_s8, 0 }
  0x8b   : > { %s174_s17 = ssub.s32 %s16356_s28, %s17972_s22  ;;  %s17833_s20 = sadd.s32 4294967295, %s16360_s29  }
  0x8c   : > { %p16610_p6 = por %p17831_p13, %p190_p11  ;;  %p216_p0 = scmp.eq.s32.totalorder %s17833_s20, 1 }
  0x8d   : > { %p175_p2 = scmp.eq.s32.totalorder %s174_s17, 0  ;;  %p222_p5 = scmp.eq.s32.totalorder %s11425_s14, 1 }
  0x8e   : > { %p16618_p7 = por %p216_p0, %p184_p1  ;;  %p15747_p9 = scmp.lt.s32.totalorder %s16360_s29, 2 }
  0x8f   : > { %s16624_s19 = scalar_select %p175_p2, %s16348_s26, %s177_s2  }
  0x90   : > { %s17834_s30 = scalar_select %p16618_p7, 1, 0 }
  0x91   : > { %p16626_p4 = por %p222_p5, %p190_p11  ;;  %s319_s23 = sand.u32 1, %s16348_s26  }
  0x92   : > { %s11433_s10 = sshll.u32 %s16356_s28, 4  ;;  %s322_s12 = scalar_lea.vmem [#allocation14], %s319_s23 }
  0x93   : > { %s17835_s21 = scalar_select %p16626_p4, 1, 0 }
  0x94   : > { %s329_s11 = sshll.u32 %s322_s12, 4  ;;  %s16635_s16 = scalar_lea.hbm %s17777_s6, %s11433_s10  ;;  %s16637_s11 = int_to_ptr.vmem [resolvable:$true] %s329_s11 }
  0x95   : > { %p16641_p10 = pnand %p15747_p9, %p16604_p12  ;;  %s320_s2 = scalar_lea.sflag [#allocation15], %s319_s23 }
  0x96   : > { %s16210_s17 = scalar_lea.hbm %s16635_s16, 16  ;;  %s16215_s12 = scalar_lea.hbm %s17777_s6, 32 }
  0x97   : > { %p16211_p8 = scmp.ne.s32.totalorder %s16635_s16, %s16210_s17  ;;  %p16212_p1 = pneg %p16641_p10 }
  0x98   : > { %p16216_p12 = scmp.lt.u32.totalorder %s16635_s16, %s17777_s6  ;;  %p16217_p13 = scmp.lt.u32.totalorder %s16215_s12, %s16210_s17 }
  0x99   : > { %p16213_p3 = pnand %p16212_p1, %p16211_p8  ;;  %p16219_p2 = scmp.lt.u32.totalorder %s16210_s17, %s16635_s16 }
  0x9a   : > { %p16218_p0 = por %p16217_p13, %p16216_p12 }
  0x9b   : > { %p16214_p11 = pneg %p16213_p3 }
  0x9c   : > { %p16220_p5 = por %p16219_p2, %p16218_p0 }
  0x9e   : > { %p16221_p9 = pnand %p16220_p5, %p16214_p11 }
  0xa0   : > { %16224 = shalt.err (!%p16221_p9)
}
  0xa1   : > { %s16225_s23 = scalar_lea.vmem %s16637_s11, 16  ;;  %s16369_s18 = smov [#allocation14]  }
  0xa2   : > { %p16226_p8 = scmp.ne.s32.totalorder %s16637_s11, %s16225_s23  ;;  %s16230_s20 = sshll.u32 %s16369_s18, 4  ;;  %s16231_s20 = int_to_ptr.vmem [resolvable:$false] %s16230_s20 }
  0xa3   : > { %s16232_s10 = scalar_lea.vmem %s16231_s20, 32  ;;  %p16233_p7 = scmp.lt.s32.totalorder %s16637_s11, %s16231_s20 }
  0xa4   : > { %p16228_p3 = pnand %p16226_p8, %p16212_p1  ;;  %p16234_p12 = scmp.lt.s32.totalorder %s16232_s10, %s16225_s23 }
  0xa6   : > { %p16229_p4 = pneg %p16228_p3  ;;  %p16235_p13 = por %p16234_p12, %p16233_p7 }
  0xa8   : > { %p16236_p0 = pnand %p16235_p13, %p16229_p4 }
  0xaa   : > { %16239 = shalt.err (!%p16236_p0)
}
  0xab   : > { %15737 = dma.hbm_to_vmem [thread:$0]  (!%p16641_p10), %s16635_s16, 16, %s16637_s11, %s320_s2  }
  0xac   : > { %p17837_p11 = scmp.ne.s32.totalorder %s17826_s9, 0 }
  0xae   : > { %338 = sbr.rel (%p17837_p11) target bundleno = 1718 (0x6b6), region = 44 }
  0xb5   : > { %p17838_p1 = scmp.ne.s32.totalorder %s17825_s8, 0 }
  0xb7   : > { %16317 = dma.done.wait (%p17838_p1), [#allocation6], 1024  }
  0xb8   : > { %16319 = vsyncadd (%p17838_p1), [#allocation6], 4294966272 }
  0xb9   : > { %16321 = dma.done.wait (%p17838_p1), [#allocation9], 18432  }
  0xba   : > { %16323 = vsyncadd (%p17838_p1), [#allocation9], 4294948864 }
  0xbb   : > { %16325 = dma.done.wait (%p17838_p1), [#allocation12], 13312  }
  0xbc   : > { %16327 = vsyncadd (%p17838_p1), [#allocation12], 4294953984  ;;  %s16685_s9 = sand.u32 1, %s16344_s25  }
  0xbd   : > { %s361_s11 = scalar_lea.sflag [#allocation15], %s16685_s9 }
  0xbe   : > { %16329 = dma.done.wait (%p16610_p6), %s361_s11, 16  }
  0xbf   : > { %16331 = vsyncadd (%p16610_p6), %s361_s11, 4294967280  ;;  %s11440_s14 = sshll.u32 %s16685_s9, 7  ;;  %s12363_s2 = smul.u32 67584, %s16352_s27 }
  0xc0   : > { %s16370_s7 = smov [#allocation2]   ;;  %s16242_s10 = scalar_lea.hbm %s17771_s0, 135168 }
  0xc1   : > { %s414_s12 = scalar_lea.hbm %s17771_s0, %s12363_s2  ;;  %s422_s13 = sshll.u32 %s16370_s7, 4  ;;  %s423_s13 = int_to_ptr.vmem [resolvable:$true] %s422_s13 }
  0xc2   : > { %s16240_s23 = scalar_lea.hbm %s414_s12, 67584  ;;  %p16243_p6 = scmp.lt.u32.totalorder %s414_s12, %s17771_s0 }
  0xc3   : > { %p16241_p7 = scmp.ne.s32.totalorder %s414_s12, %s16240_s23  ;;  %p16244_p4 = scmp.lt.u32.totalorder %s16242_s10, %s16240_s23 }
  0xc4   : > { %p16246_p2 = scmp.lt.u32.totalorder %s16240_s23, %s414_s12 }
  0xc5   : > { %p16245_p10 = por %p16244_p4, %p16243_p6 }
  0xc7   : > { %p16247_p5 = por %p16246_p2, %p16245_p10 }
  0xc9   : > { %p16248_p9 = pnand %p16247_p5, %p16241_p7 }
  0xcb   : > { %16251 = shalt.err (!%p16248_p9)  }
  0xcc   : > { %s16252_s11 = scalar_lea.vmem %s423_s13, 67584  ;;  %s16256_s2 = scalar_lea.vmem %s423_s13, 135168 }
  0xcd   : > { %p16253_p8 = scmp.ne.s32.totalorder %s423_s13, %s16252_s11  ;;  %p16257_p3 = scmp.lt.s32.totalorder %s423_s13, %s423_s13 }
  0xce   : > { %p16258_p12 = scmp.lt.s32.totalorder %s16256_s2, %s16252_s11 }
  0xd0   : > { %p16259_p13 = por %p16258_p12, %p16257_p3 }
  0xd2   : > { %p16260_p0 = pnand %p16259_p13, %p16253_p8 }
  0xd4   : > { %16263 = shalt.err (!%p16260_p0)  }
  0xd5   : > { %425 = dma.hbm_to_vmem [thread:$0]  %s414_s12, 67584, %s423_s13, [#allocation3] }
  0xd6   : > { %s16704_s17 = scalar_lea.vmem [#allocation16], %s11440_s14 }
  0xd7   : > { %16332 = dma.done.wait [#allocation3], 67584 }
  0xd8   : > { %16333 = vsyncadd [#allocation3], 4294899712  ;;  %v15812_v0 = vld [vmem:[#allocation5] sm:$0xff]   ;;  %v15814_v2 = vld [vmem:[#allocation5 + $0x8] sm:$0xff]   ;;  %vm530_vm0 = vcmask 1045504   ;;  %vm885_vm1 = vcmask 1043456  }
  0xd9   : > { %v15813_v1 = vld [vmem:[#allocation8 + $0x80] sm:$0xff]   ;;  %13262 = vmatprep.subr.bf16.mxu0 %v15812_v0  ;;  %v15815_v3 = vld [vmem:[#allocation8 + $0x88] sm:$0xff]   ;;  %v15816_v4 = vld [vmem:[#allocation5 + $0x10] sm:$0xff]   ;;  %vm3825_vm2 = vcmask 1041408   ;;  %s17961_s16 = scalar_lea.vmem [#allocation14], %s16685_s9  ;;  %s12398_s14 = sshll.u32 %s16352_s27, 11 }
  0xda   : > { %13406 = vmatprep.subr.bf16.mxu1 %v15813_v1  ;;  %13263 = vmatpush3.bf16.msra.mxu0 %v15812_v0  ;;  %v15817_v5 = vld [vmem:[#allocation8 + $0x90] sm:$0xff]   ;;  %v15818_v6 = vld [vmem:[#allocation5 + $0x18] sm:$0xff]   ;;  %v15820_v8 = vld [vmem:[#allocation5 + $0x20] sm:$0xff]   ;;  %s11252_s8 = sshll.u32 %s16704_s17, 4  ;;  %s17962_s13 = sld [smem:[#allocation73_spill]]  ;;  %s17720_s8 = int_to_ptr.vmem [resolvable:$true] %s11252_s8 }
  0xdb   : > { %13407 = vmatpush3.bf16.msra.mxu1 %v15813_v1  ;;  %13264 = vmatprep.subr.bf16.mxu0 %v15814_v2  ;;  %v15819_v7 = vld [vmem:[#allocation8 + $0x98] sm:$0xff]   ;;  %v15821_v9 = vld [vmem:[#allocation8 + $0xa0] sm:$0xff]   ;;  %v15822_v10 = vld [vmem:[#allocation5 + $0x28] sm:$0xff]   ;;  %s11237_s27 = scalar_lea.sflag [#allocation7], %s16685_s9  ;;  %s16264_s18 = scalar_lea.vmem %s17720_s8, 2048 }
  0xdc   : > { %13408 = vmatprep.subr.bf16.mxu1 %v15815_v3  ;;  %v11443_v11 = vld [vmem:[#allocation2 + $0x6d0] sm:$0xfc]  ;;  %v11444_v12 = vld [vmem:[#allocation2 + $0x6d8] sm:$0x3]  ;;  %v15823_v14 = vld [vmem:[#allocation8 + $0xa8] sm:$0xff]   ;;  %p16265_p11 = scmp.ne.s32.totalorder %s17720_s8, %s16264_s18  ;;  %p17963_p1 = scmp.ne.s32.totalorder %s17834_s30, 0 }
  0xdd   : > { %v11563_v13 = vld [vmem:[#allocation2 + $0x498] sm:$0xff]  ;;  %v531_v15 = vrot.slane %v11443_v11, 2  ;;  %v532_v16 = vrot.slane %v11444_v12, 2  ;;  %v15824_v18 = vld [vmem:[#allocation5 + $0x30] sm:$0xff]   ;;  %v11445_v22 = vld [vmem:[#allocation2 + $0x700] sm:$0xfc] }
  0xde   : > { %13265 = vmatpush3.bf16.msra.mxu0 %v15814_v2  ;;  %13422 = vmatprep.mubr.bf16.mxu1 %v11563_v13  ;;  %v15825_v19 = vld [vmem:[#allocation8 + $0xb0] sm:$0xff]   ;;  %v15826_v20 = vld [vmem:[#allocation5 + $0x38] sm:$0xff]   ;;  %v11446_v23 = vld [vmem:[#allocation2 + $0x708] sm:$0x3]  ;;  %v534_v26 = vrot.slane %v11445_v22, 2  ;;  %p16266_p7 = pnand %p16265_p11, %p17963_p1  ;;  %s16371_s20 = smov [#allocation16]  }
  0xdf   : > { %13409 = vmatpush3.bf16.msra.mxu1 %v15815_v3  ;;  %13266 = vmatprep.subr.bf16.mxu0 %v15816_v4  ;;  %v16707_v17 = vsel %vm530_vm0, %v531_v15, %v532_v16  ;;  %v15827_v21 = vld [vmem:[#allocation8 + $0xb8] sm:$0xff]   ;;  %v11447_v24 = vld [vmem:[#allocation2 + $0x730] sm:$0xfc]  ;;  %v535_v27 = vrot.slane %v11446_v23, 2  ;;  %v15828_v30 = vld [vmem:[#allocation8 + $0xc0] sm:$0xff]   ;;  %s16268_s10 = sshll.u32 %s16371_s20, 4  ;;  %s16269_s10 = int_to_ptr.vmem [resolvable:$false] %s16268_s10 }
  0xe0   : > { %13410 = vmatprep.subr.bf16.mxu1 %v15817_v5  ;;  %13278 = vmatprep.mubr.bf16.mxu0 %v16707_v17  ;;  %v11448_v25 = vld [vmem:[#allocation2 + $0x738] sm:$0x3]  ;;  %v537_v28 = vrot.slane %v11447_v24, 2  ;;  %v11564_v31 = vld [vmem:[#allocation2 + $0x4c8] sm:$0xff]  ;;  %v11449_v32 = vld [vmem:[#allocation2 + $0x760] sm:$0xfc]  ;;  %s17718_s23 = scalar_lea.hbm %s17962_s13, %s12398_s14  ;;  %p16267_p6 = pneg %p16266_p7 }
  0xe1   : > { %v538_v29 = vrot.slane %v11448_v25, 2  ;;  %v11450_v33 = vld [vmem:[#allocation2 + $0x768] sm:$0x3]  ;;  %v15832_v34 = vld [vmem:[#allocation8 + $0x40] sm:$0xff]   ;;  %v16711_v35 = vsel %vm530_vm0, %v534_v26, %v535_v27  ;;  %v11565_v36 = vld [vmem:[#allocation2 + $0x4f8] sm:$0xff]  ;;  %v540_v42 = vrot.slane %v11449_v32, 2  ;;  %p16271_p4 = scmp.lt.s32.totalorder %s17720_s8, %s16269_s10 }
  0xe2   : > { %13267 = vmatpush3.bf16.msra.mxu0 %v15816_v4  ;;  %v15829_v37 = vld [vmem:[#allocation8 + $0xc8] sm:$0xff]   ;;  %v11451_v39 = vld [vmem:[#allocation2 + $0x790] sm:$0xfc]  ;;  %v11452_v40 = vld [vmem:[#allocation2 + $0x798] sm:$0x3]  ;;  %v541_v43 = vrot.slane %v11450_v33, 2 }
  0xe3   : > { %13411 = vmatpush3.bf16.msra.mxu1 %v15817_v5  ;;  %13268 = vmatprep.subr.bf16.mxu0 %v15818_v6  ;;  %v16714_v38 = vsel %vm530_vm0, %v537_v28, %v538_v29  ;;  %v15834_v41 = vld [vmem:[#allocation8 + $0x48] sm:$0xff]   ;;  %v543_v44 = vrot.slane %v11451_v39, 2  ;;  %v544_v45 = vrot.slane %v11452_v40, 2  ;;  %v15830_v46 = vld [vmem:[#allocation8 + $0xd0] sm:$0xff]   ;;  %v11567_v50 = vld [vmem:[#allocation2 + $0x558] sm:$0xff]  ;;  %s16270_s15 = scalar_lea.vmem %s16269_s10, 4096 }
  0xe4   : > { %13412 = vmatprep.subr.bf16.mxu1 %v15819_v7  ;;  %v15835_v47 = vld [vmem:[#allocation8 + $0x50] sm:$0xff]   ;;  %v16719_v48 = vsel %vm530_vm0, %v540_v42, %v541_v43  ;;  %v11566_v49 = vld [vmem:[#allocation2 + $0x528] sm:$0xff]  ;;  %v11453_v52 = vld [vmem:[#allocation2 + $0x7c0] sm:$0xfc]  ;;  %p16272_p10 = scmp.lt.s32.totalorder %s16270_s15, %s16264_s18 }
  0xe5   : > { %v16722_v51 = vsel %vm530_vm0, %v543_v44, %v544_v45  ;;  %v11454_v53 = vld [vmem:[#allocation2 + $0x7c8] sm:$0x3]  ;;  %v11455_v54 = vld [vmem:[#allocation2 + $0x7f0] sm:$0xfc]  ;;  %v11456_v55 = vld [vmem:[#allocation2 + $0x7f8] sm:$0x3] }
  0xe6   : > { %13269 = vmatpush3.bf16.msra.mxu0 %v15818_v6  ;;  %v15831_v56 = vld [vmem:[#allocation8 + $0xd8] sm:$0xff]   ;;  %v546_v58 = vrot.slane %v11453_v52, 2  ;;  %v547_v59 = vrot.slane %v11454_v53, 2  ;;  %v549_v60 = vrot.slane %v11455_v54, 2  ;;  %v550_v61 = vrot.slane %v11456_v55, 2  ;;  %v15833_v62 = vld [vmem:[#allocation8 + $0xe0] sm:$0xff]   ;;  %p16273_p2 = por %p16272_p10, %p16271_p4 }
  0xe7   : > { %13413 = vmatpush3.bf16.msra.mxu1 %v15819_v7  ;;  %13270 = vmatprep.subr.bf16.mxu0 %v15820_v8  ;;  %v15837_v57 = vld [vmem:[#allocation8 + $0x58] sm:$0xff]   ;;  %v11568_v63 = vld [vmem:[#allocation2 + $0x588] sm:$0xff]  ;;  %v11457_v0 = vld [vmem:[#allocation2 + $0x820] sm:$0xfc] }
  0xe8   : > { %13414 = vmatprep.subr.bf16.mxu1 %v15821_v9  ;;  %v15838_v1 = vld [vmem:[#allocation8 + $0x60] sm:$0xff]   ;;  %v16727_v2 = vsel %vm530_vm0, %v546_v58, %v547_v59  ;;  %v11569_v3 = vld [vmem:[#allocation2 + $0x5b8] sm:$0xff]  ;;  %v11458_v4 = vld [vmem:[#allocation2 + $0x828] sm:$0x3]  ;;  %v16730_v5 = vsel %vm530_vm0, %v549_v60, %v550_v61  ;;  %p16274_p5 = pnand %p16273_p2, %p16267_p6 }
  0xe9   : > { %v11459_v6 = vld [vmem:[#allocation2 + $0x850] sm:$0xfc]  ;;  %v11460_v7 = vld [vmem:[#allocation2 + $0x858] sm:$0x3]  ;;  %v553_v11 = vrot.slane %v11458_v4, 2  ;;  %v16744_v32 = vld [vmem:[#allocation8] sm:$0xff]  }
  0xea   : > { %13271 = vmatpush3.bf16.msra.mxu0 %v15820_v8  ;;  %v15836_v8 = vld [vmem:[#allocation8 + $0xe8] sm:$0xff]   ;;  %v555_v12 = vrot.slane %v11459_v6, 2  ;;  %v556_v13 = vrot.slane %v11460_v7, 2  ;;  %v15841_v15 = vld [vmem:[#allocation8 + $0x70] sm:$0xff]   ;;  %v11464_v24 = vld [vmem:[#allocation2 + $0x8b8] sm:$0x3] }
  0xeb   : > { %13415 = vmatpush3.bf16.msra.mxu1 %v15821_v9  ;;  %13272 = vmatprep.subr.bf16.mxu0 %v15822_v10  ;;  %v15840_v9 = vld [vmem:[#allocation8 + $0x68] sm:$0xff]   ;;  %v11463_v23 = vld [vmem:[#allocation2 + $0x8b0] sm:$0xfc]  ;;  %v15842_v25 = vld [vmem:[#allocation8 + $0xf8] sm:$0xff]  }
  0xec   : > { %13416 = vmatprep.subr.bf16.mxu1 %v15823_v14  ;;  %v11462_v22 = vld [vmem:[#allocation2 + $0x888] sm:$0x3]  ;;  %v15843_v26 = vld [vmem:[#allocation8 + $0x78] sm:$0xff]   ;;  %v561_v29 = vrot.slane %v11463_v23, 2  ;;  %v11465_v39 = vld [vmem:[#allocation2 + $0x8e0] sm:$0xfc] }
  0xed   : > { %v559_v28 = vrot.slane %v11462_v22, 2  ;;  %v11466_v40 = vld [vmem:[#allocation2 + $0x8e8] sm:$0x3]  ;;  %v11468_v42 = vld [vmem:[#allocation2 + $0x918] sm:$0x3]  ;;  %v564_v43 = vrot.slane %v11465_v39, 2 }
  0xee   : > { %13273 = vmatpush3.bf16.msra.mxu0 %v15822_v10  ;;  %v552_v10 = vrot.slane %v11457_v0, 2  ;;  %v565_v44 = vrot.slane %v11466_v40, 2  ;;  %v11575_v52 = vld [vmem:[#allocation2 + $0x6d8] sm:$0xff]  ;;  %v11469_v53 = vld [vmem:[#allocation2 + $0x940] sm:$0xfc]  ;;  %v11576_v61 = vld [vmem:[#allocation2 + $0x708] sm:$0xff] }
  0xef   : > { %13417 = vmatpush3.bf16.msra.mxu1 %v15823_v14  ;;  %13274 = vmatprep.subr.bf16.mxu0 %v15824_v18  ;;  %v15839_v14 = vld [vmem:[#allocation8 + $0xf0] sm:$0xff]   ;;  %v11470_v54 = vld [vmem:[#allocation2 + $0x948] sm:$0x3]  ;;  %v11473_v0 = vld [vmem:[#allocation2 + $0x9a0] sm:$0xfc] }
  0xf0   : > { %13418 = vmatprep.subr.bf16.mxu1 %v15825_v19  ;;  %v16735_v16 = vsel %vm530_vm0, %v552_v10, %v553_v11  ;;  %v11471_v55 = vld [vmem:[#allocation2 + $0x970] sm:$0xfc]  ;;  %v571_v58 = vrot.slane %v11470_v54, 2  ;;  %v11516_v6 = vld [vmem:[#allocation2 + $0x498] sm:$0x3] }
  0xf1   : > { %v573_v59 = vrot.slane %v11471_v55, 2  ;;  %v11515_v4 = vld [vmem:[#allocation2 + $0x490] sm:$0xfc]  ;;  %v11587_v7 = vld [vmem:[#allocation2 + $0x6c8] sm:$0xf0] }
  0xf2   : > { %13275 = vmatpush3.bf16.msra.mxu0 %v15824_v18  ;;  %v11570_v18 = vld [vmem:[#allocation2 + $0x5e8] sm:$0xff]  ;;  %v1030_v11 = vrot.slane %v11515_v4, 2  ;;  %v11589_v22 = vld [vmem:[#allocation2 + $0x6f8] sm:$0xf0]  ;;  %v11594_v55 = vld [vmem:[#allocation2 + $0x760] sm:$0xf] }
  0xf3   : > { %13419 = vmatpush3.bf16.msra.mxu1 %v15825_v19  ;;  %13276 = vmatprep.subr.bf16.mxu0 %v15826_v20  ;;  %v16738_v19 = vsel %vm530_vm0, %v555_v12, %v556_v13  ;;  %v1031_v12 = vrot.slane %v11516_v6, 2  ;;  %v1865_v13 = vrot.slane %v11587_v7, 4  ;;  %v1875_v6 = vrot.slane %v11594_v55, 4 }
  0xf4   : > { %13420 = vmatprep.subr.bf16.mxu1 %v15827_v21 }
  0xf5   : > { %v1032_v23 = vsel %vm530_vm0, %v1030_v11, %v1031_v12  ;;  %v15851_v12 = vld [vmem:[#allocation8 + $0x10] sm:$0xff]  }
  0xf6   : > { %13277 = vmatpush3.bf16.msra.mxu0 %v15826_v20  ;;  %v11571_v20 = vld [vmem:[#allocation2 + $0x618] sm:$0xff] }
  0xf7   : > { %13421 = vmatpush3.bf16.msra.mxu1 %v15827_v21  ;;  %13310 = vmatprep.subr.bf16.mxu0 %v15832_v34  ;;  %v11461_v21 = vld [vmem:[#allocation2 + $0x880] sm:$0xfc] }
  0xf8   : > { %13454 = vmatprep.subr.bf16.mxu1 %v15828_v30  ;;  %v558_v27 = vrot.slane %v11461_v21, 2  ;;  %v11518_v21 = vld [vmem:[#allocation2 + $0x4c8] sm:$0x3] }
  0xf9   : > { %13279 = vmatmul.mubr.bf16.vlgmr.msra.gmra.mrb[0].mxu0 %v16711_v35 }
  0xfa   : > { %13423 = vmatmul.mubr.bf16.vlgmr.msra.gmra.mrb[0].mxu1 %v11564_v31  ;;  %13282 = vmatprep.mubr.bf16.mxu0 %v16714_v38  ;;  %v16742_v31 = vld [vmem:[#allocation8 + $0x100] sm:$0xff]   ;;  %v16747_v33 = vsel %vm530_vm0, %v558_v27, %v559_v28  ;;  %v11520_v27 = vld [vmem:[#allocation2 + $0x4f8] sm:$0x3]  ;;  %v11591_v28 = vld [vmem:[#allocation2 + $0x728] sm:$0xf0] }
  0xfb   : > { %13455 = vmatpush3.bf16.msra.mxu1 %v15828_v30  ;;  %13426 = vmatprep.mubr.bf16.mxu1 %v11565_v36  ;;  %v562_v30 = vrot.slane %v11464_v24, 2  ;;  %v11573_v36 = vld [vmem:[#allocation2 + $0x678] sm:$0xff]  ;;  %v11590_v24 = vld [vmem:[#allocation2 + $0x700] sm:$0xf] }
  0xfc   : > { %13456 = vmatprep.subr.bf16.mxu1 %v15829_v37  ;;  %13311 = vmatpush3.bf16.msra.mxu0 %v15832_v34  ;;  %v11572_v34 = vld [vmem:[#allocation2 + $0x648] sm:$0xff]  ;;  %v1869_v39 = vrot.slane %v11590_v24, 4  ;;  %v11598_v24 = vld [vmem:[#allocation2 + $0x7c0] sm:$0xf] }
  0xfd   : > { %13312 = vmatprep.subr.bf16.mxu0 %v15834_v41 }
  0xff   : > { %13457 = vmatpush3.bf16.msra.mxu1 %v15829_v37  ;;  %v16750_v37 = vsel %vm530_vm0, %v561_v29, %v562_v30  ;;  %v11592_v29 = vld [vmem:[#allocation2 + $0x730] sm:$0xf] }
 0x100   : > { %13458 = vmatprep.subr.bf16.mxu1 %v15830_v46  ;;  %13313 = vmatpush3.bf16.msra.mxu0 %v15834_v41  ;;  %v11467_v41 = vld [vmem:[#allocation2 + $0x910] sm:$0xfc] }
 0x101   : > { %13283 = vmatmul.mubr.bf16.gmra.mrb[4].mxu0 %v16719_v48  ;;  %13314 = vmatprep.subr.bf16.mxu0 %v15835_v47  ;;  %v567_v45 = vrot.slane %v11467_v41, 2  ;;  %v1037_v41 = vrot.slane %v11520_v27, 2  ;;  %v11599_v27 = vld [vmem:[#allocation2 + $0x7e8] sm:$0xf0] }
 0x102   : > { %13427 = vmatmul.mubr.bf16.gmra.mrb[4].mxu1 %v11566_v49  ;;  %13286 = vmatprep.mubr.bf16.mxu0 %v16722_v51  ;;  %v11574_v49 = vld [vmem:[#allocation2 + $0x6a8] sm:$0xff] }
 0x103   : > { %13430 = vmatprep.mubr.bf16.mxu1 %v11567_v50  ;;  %13459 = vmatpush3.bf16.msra.mxu1 %v15830_v46  ;;  %v568_v46 = vrot.slane %v11468_v42, 2  ;;  %v1871_v42 = vrot.slane %v11591_v28, 4  ;;  %v11600_v28 = vld [vmem:[#allocation2 + $0x7f0] sm:$0xf] }
 0x104   : > { %13460 = vmatprep.subr.bf16.mxu1 %v15831_v56  ;;  %13315 = vmatpush3.bf16.msra.mxu0 %v15835_v47  ;;  %v16757_v47 = vsel %vm530_vm0, %v564_v43, %v565_v44  ;;  %v1872_v43 = vrot.slane %v11592_v29, 4  ;;  %v11521_v44 = vld [vmem:[#allocation2 + $0x520] sm:$0xfc]  ;;  %v15853_v29 = vld [vmem:[#allocation8 + $0x18] sm:$0xff]  }
 0x105   : > { %13316 = vmatprep.subr.bf16.mxu0 %v15837_v57  ;;  %17839 = vst [vmem:[#allocation29_spill] sm:$0xff] %v16757_v47  ;;  %v16760_v50 = vsel %vm530_vm0, %v567_v45, %v568_v46  ;;  %v11522_v45 = vld [vmem:[#allocation2 + $0x528] sm:$0x3] }
 0x106   : > { %17840 = vst [vmem:[#allocation30_spill] sm:$0xff] %v16760_v50 }
 0x107   : > { %13461 = vmatpush3.bf16.msra.mxu1 %v15831_v56  ;;  %v11472_v56 = vld [vmem:[#allocation2 + $0x978] sm:$0x3] }
 0x108   : > { %13462 = vmatprep.subr.bf16.mxu1 %v15833_v62  ;;  %13317 = vmatpush3.bf16.msra.mxu0 %v15837_v57  ;;  %v570_v57 = vrot.slane %v11469_v53, 2  ;;  %v574_v60 = vrot.slane %v11472_v56, 2  ;;  %v11523_v56 = vld [vmem:[#allocation2 + $0x550] sm:$0xfc] }
 0x109   : > { %13287 = vmatmul.mubr.bf16.gmra.mrb[8].mxu0 %v16727_v2  ;;  %13318 = vmatprep.subr.bf16.mxu0 %v15838_v1  ;;  %v1042_v7 = vrot.slane %v11523_v56, 2  ;;  %v11531_v56 = vld [vmem:[#allocation2 + $0x610] sm:$0xfc] }
 0x10a   : > { %13431 = vmatmul.mubr.bf16.gmra.mrb[8].mxu1 %v11568_v63  ;;  %13290 = vmatprep.mubr.bf16.mxu0 %v16730_v5  ;;  %v11577_v63 = vld [vmem:[#allocation2 + $0x738] sm:$0xff] }
 0x10b   : > { %13434 = vmatprep.mubr.bf16.mxu1 %v11569_v3  ;;  %13463 = vmatpush3.bf16.msra.mxu1 %v15833_v62  ;;  %v16765_v62 = vsel %vm530_vm0, %v570_v57, %v571_v58  ;;  %v16768_v3 = vsel %vm530_vm0, %v573_v59, %v574_v60  ;;  %v1873_v57 = vsel %vm885_vm1, %v1871_v42, %v1872_v43  ;;  %v11524_v58 = vld [vmem:[#allocation2 + $0x558] sm:$0x3]  ;;  %v11595_v59 = vld [vmem:[#allocation2 + $0x788] sm:$0xf0]  ;;  %v11596_v60 = vld [vmem:[#allocation2 + $0x790] sm:$0xf] }
 0x10c   : > { %13464 = vmatprep.subr.bf16.mxu1 %v15836_v8  ;;  %13319 = vmatpush3.bf16.msra.mxu0 %v15838_v1  ;;  %17841 = vst [vmem:[#allocation31_spill] sm:$0xff] %v16765_v62  ;;  %v11474_v1 = vld [vmem:[#allocation2 + $0x9a8] sm:$0x3]  ;;  %17842 = vst [vmem:[#allocation32_spill] sm:$0xff] %v16768_v3  ;;  %v1878_v11 = vrot.slane %v11596_v60, 4  ;;  %v1883_v42 = vrot.slane %v11599_v27, 4 }
 0x10d   : > { %13320 = vmatprep.subr.bf16.mxu0 %v15840_v9  ;;  %v577_v10 = vrot.slane %v11474_v1, 2  ;;  %v15846_v1 = vld [vmem:[#allocation8 + $0x110] sm:$0xff]   ;;  %v1884_v43 = vrot.slane %v11600_v28, 4  ;;  %v11603_v60 = vld [vmem:[#allocation2 + $0x848] sm:$0xf0] }
 0x10f   : > { %13465 = vmatpush3.bf16.msra.mxu1 %v15836_v8  ;;  %v11588_v8 = vld [vmem:[#allocation2 + $0x6d0] sm:$0xf] }
 0x110   : > { %13466 = vmatprep.subr.bf16.mxu1 %v15839_v14  ;;  %13321 = vmatpush3.bf16.msra.mxu0 %v15840_v9  ;;  %v576_v9 = vrot.slane %v11473_v0, 2  ;;  %v1040_v0 = vrot.slane %v11522_v45, 2  ;;  %v11601_v45 = vld [vmem:[#allocation2 + $0x818] sm:$0xf0] }
 0x111   : > { %13291 = vmatmul.mubr.bf16.gmra.mrb[12].mxu0 %v16735_v16  ;;  %13322 = vmatprep.subr.bf16.mxu0 %v15841_v15 }
 0x112   : > { %13435 = vmatmul.mubr.bf16.gmra.mrb[12].mxu1 %v11570_v18  ;;  %13294 = vmatprep.mubr.bf16.mxu0 %v16738_v19  ;;  %v11517_v18 = vld [vmem:[#allocation2 + $0x4c0] sm:$0xfc] }
 0x113   : > { %13438 = vmatprep.mubr.bf16.mxu1 %v11571_v20  ;;  %13467 = vmatpush3.bf16.msra.mxu1 %v15839_v14  ;;  %v1866_v14 = vrot.slane %v11588_v8, 4  ;;  %v16773_v20 = vsel %vm530_vm0, %v576_v9, %v577_v10  ;;  %v1033_v30 = vrot.slane %v11517_v18, 2  ;;  %v1043_v8 = vrot.slane %v11524_v58, 2  ;;  %v11525_v9 = vld [vmem:[#allocation2 + $0x580] sm:$0xfc]  ;;  %v15847_v18 = vld [vmem:[#allocation8 + $0x118] sm:$0xff]  }
 0x114   : > { %13468 = vmatprep.subr.bf16.mxu1 %v15842_v25  ;;  %13323 = vmatpush3.bf16.msra.mxu0 %v15841_v15  ;;  %v11578_v15 = vld [vmem:[#allocation2 + $0x768] sm:$0xff]  ;;  %17843 = vst [vmem:[#allocation33_spill] sm:$0xff] %v16773_v20  ;;  %v1877_v10 = vrot.slane %v11595_v59, 4  ;;  %v1885_v58 = vsel %vm885_vm1, %v1883_v42, %v1884_v43  ;;  %v16796_v42 = vld [vmem:[#allocation8 + $0x140] sm:$0xff]  }
 0x115   : > { %13324 = vmatprep.subr.bf16.mxu0 %v15843_v26  ;;  %v16798_v43 = vld [vmem:[#allocation10 + $0x40] sm:$0xff]  }
 0x117   : > { %13469 = vmatpush3.bf16.msra.mxu1 %v15842_v25  ;;  %v1867_v25 = vsel %vm885_vm1, %v1865_v13, %v1866_v14  ;;  %v11526_v14 = vld [vmem:[#allocation2 + $0x588] sm:$0x3] }
 0x118   : > { %13325 = vmatpush3.bf16.msra.mxu0 %v15843_v26  ;;  %13502 = vmatprep.subr.bf16.mxu1 %v16742_v31  ;;  %v11519_v26 = vld [vmem:[#allocation2 + $0x4f0] sm:$0xfc] }
 0x119   : > { %13295 = vmatmul.mubr.bf16.gmra.mrb[16].mxu0 %v16747_v33  ;;  %13358 = vmatprep.subr.bf16.mxu0 %v16744_v32  ;;  %v1036_v40 = vrot.slane %v11519_v26, 2  ;;  %v11528_v26 = vld [vmem:[#allocation2 + $0x5b8] sm:$0x3] }
 0x11a   : > { %13439 = vmatmul.mubr.bf16.gmra.mrb[16].mxu1 %v11572_v34  ;;  %13298 = vmatprep.mubr.bf16.mxu0 %v16750_v37  ;;  %v1034_v34 = vrot.slane %v11518_v21, 2  ;;  %v1044_v21 = vsel %vm530_vm0, %v1042_v7, %v1043_v8  ;;  %v1889_v8 = vrot.slane %v11603_v60, 4 }
 0x11b   : > { %13442 = vmatprep.mubr.bf16.mxu1 %v11573_v36  ;;  %v1868_v36 = vrot.slane %v11589_v22, 4  ;;  %v1038_v54 = vsel %vm530_vm0, %v1036_v40, %v1037_v41  ;;  %v11597_v22 = vld [vmem:[#allocation2 + $0x7b8] sm:$0xf0]  ;;  %v1049_v40 = vrot.slane %v11528_v26, 2  ;;  %v15849_v41 = vld [vmem:[#allocation8 + $0x120] sm:$0xff]  }
 0x11c   : > { %v1035_v46 = vsel %vm530_vm0, %v1033_v30, %v1034_v34  ;;  %v11529_v30 = vld [vmem:[#allocation2 + $0x5e0] sm:$0xfc]  ;;  %v1880_v34 = vrot.slane %v11597_v22, 4  ;;  %v15858_v26 = vld [vmem:[#allocation8 + $0x138] sm:$0xff]  }
 0x11d   : > { %v1870_v53 = vsel %vm885_vm1, %v1868_v36, %v1869_v39  ;;  %v1881_v36 = vrot.slane %v11598_v24, 4  ;;  %v11536_v24 = vld [vmem:[#allocation2 + $0x678] sm:$0x3] }
 0x121   : > { %13299 = vmatmul.mubr.bf16.gmra.mrb[20].mxu0 %v16757_v47 }
 0x122   : > { %13443 = vmatmul.mubr.bf16.gmra.mrb[20].mxu1 %v11574_v49  ;;  %13302 = vmatprep.mubr.bf16.mxu0 %v16760_v50  ;;  %v11593_v49 = vld [vmem:[#allocation2 + $0x758] sm:$0xf0] }
 0x123   : > { %13446 = vmatprep.mubr.bf16.mxu1 %v11575_v52  ;;  %v15845_v52 = vld [vmem:[#allocation8 + $0x108] sm:$0xff]   ;;  %v1874_v4 = vrot.slane %v11593_v49, 4  ;;  %v15854_v49 = vld [vmem:[#allocation8 + $0x20] sm:$0xff]  }
 0x129   : > { %13303 = vmatmul.mubr.bf16.gmra.mrb[24].mxu0 %v16765_v62 }
 0x12a   : > { %13447 = vmatmul.mubr.bf16.gmra.mrb[24].mxu1 %v11576_v61  ;;  %13306 = vmatprep.mubr.bf16.mxu0 %v16768_v3  ;;  %v15850_v61 = vld [vmem:[#allocation8 + $0x8] sm:$0xff]  }
 0x12b   : > { %13450 = vmatprep.mubr.bf16.mxu1 %v11577_v63  ;;  %v1039_v63 = vrot.slane %v11521_v44, 2  ;;  %v11530_v44 = vld [vmem:[#allocation2 + $0x5e8] sm:$0x3] }
 0x12c   : > { %v1052_v59 = vrot.slane %v11530_v44, 2 }
 0x12d   : > { %v1041_v13 = vsel %vm530_vm0, %v1039_v63, %v1040_v0  ;;  %v15852_v63 = vld [vmem:[#allocation8 + $0x128] sm:$0xff]   ;;  %v1886_v0 = vrot.slane %v11601_v45, 4  ;;  %v11537_v45 = vld [vmem:[#allocation2 + $0x6a0] sm:$0xfc] }
 0x12e   : > { %v1063_v60 = vrot.slane %v11537_v45, 2  ;;  %v11483_v45 = vld [vmem:[#allocation2 + $0x488] sm:$0xf0] }
 0x131   : > { %13307 = vmatmul.mubr.bf16.gmra.mrb[28].mxu0 %v16773_v20 }
 0x132   : > { %13451 = vmatmul.mubr.bf16.gmra.mrb[28].mxu1 %v11578_v15  ;;  %13326 = vmatprep.mubr.bf16.mxu0 %v1032_v23  ;;  %v1045_v15 = vrot.slane %v11525_v9, 2  ;;  %v1879_v23 = vsel %vm885_vm1, %v1877_v10, %v1878_v11  ;;  %v11533_v10 = vld [vmem:[#allocation2 + $0x640] sm:$0xfc]  ;;  %v11534_v11 = vld [vmem:[#allocation2 + $0x648] sm:$0x3] }
 0x133   : > { %13470 = vmatprep.mubr.bf16.mxu1 %v1867_v25  ;;  %v11527_v25 = vld [vmem:[#allocation2 + $0x5b0] sm:$0xfc]  ;;  %v1058_v27 = vrot.slane %v11534_v11, 2 }
 0x134   : > { %v1048_v39 = vrot.slane %v11527_v25, 2  ;;  %v11607_v25 = vld [vmem:[#allocation2 + $0x8a8] sm:$0xf0] }
 0x136   : > { %v1050_v55 = vsel %vm530_vm0, %v1048_v39, %v1049_v40  ;;  %v1061_v39 = vrot.slane %v11536_v24, 2  ;;  %v1895_v40 = vrot.slane %v11607_v25, 4 }
 0x139   : > { %13327 = vmatmul.mubr.bf16.vlgmr.msra.gmra.mrb[32].mxu0 %v1035_v46  ;;  %v1051_v46 = vrot.slane %v11529_v30, 2  ;;  %v15859_v30 = vld [vmem:[#allocation8 + $0x38] sm:$0xff]  }
 0x13a   : > { %13471 = vmatmul.mubr.bf16.vlgmr.msra.gmra.mrb[0].mxu1 %v1870_v53  ;;  %13330 = vmatprep.mubr.bf16.mxu0 %v1038_v54  ;;  %v11602_v53 = vld [vmem:[#allocation2 + $0x820] sm:$0xf]  ;;  %v1882_v54 = vsel %vm885_vm1, %v1880_v34, %v1881_v36 }
 0x13b   : > { %13503 = vmatpush3.bf16.msra.mxu1 %v16742_v31  ;;  %13474 = vmatprep.mubr.bf16.mxu1 %v1873_v57  ;;  %v1876_v31 = vsel %vm885_vm1, %v1874_v4, %v1875_v6  ;;  %v11532_v57 = vld [vmem:[#allocation2 + $0x618] sm:$0x3]  ;;  %v1887_v4 = vrot.slane %v11602_v53, 4  ;;  %v1054_v6 = vrot.slane %v11531_v56, 2  ;;  %v11609_v53 = vld [vmem:[#allocation2 + $0x8d8] sm:$0xf0] }
 0x13c   : > { %13504 = vmatprep.subr.bf16.mxu1 %v15845_v52  ;;  %13359 = vmatpush3.bf16.msra.mxu0 %v16744_v32  ;;  %v1046_v32 = vrot.slane %v11526_v14, 2  ;;  %v1055_v7 = vrot.slane %v11532_v57, 2  ;;  %v11606_v14 = vld [vmem:[#allocation2 + $0x880] sm:$0xf]  ;;  %v11539_v56 = vld [vmem:[#allocation2 + $0x6d0] sm:$0xfc] }
 0x13d   : > { %13360 = vmatprep.subr.bf16.mxu0 %v15850_v61  ;;  %v1893_v34 = vrot.slane %v11606_v14, 4  ;;  %v11540_v57 = vld [vmem:[#allocation2 + $0x6d8] sm:$0x3]  ;;  %v11614_v14 = vld [vmem:[#allocation2 + $0x940] sm:$0xf] }
 0x13e   : > { %v1056_v22 = vsel %vm530_vm0, %v1054_v6, %v1055_v7 }
 0x13f   : > { %13505 = vmatpush3.bf16.msra.mxu1 %v15845_v52  ;;  %v1047_v52 = vsel %vm530_vm0, %v1045_v15, %v1046_v32  ;;  %v15857_v15 = vld [vmem:[#allocation8 + $0x30] sm:$0xff]   ;;  %v1057_v32 = vrot.slane %v11533_v10, 2  ;;  %v11542_v10 = vld [vmem:[#allocation2 + $0x708] sm:$0x3] }
 0x140   : > { %13506 = vmatprep.subr.bf16.mxu1 %v15846_v1  ;;  %13361 = vmatpush3.bf16.msra.mxu0 %v15850_v61  ;;  %v11604_v61 = vld [vmem:[#allocation2 + $0x850] sm:$0xf]  ;;  %v1070_v24 = vrot.slane %v11542_v10, 2 }
 0x141   : > { %13331 = vmatmul.mubr.bf16.gmra.mrb[36].mxu0 %v1041_v13  ;;  %13362 = vmatprep.subr.bf16.mxu0 %v15851_v12  ;;  %v1890_v9 = vrot.slane %v11604_v61, 4  ;;  %v15855_v13 = vld [vmem:[#allocation8 + $0x130] sm:$0xff]   ;;  %v1059_v44 = vsel %vm530_vm0, %v1057_v32, %v1058_v27 }
 0x142   : > { %13475 = vmatmul.mubr.bf16.gmra.mrb[4].mxu1 %v1876_v31  ;;  %13334 = vmatprep.mubr.bf16.mxu0 %v1044_v21  ;;  %v11535_v31 = vld [vmem:[#allocation2 + $0x670] sm:$0xfc]  ;;  %v1888_v21 = vsel %vm885_vm1, %v1886_v0, %v1887_v4  ;;  %v1067_v4 = vrot.slane %v11540_v57, 2 }
 0x143   : > { %13478 = vmatprep.mubr.bf16.mxu1 %v1879_v23  ;;  %13507 = vmatpush3.bf16.msra.mxu1 %v15846_v1  ;;  %v15856_v1 = vld [vmem:[#allocation8 + $0x28] sm:$0xff]   ;;  %v1891_v23 = vsel %vm885_vm1, %v1889_v8, %v1890_v9  ;;  %v1060_v36 = vrot.slane %v11535_v31, 2  ;;  %v11541_v9 = vld [vmem:[#allocation2 + $0x700] sm:$0xfc]  ;;  %v11544_v31 = vld [vmem:[#allocation2 + $0x738] sm:$0x3] }
 0x144   : > { %13508 = vmatprep.subr.bf16.mxu1 %v15847_v18  ;;  %13363 = vmatpush3.bf16.msra.mxu0 %v15851_v12  ;;  %v11605_v12 = vld [vmem:[#allocation2 + $0x878] sm:$0xf0]  ;;  %v1073_v27 = vrot.slane %v11544_v31, 2 }
 0x145   : > { %13364 = vmatprep.subr.bf16.mxu0 %v15853_v29  ;;  %v1892_v28 = vrot.slane %v11605_v12, 4 }
 0x147   : > { %13509 = vmatpush3.bf16.msra.mxu1 %v15847_v18  ;;  %v1053_v18 = vsel %vm530_vm0, %v1051_v46, %v1052_v59  ;;  %v1894_v46 = vsel %vm885_vm1, %v1892_v28, %v1893_v34  ;;  %v11612_v59 = vld [vmem:[#allocation2 + $0x910] sm:$0xf] }
 0x148   : > { %13510 = vmatprep.subr.bf16.mxu1 %v15849_v41  ;;  %13365 = vmatpush3.bf16.msra.mxu0 %v15853_v29  ;;  %v11608_v29 = vld [vmem:[#allocation2 + $0x8b0] sm:$0xf]  ;;  %v1902_v7 = vrot.slane %v11612_v59, 4  ;;  %v11485_v59 = vld [vmem:[#allocation2 + $0x4b8] sm:$0xf0] }
 0x149   : > { %13335 = vmatmul.mubr.bf16.gmra.mrb[40].mxu0 %v1047_v52  ;;  %13366 = vmatprep.subr.bf16.mxu0 %v15854_v49  ;;  %v11538_v52 = vld [vmem:[#allocation2 + $0x6a8] sm:$0x3] }
 0x14a   : > { %13479 = vmatmul.mubr.bf16.gmra.mrb[8].mxu1 %v1882_v54  ;;  %13338 = vmatprep.mubr.bf16.mxu0 %v1050_v55  ;;  %v11610_v55 = vld [vmem:[#allocation2 + $0x8e0] sm:$0xf]  ;;  %v1064_v61 = vrot.slane %v11538_v52, 2 }
 0x14b   : > { %13482 = vmatprep.mubr.bf16.mxu1 %v1885_v58  ;;  %13511 = vmatpush3.bf16.msra.mxu1 %v15849_v41  ;;  %v1896_v41 = vrot.slane %v11608_v29, 4  ;;  %v11611_v58 = vld [vmem:[#allocation2 + $0x908] sm:$0xf0]  ;;  %v1899_v0 = vrot.slane %v11610_v55, 4 }
 0x14c   : > { %13512 = vmatprep.subr.bf16.mxu1 %v15852_v63  ;;  %13367 = vmatpush3.bf16.msra.mxu0 %v15854_v49  ;;  %v1062_v49 = vsel %vm530_vm0, %v1060_v36, %v1061_v39  ;;  %v1901_v6 = vrot.slane %v11611_v58, 4  ;;  %v1065_v8 = vsel %vm530_vm0, %v1063_v60, %v1064_v61  ;;  %v11546_v36 = vld [vmem:[#allocation2 + $0x768] sm:$0x3] }
 0x14d   : > { %13368 = vmatprep.subr.bf16.mxu0 %v15856_v1  ;;  %v1897_v54 = vsel %vm885_vm1, %v1895_v40, %v1896_v41  ;;  %v11617_v41 = vld [vmem:[#allocation2 + $0x998] sm:$0xf0] }
 0x14f   : > { %13513 = vmatpush3.bf16.msra.mxu1 %v15852_v63  ;;  %v1898_v63 = vrot.slane %v11609_v53, 4  ;;  %v1076_v53 = vrot.slane %v11546_v36, 2 }
 0x150   : > { %13514 = vmatprep.subr.bf16.mxu1 %v15855_v13  ;;  %13369 = vmatpush3.bf16.msra.mxu0 %v15856_v1  ;;  %v1066_v1 = vrot.slane %v11539_v56, 2  ;;  %v886_v56 = vrot.slane %v11483_v45, 4  ;;  %v11498_v45 = vld [vmem:[#allocation2 + $0x5e0] sm:$0xf] }
 0x151   : > { %13339 = vmatmul.mubr.bf16.gmra.mrb[44].mxu0 %v1053_v18  ;;  %13370 = vmatprep.subr.bf16.mxu0 %v15857_v15  ;;  %v1900_v11 = vsel %vm885_vm1, %v1898_v63, %v1899_v0  ;;  %v1903_v18 = vsel %vm885_vm1, %v1901_v6, %v1902_v7  ;;  %v11486_v63 = vld [vmem:[#allocation2 + $0x4c0] sm:$0xf]  ;;  %v11487_v0 = vld [vmem:[#allocation2 + $0x4e8] sm:$0xf0] }
 0x152   : > { %13483 = vmatmul.mubr.bf16.gmra.mrb[12].mxu1 %v1888_v21  ;;  %13342 = vmatprep.mubr.bf16.mxu0 %v1056_v22  ;;  %v1068_v12 = vsel %vm530_vm0, %v1066_v1, %v1067_v4  ;;  %v11615_v21 = vld [vmem:[#allocation2 + $0x968] sm:$0xf0]  ;;  %v11616_v22 = vld [vmem:[#allocation2 + $0x970] sm:$0xf]  ;;  %v889_v4 = vrot.slane %v11485_v59, 4  ;;  %v890_v6 = vrot.slane %v11486_v63, 4 }
 0x153   : > { %13486 = vmatprep.mubr.bf16.mxu1 %v1891_v23  ;;  %13515 = vmatpush3.bf16.msra.mxu1 %v15855_v13  ;;  %v11613_v13 = vld [vmem:[#allocation2 + $0x938] sm:$0xf0]  ;;  %v1069_v23 = vrot.slane %v11541_v9, 2  ;;  %v1907_v28 = vrot.slane %v11615_v21, 4  ;;  %v1908_v29 = vrot.slane %v11616_v22, 4  ;;  %v892_v7 = vrot.slane %v11487_v0, 4 }
 0x154   : > { %13516 = vmatprep.subr.bf16.mxu1 %v15858_v26  ;;  %13371 = vmatpush3.bf16.msra.mxu0 %v15857_v15  ;;  %v11543_v15 = vld [vmem:[#allocation2 + $0x730] sm:$0xfc]  ;;  %v1904_v25 = vrot.slane %v11613_v13, 4  ;;  %v891_v9 = vsel %vm885_vm1, %v889_v4, %v890_v6  ;;  %v15861_v13 = vld [vmem:[#allocation8 + $0x148] sm:$0xff]   ;;  %v11501_v63 = vld [vmem:[#allocation2 + $0x638] sm:$0xf0] }
 0x155   : > { %13372 = vmatprep.subr.bf16.mxu0 %v15859_v30  ;;  %v1072_v32 = vrot.slane %v11543_v15, 2  ;;  %v1071_v34 = vsel %vm530_vm0, %v1069_v23, %v1070_v24  ;;  %v11488_v1 = vld [vmem:[#allocation2 + $0x4f0] sm:$0xf]  ;;  %v11502_v0 = vld [vmem:[#allocation2 + $0x640] sm:$0xf] }
 0x156   : > { %v11492_v15 = vld [vmem:[#allocation2 + $0x550] sm:$0xf]  ;;  %v11503_v6 = vld [vmem:[#allocation2 + $0x668] sm:$0xf0] }
 0x157   : > { %13517 = vmatpush3.bf16.msra.mxu1 %v15858_v26  ;;  %v1905_v26 = vrot.slane %v11614_v14, 4  ;;  %v1074_v40 = vsel %vm530_vm0, %v1072_v32, %v1073_v27  ;;  %v11491_v14 = vld [vmem:[#allocation2 + $0x548] sm:$0xf0]  ;;  %v899_v23 = vrot.slane %v11492_v15, 4  ;;  %v15862_v24 = vld [vmem:[#allocation8 + $0x150] sm:$0xff]   ;;  %v16836_v15 = vld [vmem:[#allocation8 + $0x180] sm:$0xff]  }
 0x158   : > { %13373 = vmatpush3.bf16.msra.mxu0 %v15859_v30  ;;  %13550 = vmatprep.subr.bf16.mxu1 %v16796_v42  ;;  %v11545_v30 = vld [vmem:[#allocation2 + $0x760] sm:$0xfc]  ;;  %v898_v22 = vrot.slane %v11491_v14, 4  ;;  %v11493_v32 = vld [vmem:[#allocation2 + $0x578] sm:$0xf0] }
 0x159   : > { %13343 = vmatmul.mubr.bf16.gmra.mrb[48].mxu0 %v1059_v44  ;;  %13742 = vmatprep.subr.bf16.mxu0 %v16798_v43  ;;  %v1906_v39 = vsel %vm885_vm1, %v1904_v25, %v1905_v26  ;;  %v11618_v44 = vld [vmem:[#allocation2 + $0x9a0] sm:$0xf]  ;;  %v1075_v52 = vrot.slane %v11545_v30, 2  ;;  %v15868_v25 = vld [vmem:[#allocation10 + $0x50] sm:$0xff]  }
 0x15a   : > { %13487 = vmatmul.mubr.bf16.gmra.mrb[16].mxu1 %v1894_v46  ;;  %13346 = vmatprep.mubr.bf16.mxu0 %v1062_v49  ;;  %v1909_v46 = vsel %vm885_vm1, %v1907_v28, %v1908_v29  ;;  %v11484_v49 = vld [vmem:[#allocation2 + $0x490] sm:$0xf]  ;;  %v1911_v55 = vrot.slane %v11618_v44, 4  ;;  %v900_v27 = vsel %vm885_vm1, %v898_v22, %v899_v23  ;;  %v11494_v28 = vld [vmem:[#allocation2 + $0x580] sm:$0xf]  ;;  %v15863_v29 = vld [vmem:[#allocation8 + $0x158] sm:$0xff]  }
 0x15b   : > { %13490 = vmatprep.mubr.bf16.mxu1 %v1897_v54  ;;  %v1910_v54 = vrot.slane %v11617_v41, 4  ;;  %v887_v57 = vrot.slane %v11484_v49, 4  ;;  %v1077_v58 = vsel %vm530_vm0, %v1075_v52, %v1076_v53  ;;  %v11496_v30 = vld [vmem:[#allocation2 + $0x5b0] sm:$0xf]  ;;  %v902_v36 = vrot.slane %v11494_v28, 4  ;;  %v15864_v41 = vld [vmem:[#allocation8 + $0x160] sm:$0xff]  }
 0x15c   : > { %v11497_v44 = vld [vmem:[#allocation2 + $0x5d8] sm:$0xf0]  ;;  %v11499_v52 = vld [vmem:[#allocation2 + $0x608] sm:$0xf0]  ;;  %v11500_v53 = vld [vmem:[#allocation2 + $0x610] sm:$0xf] }
 0x15d   : > { %v1912_v60 = vsel %vm885_vm1, %v1910_v54, %v1911_v55  ;;  %v888_v61 = vsel %vm885_vm1, %v886_v56, %v887_v57  ;;  %v15867_v54 = vld [vmem:[#allocation8 + $0x168] sm:$0xff]   ;;  %v907_v57 = vrot.slane %v11497_v44, 4  ;;  %v910_v59 = vrot.slane %v11499_v52, 4  ;;  %v11506_v22 = vld [vmem:[#allocation2 + $0x6a0] sm:$0xf] }
 0x15e   : > { %v15872_v56 = vld [vmem:[#allocation10 + $0x68] sm:$0xff]  }
 0x161   : > { %13347 = vmatmul.mubr.bf16.gmra.mrb[52].mxu0 %v1065_v8  ;;  %v893_v8 = vrot.slane %v11488_v1, 4  ;;  %v15874_v1 = vld [vmem:[#allocation10 + $0x70] sm:$0xff]  }
 0x162   : > { %13491 = vmatmul.mubr.bf16.gmra.mrb[20].mxu1 %v1900_v11  ;;  %13350 = vmatprep.mubr.bf16.mxu0 %v1068_v12  ;;  %v11489_v11 = vld [vmem:[#allocation2 + $0x518] sm:$0xf0]  ;;  %v11490_v12 = vld [vmem:[#allocation2 + $0x520] sm:$0xf] }
 0x163   : > { %13494 = vmatprep.mubr.bf16.mxu1 %v1903_v18  ;;  %v894_v10 = vsel %vm885_vm1, %v892_v7, %v893_v8  ;;  %v15866_v18 = vld [vmem:[#allocation10 + $0x48] sm:$0xff]   ;;  %v895_v31 = vrot.slane %v11489_v11, 4  ;;  %v896_v21 = vrot.slane %v11490_v12, 4  ;;  %v11504_v7 = vld [vmem:[#allocation2 + $0x670] sm:$0xf]  ;;  %v15873_v8 = vld [vmem:[#allocation8 + $0x178] sm:$0xff]  }
 0x164   : > { %v913_v11 = vrot.slane %v11501_v63, 4  ;;  %v914_v12 = vrot.slane %v11502_v0, 4  ;;  %v917_v14 = vrot.slane %v11504_v7, 4  ;;  %v11798_v63 = vld [vmem:[#allocation2 + $0x288] sm:$0x3] }
 0x165   : > { %v897_v26 = vsel %vm885_vm1, %v895_v31, %v896_v21  ;;  %v11505_v21 = vld [vmem:[#allocation2 + $0x698] sm:$0xf0]  ;;  %v3974_v7 = vrot.slane %v11798_v63, 2 }
 0x166   : > { %v915_v31 = vsel %vm885_vm1, %v913_v11, %v914_v12  ;;  %v11801_v11 = vld [vmem:[#allocation2 + $0x2e0] sm:$0xfc] }
 0x169   : > { %13351 = vmatmul.mubr.bf16.gmra.mrb[56].mxu0 %v1071_v34  ;;  %v15869_v34 = vld [vmem:[#allocation10 + $0x58] sm:$0xff]  }
 0x16a   : > { %13495 = vmatmul.mubr.bf16.gmra.mrb[24].mxu1 %v1906_v39  ;;  %13354 = vmatprep.mubr.bf16.mxu0 %v1074_v40  ;;  %v905_v40 = vrot.slane %v11496_v30, 4  ;;  %v11510_v30 = vld [vmem:[#allocation2 + $0x700] sm:$0xf] }
 0x16b   : > { %13498 = vmatprep.mubr.bf16.mxu1 %v1909_v46  ;;  %v15871_v46 = vld [vmem:[#allocation10 + $0x60] sm:$0xff]  }
 0x171   : > { %13355 = vmatmul.mubr.bf16.gmra.mrb[60].mxu0 %v1077_v58  ;;  %v908_v58 = vrot.slane %v11498_v45, 4 }
 0x172   : > { %13499 = vmatmul.mubr.bf16.gmra.mrb[28].mxu1 %v1912_v60  ;;  %13374 = vmatprep.mubr.bf16.mxu0 %v888_v61  ;;  %v911_v60 = vrot.slane %v11500_v53, 4  ;;  %v15870_v61 = vld [vmem:[#allocation8 + $0x170] sm:$0xff]  }
 0x173   : > { %13518 = vmatprep.mubr.bf16.mxu1 %v16707_v17  ;;  %v909_v4 = vsel %vm885_vm1, %v907_v57, %v908_v58  ;;  %v11795_v53 = vld [vmem:[#allocation2 + $0x250] sm:$0xfc] }
 0x174   : > { %v3970_v57 = vrot.slane %v11795_v53, 2  ;;  %v11640_v53 = vld [vmem:[#allocation2 + $0x7c8] sm:$0xff] }
 0x179   : > { %13375 = vmatmul.mubr.bf16.vlgmr.msra.gmra.mrb[32].mxu0 %v891_v9  ;;  %v912_v9 = vsel %vm885_vm1, %v910_v59, %v911_v60  ;;  %v11635_v60 = vld [vmem:[#allocation2 + $0x6d8] sm:$0xff] }
 0x17a   : > { %13519 = vmatmul.mubr.bf16.vlgmr.msra.gmra.mrb[0].mxu1 %v16711_v35  ;;  %13378 = vmatprep.mubr.bf16.mxu0 %v894_v10  ;;  %v15875_v10 = vld [vmem:[#allocation10 + $0x78] sm:$0xff]  }
 0x17b   : > { %13551 = vmatpush3.bf16.msra.mxu1 %v16796_v42  ;;  %13522 = vmatprep.mubr.bf16.mxu1 %v16714_v38  ;;  %v11495_v42 = vld [vmem:[#allocation2 + $0x5a8] sm:$0xf0] }
 0x17c   : > { %13552 = vmatprep.subr.bf16.mxu1 %v15861_v13  ;;  %13743 = vmatpush3.bf16.msra.mxu0 %v16798_v43  ;;  %v901_v43 = vrot.slane %v11493_v32, 4  ;;  %v904_v39 = vrot.slane %v11495_v42, 4  ;;  %v920_v32 = vrot.slane %v11506_v22, 4  ;;  %v11509_v42 = vld [vmem:[#allocation2 + $0x6f8] sm:$0xf0] }
 0x17d   : > { %13744 = vmatprep.subr.bf16.mxu0 %v15866_v18 }
 0x17e   : > { %v903_v49 = vsel %vm885_vm1, %v901_v43, %v902_v36  ;;  %v906_v55 = vsel %vm885_vm1, %v904_v39, %v905_v40  ;;  %v11511_v43 = vld [vmem:[#allocation2 + $0x728] sm:$0xf0]  ;;  %v11512_v36 = vld [vmem:[#allocation2 + $0x730] sm:$0xf]  ;;  %v925_v39 = vrot.slane %v11509_v42, 4  ;;  %v926_v40 = vrot.slane %v11510_v30, 4 }
 0x17f   : > { %13553 = vmatpush3.bf16.msra.mxu1 %v15861_v13  ;;  %v916_v13 = vrot.slane %v11503_v6, 4  ;;  %v929_v44 = vrot.slane %v11512_v36, 4  ;;  %v11806_v42 = vld [vmem:[#allocation2 + $0x348] sm:$0x3]  ;;  %v15884_v30 = vld [vmem:[#allocation10 + $0x10] sm:$0xff]  }
 0x180   : > { %13554 = vmatprep.subr.bf16.mxu1 %v15862_v24  ;;  %13745 = vmatpush3.bf16.msra.mxu0 %v15866_v18  ;;  %v16838_v18 = vld [vmem:[#allocation10] sm:$0xff]   ;;  %v927_v45 = vsel %vm885_vm1, %v925_v39, %v926_v40  ;;  %v11807_v36 = vld [vmem:[#allocation2 + $0x370] sm:$0xfc]  ;;  %v11808_v39 = vld [vmem:[#allocation2 + $0x378] sm:$0x3] }
 0x181   : > { %13379 = vmatmul.mubr.bf16.gmra.mrb[36].mxu0 %v897_v26  ;;  %13746 = vmatprep.subr.bf16.mxu0 %v15868_v25  ;;  %v918_v23 = vsel %vm885_vm1, %v916_v13, %v917_v14  ;;  %v919_v26 = vrot.slane %v11505_v21, 4  ;;  %v15877_v13 = vld [vmem:[#allocation8 + $0x188] sm:$0xff]   ;;  %v11804_v21 = vld [vmem:[#allocation2 + $0x318] sm:$0x3] }
 0x182   : > { %13523 = vmatmul.mubr.bf16.gmra.mrb[4].mxu1 %v16719_v48  ;;  %13382 = vmatprep.mubr.bf16.mxu0 %v900_v27  ;;  %v11802_v14 = vld [vmem:[#allocation2 + $0x2e8] sm:$0x3]  ;;  %v15879_v40 = vld [vmem:[#allocation8 + $0x198] sm:$0xff]  }
 0x183   : > { %13526 = vmatprep.mubr.bf16.mxu1 %v16722_v51  ;;  %13555 = vmatpush3.bf16.msra.mxu1 %v15862_v24  ;;  %v11507_v24 = vld [vmem:[#allocation2 + $0x6c8] sm:$0xf0] }
 0x184   : > { %13556 = vmatprep.subr.bf16.mxu1 %v15863_v29  ;;  %13747 = vmatpush3.bf16.msra.mxu0 %v15868_v25  ;;  %v11508_v25 = vld [vmem:[#allocation2 + $0x6d0] sm:$0xf]  ;;  %v922_v27 = vrot.slane %v11507_v24, 4  ;;  %v3979_v24 = vrot.slane %v11801_v11, 2  ;;  %v11814_v11 = vld [vmem:[#allocation2 + $0x408] sm:$0x3] }
 0x185   : > { %13748 = vmatprep.subr.bf16.mxu0 %v15869_v34  ;;  %v923_v28 = vrot.slane %v11508_v25, 4  ;;  %v3980_v25 = vrot.slane %v11802_v14, 2  ;;  %v11643_v14 = vld [vmem:[#allocation2 + $0x858] sm:$0xff] }
 0x187   : > { %13557 = vmatpush3.bf16.msra.mxu1 %v15863_v29  ;;  %v921_v29 = vsel %vm885_vm1, %v919_v26, %v920_v32  ;;  %v16068_v26 = vld [vmem:[#allocation2 + $0x738] sm:$0xff] }
 0x188   : > { %13558 = vmatprep.subr.bf16.mxu1 %v15864_v41  ;;  %13749 = vmatpush3.bf16.msra.mxu0 %v15869_v34  ;;  %v924_v34 = vsel %vm885_vm1, %v922_v27, %v923_v28  ;;  %v3983_v27 = vrot.slane %v11804_v21, 2  ;;  %v15878_v28 = vld [vmem:[#allocation8 + $0x190] sm:$0xff]   ;;  %v11816_v21 = vld [vmem:[#allocation2 + $0x438] sm:$0x3] }
 0x189   : > { %13383 = vmatmul.mubr.bf16.gmra.mrb[40].mxu0 %v903_v49  ;;  %13750 = vmatprep.subr.bf16.mxu0 %v15871_v46  ;;  %v11514_v49 = vld [vmem:[#allocation2 + $0x760] sm:$0xf] }
 0x18a   : > { %13527 = vmatmul.mubr.bf16.gmra.mrb[8].mxu1 %v16727_v2  ;;  %13386 = vmatprep.mubr.bf16.mxu0 %v906_v55 }
 0x18b   : > { %13530 = vmatprep.mubr.bf16.mxu1 %v16730_v5  ;;  %13559 = vmatpush3.bf16.msra.mxu1 %v15864_v41  ;;  %v928_v41 = vrot.slane %v11511_v43, 4  ;;  %v11639_v43 = vld [vmem:[#allocation2 + $0x798] sm:$0xff] }
 0x18c   : > { %13560 = vmatprep.subr.bf16.mxu1 %v15867_v54  ;;  %13751 = vmatpush3.bf16.msra.mxu0 %v15871_v46  ;;  %v11513_v46 = vld [vmem:[#allocation2 + $0x758] sm:$0xf0] }
 0x18d   : > { %13752 = vmatprep.subr.bf16.mxu0 %v15872_v56  ;;  %v930_v52 = vsel %vm885_vm1, %v928_v41, %v929_v44  ;;  %v931_v55 = vrot.slane %v11513_v46, 4  ;;  %v15885_v41 = vld [vmem:[#allocation10 + $0x18] sm:$0xff]   ;;  %v16069_v44 = vld [vmem:[#allocation2 + $0x768] sm:$0xff]  ;;  %v3988_v46 = vrot.slane %v11807_v36, 2 }
 0x18e   : > { %v11818_v36 = vld [vmem:[#allocation2 + $0x468] sm:$0x3] }
 0x18f   : > { %13561 = vmatpush3.bf16.msra.mxu1 %v15867_v54  ;;  %v11796_v54 = vld [vmem:[#allocation2 + $0x258] sm:$0x3] }
 0x190   : > { %13562 = vmatprep.subr.bf16.mxu1 %v15870_v61  ;;  %13753 = vmatpush3.bf16.msra.mxu0 %v15872_v56  ;;  %v932_v56 = vrot.slane %v11514_v49, 4  ;;  %v3971_v58 = vrot.slane %v11796_v54, 2  ;;  %v3989_v49 = vrot.slane %v11808_v39, 2  ;;  %v11809_v54 = vld [vmem:[#allocation2 + $0x3a0] sm:$0xfc] }
 0x191   : > { %13387 = vmatmul.mubr.bf16.gmra.mrb[44].mxu0 %v909_v4  ;;  %13754 = vmatprep.subr.bf16.mxu0 %v15874_v1  ;;  %v11800_v4 = vld [vmem:[#allocation2 + $0x2b8] sm:$0x3] }
 0x192   : > { %13531 = vmatmul.mubr.bf16.gmra.mrb[12].mxu1 %v16735_v16  ;;  %13390 = vmatprep.mubr.bf16.mxu0 %v912_v9  ;;  %v933_v59 = vsel %vm885_vm1, %v931_v55, %v932_v56  ;;  %v3972_v0 = vsel %vm530_vm0, %v3970_v57, %v3971_v58  ;;  %v3977_v9 = vrot.slane %v11800_v4, 2  ;;  %v11810_v55 = vld [vmem:[#allocation2 + $0x3a8] sm:$0x3]  ;;  %v15887_v56 = vld [vmem:[#allocation10 + $0x20] sm:$0xff]   ;;  %v11641_v58 = vld [vmem:[#allocation2 + $0x7f8] sm:$0xff]  ;;  %v3990_v63 = vsel %vm530_vm0, %v3988_v46, %v3989_v49 }
 0x193   : > { %13534 = vmatprep.mubr.bf16.mxu1 %v16738_v19  ;;  %13563 = vmatpush3.bf16.msra.mxu1 %v15870_v61  ;;  %v11797_v61 = vld [vmem:[#allocation2 + $0x280] sm:$0xfc]  ;;  %v3992_v4 = vrot.slane %v11810_v55, 2  ;;  %v11646_v46 = vld [vmem:[#allocation2 + $0x8e8] sm:$0xff] }
 0x194   : > { %13564 = vmatprep.subr.bf16.mxu1 %v15873_v8  ;;  %13755 = vmatpush3.bf16.msra.mxu0 %v15874_v1  ;;  %v11799_v1 = vld [vmem:[#allocation2 + $0x2b0] sm:$0xfc]  ;;  %v3973_v6 = vrot.slane %v11797_v61, 2  ;;  %v15883_v61 = vld [vmem:[#allocation8 + $0x1a8] sm:$0xff]  }
 0x195   : > { %13756 = vmatprep.subr.bf16.mxu0 %v15875_v10 }
 0x196   : > { %v3975_v12 = vsel %vm530_vm0, %v3973_v6, %v3974_v7 }
 0x197   : > { %13565 = vmatpush3.bf16.msra.mxu1 %v15873_v8  ;;  %v3976_v8 = vrot.slane %v11799_v1, 2  ;;  %v3991_v1 = vrot.slane %v11809_v54, 2  ;;  %v11822_v54 = vld [vmem:[#allocation2 + $0x4c8] sm:$0x3] }
 0x198   : > { %13757 = vmatpush3.bf16.msra.mxu0 %v15875_v10  ;;  %13598 = vmatprep.subr.bf16.mxu1 %v16836_v15  ;;  %v11636_v10 = vld [vmem:[#allocation2 + $0x708] sm:$0xff] }
 0x199   : > { %13391 = vmatmul.mubr.bf16.gmra.mrb[48].mxu0 %v915_v31  ;;  %13790 = vmatprep.subr.bf16.mxu0 %v16838_v18  ;;  %v11803_v31 = vld [vmem:[#allocation2 + $0x310] sm:$0xfc]  ;;  %v3978_v22 = vsel %vm530_vm0, %v3976_v8, %v3977_v9  ;;  %v11642_v9 = vld [vmem:[#allocation2 + $0x828] sm:$0xff] }
 0x19a   : > { %13535 = vmatmul.mubr.bf16.gmra.mrb[16].mxu1 %v16747_v33  ;;  %13394 = vmatprep.mubr.bf16.mxu0 %v918_v23  ;;  %v15882_v23 = vld [vmem:[#allocation10 + $0x8] sm:$0xff]   ;;  %v3982_v32 = vrot.slane %v11803_v31, 2  ;;  %v15886_v8 = vld [vmem:[#allocation8 + $0x1b0] sm:$0xff]  }
 0x19b   : > { %13538 = vmatprep.mubr.bf16.mxu1 %v16750_v37  ;;  %v11815_v31 = vld [vmem:[#allocation2 + $0x430] sm:$0xfc] }
 0x1a1   : > { %13395 = vmatmul.mubr.bf16.gmra.mrb[52].mxu0 %v921_v29  ;;  %v11805_v29 = vld [vmem:[#allocation2 + $0x340] sm:$0xfc] }
 0x1a2   : > { %13539 = vmatmul.mubr.bf16.gmra.mrb[20].mxu1 %v16757_v47  ;;  %13398 = vmatprep.mubr.bf16.mxu0 %v924_v34  ;;  %v3981_v34 = vsel %vm530_vm0, %v3979_v24, %v3980_v25  ;;  %v15891_v24 = vld [vmem:[#allocation10 + $0x38] sm:$0xff]  }
 0x1a3   : > { %13542 = vmatprep.mubr.bf16.mxu1 %v16760_v50 }
 0x1a9   : > { %13399 = vmatmul.mubr.bf16.gmra.mrb[56].mxu0 %v927_v45  ;;  %v3986_v45 = vrot.slane %v11806_v42, 2  ;;  %v16869_v42 = vld [vmem:[#allocation10 + $0x80] sm:$0xff]  }
 0x1aa   : > { %13543 = vmatmul.mubr.bf16.gmra.mrb[24].mxu1 %v16765_v62  ;;  %13402 = vmatprep.mubr.bf16.mxu0 %v930_v52  ;;  %v15880_v52 = vld [vmem:[#allocation8 + $0x1a0] sm:$0xff]  }
 0x1ab   : > { %13546 = vmatprep.mubr.bf16.mxu1 %v16768_v3 }
 0x1b1   : > { %13403 = vmatmul.mubr.bf16.gmra.mrb[60].mxu0 %v933_v59  ;;  %v11811_v59 = vld [vmem:[#allocation2 + $0x3d0] sm:$0xfc] }
 0x1b2   : > { %13547 = vmatmul.mubr.bf16.gmra.mrb[28].mxu1 %v16773_v20  ;;  %13758 = vmatprep.mubr.bf16.mxu0 %v3972_v0  ;;  %v15888_v0 = vld [vmem:[#allocation10 + $0x28] sm:$0xff]   ;;  %v3994_v6 = vrot.slane %v11811_v59, 2  ;;  %v4010_v59 = vrot.slane %v11822_v54, 2 }
 0x1b3   : > { %13566 = vmatprep.mubr.bf16.mxu1 %v11635_v60  ;;  %v11812_v60 = vld [vmem:[#allocation2 + $0x3d8] sm:$0x3] }
 0x1b4   : > { %v3995_v7 = vrot.slane %v11812_v60, 2 }
 0x1b9   : > { %13759 = vmatmul.mubr.bf16.vlgmr.msra.gmra.mrb[64].mxu0 %v3975_v12  ;;  %v15890_v12 = vld [vmem:[#allocation10 + $0x30] sm:$0xff]  }
 0x1ba   : > { %13567 = vmatmul.mubr.bf16.vlgmr.msra.gmra.mrb[0].mxu1 %v11636_v10  ;;  %13762 = vmatprep.mubr.bf16.mxu0 %v3978_v22  ;;  %v11813_v10 = vld [vmem:[#allocation2 + $0x400] sm:$0xfc]  ;;  %v15889_v22 = vld [vmem:[#allocation8 + $0x1b8] sm:$0xff]  }
 0x1bb   : > { %13599 = vmatpush3.bf16.msra.mxu1 %v16836_v15  ;;  %13570 = vmatprep.mubr.bf16.mxu1 %v16068_v26  ;;  %v3984_v15 = vsel %vm530_vm0, %v3982_v32, %v3983_v27  ;;  %v3997_v25 = vrot.slane %v11813_v10, 2  ;;  %v3998_v26 = vrot.slane %v11814_v11, 2  ;;  %v4000_v32 = vrot.slane %v11815_v31, 2  ;;  %v11763_v10 = vld [vmem:[#allocation2 + $0x240] sm:$0xc0] }
 0x1bc   : > { %13600 = vmatprep.subr.bf16.mxu1 %v15877_v13  ;;  %13791 = vmatpush3.bf16.msra.mxu0 %v16838_v18  ;;  %v3985_v18 = vrot.slane %v11805_v29, 2  ;;  %v4001_v27 = vrot.slane %v11816_v21, 2  ;;  %v11644_v29 = vld [vmem:[#allocation2 + $0x888] sm:$0xff] }
 0x1bd   : > { %13792 = vmatprep.subr.bf16.mxu0 %v15882_v23  ;;  %v11764_v11 = vld [vmem:[#allocation2 + $0x248] sm:$0x3f] }
 0x1be   : > { %v3987_v57 = vsel %vm530_vm0, %v3985_v18, %v3986_v45  ;;  %v4002_v39 = vsel %vm530_vm0, %v4000_v32, %v4001_v27  ;;  %v3827_v31 = vrot.slane %v11764_v11, 6  ;;  %v11765_v32 = vld [vmem:[#allocation2 + $0x270] sm:$0xc0]  ;;  %v11766_v27 = vld [vmem:[#allocation2 + $0x278] sm:$0x3f] }
 0x1bf   : > { %13601 = vmatpush3.bf16.msra.mxu1 %v15877_v13  ;;  %v3993_v13 = vsel %vm530_vm0, %v3991_v1, %v3992_v4  ;;  %v11649_v1 = vld [vmem:[#allocation2 + $0x978] sm:$0xff]  ;;  %v11825_v4 = vld [vmem:[#allocation2 + $0x520] sm:$0xfc] }
 0x1c0   : > { %13602 = vmatprep.subr.bf16.mxu1 %v15878_v28  ;;  %13793 = vmatpush3.bf16.msra.mxu0 %v15882_v23  ;;  %v3996_v23 = vsel %vm530_vm0, %v3994_v6, %v3995_v7  ;;  %v11826_v6 = vld [vmem:[#allocation2 + $0x528] sm:$0x3] }
 0x1c1   : > { %13763 = vmatmul.mubr.bf16.gmra.mrb[68].mxu0 %v3981_v34  ;;  %13794 = vmatprep.subr.bf16.mxu0 %v15884_v30  ;;  %v11645_v34 = vld [vmem:[#allocation2 + $0x8b8] sm:$0xff] }
 0x1c2   : > { %13571 = vmatmul.mubr.bf16.gmra.mrb[4].mxu1 %v16069_v44  ;;  %13766 = vmatprep.mubr.bf16.mxu0 %v3984_v15  ;;  %v11820_v15 = vld [vmem:[#allocation2 + $0x498] sm:$0x3]  ;;  %v4004_v44 = vrot.slane %v11818_v36, 2 }
 0x1c3   : > { %13574 = vmatprep.mubr.bf16.mxu1 %v11639_v43  ;;  %13603 = vmatpush3.bf16.msra.mxu1 %v15878_v28  ;;  %v16867_v28 = vld [vmem:[#allocation8 + $0x1c0] sm:$0xff]   ;;  %v4007_v45 = vrot.slane %v11820_v15, 2  ;;  %v3830_v15 = vrot.slane %v11766_v27, 6  ;;  %v15895_v27 = vld [vmem:[#allocation8 + $0x1d8] sm:$0xff]  }
 0x1c4   : > { %13604 = vmatprep.subr.bf16.mxu1 %v15879_v40  ;;  %13795 = vmatpush3.bf16.msra.mxu0 %v15884_v30  ;;  %v3999_v30 = vsel %vm530_vm0, %v3997_v25, %v3998_v26  ;;  %v11817_v43 = vld [vmem:[#allocation2 + $0x460] sm:$0xfc]  ;;  %v11661_v25 = vld [vmem:[#allocation2 + $0x938] sm:$0xf0] }
 0x1c5   : > { %13796 = vmatprep.subr.bf16.mxu0 %v15885_v41  ;;  %v11662_v26 = vld [vmem:[#allocation2 + $0x940] sm:$0xf] }
 0x1c7   : > { %13605 = vmatpush3.bf16.msra.mxu1 %v15879_v40  ;;  %v11819_v40 = vld [vmem:[#allocation2 + $0x490] sm:$0xfc] }
 0x1c8   : > { %13606 = vmatprep.subr.bf16.mxu1 %v15880_v52  ;;  %13797 = vmatpush3.bf16.msra.mxu0 %v15885_v41  ;;  %v4003_v41 = vrot.slane %v11817_v43, 2  ;;  %v4006_v18 = vrot.slane %v11819_v40, 2  ;;  %v11767_v43 = vld [vmem:[#allocation2 + $0x2a0] sm:$0xc0]  ;;  %v3829_v40 = vrot.slane %v11765_v32, 6 }
 0x1c9   : > { %13767 = vmatmul.mubr.bf16.gmra.mrb[72].mxu0 %v3987_v57  ;;  %13798 = vmatprep.subr.bf16.mxu0 %v15887_v56  ;;  %v11824_v57 = vld [vmem:[#allocation2 + $0x4f8] sm:$0x3]  ;;  %v11776_v32 = vld [vmem:[#allocation2 + $0x368] sm:$0x3f] }
 0x1ca   : > { %13575 = vmatmul.mubr.bf16.gmra.mrb[8].mxu1 %v11640_v53  ;;  %13770 = vmatprep.mubr.bf16.mxu0 %v3990_v63  ;;  %v4005_v49 = vsel %vm530_vm0, %v4003_v41, %v4004_v44  ;;  %v11821_v53 = vld [vmem:[#allocation2 + $0x4c0] sm:$0xfc]  ;;  %v4008_v55 = vsel %vm530_vm0, %v4006_v18, %v4007_v45  ;;  %v11648_v63 = vld [vmem:[#allocation2 + $0x948] sm:$0xff]  ;;  %v2784_v41 = vrot.slane %v11661_v25, 4  ;;  %v2785_v44 = vrot.slane %v11662_v26, 4 }
 0x1cb   : > { %13578 = vmatprep.mubr.bf16.mxu1 %v11641_v58  ;;  %13607 = vmatpush3.bf16.msra.mxu1 %v15880_v52  ;;  %v11647_v52 = vld [vmem:[#allocation2 + $0x918] sm:$0xff]  ;;  %v4009_v58 = vrot.slane %v11821_v53, 2  ;;  %v3832_v18 = vrot.slane %v11767_v43, 6  ;;  %v3831_v54 = vsel %vm3825_vm2, %v3829_v40, %v3830_v15  ;;  %v11670_v25 = vld [vmem:[#allocation2 + $0xa00] sm:$0xf] }
 0x1cc   : > { %13608 = vmatprep.subr.bf16.mxu1 %v15883_v61  ;;  %13799 = vmatpush3.bf16.msra.mxu0 %v15887_v56  ;;  %v11823_v56 = vld [vmem:[#allocation2 + $0x4f0] sm:$0xfc]  ;;  %v11770_v53 = vld [vmem:[#allocation2 + $0x2d8] sm:$0x3f]  ;;  %v11775_v26 = vld [vmem:[#allocation2 + $0x360] sm:$0xc0] }
 0x1cd   : > { %13800 = vmatprep.subr.bf16.mxu0 %v15888_v0  ;;  %v4012_v60 = vrot.slane %v11823_v56, 2  ;;  %v11666_v56 = vld [vmem:[#allocation2 + $0x9a0] sm:$0xf]  ;;  %v15901_v43 = vld [vmem:[#allocation10 + $0x98] sm:$0xff]   ;;  %v2797_v15 = vrot.slane %v11670_v25, 4  ;;  %v15906_v25 = vld [vmem:[#allocation10 + $0xb0] sm:$0xff]  }
 0x1cf   : > { %13609 = vmatpush3.bf16.msra.mxu1 %v15883_v61  ;;  %v4013_v61 = vrot.slane %v11824_v57, 2  ;;  %v15893_v57 = vld [vmem:[#allocation8 + $0x1c8] sm:$0xff]  }
 0x1d0   : > { %13610 = vmatprep.subr.bf16.mxu1 %v15886_v8  ;;  %13801 = vmatpush3.bf16.msra.mxu0 %v15888_v0  ;;  %v4011_v0 = vsel %vm530_vm0, %v4009_v58, %v4010_v59  ;;  %v11771_v58 = vld [vmem:[#allocation2 + $0x300] sm:$0xc0]  ;;  %v11772_v59 = vld [vmem:[#allocation2 + $0x308] sm:$0x3f] }
 0x1d1   : > { %13771 = vmatmul.mubr.bf16.gmra.mrb[76].mxu0 %v3993_v13  ;;  %13802 = vmatprep.subr.bf16.mxu0 %v15890_v12  ;;  %v4014_v7 = vsel %vm530_vm0, %v4012_v60, %v4013_v61  ;;  %v4016_v13 = vrot.slane %v11826_v6, 2  ;;  %v2786_v60 = vsel %vm885_vm1, %v2784_v41, %v2785_v44  ;;  %v3839_v11 = vrot.slane %v11772_v59, 6  ;;  %v15899_v59 = vld [vmem:[#allocation8 + $0x1e8] sm:$0xff]  }
 0x1d2   : > { %13579 = vmatmul.mubr.bf16.gmra.mrb[12].mxu1 %v11642_v9  ;;  %13774 = vmatprep.mubr.bf16.mxu0 %v3996_v23  ;;  %v11660_v9 = vld [vmem:[#allocation2 + $0x910] sm:$0xf]  ;;  %v11650_v23 = vld [vmem:[#allocation2 + $0x9a8] sm:$0xff]  ;;  %v3844_v44 = vrot.slane %v11775_v26, 6 }
 0x1d3   : > { %13582 = vmatprep.mubr.bf16.mxu1 %v11643_v14  ;;  %13611 = vmatpush3.bf16.msra.mxu1 %v15886_v8  ;;  %v11659_v8 = vld [vmem:[#allocation2 + $0x908] sm:$0xf0]  ;;  %v3826_v14 = vrot.slane %v11763_v10, 6  ;;  %v3838_v10 = vrot.slane %v11771_v58, 6 }
 0x1d4   : > { %13612 = vmatprep.subr.bf16.mxu1 %v15889_v22  ;;  %13803 = vmatpush3.bf16.msra.mxu0 %v15890_v12  ;;  %v4015_v12 = vrot.slane %v11825_v4, 2  ;;  %v2781_v21 = vrot.slane %v11659_v8, 4  ;;  %v11780_v58 = vld [vmem:[#allocation2 + $0x3c8] sm:$0x3f] }
 0x1d5   : > { %13804 = vmatprep.subr.bf16.mxu0 %v15891_v24 }
 0x1d7   : > { %13613 = vmatpush3.bf16.msra.mxu1 %v15889_v22  ;;  %v2782_v22 = vrot.slane %v11660_v9, 4  ;;  %v2791_v9 = vrot.slane %v11666_v56, 4  ;;  %v11674_v56 = vld [vmem:[#allocation2 + $0xa60] sm:$0xf] }
 0x1d8   : > { %13805 = vmatpush3.bf16.msra.mxu0 %v15891_v24  ;;  %13646 = vmatprep.subr.bf16.mxu1 %v16867_v28  ;;  %v4017_v24 = vsel %vm530_vm0, %v4015_v12, %v4016_v13 }
 0x1d9   : > { %13775 = vmatmul.mubr.bf16.gmra.mrb[80].mxu0 %v3999_v30  ;;  %13838 = vmatprep.subr.bf16.mxu0 %v16869_v42  ;;  %v11663_v30 = vld [vmem:[#allocation2 + $0x968] sm:$0xf0]  ;;  %v2783_v36 = vsel %vm885_vm1, %v2781_v21, %v2782_v22  ;;  %v11669_v21 = vld [vmem:[#allocation2 + $0x9f8] sm:$0xf0]  ;;  %v11773_v22 = vld [vmem:[#allocation2 + $0x330] sm:$0xc0] }
 0x1da   : > { %13583 = vmatmul.mubr.bf16.gmra.mrb[16].mxu1 %v11644_v29  ;;  %13778 = vmatprep.mubr.bf16.mxu0 %v4002_v39  ;;  %v3828_v29 = vsel %vm3825_vm2, %v3826_v14, %v3827_v31  ;;  %v11768_v39 = vld [vmem:[#allocation2 + $0x2a8] sm:$0x3f]  ;;  %v15894_v14 = vld [vmem:[#allocation8 + $0x1d0] sm:$0xff]  }
 0x1db   : > { %13586 = vmatprep.mubr.bf16.mxu1 %v11645_v34  ;;  %v11664_v34 = vld [vmem:[#allocation2 + $0x970] sm:$0xf]  ;;  %v3833_v45 = vrot.slane %v11768_v39, 6  ;;  %v3841_v39 = vrot.slane %v11773_v22, 6 }
 0x1dc   : > { %v15900_v31 = vld [vmem:[#allocation10 + $0x90] sm:$0xff]  }
 0x1dd   : > { %v3834_v61 = vsel %vm3825_vm2, %v3832_v18, %v3833_v45  ;;  %v3845_v18 = vrot.slane %v11776_v32, 6  ;;  %v15896_v45 = vld [vmem:[#allocation8 + $0x1e0] sm:$0xff]  }
 0x1e1   : > { %13779 = vmatmul.mubr.bf16.gmra.mrb[84].mxu0 %v4005_v49  ;;  %v2788_v49 = vrot.slane %v11664_v34, 4  ;;  %v11672_v34 = vld [vmem:[#allocation2 + $0xa30] sm:$0xf] }
 0x1e2   : > { %13587 = vmatmul.mubr.bf16.gmra.mrb[20].mxu1 %v11646_v46  ;;  %13782 = vmatprep.mubr.bf16.mxu0 %v4008_v55  ;;  %v2787_v46 = vrot.slane %v11663_v30, 4  ;;  %v11665_v55 = vld [vmem:[#allocation2 + $0x998] sm:$0xf0]  ;;  %v3840_v30 = vsel %vm3825_vm2, %v3838_v10, %v3839_v11  ;;  %v2803_v10 = vrot.slane %v11674_v56, 4 }
 0x1e3   : > { %13590 = vmatprep.mubr.bf16.mxu1 %v11647_v52  ;;  %v11769_v52 = vld [vmem:[#allocation2 + $0x2d0] sm:$0xc0]  ;;  %v2790_v8 = vrot.slane %v11665_v55, 4  ;;  %v11673_v55 = vld [vmem:[#allocation2 + $0xa58] sm:$0xf0] }
 0x1e4   : > { %v2789_v4 = vsel %vm885_vm1, %v2787_v46, %v2788_v49  ;;  %v3835_v6 = vrot.slane %v11769_v52, 6  ;;  %v2800_v46 = vrot.slane %v11672_v34, 4  ;;  %v15903_v49 = vld [vmem:[#allocation10 + $0xa0] sm:$0xff]   ;;  %v11777_v52 = vld [vmem:[#allocation2 + $0x390] sm:$0xc0] }
 0x1e5   : > { %v11784_v34 = vld [vmem:[#allocation2 + $0x428] sm:$0x3f] }
 0x1e9   : > { %13783 = vmatmul.mubr.bf16.gmra.mrb[88].mxu0 %v4011_v0  ;;  %v11668_v0 = vld [vmem:[#allocation2 + $0x9d0] sm:$0xf] }
 0x1ea   : > { %13591 = vmatmul.mubr.bf16.gmra.mrb[24].mxu1 %v11648_v63  ;;  %13786 = vmatprep.mubr.bf16.mxu0 %v4014_v7  ;;  %v11667_v63 = vld [vmem:[#allocation2 + $0x9c8] sm:$0xf0]  ;;  %v3836_v7 = vrot.slane %v11770_v53, 6  ;;  %v2794_v13 = vrot.slane %v11668_v0, 4  ;;  %v11778_v53 = vld [vmem:[#allocation2 + $0x398] sm:$0x3f] }
 0x1eb   : > { %13594 = vmatprep.mubr.bf16.mxu1 %v11649_v1  ;;  %v15898_v1 = vld [vmem:[#allocation10 + $0x88] sm:$0xff]   ;;  %v2793_v12 = vrot.slane %v11667_v63, 4  ;;  %v11676_v0 = vld [vmem:[#allocation2 + $0xa90] sm:$0xf] }
 0x1ec   : > { %v11675_v63 = vld [vmem:[#allocation2 + $0xa88] sm:$0xf0] }
 0x1f1   : > { %13787 = vmatmul.mubr.bf16.gmra.mrb[92].mxu0 %v4017_v24  ;;  %v3837_v24 = vsel %vm3825_vm2, %v3835_v6, %v3836_v7  ;;  %v3847_v6 = vrot.slane %v11777_v52, 6  ;;  %v3848_v7 = vrot.slane %v11778_v53, 6 }
 0x1f2   : > { %13595 = vmatmul.mubr.bf16.gmra.mrb[28].mxu1 %v11650_v23  ;;  %13806 = vmatprep.mubr.bf16.mxu0 %v3828_v29  ;;  %v11774_v23 = vld [vmem:[#allocation2 + $0x338] sm:$0x3f]  ;;  %v2792_v29 = vsel %vm885_vm1, %v2790_v8, %v2791_v9  ;;  %v16896_v8 = vpop.f32.mrb[0].mxu0  ;;  %v2802_v9 = vrot.slane %v11673_v55, 4 }
 0x1f3   : > { %13614 = vmatprep.mubr.bf16.mxu1 %v2783_v36  ;;  %v2796_v36 = vrot.slane %v11669_v21, 4  ;;  %v3842_v40 = vrot.slane %v11774_v23, 6  ;;  %17844 = vst [vmem:[#allocation34_spill] sm:$0xff] %v16896_v8  ;;  %v15902_v21 = vld [vmem:[#allocation8 + $0x1f0] sm:$0xff]   ;;  %v3849_v32 = vsel %vm3825_vm2, %v3847_v6, %v3848_v7  ;;  %v11682_v7 = vld [vmem:[#allocation2 + $0xb20] sm:$0xf] }
 0x1f4   : > { %v11781_v23 = vld [vmem:[#allocation2 + $0x3f0] sm:$0xc0]  ;;  %v15927_v8 = vld [vmem:[#allocation11 + $0x58] sm:$0xff]  }
 0x1f9   : > { %13807 = vmatmul.mubr.bf16.vlgmr.msra.gmra.mrb[64].mxu0 %v3831_v54  ;;  %v3843_v54 = vsel %vm3825_vm2, %v3841_v39, %v3842_v40  ;;  %v11679_v40 = vld [vmem:[#allocation2 + $0xae8] sm:$0xf0] }
 0x1fa   : > { %13615 = vmatmul.mubr.bf16.vlgmr.msra.gmra.mrb[0].mxu1 %v2786_v60  ;;  %13810 = vmatprep.mubr.bf16.mxu0 %v3834_v61  ;;  %v2798_v60 = vsel %vm885_vm1, %v2796_v36, %v2797_v15  ;;  %v3846_v61 = vsel %vm3825_vm2, %v3844_v44, %v3845_v18  ;;  %v2804_v36 = vsel %vm885_vm1, %v2802_v9, %v2803_v10  ;;  %v11680_v15 = vld [vmem:[#allocation2 + $0xaf0] sm:$0xf]  ;;  %v3853_v18 = vrot.slane %v11781_v23, 6  ;;  %v11683_v9 = vld [vmem:[#allocation2 + $0xb48] sm:$0xf0] }
 0x1fb   : > { %13647 = vmatpush3.bf16.msra.mxu1 %v16867_v28  ;;  %13618 = vmatprep.mubr.bf16.mxu1 %v2789_v4  ;;  %v11671_v28 = vld [vmem:[#allocation2 + $0xa28] sm:$0xf0]  ;;  %v2811_v56 = vrot.slane %v11679_v40, 4  ;;  %v11787_v10 = vld [vmem:[#allocation2 + $0x480] sm:$0xc0] }
 0x1fc   : > { %13648 = vmatprep.subr.bf16.mxu1 %v15893_v57  ;;  %13839 = vmatpush3.bf16.msra.mxu0 %v16869_v42  ;;  %v2795_v42 = vsel %vm885_vm1, %v2793_v12, %v2794_v13  ;;  %v2799_v41 = vrot.slane %v11671_v28, 4  ;;  %v3851_v12 = vrot.slane %v11780_v58, 6  ;;  %v16898_v13 = vpop.f32.mrb[1].mxu0  ;;  %v16916_v58 = vld [vmem:[#allocation8 + $0x200] sm:$0xff]   ;;  %v16931_v23 = vld [vmem:[#allocation2 + $0xb78] sm:$0xf0] }
 0x1fd   : > { %13840 = vmatprep.subr.bf16.mxu0 %v15898_v1  ;;  %17845 = vst [vmem:[#allocation35_spill] sm:$0xff] %v16898_v13  ;;  %v16900_v22 = vpop.f32.mrb[2].mxu0  ;;  %v11848_v28 = vld [vmem:[#allocation2 + $0x2c0] sm:$0x3f] }
 0x1fe   : > { %v2801_v4 = vsel %vm885_vm1, %v2799_v41, %v2800_v46  ;;  %17846 = vst [vmem:[#allocation36_spill] sm:$0xff] %v16900_v22  ;;  %v16904_v26 = vpop.f32.mrb[3].mxu0  ;;  %v15907_v41 = vld [vmem:[#allocation10 + $0xb8] sm:$0xff]  }
 0x1ff   : > { %13649 = vmatpush3.bf16.msra.mxu1 %v15893_v57  ;;  %v11779_v57 = vld [vmem:[#allocation2 + $0x3c0] sm:$0xc0]  ;;  %17847 = vst [vmem:[#allocation37_spill] sm:$0xff] %v16904_v26  ;;  %v16912_v46 = vpop.f32.mrb[4].mxu0  ;;  %v15933_v22 = vld [vmem:[#allocation10 + $0x118] sm:$0xff]  }
 0x200   : > { %13650 = vmatprep.subr.bf16.mxu1 %v15894_v14  ;;  %13841 = vmatpush3.bf16.msra.mxu0 %v15898_v1  ;;  %v15904_v1 = vld [vmem:[#allocation10 + $0xa8] sm:$0xff]   ;;  %v3850_v11 = vrot.slane %v11779_v57, 6  ;;  %17848 = vst [vmem:[#allocation38_spill] sm:$0xff] %v16912_v46  ;;  %v16914_v55 = vpop.f32.mrb[5].mxu0  ;;  %v2812_v57 = vrot.slane %v11680_v15, 4  ;;  %v15934_v26 = vld [vmem:[#allocation10 + $0x120] sm:$0xff]  }
 0x201   : > { %13811 = vmatmul.mubr.bf16.gmra.mrb[68].mxu0 %v3837_v24  ;;  %13842 = vmatprep.subr.bf16.mxu0 %v15900_v31  ;;  %v11782_v24 = vld [vmem:[#allocation2 + $0x3f8] sm:$0x3f]  ;;  %17849 = vst [vmem:[#allocation39_spill] sm:$0xff] %v16914_v55  ;;  %v11892_v55 = vld [vmem:[#allocation2 + $0x788] sm:$0x3f] }
 0x202   : > { %13619 = vmatmul.mubr.bf16.gmra.mrb[4].mxu1 %v2792_v29  ;;  %13814 = vmatprep.mubr.bf16.mxu0 %v3840_v30  ;;  %v11678_v29 = vld [vmem:[#allocation2 + $0xac0] sm:$0xf]  ;;  %v11783_v30 = vld [vmem:[#allocation2 + $0x420] sm:$0xc0]  ;;  %v3852_v39 = vsel %vm3825_vm2, %v3850_v11, %v3851_v12  ;;  %v11788_v11 = vld [vmem:[#allocation2 + $0x488] sm:$0x3f] }
 0x203   : > { %13622 = vmatprep.mubr.bf16.mxu1 %v2795_v42  ;;  %13651 = vmatpush3.bf16.msra.mxu1 %v15894_v14  ;;  %v2805_v14 = vrot.slane %v11675_v63, 4  ;;  %v2809_v52 = vrot.slane %v11678_v29, 4  ;;  %v3856_v53 = vrot.slane %v11783_v30, 6  ;;  %v11786_v63 = vld [vmem:[#allocation2 + $0x458] sm:$0x3f]  ;;  %v3863_v40 = vrot.slane %v11788_v11, 6 }
 0x204   : > { %13652 = vmatprep.subr.bf16.mxu1 %v15895_v27  ;;  %13843 = vmatpush3.bf16.msra.mxu0 %v15900_v31  ;;  %v2806_v31 = vrot.slane %v11676_v0, 4  ;;  %v16920_v0 = vld [vmem:[#allocation10 + $0xc0] sm:$0xff]   ;;  %v3860_v29 = vrot.slane %v11786_v63, 6  ;;  %v11789_v30 = vld [vmem:[#allocation2 + $0x4b0] sm:$0xc0] }
 0x205   : > { %13844 = vmatprep.subr.bf16.mxu0 %v15901_v43  ;;  %v11792_v63 = vld [vmem:[#allocation2 + $0x4e8] sm:$0x3f] }
 0x206   : > { %v2807_v44 = vsel %vm885_vm1, %v2805_v14, %v2806_v31 }
 0x207   : > { %13653 = vmatpush3.bf16.msra.mxu1 %v15895_v27  ;;  %v11677_v27 = vld [vmem:[#allocation2 + $0xab8] sm:$0xf0] }
 0x208   : > { %13654 = vmatprep.subr.bf16.mxu1 %v15896_v45  ;;  %13845 = vmatpush3.bf16.msra.mxu0 %v15901_v43  ;;  %v15905_v43 = vld [vmem:[#allocation8 + $0x1f8] sm:$0xff]  }
 0x209   : > { %13815 = vmatmul.mubr.bf16.gmra.mrb[72].mxu0 %v3843_v54  ;;  %13846 = vmatprep.subr.bf16.mxu0 %v15903_v49  ;;  %v3857_v54 = vrot.slane %v11784_v34, 6 }
 0x20a   : > { %13623 = vmatmul.mubr.bf16.gmra.mrb[8].mxu1 %v2798_v60  ;;  %13818 = vmatprep.mubr.bf16.mxu0 %v3846_v61  ;;  %v11681_v60 = vld [vmem:[#allocation2 + $0xb18] sm:$0xf0]  ;;  %v11785_v61 = vld [vmem:[#allocation2 + $0x450] sm:$0xc0] }
 0x20b   : > { %13626 = vmatprep.mubr.bf16.mxu1 %v2801_v4  ;;  %13655 = vmatpush3.bf16.msra.mxu1 %v15896_v45  ;;  %v3854_v45 = vrot.slane %v11782_v24, 6  ;;  %v3858_v31 = vsel %vm3825_vm2, %v3856_v53, %v3857_v54  ;;  %v2813_v24 = vsel %vm885_vm1, %v2811_v56, %v2812_v57  ;;  %v11687_v53 = vld [vmem:[#allocation2 + $0xba8] sm:$0xf0]  ;;  %v11688_v54 = vld [vmem:[#allocation2 + $0xbb0] sm:$0xf] }
 0x20c   : > { %13656 = vmatprep.subr.bf16.mxu1 %v15899_v59  ;;  %13847 = vmatpush3.bf16.msra.mxu0 %v15903_v49  ;;  %v2808_v49 = vrot.slane %v11677_v27, 4  ;;  %v3859_v27 = vrot.slane %v11785_v61, 6  ;;  %v11791_v61 = vld [vmem:[#allocation2 + $0x4e0] sm:$0xc0] }
 0x20d   : > { %13848 = vmatprep.subr.bf16.mxu0 %v15904_v1  ;;  %v3855_v6 = vsel %vm3825_vm2, %v3853_v18, %v3854_v45 }
 0x20e   : > { %v2810_v14 = vsel %vm885_vm1, %v2808_v49, %v2809_v52  ;;  %v11790_v49 = vld [vmem:[#allocation2 + $0x4b8] sm:$0x3f]  ;;  %v3865_v52 = vrot.slane %v11789_v30, 6 }
 0x20f   : > { %13657 = vmatpush3.bf16.msra.mxu1 %v15899_v59  ;;  %v16918_v59 = vpop.f32.mrb[6].mxu0 }
 0x210   : > { %13658 = vmatprep.subr.bf16.mxu1 %v15902_v21  ;;  %13849 = vmatpush3.bf16.msra.mxu0 %v15904_v1  ;;  %17850 = vst [vmem:[#allocation40_spill] sm:$0xff] %v16918_v59  ;;  %v16924_v4 = vpop.f32.mrb[7].mxu0  ;;  %v16992_v1 = vld [vmem:[#allocation2 + $0x978] sm:$0x3]  ;;  %v11891_v59 = vld [vmem:[#allocation2 + $0x780] sm:$0xc0] }
 0x211   : > { %13819 = vmatmul.mubr.bf16.gmra.mrb[76].mxu0 %v3849_v32  ;;  %13850 = vmatprep.subr.bf16.mxu0 %v15906_v25  ;;  %17851 = vst [vmem:[#allocation41_spill] sm:$0xff] %v16924_v4  ;;  %v2814_v32 = vrot.slane %v11681_v60, 4  ;;  %v16938_v34 = vpop.f32.mrb[8].mxu0  ;;  %v3861_v60 = vsel %vm3825_vm2, %v3859_v27, %v3860_v29  ;;  %v2824_v27 = vrot.slane %v11688_v54, 4  ;;  %v11700_v29 = vld [vmem:[#allocation2 + $0x918] sm:$0x3] }
 0x212   : > { %13627 = vmatmul.mubr.bf16.gmra.mrb[12].mxu1 %v2804_v36  ;;  %13822 = vmatprep.mubr.bf16.mxu0 %v3852_v39  ;;  %17852 = vst [vmem:[#allocation42_spill] sm:$0xff] %v16938_v34  ;;  %v2817_v36 = vrot.slane %v11683_v9, 4  ;;  %v3862_v39 = vrot.slane %v11787_v10, 6  ;;  %v16940_v15 = vpop.f32.mrb[9].mxu0  ;;  %v3167_v54 = vrot.slane %v11700_v29, 2 }
 0x213   : > { %13630 = vmatprep.mubr.bf16.mxu1 %v2807_v44  ;;  %13659 = vmatpush3.bf16.msra.mxu1 %v15902_v21  ;;  %v11684_v21 = vld [vmem:[#allocation2 + $0xb50] sm:$0xf]  ;;  %17853 = vst [vmem:[#allocation43_spill] sm:$0xff] %v16940_v15  ;;  %v2820_v44 = vrot.slane %v16931_v23, 4  ;;  %v16944_v45 = vpop.f32.mrb[10].mxu0 }
 0x214   : > { %13660 = vmatprep.subr.bf16.mxu1 %v15905_v43  ;;  %13851 = vmatpush3.bf16.msra.mxu0 %v15906_v25  ;;  %v16934_v25 = vld [vmem:[#allocation2 + $0xb80] sm:$0xf]  ;;  %17854 = vst [vmem:[#allocation44_spill] sm:$0xff] %v16944_v45  ;;  %v16948_v57 = vpop.f32.mrb[11].mxu0  ;;  %v3864_v11 = vsel %vm3825_vm2, %v3862_v39, %v3863_v40  ;;  %v16964_v23 = vld [vmem:[#allocation2 + $0x910] sm:$0xfc] }
 0x215   : > { %13852 = vmatprep.subr.bf16.mxu0 %v15907_v41  ;;  %v2821_v18 = vrot.slane %v16934_v25, 4  ;;  %17855 = vst [vmem:[#allocation45_spill] sm:$0xff] %v16948_v57  ;;  %v2823_v25 = vrot.slane %v11687_v53, 4  ;;  %v16966_v30 = vpop.f32.mrb[12].mxu0 }
 0x216   : > { %17856 = vst [vmem:[#allocation46_spill] sm:$0xff] %v16966_v30  ;;  %v16970_v56 = vpop.f32.mrb[13].mxu0  ;;  %v16996_v30 = vld [vmem:[#allocation2 + $0x9a0] sm:$0xfc] }
 0x217   : > { %13661 = vmatpush3.bf16.msra.mxu1 %v15905_v43  ;;  %v2815_v43 = vrot.slane %v11682_v7, 4  ;;  %v16953_v7 = vld [vmem:[#allocation2 + $0xbe0] sm:$0xf]  ;;  %17857 = vst [vmem:[#allocation47_spill] sm:$0xff] %v16970_v56  ;;  %v16975_v53 = vpop.f32.mrb[14].mxu0  ;;  %v2822_v29 = vsel %vm885_vm1, %v2820_v44, %v2821_v18  ;;  %v2825_v12 = vsel %vm885_vm1, %v2823_v25, %v2824_v27  ;;  %v3173_v27 = vrot.slane %v16992_v1, 2 }
 0x218   : > { %13853 = vmatpush3.bf16.msra.mxu0 %v15907_v41  ;;  %13694 = vmatprep.subr.bf16.mxu1 %v16916_v58  ;;  %v2818_v41 = vrot.slane %v11684_v21, 4  ;;  %v2827_v40 = vrot.slane %v16953_v7, 4  ;;  %17858 = vst [vmem:[#allocation48_spill] sm:$0xff] %v16975_v53  ;;  %v16984_v7 = vld [vmem:[#allocation2 + $0x948] sm:$0x3] }
 0x219   : > { %13823 = vmatmul.mubr.bf16.gmra.mrb[80].mxu0 %v3855_v6  ;;  %13886 = vmatprep.subr.bf16.mxu0 %v16920_v0  ;;  %v16951_v6 = vld [vmem:[#allocation2 + $0xbd8] sm:$0xf0]  ;;  %v2816_v10 = vsel %vm885_vm1, %v2814_v32, %v2815_v43  ;;  %v3868_v32 = vrot.slane %v11791_v61, 6  ;;  %v3869_v43 = vrot.slane %v11792_v63, 6  ;;  %v16981_v63 = vpop.f32.mrb[15].mxu0  ;;  %v3170_v44 = vrot.slane %v16984_v7, 2 }
 0x21a   : > { %13631 = vmatmul.mubr.bf16.gmra.mrb[16].mxu1 %v2810_v14  ;;  %13826 = vmatprep.mubr.bf16.mxu0 %v3858_v31  ;;  %v16959_v14 = vld [vmem:[#allocation2 + $0x510] sm:$0xc0]  ;;  %v16961_v31 = vld [vmem:[#allocation2 + $0x518] sm:$0x3f]  ;;  %v2819_v21 = vsel %vm885_vm1, %v2817_v36, %v2818_v41  ;;  %v2826_v39 = vrot.slane %v16951_v6, 4  ;;  %17859 = vst [vmem:[#allocation49_spill] sm:$0xff] %v16981_v63 }
 0x21b   : > { %13634 = vmatprep.mubr.bf16.mxu1 %v2813_v24  ;;  %v3866_v24 = vrot.slane %v11790_v49, 6  ;;  %v3871_v36 = vrot.slane %v16959_v14, 6  ;;  %v3872_v41 = vrot.slane %v16961_v31, 6  ;;  %v3166_v49 = vrot.slane %v16964_v23, 2  ;;  %v11845_v14 = vld [vmem:[#allocation2 + $0x288] sm:$0xc0] }
 0x21c   : > { %v11846_v31 = vld [vmem:[#allocation2 + $0x290] sm:$0x3f]  ;;  %v3870_v9 = vsel %vm3825_vm2, %v3868_v32, %v3869_v43  ;;  %v11847_v61 = vld [vmem:[#allocation2 + $0x2b8] sm:$0xc0]  ;;  %v16998_v23 = vpop.f32.mrb[16].mxu0  ;;  %v4535_v18 = vrot.slane %v11845_v14, 6 }
 0x21d   : > { %v3867_v6 = vsel %vm3825_vm2, %v3865_v52, %v3866_v24  ;;  %17860 = vst [vmem:[#allocation50_spill] sm:$0xff] %v16998_v23  ;;  %v4536_v32 = vrot.slane %v11846_v31, 6  ;;  %v17002_v25 = vpop.f32.mrb[17].mxu0  ;;  %v3873_v14 = vsel %vm3825_vm2, %v3871_v36, %v3872_v41  ;;  %v17015_v31 = vld [vmem:[#allocation2 + $0x2e8] sm:$0xc0] }
 0x21e   : > { %17861 = vst [vmem:[#allocation51_spill] sm:$0xff] %v17002_v25  ;;  %v17024_v53 = vld [vmem:[#allocation2 + $0x9d8] sm:$0x3]  ;;  %v4541_v41 = vrot.slane %v17015_v31, 6  ;;  %v11851_v23 = vld [vmem:[#allocation2 + $0x318] sm:$0xc0] }
 0x21f   : > { %v11726_v56 = vld [vmem:[#allocation2 + $0xb88] sm:$0x3] }
 0x220   : > { %v3206_v63 = vrot.slane %v11726_v56, 2 }
 0x221   : > { %13827 = vmatmul.mubr.bf16.gmra.mrb[84].mxu0 %v3861_v60  ;;  %v11843_v60 = vld [vmem:[#allocation2 + $0x258] sm:$0xc0] }
 0x222   : > { %13635 = vmatmul.mubr.bf16.gmra.mrb[20].mxu1 %v2816_v10  ;;  %13830 = vmatprep.mubr.bf16.mxu0 %v3864_v11  ;;  %v11844_v10 = vld [vmem:[#allocation2 + $0x260] sm:$0x3f]  ;;  %v4532_v52 = vrot.slane %v11843_v60, 6  ;;  %v4539_v60 = vrot.slane %v11848_v28, 6  ;;  %v2828_v28 = vsel %vm885_vm1, %v2826_v39, %v2827_v40 }
 0x223   : > { %13638 = vmatprep.mubr.bf16.mxu1 %v2819_v21  ;;  %v16977_v11 = vld [vmem:[#allocation2 + $0x940] sm:$0xfc]  ;;  %v16986_v21 = vld [vmem:[#allocation2 + $0x970] sm:$0xfc]  ;;  %v4533_v24 = vrot.slane %v11844_v10, 6  ;;  %v17005_v10 = vpop.f32.mrb[18].mxu0 }
 0x224   : > { %v3169_v42 = vrot.slane %v16977_v11, 2  ;;  %v3172_v43 = vrot.slane %v16986_v21, 2  ;;  %17862 = vst [vmem:[#allocation52_spill] sm:$0xff] %v17005_v10  ;;  %v17007_v11 = vld [vmem:[#allocation2 + $0x9a8] sm:$0x3]  ;;  %v17012_v7 = vpop.f32.mrb[19].mxu0 }
 0x225   : > { %17863 = vst [vmem:[#allocation53_spill] sm:$0xff] %v17012_v7  ;;  %v11850_v21 = vld [vmem:[#allocation2 + $0x2f0] sm:$0x3f]  ;;  %v3176_v36 = vrot.slane %v17007_v11, 2  ;;  %v17028_v1 = vpop.f32.mrb[20].mxu0  ;;  %v15914_v11 = vld [vmem:[#allocation10 + $0xc8] sm:$0xff]  }
 0x226   : > { %17864 = vst [vmem:[#allocation54_spill] sm:$0xff] %v17028_v1  ;;  %v11852_v40 = vld [vmem:[#allocation2 + $0x320] sm:$0x3f]  ;;  %v3174_v1 = vsel %vm530_vm0, %v3172_v43, %v3173_v27  ;;  %v15910_v43 = vld [vmem:[#allocation8 + $0x210] sm:$0xff]   ;;  %v11712_v27 = vld [vmem:[#allocation2 + $0xa38] sm:$0x3] }
 0x227   : > { %v4545_v25 = vrot.slane %v11852_v40, 6  ;;  %v11855_v40 = vld [vmem:[#allocation2 + $0x378] sm:$0xc0] }
 0x229   : > { %13831 = vmatmul.mubr.bf16.gmra.mrb[88].mxu0 %v3867_v6  ;;  %v3168_v6 = vsel %vm530_vm0, %v3166_v49, %v3167_v54  ;;  %v3179_v49 = vrot.slane %v17024_v53, 2 }
 0x22a   : > { %13639 = vmatmul.mubr.bf16.gmra.mrb[24].mxu1 %v2822_v29  ;;  %13834 = vmatprep.mubr.bf16.mxu0 %v3870_v9  ;;  %v4538_v9 = vrot.slane %v11847_v61, 6  ;;  %v4534_v61 = vsel %vm3825_vm2, %v4532_v52, %v4533_v24  ;;  %v17021_v29 = vld [vmem:[#allocation2 + $0x9d0] sm:$0xfc]  ;;  %v17031_v52 = vpop.f32.mrb[21].mxu0  ;;  %v4544_v24 = vrot.slane %v11851_v23, 6  ;;  %v3171_v23 = vsel %vm530_vm0, %v3169_v42, %v3170_v44 }
 0x22b   : > { %13642 = vmatprep.mubr.bf16.mxu1 %v2825_v12  ;;  %v4542_v12 = vrot.slane %v11850_v21, 6  ;;  %v3178_v39 = vrot.slane %v17021_v29, 2  ;;  %17865 = vst [vmem:[#allocation55_spill] sm:$0xff] %v17031_v52  ;;  %v17034_v54 = vpop.f32.mrb[22].mxu0  ;;  %v4537_v21 = vsel %vm3825_vm2, %v4535_v18, %v4536_v32  ;;  %v17047_v29 = vld [vmem:[#allocation2 + $0x350] sm:$0x3f] }
 0x22c   : > { %17866 = vst [vmem:[#allocation56_spill] sm:$0xff] %v17034_v54  ;;  %v17040_v31 = vpop.f32.mrb[23].mxu0  ;;  %v4540_v10 = vsel %vm3825_vm2, %v4538_v9, %v4539_v60  ;;  %v4548_v44 = vrot.slane %v17047_v29, 6  ;;  %v17061_v9 = vld [vmem:[#allocation2 + $0xa30] sm:$0xfc]  ;;  %v17872_v52 = vrot.slane %v16996_v30, 2  ;;  %v4546_v7 = vsel %vm3825_vm2, %v4544_v24, %v4545_v25 }
 0x22d   : > { %17867 = vst [vmem:[#allocation57_spill] sm:$0xff] %v17040_v31  ;;  %v17055_v32 = vpop.f32.mrb[24].mxu0  ;;  %v4543_v29 = vsel %vm3825_vm2, %v4541_v41, %v4542_v12  ;;  %v17076_v18 = vld [vmem:[#allocation2 + $0xa68] sm:$0x3]  ;;  %v4550_v12 = vrot.slane %v11855_v40, 6 }
 0x22e   : > { %17868 = vst [vmem:[#allocation58_spill] sm:$0xff] %v17055_v32  ;;  %v17063_v60 = vpop.f32.mrb[25].mxu0  ;;  %v3177_v31 = vsel %vm530_vm0, %v17872_v52, %v3176_v36  ;;  %v15917_v32 = vld [vmem:[#allocation10 + $0xd8] sm:$0xff]   ;;  %v11857_v30 = vld [vmem:[#allocation2 + $0x3a8] sm:$0xc0]  ;;  %v3188_v25 = vrot.slane %v17076_v18, 2 }
 0x22f   : > { %17869 = vst [vmem:[#allocation59_spill] sm:$0xff] %v17063_v60  ;;  %v11858_v36 = vld [vmem:[#allocation2 + $0x3b0] sm:$0x3f]  ;;  %v11716_v24 = vld [vmem:[#allocation2 + $0xa98] sm:$0x3]  ;;  %v15915_v40 = vld [vmem:[#allocation8 + $0x228] sm:$0xff]  }
 0x230   : > { %v4554_v60 = vrot.slane %v11858_v36, 6  ;;  %v15922_v36 = vld [vmem:[#allocation10 + $0xf0] sm:$0xff]  }
 0x231   : > { %13835 = vmatmul.mubr.bf16.gmra.mrb[92].mxu0 %v3873_v14  ;;  %v17036_v14 = vld [vmem:[#allocation2 + $0xa00] sm:$0xfc] }
 0x232   : > { %13643 = vmatmul.mubr.bf16.gmra.mrb[28].mxu1 %v2828_v28  ;;  %13854 = vmatprep.mubr.bf16.mxu0 %v4534_v61  ;;  %v17043_v28 = vld [vmem:[#allocation2 + $0xa08] sm:$0x3]  ;;  %v17045_v61 = vld [vmem:[#allocation2 + $0x348] sm:$0xc0] }
 0x233   : > { %13662 = vmatprep.mubr.bf16.mxu1 %v3168_v6  ;;  %v15909_v6 = vld [vmem:[#allocation8 + $0x208] sm:$0xff]   ;;  %v3182_v53 = vrot.slane %v17043_v28, 2  ;;  %v4547_v42 = vrot.slane %v17045_v61, 6  ;;  %v3185_v28 = vrot.slane %v11712_v27, 2 }
 0x235   : > { %v4549_v18 = vsel %vm3825_vm2, %v4547_v42, %v4548_v44  ;;  %v3191_v44 = vrot.slane %v11716_v24, 2 }
 0x239   : > { %13855 = vmatmul.mubr.bf16.vlgmr.msra.gmra.mrb[64].mxu0 %v4537_v21  ;;  %v15916_v21 = vld [vmem:[#allocation10 + $0xd0] sm:$0xff]  }
 0x23a   : > { %13663 = vmatmul.mubr.bf16.vlgmr.msra.gmra.mrb[0].mxu1 %v3171_v23  ;;  %13858 = vmatprep.mubr.bf16.mxu0 %v4540_v10  ;;  %v17066_v10 = vpop.f32.mrb[26].mxu0  ;;  %v3184_v23 = vrot.slane %v17061_v9, 2 }
 0x23b   : > { %13695 = vmatpush3.bf16.msra.mxu1 %v16916_v58  ;;  %13666 = vmatprep.mubr.bf16.mxu1 %v3174_v1  ;;  %17870 = vst [vmem:[#allocation60_spill] sm:$0xff] %v17066_v10  ;;  %v11856_v58 = vld [vmem:[#allocation2 + $0x380] sm:$0x3f]  ;;  %v17072_v61 = vpop.f32.mrb[27].mxu0  ;;  %v3180_v10 = vsel %vm530_vm0, %v3178_v39, %v3179_v49 }
 0x23c   : > { %13696 = vmatprep.subr.bf16.mxu1 %v15909_v6  ;;  %13887 = vmatpush3.bf16.msra.mxu0 %v16920_v0  ;;  %v17068_v1 = vld [vmem:[#allocation2 + $0xa60] sm:$0xfc]  ;;  %17871 = vst [vmem:[#allocation61_spill] sm:$0xff] %v17072_v61  ;;  %v15911_v0 = vld [vmem:[#allocation8 + $0x218] sm:$0xff]   ;;  %v4551_v41 = vrot.slane %v11856_v58, 6  ;;  %v17086_v54 = vpop.f32.mrb[28].mxu0 }
 0x23d   : > { %13888 = vmatprep.subr.bf16.mxu0 %v15914_v11  ;;  %v3187_v9 = vrot.slane %v17068_v1, 2  ;;  %17873 = vst [vmem:[#allocation62_spill] sm:$0xff] %v17086_v54  ;;  %v17089_v52 = vpop.f32.mrb[29].mxu0  ;;  %v15912_v39 = vld [vmem:[#allocation8 + $0x220] sm:$0xff]   ;;  %v17877_v1 = vrot.slane %v17036_v14, 2  ;;  %v15920_v61 = vld [vmem:[#allocation10 + $0xe8] sm:$0xff]  }
 0x23e   : > { %17874 = vst [vmem:[#allocation63_spill] sm:$0xff] %v17089_v52  ;;  %v17091_v49 = vpop.f32.mrb[30].mxu0  ;;  %v11717_v14 = vld [vmem:[#allocation2 + $0xac0] sm:$0xfc] }
 0x23f   : > { %13697 = vmatpush3.bf16.msra.mxu1 %v15909_v6  ;;  %17875 = vst [vmem:[#allocation64_spill] sm:$0xff] %v17091_v49  ;;  %v17095_v27 = vpop.f32.mrb[31].mxu0  ;;  %v3186_v6 = vsel %vm530_vm0, %v3184_v23, %v3185_v28  ;;  %v11861_v28 = vld [vmem:[#allocation2 + $0x408] sm:$0xc0]  ;;  %v11862_v23 = vld [vmem:[#allocation2 + $0x410] sm:$0x3f] }
 0x240   : > { %13698 = vmatprep.subr.bf16.mxu1 %v15910_v43  ;;  %13889 = vmatpush3.bf16.msra.mxu0 %v15914_v11  ;;  %v11859_v11 = vld [vmem:[#allocation2 + $0x3d8] sm:$0xc0]  ;;  %17876 = vst [vmem:[#allocation65_spill] sm:$0xff] %v17095_v27  ;;  %v3193_v24 = vrot.slane %v11717_v14, 2 }
 0x241   : > { %13859 = vmatmul.mubr.bf16.gmra.mrb[68].mxu0 %v4543_v29  ;;  %13890 = vmatprep.subr.bf16.mxu0 %v15916_v21  ;;  %v4552_v29 = vsel %vm3825_vm2, %v4550_v12, %v4551_v41  ;;  %v15918_v12 = vld [vmem:[#allocation8 + $0x230] sm:$0xff]   ;;  %v11720_v41 = vld [vmem:[#allocation2 + $0xaf8] sm:$0x3] }
 0x242   : > { %13667 = vmatmul.mubr.bf16.gmra.mrb[4].mxu1 %v3177_v31  ;;  %13862 = vmatprep.mubr.bf16.mxu0 %v4546_v7  ;;  %v11715_v7 = vld [vmem:[#allocation2 + $0xa90] sm:$0xfc]  ;;  %v15919_v31 = vld [vmem:[#allocation10 + $0xe0] sm:$0xff]  }
 0x243   : > { %13670 = vmatprep.mubr.bf16.mxu1 %v3180_v10  ;;  %13699 = vmatpush3.bf16.msra.mxu1 %v15910_v43  ;;  %v4553_v43 = vrot.slane %v11857_v30, 6  ;;  %v11860_v10 = vld [vmem:[#allocation2 + $0x3e0] sm:$0x3f]  ;;  %v3190_v42 = vrot.slane %v11715_v7, 2  ;;  %v4556_v30 = vrot.slane %v11859_v11, 6 }
 0x244   : > { %13700 = vmatprep.subr.bf16.mxu1 %v15911_v0  ;;  %13891 = vmatpush3.bf16.msra.mxu0 %v15916_v21  ;;  %v3183_v21 = vsel %vm530_vm0, %v17877_v1, %v3182_v53  ;;  %v4557_v58 = vrot.slane %v11860_v10, 6  ;;  %v11718_v53 = vld [vmem:[#allocation2 + $0xac8] sm:$0x3]  ;;  %v11863_v11 = vld [vmem:[#allocation2 + $0x438] sm:$0xc0] }
 0x245   : > { %13892 = vmatprep.subr.bf16.mxu0 %v15917_v32  ;;  %v4555_v7 = vsel %vm3825_vm2, %v4553_v43, %v4554_v60  ;;  %v3194_v1 = vrot.slane %v11718_v53, 2  ;;  %v3192_v49 = vsel %vm530_vm0, %v3190_v42, %v3191_v44  ;;  %v4559_v60 = vrot.slane %v11861_v28, 6  ;;  %v11721_v42 = vld [vmem:[#allocation2 + $0xb20] sm:$0xfc] }
 0x246   : > { %v4560_v43 = vrot.slane %v11862_v23, 6  ;;  %v17121_v44 = vld [vmem:[#allocation10 + $0x100] sm:$0xff]   ;;  %v11722_v23 = vld [vmem:[#allocation2 + $0xb28] sm:$0x3] }
 0x247   : > { %13701 = vmatpush3.bf16.msra.mxu1 %v15911_v0 }
 0x248   : > { %13702 = vmatprep.subr.bf16.mxu1 %v15912_v39  ;;  %13893 = vmatpush3.bf16.msra.mxu0 %v15917_v32  ;;  %v11719_v32 = vld [vmem:[#allocation2 + $0xaf0] sm:$0xfc]  ;;  %v4561_v28 = vsel %vm3825_vm2, %v4559_v60, %v4560_v43  ;;  %v3199_v60 = vrot.slane %v11721_v42, 2  ;;  %v3200_v43 = vrot.slane %v11722_v23, 2 }
 0x249   : > { %13863 = vmatmul.mubr.bf16.gmra.mrb[72].mxu0 %v4549_v18  ;;  %13894 = vmatprep.subr.bf16.mxu0 %v15919_v31  ;;  %v3196_v14 = vrot.slane %v11719_v32, 2  ;;  %v11723_v32 = vld [vmem:[#allocation2 + $0xb50] sm:$0xfc] }
 0x24a   : > { %13671 = vmatmul.mubr.bf16.gmra.mrb[8].mxu1 %v3183_v21  ;;  %13866 = vmatprep.mubr.bf16.mxu0 %v4552_v29  ;;  %v15921_v21 = vld [vmem:[#allocation8 + $0x238] sm:$0xff]  }
 0x24b   : > { %13674 = vmatprep.mubr.bf16.mxu1 %v3186_v6  ;;  %13703 = vmatpush3.bf16.msra.mxu1 %v15912_v39  ;;  %v11864_v6 = vld [vmem:[#allocation2 + $0x440] sm:$0x3f]  ;;  %v3189_v39 = vsel %vm530_vm0, %v3187_v9, %v3188_v25  ;;  %v15923_v29 = vld [vmem:[#allocation10 + $0xf8] sm:$0xff]   ;;  %v3197_v9 = vrot.slane %v11720_v41, 2  ;;  %v4562_v25 = vrot.slane %v11863_v11, 6 }
 0x24c   : > { %13704 = vmatprep.subr.bf16.mxu1 %v15915_v40  ;;  %13895 = vmatpush3.bf16.msra.mxu0 %v15919_v31  ;;  %v17105_v0 = vpop.f32.mrb[32].mxu0  ;;  %v4558_v31 = vsel %vm3825_vm2, %v4556_v30, %v4557_v58  ;;  %v4563_v58 = vrot.slane %v11864_v6, 6  ;;  %v11867_v11 = vld [vmem:[#allocation2 + $0x498] sm:$0xc0] }
 0x24d   : > { %13896 = vmatprep.subr.bf16.mxu0 %v15920_v61  ;;  %v17107_v18 = vpop.f32.mrb[33].mxu0 }
 0x24e   : > { %v17110_v10 = vpop.f32.mrb[34].mxu0 }
 0x24f   : > { %13705 = vmatpush3.bf16.msra.mxu1 %v15915_v40  ;;  %v17114_v54 = vpop.f32.mrb[35].mxu0  ;;  %v17117_v40 = vld [vmem:[#allocation11 + $0x40] sm:$0xff]  }
 0x250   : > { %13706 = vmatprep.subr.bf16.mxu1 %v15918_v12  ;;  %13897 = vmatpush3.bf16.msra.mxu0 %v15920_v61  ;;  %v11865_v61 = vld [vmem:[#allocation2 + $0x468] sm:$0xc0] }
 0x251   : > { %13867 = vmatmul.mubr.bf16.gmra.mrb[76].mxu0 %v4555_v7  ;;  %13898 = vmatprep.subr.bf16.mxu0 %v15922_v36  ;;  %v11724_v7 = vld [vmem:[#allocation2 + $0xb58] sm:$0x3] }
 0x252   : > { %13675 = vmatmul.mubr.bf16.gmra.mrb[12].mxu1 %v3189_v39  ;;  %13870 = vmatprep.mubr.bf16.mxu0 %v4558_v31  ;;  %v3198_v39 = vsel %vm530_vm0, %v3196_v14, %v3197_v9  ;;  %v11868_v31 = vld [vmem:[#allocation2 + $0x4a0] sm:$0x3f]  ;;  %v3203_v52 = vrot.slane %v11724_v7, 2 }
 0x253   : > { %13678 = vmatprep.mubr.bf16.mxu1 %v3192_v49  ;;  %13707 = vmatpush3.bf16.msra.mxu1 %v15918_v12  ;;  %v11866_v49 = vld [vmem:[#allocation2 + $0x470] sm:$0x3f]  ;;  %v3195_v12 = vsel %vm530_vm0, %v3193_v24, %v3194_v1  ;;  %v4565_v24 = vrot.slane %v11865_v61, 6  ;;  %v11725_v14 = vld [vmem:[#allocation2 + $0xb80] sm:$0xfc]  ;;  %v3201_v61 = vsel %vm530_vm0, %v3199_v60, %v3200_v43 }
 0x254   : > { %13708 = vmatprep.subr.bf16.mxu1 %v15921_v21  ;;  %13899 = vmatpush3.bf16.msra.mxu0 %v15922_v36  ;;  %v17119_v30 = vpop.f32.mrb[36].mxu0  ;;  %v4564_v36 = vsel %vm3825_vm2, %v4562_v25, %v4563_v58  ;;  %v4566_v1 = vrot.slane %v11866_v49, 6  ;;  %v3202_v25 = vrot.slane %v11723_v32, 2  ;;  %v4569_v58 = vrot.slane %v11868_v31, 6  ;;  %v11728_v49 = vld [vmem:[#allocation2 + $0xbb8] sm:$0x3] }
 0x255   : > { %13900 = vmatprep.subr.bf16.mxu0 %v15923_v29  ;;  %v17123_v53 = vpop.f32.mrb[37].mxu0  ;;  %v11871_v32 = vld [vmem:[#allocation2 + $0x4f8] sm:$0xc0]  ;;  %v3205_v31 = vrot.slane %v11725_v14, 2  ;;  %v3209_v43 = vrot.slane %v11728_v49, 2 }
 0x256   : > { %v17126_v41 = vpop.f32.mrb[38].mxu0  ;;  %v4574_v45 = vrot.slane %v11871_v32, 6  ;;  %v11884_v49 = vld [vmem:[#allocation2 + $0x6c8] sm:$0x3f] }
 0x257   : > { %13709 = vmatpush3.bf16.msra.mxu1 %v15921_v21  ;;  %v17130_v6 = vpop.f32.mrb[39].mxu0  ;;  %v4568_v21 = vrot.slane %v11867_v11, 6  ;;  %v3204_v11 = vsel %vm530_vm0, %v3202_v25, %v3203_v52  ;;  %v11729_v52 = vld [vmem:[#allocation2 + $0xbe0] sm:$0xfc]  ;;  %v11730_v25 = vld [vmem:[#allocation2 + $0xbe8] sm:$0x3]  ;;  %v3207_v14 = vsel %vm530_vm0, %v3205_v31, %v3206_v63 }
 0x258   : > { %13901 = vmatpush3.bf16.msra.mxu0 %v15923_v29  ;;  %14174 = vmatprep.subr.bf16.mxu1 %v17117_v40  ;;  %v11869_v29 = vld [vmem:[#allocation2 + $0x4c8] sm:$0xc0]  ;;  %v4918_v57 = vrot.slane %v11884_v49, 6  ;;  %v11885_v31 = vld [vmem:[#allocation2 + $0x6f0] sm:$0xc0] }
 0x259   : > { %13871 = vmatmul.mubr.bf16.gmra.mrb[80].mxu0 %v4561_v28  ;;  %13934 = vmatprep.subr.bf16.mxu0 %v17121_v44  ;;  %v4567_v28 = vsel %vm3825_vm2, %v4565_v24, %v4566_v1  ;;  %v4570_v23 = vsel %vm3825_vm2, %v4568_v21, %v4569_v58  ;;  %v4571_v24 = vrot.slane %v11869_v29, 6  ;;  %v11883_v29 = vld [vmem:[#allocation2 + $0x6c0] sm:$0xc0] }
 0x25a   : > { %13679 = vmatmul.mubr.bf16.gmra.mrb[16].mxu1 %v3195_v12  ;;  %13874 = vmatprep.mubr.bf16.mxu0 %v4564_v36  ;;  %v11870_v12 = vld [vmem:[#allocation2 + $0x4d0] sm:$0x3f] }
 0x25b   : > { %13682 = vmatprep.mubr.bf16.mxu1 %v3198_v39  ;;  %v11727_v36 = vld [vmem:[#allocation2 + $0xbb0] sm:$0xfc]  ;;  %v11872_v39 = vld [vmem:[#allocation2 + $0x500] sm:$0x3f]  ;;  %v4572_v1 = vrot.slane %v11870_v12, 6 }
 0x25c   : > { %v17135_v27 = vpop.f32.mrb[40].mxu0  ;;  %v3208_v34 = vrot.slane %v11727_v36, 2  ;;  %v4575_v60 = vrot.slane %v11872_v39, 6  ;;  %v3211_v39 = vrot.slane %v11729_v52, 2 }
 0x25d   : > { %v17137_v9 = vpop.f32.mrb[41].mxu0  ;;  %v4573_v15 = vsel %vm3825_vm2, %v4571_v24, %v4572_v1  ;;  %v3212_v24 = vrot.slane %v11730_v25, 2  ;;  %v4917_v1 = vrot.slane %v11883_v29, 6  ;;  %v11888_v25 = vld [vmem:[#allocation2 + $0x728] sm:$0x3f] }
 0x25e   : > { %v17140_v42 = vpop.f32.mrb[42].mxu0  ;;  %v4576_v56 = vsel %vm3825_vm2, %v4574_v45, %v4575_v60  ;;  %v3210_v36 = vsel %vm530_vm0, %v3208_v34, %v3209_v43  ;;  %v11886_v60 = vld [vmem:[#allocation2 + $0x6f8] sm:$0x3f] }
 0x25f   : > { %v17144_v7 = vpop.f32.mrb[43].mxu0  ;;  %v11739_v43 = vld [vmem:[#allocation2 + $0x918] sm:$0xff] }
 0x261   : > { %13875 = vmatmul.mubr.bf16.gmra.mrb[84].mxu0 %v4567_v28  ;;  %v11873_v28 = vld [vmem:[#allocation2 + $0x528] sm:$0xc0] }
 0x262   : > { %13683 = vmatmul.mubr.bf16.gmra.mrb[20].mxu1 %v3201_v61  ;;  %13878 = vmatprep.mubr.bf16.mxu0 %v4570_v23  ;;  %v11874_v61 = vld [vmem:[#allocation2 + $0x530] sm:$0x3f]  ;;  %v4577_v32 = vrot.slane %v11873_v28, 6  ;;  %v4919_v28 = vsel %vm3825_vm2, %v4917_v1, %v4918_v57  ;;  %v11741_v1 = vld [vmem:[#allocation2 + $0x978] sm:$0xff] }
 0x263   : > { %13686 = vmatprep.mubr.bf16.mxu1 %v3204_v11  ;;  %v4578_v11 = vrot.slane %v11874_v61, 6  ;;  %v11887_v61 = vld [vmem:[#allocation2 + $0x720] sm:$0xc0] }
 0x264   : > { %v17147_v21 = vpop.f32.mrb[44].mxu0  ;;  %v4923_v29 = vrot.slane %v11887_v61, 6 }
 0x265   : > { %v17149_v58 = vpop.f32.mrb[45].mxu0  ;;  %v4579_v45 = vsel %vm3825_vm2, %v4577_v32, %v4578_v11  ;;  %v11740_v32 = vld [vmem:[#allocation2 + $0x948] sm:$0xff]  ;;  %v11889_v11 = vld [vmem:[#allocation2 + $0x750] sm:$0xc0] }
 0x266   : > { %v17152_v23 = vpop.f32.mrb[46].mxu0 }
 0x267   : > { %v17156_v12 = vpop.f32.mrb[47].mxu0 }
 0x269   : > { %13879 = vmatmul.mubr.bf16.gmra.mrb[88].mxu0 %v4573_v15  ;;  %v3213_v15 = vsel %vm530_vm0, %v3211_v39, %v3212_v24  ;;  %v11890_v39 = vld [vmem:[#allocation2 + $0x758] sm:$0x3f] }
 0x26a   : > { %13687 = vmatmul.mubr.bf16.gmra.mrb[24].mxu1 %v3207_v14  ;;  %13882 = vmatprep.mubr.bf16.mxu0 %v4576_v56  ;;  %v4920_v14 = vrot.slane %v11885_v31, 6  ;;  %v4921_v56 = vrot.slane %v11886_v60, 6  ;;  %v15925_v60 = vld [vmem:[#allocation11 + $0x48] sm:$0xff]   ;;  %v4927_v61 = vrot.slane %v11890_v39, 6  ;;  %v11894_v39 = vld [vmem:[#allocation2 + $0x7b8] sm:$0x3f] }
 0x26b   : > { %13690 = vmatprep.mubr.bf16.mxu1 %v3210_v36  ;;  %v4924_v36 = vrot.slane %v11888_v25, 6  ;;  %v4929_v25 = vrot.slane %v11891_v59, 6 }
 0x26c   : > { %v17159_v46 = vpop.f32.mrb[48].mxu0  ;;  %v4922_v57 = vsel %vm3825_vm2, %v4920_v14, %v4921_v56  ;;  %v4930_v14 = vrot.slane %v11892_v55, 6  ;;  %v15926_v56 = vld [vmem:[#allocation11 + $0x50] sm:$0xff]  }
 0x26d   : > { %v17161_v63 = vpop.f32.mrb[49].mxu0  ;;  %v4925_v31 = vsel %vm3825_vm2, %v4923_v29, %v4924_v36  ;;  %v15931_v29 = vld [vmem:[#allocation10 + $0x110] sm:$0xff]  }
 0x26e   : > { %v17164_v34 = vpop.f32.mrb[50].mxu0  ;;  %v4931_v59 = vsel %vm3825_vm2, %v4929_v25, %v4930_v14  ;;  %v11893_v55 = vld [vmem:[#allocation2 + $0x7b0] sm:$0xc0]  ;;  %v15929_v14 = vld [vmem:[#allocation11 + $0x60] sm:$0xff]  }
 0x26f   : > { %v17168_v52 = vpop.f32.mrb[51].mxu0 }
 0x271   : > { %13883 = vmatmul.mubr.bf16.gmra.mrb[92].mxu0 %v4579_v45 }
 0x272   : > { %13691 = vmatmul.mubr.bf16.gmra.mrb[28].mxu1 %v3213_v15  ;;  %13902 = vmatprep.mubr.bf16.mxu0 %v4919_v28  ;;  %v4926_v28 = vrot.slane %v11889_v11, 6 }
 0x273   : > { %13710 = vmatprep.mubr.bf16.mxu1 %v11739_v43  ;;  %v15930_v43 = vld [vmem:[#allocation10 + $0x108] sm:$0xff]  }
 0x274   : > { %v17170_v49 = vpop.f32.mrb[52].mxu0 }
 0x275   : > { %v17172_v24 = vpop.f32.mrb[53].mxu0 }
 0x276   : > { %v17175_v45 = vpop.f32.mrb[54].mxu0 }
 0x277   : > { %v17178_v15 = vpop.f32.mrb[55].mxu0 }
 0x279   : > { %13903 = vmatmul.mubr.bf16.vlgmr.msra.gmra.mrb[64].mxu0 %v4922_v57  ;;  %v11742_v57 = vld [vmem:[#allocation2 + $0x9a8] sm:$0xff] }
 0x27a   : > { %13711 = vmatmul.mubr.bf16.vlgmr.msra.gmra.mrb[0].mxu1 %v11740_v32  ;;  %13906 = vmatprep.mubr.bf16.mxu0 %v4925_v31  ;;  %v4928_v32 = vsel %vm3825_vm2, %v4926_v28, %v4927_v61  ;;  %v11896_v31 = vld [vmem:[#allocation2 + $0x7e8] sm:$0x3f]  ;;  %v4932_v28 = vrot.slane %v11893_v55, 6  ;;  %v4933_v61 = vrot.slane %v11894_v39, 6  ;;  %v11898_v55 = vld [vmem:[#allocation2 + $0x818] sm:$0x3f] }
 0x27b   : > { %14175 = vmatpush3.bf16.msra.mxu1 %v17117_v40  ;;  %13714 = vmatprep.mubr.bf16.mxu1 %v11741_v1  ;;  %v11743_v40 = vld [vmem:[#allocation2 + $0x9d8] sm:$0xff]  ;;  %v4936_v25 = vrot.slane %v11896_v31, 6  ;;  %v15932_v31 = vld [vmem:[#allocation11 + $0x68] sm:$0xff]  }
 0x27c   : > { %14176 = vmatprep.subr.bf16.mxu1 %v15925_v60  ;;  %13935 = vmatpush3.bf16.msra.mxu0 %v17121_v44  ;;  %v17182_v4 = vpop.f32.mrb[56].mxu0  ;;  %v11895_v44 = vld [vmem:[#allocation2 + $0x7e0] sm:$0xc0] }
 0x27d   : > { %13936 = vmatprep.subr.bf16.mxu0 %v15930_v43  ;;  %v17184_v36 = vpop.f32.mrb[57].mxu0 }
 0x27e   : > { %v17187_v11 = vpop.f32.mrb[58].mxu0 }
 0x27f   : > { %17878 = vst [vmem:[#allocation66_spill] sm:$0xff] %v17187_v11  ;;  %14177 = vmatpush3.bf16.msra.mxu1 %v15925_v60  ;;  %v17190_v1 = vpop.f32.mrb[59].mxu0  ;;  %v4935_v60 = vrot.slane %v11895_v44, 6  ;;  %v11900_v44 = vld [vmem:[#allocation2 + $0x848] sm:$0x3f] }
 0x280   : > { %17879 = vst [vmem:[#allocation67_spill] sm:$0xff] %v17190_v1  ;;  %14178 = vmatprep.subr.bf16.mxu1 %v15926_v56  ;;  %13937 = vmatpush3.bf16.msra.mxu0 %v15930_v43  ;;  %v11744_v43 = vld [vmem:[#allocation2 + $0xa08] sm:$0xff]  ;;  %v11901_v11 = vld [vmem:[#allocation2 + $0x870] sm:$0xc0] }
 0x281   : > { %13907 = vmatmul.mubr.bf16.gmra.mrb[68].mxu0 %v4928_v32  ;;  %13938 = vmatprep.subr.bf16.mxu0 %v15931_v29  ;;  %v4934_v32 = vsel %vm3825_vm2, %v4932_v28, %v4933_v61  ;;  %v4939_v61 = vrot.slane %v11898_v55, 6 }
 0x282   : > { %13715 = vmatmul.mubr.bf16.gmra.mrb[4].mxu1 %v11742_v57  ;;  %13910 = vmatprep.mubr.bf16.mxu0 %v4931_v59  ;;  %v11745_v59 = vld [vmem:[#allocation2 + $0xa38] sm:$0xff] }
 0x283   : > { %13718 = vmatprep.mubr.bf16.mxu1 %v11743_v40  ;;  %14179 = vmatpush3.bf16.msra.mxu1 %v15926_v56  ;;  %v4937_v40 = vsel %vm3825_vm2, %v4935_v60, %v4936_v25  ;;  %v11897_v56 = vld [vmem:[#allocation2 + $0x810] sm:$0xc0]  ;;  %v4942_v60 = vrot.slane %v11900_v44, 6 }
 0x284   : > { %14180 = vmatprep.subr.bf16.mxu1 %v15927_v8  ;;  %13939 = vmatpush3.bf16.msra.mxu0 %v15931_v29  ;;  %v17192_v13 = vpop.f32.mrb[60].mxu0  ;;  %v11899_v29 = vld [vmem:[#allocation2 + $0x840] sm:$0xc0]  ;;  %v4938_v28 = vrot.slane %v11897_v56, 6  ;;  %v15937_v25 = vld [vmem:[#allocation10 + $0x130] sm:$0xff]  }
 0x285   : > { %17880 = vst [vmem:[#allocation68_spill] sm:$0xff] %v17192_v13  ;;  %13940 = vmatprep.subr.bf16.mxu0 %v15933_v22  ;;  %v17194_v1 = vpop.f32.mrb[61].mxu0  ;;  %v11904_v56 = vld [vmem:[#allocation2 + $0x8a8] sm:$0x3f] }
 0x286   : > { %17881 = vst [vmem:[#allocation69_spill] sm:$0xff] %v17194_v1  ;;  %v17197_v57 = vpop.f32.mrb[62].mxu0  ;;  %v15936_v1 = vld [vmem:[#allocation10 + $0x128] sm:$0xff]   ;;  %v4940_v13 = vsel %vm3825_vm2, %v4938_v28, %v4939_v61  ;;  %v4948_v44 = vrot.slane %v11904_v56, 6  ;;  %v11906_v61 = vld [vmem:[#allocation2 + $0x8d8] sm:$0x3f] }
 0x287   : > { %17882 = vst [vmem:[#allocation70_spill] sm:$0xff] %v17197_v57  ;;  %14181 = vmatpush3.bf16.msra.mxu1 %v15927_v8  ;;  %v17200_v39 = vpop.f32.mrb[63].mxu0  ;;  %v4941_v57 = vrot.slane %v11899_v29, 6  ;;  %v15935_v8 = vld [vmem:[#allocation11 + $0x70] sm:$0xff]   ;;  %v11750_v56 = vld [vmem:[#allocation2 + $0xb28] sm:$0xff] }
 0x288   : > { %17883 = vst [vmem:[#allocation71_spill] sm:$0xff] %v17200_v39  ;;  %14182 = vmatprep.subr.bf16.mxu1 %v15929_v14  ;;  %13941 = vmatpush3.bf16.msra.mxu0 %v15933_v22  ;;  %v11746_v39 = vld [vmem:[#allocation2 + $0xa68] sm:$0xff]  ;;  %v11747_v22 = vld [vmem:[#allocation2 + $0xa98] sm:$0xff] }
 0x289   : > { %13911 = vmatmul.mubr.bf16.gmra.mrb[72].mxu0 %v4934_v32  ;;  %13942 = vmatprep.subr.bf16.mxu0 %v15934_v26  ;;  %v4943_v32 = vsel %vm3825_vm2, %v4941_v57, %v4942_v60  ;;  %v17204_v57 = vld [vmem:[#allocation11] sm:$0xff]  }
 0x28a   : > { %13719 = vmatmul.mubr.bf16.gmra.mrb[8].mxu1 %v11744_v43  ;;  %13914 = vmatprep.mubr.bf16.mxu0 %v4937_v40  ;;  %v11902_v43 = vld [vmem:[#allocation2 + $0x878] sm:$0x3f]  ;;  %v11903_v40 = vld [vmem:[#allocation2 + $0x8a0] sm:$0xc0] }
 0x28b   : > { %13722 = vmatprep.mubr.bf16.mxu1 %v11745_v59  ;;  %14183 = vmatpush3.bf16.msra.mxu1 %v15929_v14  ;;  %v15938_v59 = vld [vmem:[#allocation11 + $0x78] sm:$0xff]   ;;  %v4945_v55 = vrot.slane %v11902_v43, 6  ;;  %v4947_v29 = vrot.slane %v11903_v40, 6  ;;  %v11907_v60 = vld [vmem:[#allocation2 + $0x900] sm:$0xc0] }
 0x28c   : > { %14184 = vmatprep.subr.bf16.mxu1 %v15932_v31  ;;  %13943 = vmatpush3.bf16.msra.mxu0 %v15934_v26  ;;  %v15939_v14 = vld [vmem:[#allocation10 + $0x138] sm:$0xff]   ;;  %v4944_v26 = vrot.slane %v11901_v11, 6 }
 0x28d   : > { %13944 = vmatprep.subr.bf16.mxu0 %v15936_v1  ;;  %v4949_v28 = vsel %vm3825_vm2, %v4947_v29, %v4948_v44  ;;  %v11749_v11 = vld [vmem:[#allocation2 + $0xaf8] sm:$0xff]  ;;  %v11911_v29 = vld [vmem:[#allocation2 + $0x960] sm:$0xc0]  ;;  %v11912_v44 = vld [vmem:[#allocation2 + $0x968] sm:$0x3f] }
 0x28f   : > { %14185 = vmatpush3.bf16.msra.mxu1 %v15932_v31  ;;  %v17206_v31 = vld [vmem:[#allocation10 + $0x140] sm:$0xff]  }
 0x290   : > { %14186 = vmatprep.subr.bf16.mxu1 %v15935_v8  ;;  %13945 = vmatpush3.bf16.msra.mxu0 %v15936_v1  ;;  %v4946_v1 = vsel %vm3825_vm2, %v4944_v26, %v4945_v55  ;;  %v11909_v26 = vld [vmem:[#allocation2 + $0x930] sm:$0xc0]  ;;  %v11910_v55 = vld [vmem:[#allocation2 + $0x938] sm:$0x3f] }
 0x291   : > { %13915 = vmatmul.mubr.bf16.gmra.mrb[76].mxu0 %v4940_v13  ;;  %13946 = vmatprep.subr.bf16.mxu0 %v15937_v25  ;;  %v11748_v13 = vld [vmem:[#allocation2 + $0xac8] sm:$0xff] }
 0x292   : > { %13723 = vmatmul.mubr.bf16.gmra.mrb[12].mxu1 %v11746_v39  ;;  %13918 = vmatprep.mubr.bf16.mxu0 %v4943_v32  ;;  %v11905_v39 = vld [vmem:[#allocation2 + $0x8d0] sm:$0xc0]  ;;  %v4953_v32 = vrot.slane %v11907_v60, 6 }
 0x293   : > { %13726 = vmatprep.mubr.bf16.mxu1 %v11747_v22  ;;  %14187 = vmatpush3.bf16.msra.mxu1 %v15935_v8  ;;  %v11908_v22 = vld [vmem:[#allocation2 + $0x908] sm:$0x3f]  ;;  %v4950_v8 = vrot.slane %v11905_v39, 6  ;;  %v4960_v39 = vrot.slane %v11912_v44, 6  ;;  %v7070_v44 = vld [vmem:[#allocation2 + $0x40] sm:$0xfc] }
 0x294   : > { %14188 = vmatprep.subr.bf16.mxu1 %v15938_v59  ;;  %13947 = vmatpush3.bf16.msra.mxu0 %v15937_v25  ;;  %v4951_v25 = vrot.slane %v11906_v61, 6  ;;  %v4954_v43 = vrot.slane %v11908_v22, 6  ;;  %v11913_v22 = vld [vmem:[#allocation2 + $0x990] sm:$0xc0] }
 0x295   : > { %13948 = vmatprep.subr.bf16.mxu0 %v15939_v14 }
 0x296   : > { %v4952_v40 = vsel %vm3825_vm2, %v4950_v8, %v4951_v25  ;;  %v11914_v8 = vld [vmem:[#allocation2 + $0x998] sm:$0x3f] }
 0x297   : > { %14189 = vmatpush3.bf16.msra.mxu1 %v15938_v59  ;;  %v4955_v59 = vsel %vm3825_vm2, %v4953_v32, %v4954_v43  ;;  %v11753_v25 = vld [vmem:[#allocation2 + $0xbb8] sm:$0xff]  ;;  %v7068_v32 = vld [vmem:[#allocation2 + $0x10] sm:$0xfc] }
 0x298   : > { %13949 = vmatpush3.bf16.msra.mxu0 %v15939_v14  ;;  %14222 = vmatprep.subr.bf16.mxu1 %v17204_v57  ;;  %v11751_v14 = vld [vmem:[#allocation2 + $0xb58] sm:$0xff] }
 0x299   : > { %13919 = vmatmul.mubr.bf16.gmra.mrb[80].mxu0 %v4946_v1  ;;  %13982 = vmatprep.subr.bf16.mxu0 %v17206_v31  ;;  %v4956_v1 = vrot.slane %v11909_v26, 6  ;;  %v7069_v43 = vld [vmem:[#allocation2 + $0x18] sm:$0x3] }
 0x29a   : > { %13727 = vmatmul.mubr.bf16.gmra.mrb[16].mxu1 %v11748_v13  ;;  %13922 = vmatprep.mubr.bf16.mxu0 %v4949_v28  ;;  %v4957_v13 = vrot.slane %v11910_v55, 6  ;;  %v4959_v28 = vrot.slane %v11911_v29, 6  ;;  %v7133_v26 = vrot.slane %v7069_v43, 2  ;;  %v15941_v43 = vld [vmem:[#allocation11 + $0x8] sm:$0xff]  }
 0x29b   : > { %13730 = vmatprep.mubr.bf16.mxu1 %v11749_v11  ;;  %v11752_v11 = vld [vmem:[#allocation2 + $0xb88] sm:$0xff] }
 0x29c   : > { %v4958_v61 = vsel %vm3825_vm2, %v4956_v1, %v4957_v13  ;;  %v4961_v60 = vsel %vm3825_vm2, %v4959_v28, %v4960_v39  ;;  %v7071_v1 = vld [vmem:[#allocation2 + $0x48] sm:$0x3]  ;;  %v7072_v13 = vld [vmem:[#allocation2 + $0x70] sm:$0xfc]  ;;  %v7073_v28 = vld [vmem:[#allocation2 + $0x78] sm:$0x3] }
 0x29d   : > { %v7135_v39 = vrot.slane %v7070_v44, 2  ;;  %v15942_v44 = vld [vmem:[#allocation11 + $0x10] sm:$0xff]  }
 0x2a1   : > { %13923 = vmatmul.mubr.bf16.gmra.mrb[84].mxu0 %v4952_v40  ;;  %v4962_v40 = vrot.slane %v11913_v22, 6 }
 0x2a2   : > { %13731 = vmatmul.mubr.bf16.gmra.mrb[20].mxu1 %v11750_v56  ;;  %13926 = vmatprep.mubr.bf16.mxu0 %v4955_v59  ;;  %v4963_v56 = vrot.slane %v11914_v8, 6  ;;  %v7132_v59 = vrot.slane %v7068_v32, 2  ;;  %v7075_v32 = vld [vmem:[#allocation2 + $0xa8] sm:$0x3] }
 0x2a3   : > { %13734 = vmatprep.mubr.bf16.mxu1 %v11751_v14  ;;  %v11754_v14 = vld [vmem:[#allocation2 + $0xbe8] sm:$0xff] }
 0x2a4   : > { %v4964_v55 = vsel %vm3825_vm2, %v4962_v40, %v4963_v56  ;;  %v7134_v29 = vsel %vm530_vm0, %v7132_v59, %v7133_v26  ;;  %v7076_v40 = vld [vmem:[#allocation2 + $0xd0] sm:$0xfc]  ;;  %v7077_v56 = vld [vmem:[#allocation2 + $0xd8] sm:$0x3]  ;;  %v15946_v59 = vld [vmem:[#allocation10 + $0x148] sm:$0xff]  }
 0x2a9   : > { %13927 = vmatmul.mubr.bf16.gmra.mrb[88].mxu0 %v4958_v61  ;;  %v7136_v61 = vrot.slane %v7071_v1, 2  ;;  %v15947_v1 = vld [vmem:[#allocation10 + $0x150] sm:$0xff]  }
 0x2aa   : > { %13735 = vmatmul.mubr.bf16.gmra.mrb[24].mxu1 %v11752_v11  ;;  %13930 = vmatprep.mubr.bf16.mxu0 %v4961_v60  ;;  %v7138_v11 = vrot.slane %v7072_v13, 2  ;;  %v7139_v60 = vrot.slane %v7073_v28, 2 }
 0x2ab   : > { %13738 = vmatprep.mubr.bf16.mxu1 %v11753_v25  ;;  %v7137_v22 = vsel %vm530_vm0, %v7135_v39, %v7136_v61  ;;  %v7074_v25 = vld [vmem:[#allocation2 + $0xa0] sm:$0xfc]  ;;  %v7079_v61 = vld [vmem:[#allocation2 + $0x108] sm:$0x3] }
 0x2ac   : > { %v7140_v8 = vsel %vm530_vm0, %v7138_v11, %v7139_v60  ;;  %v7141_v26 = vrot.slane %v7074_v25, 2  ;;  %v7078_v39 = vld [vmem:[#allocation2 + $0x100] sm:$0xfc]  ;;  %v7080_v11 = vld [vmem:[#allocation2 + $0x130] sm:$0xfc] }
 0x2ad   : > { %v7081_v60 = vld [vmem:[#allocation2 + $0x138] sm:$0x3]  ;;  %v7150_v25 = vrot.slane %v7080_v11, 2  ;;  %v15953_v11 = vld [vmem:[#allocation10 + $0x170] sm:$0xff]  }
 0x2b1   : > { %13931 = vmatmul.mubr.bf16.gmra.mrb[92].mxu0 %v4964_v55  ;;  %v7142_v55 = vrot.slane %v7075_v32, 2  ;;  %v7151_v32 = vrot.slane %v7081_v60, 2 }
 0x2b2   : > { %13739 = vmatmul.mubr.bf16.gmra.mrb[28].mxu1 %v11754_v14  ;;  %13950 = vmatprep.mubr.bf16.mxu0 %v16707_v17  ;;  %v7144_v14 = vrot.slane %v7076_v40, 2  ;;  %v15950_v40 = vld [vmem:[#allocation10 + $0x160] sm:$0xff]  }
 0x2b3   : > { %14190 = vmatprep.mubr.bf16.mxu1 %v7134_v29  ;;  %v7145_v29 = vrot.slane %v7077_v56, 2  ;;  %v7143_v13 = vsel %vm530_vm0, %v7141_v26, %v7142_v55  ;;  %v7082_v26 = vld [vmem:[#allocation2 + $0x160] sm:$0xfc]  ;;  %v7083_v55 = vld [vmem:[#allocation2 + $0x168] sm:$0x3] }
 0x2b5   : > { %v7146_v28 = vsel %vm530_vm0, %v7144_v14, %v7145_v29  ;;  %v15948_v14 = vld [vmem:[#allocation11 + $0x28] sm:$0xff]   ;;  %v7084_v29 = vld [vmem:[#allocation2 + $0x190] sm:$0xfc] }
 0x2b9   : > { %13951 = vmatmul.mubr.bf16.vlgmr.msra.gmra.mrb[64].mxu0 %v16711_v35 }
 0x2ba   : > { %14191 = vmatmul.mubr.bf16.vlgmr.msra.gmra.mrb[32].mxu1 %v7137_v22  ;;  %13954 = vmatprep.mubr.bf16.mxu0 %v16714_v38  ;;  %v15949_v22 = vld [vmem:[#allocation10 + $0x158] sm:$0xff]  }
 0x2bb   : > { %14223 = vmatpush3.bf16.msra.mxu1 %v17204_v57  ;;  %14194 = vmatprep.mubr.bf16.mxu1 %v7140_v8  ;;  %v15943_v57 = vld [vmem:[#allocation11 + $0x18] sm:$0xff]   ;;  %v7148_v8 = vrot.slane %v7079_v61, 2 }
 0x2bc   : > { %14224 = vmatprep.subr.bf16.mxu1 %v15941_v43  ;;  %13983 = vmatpush3.bf16.msra.mxu0 %v17206_v31  ;;  %v7147_v31 = vrot.slane %v7078_v39, 2  ;;  %v7156_v39 = vrot.slane %v7084_v29, 2  ;;  %v17239_v29 = vld [vmem:[#allocation10 + $0x180] sm:$0xff]  }
 0x2bd   : > { %13984 = vmatprep.subr.bf16.mxu0 %v15946_v59 }
 0x2be   : > { %v7149_v56 = vsel %vm530_vm0, %v7147_v31, %v7148_v8  ;;  %v7086_v31 = vld [vmem:[#allocation2 + $0x1c0] sm:$0xfc]  ;;  %v7087_v8 = vld [vmem:[#allocation2 + $0x1c8] sm:$0x3] }
 0x2bf   : > { %14225 = vmatpush3.bf16.msra.mxu1 %v15941_v43  ;;  %v15945_v43 = vld [vmem:[#allocation11 + $0x20] sm:$0xff]  }
 0x2c0   : > { %14226 = vmatprep.subr.bf16.mxu1 %v15942_v44  ;;  %13985 = vmatpush3.bf16.msra.mxu0 %v15946_v59  ;;  %v7152_v59 = vsel %vm530_vm0, %v7150_v25, %v7151_v32  ;;  %v15954_v25 = vld [vmem:[#allocation11 + $0x38] sm:$0xff]   ;;  %v7088_v32 = vld [vmem:[#allocation2 + $0x1f0] sm:$0xfc] }
 0x2c1   : > { %13955 = vmatmul.mubr.bf16.gmra.mrb[68].mxu0 %v16719_v48  ;;  %13986 = vmatprep.subr.bf16.mxu0 %v15947_v1 }
 0x2c2   : > { %14195 = vmatmul.mubr.bf16.gmra.mrb[36].mxu1 %v7143_v13  ;;  %13958 = vmatprep.mubr.bf16.mxu0 %v16722_v51  ;;  %v15952_v13 = vld [vmem:[#allocation10 + $0x168] sm:$0xff]  }
 0x2c3   : > { %14198 = vmatprep.mubr.bf16.mxu1 %v7146_v28  ;;  %14227 = vmatpush3.bf16.msra.mxu1 %v15942_v44  ;;  %v7085_v44 = vld [vmem:[#allocation2 + $0x198] sm:$0x3]  ;;  %v7154_v28 = vrot.slane %v7083_v55, 2 }
 0x2c4   : > { %14228 = vmatprep.subr.bf16.mxu1 %v15943_v57  ;;  %13987 = vmatpush3.bf16.msra.mxu0 %v15947_v1  ;;  %v7153_v1 = vrot.slane %v7082_v26, 2  ;;  %v7157_v61 = vrot.slane %v7085_v44, 2  ;;  %v7162_v26 = vrot.slane %v7088_v32, 2  ;;  %v7095_v32 = vld [vmem:[#allocation2 + $0x288] sm:$0x3] }
 0x2c5   : > { %13988 = vmatprep.subr.bf16.mxu0 %v15949_v22 }
 0x2c6   : > { %v7155_v60 = vsel %vm530_vm0, %v7153_v1, %v7154_v28  ;;  %v7090_v1 = vld [vmem:[#allocation2 + $0x220] sm:$0xfc]  ;;  %v7091_v28 = vld [vmem:[#allocation2 + $0x228] sm:$0x3] }
 0x2c7   : > { %14229 = vmatpush3.bf16.msra.mxu1 %v15943_v57  ;;  %v15951_v57 = vld [vmem:[#allocation11 + $0x30] sm:$0xff]  }
 0x2c8   : > { %14230 = vmatprep.subr.bf16.mxu1 %v15945_v43  ;;  %13989 = vmatpush3.bf16.msra.mxu0 %v15949_v22  ;;  %v7158_v22 = vsel %vm530_vm0, %v7156_v39, %v7157_v61  ;;  %v7092_v39 = vld [vmem:[#allocation2 + $0x250] sm:$0xfc]  ;;  %v7093_v61 = vld [vmem:[#allocation2 + $0x258] sm:$0x3] }
 0x2c9   : > { %13959 = vmatmul.mubr.bf16.gmra.mrb[72].mxu0 %v16727_v2  ;;  %13990 = vmatprep.subr.bf16.mxu0 %v15950_v40 }
 0x2ca   : > { %14199 = vmatmul.mubr.bf16.gmra.mrb[40].mxu1 %v7149_v56  ;;  %13962 = vmatprep.mubr.bf16.mxu0 %v16730_v5  ;;  %v15955_v56 = vld [vmem:[#allocation10 + $0x178] sm:$0xff]  }
 0x2cb   : > { %14202 = vmatprep.mubr.bf16.mxu1 %v7152_v59  ;;  %14231 = vmatpush3.bf16.msra.mxu1 %v15945_v43  ;;  %v7089_v43 = vld [vmem:[#allocation2 + $0x1f8] sm:$0x3]  ;;  %v7160_v59 = vrot.slane %v7087_v8, 2 }
 0x2cc   : > { %14232 = vmatprep.subr.bf16.mxu1 %v15948_v14  ;;  %13991 = vmatpush3.bf16.msra.mxu0 %v15950_v40  ;;  %v7159_v40 = vrot.slane %v7086_v31, 2  ;;  %v7163_v55 = vrot.slane %v7089_v43, 2  ;;  %v7096_v43 = vld [vmem:[#allocation2 + $0x2b0] sm:$0xfc] }
 0x2cd   : > { %13992 = vmatprep.subr.bf16.mxu0 %v15952_v13 }
 0x2ce   : > { %v7161_v44 = vsel %vm530_vm0, %v7159_v40, %v7160_v59  ;;  %v7172_v59 = vrot.slane %v7095_v32, 2  ;;  %v11934_v32 = vld [vmem:[#allocation2 + $0x710] sm:$0x3f] }
 0x2cf   : > { %14233 = vmatpush3.bf16.msra.mxu1 %v15948_v14  ;;  %v17237_v14 = vld [vmem:[#allocation11 + $0x80] sm:$0xff]  }
 0x2d0   : > { %14234 = vmatprep.subr.bf16.mxu1 %v15951_v57  ;;  %13993 = vmatpush3.bf16.msra.mxu0 %v15952_v13  ;;  %v7164_v13 = vsel %vm530_vm0, %v7162_v26, %v7163_v55  ;;  %v7174_v26 = vrot.slane %v7096_v43, 2  ;;  %v7036_v43 = vld [vmem:[#allocation2] sm:$0xff] }
 0x2d1   : > { %13963 = vmatmul.mubr.bf16.gmra.mrb[76].mxu0 %v16735_v16  ;;  %13994 = vmatprep.subr.bf16.mxu0 %v15953_v11 }
 0x2d2   : > { %14203 = vmatmul.mubr.bf16.gmra.mrb[44].mxu1 %v7155_v60  ;;  %13966 = vmatprep.mubr.bf16.mxu0 %v16738_v19  ;;  %v7168_v60 = vrot.slane %v7092_v39, 2  ;;  %v11931_v39 = vld [vmem:[#allocation2 + $0x6d8] sm:$0xc0] }
 0x2d3   : > { %14206 = vmatprep.mubr.bf16.mxu1 %v7158_v22  ;;  %14235 = vmatpush3.bf16.msra.mxu1 %v15951_v57  ;;  %v7165_v57 = vrot.slane %v7090_v1, 2  ;;  %v7169_v22 = vrot.slane %v7093_v61, 2  ;;  %v11932_v61 = vld [vmem:[#allocation2 + $0x6e0] sm:$0x3f] }
 0x2d4   : > { %14236 = vmatprep.subr.bf16.mxu1 %v15954_v25  ;;  %13995 = vmatpush3.bf16.msra.mxu0 %v15953_v11  ;;  %v7166_v11 = vrot.slane %v7091_v28, 2  ;;  %v7099_v28 = vld [vmem:[#allocation2 + $0x2e8] sm:$0x3] }
 0x2d5   : > { %13996 = vmatprep.subr.bf16.mxu0 %v15955_v56  ;;  %v7170_v8 = vsel %vm530_vm0, %v7168_v60, %v7169_v22  ;;  %v5559_v60 = vrot.slane %v11931_v39, 6  ;;  %v5560_v22 = vrot.slane %v11932_v61, 6  ;;  %v7038_v39 = vld [vmem:[#allocation2 + $0x60] sm:$0xff]  ;;  %v11937_v61 = vld [vmem:[#allocation2 + $0x768] sm:$0xc0] }
 0x2d6   : > { %v7167_v31 = vsel %vm530_vm0, %v7165_v57, %v7166_v11  ;;  %v7178_v11 = vrot.slane %v7099_v28, 2 }
 0x2d7   : > { %14237 = vmatpush3.bf16.msra.mxu1 %v15954_v25  ;;  %v7094_v25 = vld [vmem:[#allocation2 + $0x280] sm:$0xfc] }
 0x2d8   : > { %13997 = vmatpush3.bf16.msra.mxu0 %v15955_v56  ;;  %14270 = vmatprep.subr.bf16.mxu1 %v17237_v14  ;;  %v7097_v56 = vld [vmem:[#allocation2 + $0x2b8] sm:$0x3]  ;;  %v7171_v40 = vrot.slane %v7094_v25, 2  ;;  %v11933_v25 = vld [vmem:[#allocation2 + $0x708] sm:$0xc0] }
 0x2d9   : > { %13967 = vmatmul.mubr.bf16.gmra.mrb[80].mxu0 %v16747_v33  ;;  %14030 = vmatprep.subr.bf16.mxu0 %v17239_v29  ;;  %v7175_v55 = vrot.slane %v7097_v56, 2  ;;  %v11935_v56 = vld [vmem:[#allocation2 + $0x738] sm:$0xc0] }
 0x2da   : > { %14207 = vmatmul.mubr.bf16.gmra.mrb[48].mxu1 %v7161_v44  ;;  %13970 = vmatprep.mubr.bf16.mxu0 %v16750_v37  ;;  %v7173_v44 = vsel %vm530_vm0, %v7171_v40, %v7172_v59  ;;  %v11936_v40 = vld [vmem:[#allocation2 + $0x740] sm:$0x3f]  ;;  %v5562_v59 = vrot.slane %v11933_v25, 6 }
 0x2db   : > { %14210 = vmatprep.mubr.bf16.mxu1 %v7164_v13  ;;  %v7098_v13 = vld [vmem:[#allocation2 + $0x2e0] sm:$0xfc]  ;;  %v7176_v1 = vsel %vm530_vm0, %v7174_v26, %v7175_v55  ;;  %v5563_v26 = vrot.slane %v11934_v32, 6  ;;  %v5565_v55 = vrot.slane %v11935_v56, 6  ;;  %v15963_v56 = vld [vmem:[#allocation10 + $0x190] sm:$0xff]  }
 0x2dc   : > { %v7177_v57 = vrot.slane %v7098_v13, 2 }
 0x2dd   : > { %v5564_v13 = vsel %vm3825_vm2, %v5562_v59, %v5563_v26  ;;  %v7039_v59 = vld [vmem:[#allocation2 + $0x90] sm:$0xff] }
 0x2e1   : > { %13971 = vmatmul.mubr.bf16.gmra.mrb[84].mxu0 %v16757_v47  ;;  %v7636_v47 = vld [vmem:[#allocation2 + $0xb0] sm:$0xf0] }
 0x2e2   : > { %14211 = vmatmul.mubr.bf16.gmra.mrb[52].mxu1 %v7167_v31  ;;  %13974 = vmatprep.mubr.bf16.mxu0 %v16760_v50  ;;  %v7179_v31 = vsel %vm530_vm0, %v7177_v57, %v7178_v11  ;;  %v11938_v57 = vld [vmem:[#allocation2 + $0x770] sm:$0x3f]  ;;  %v15957_v11 = vld [vmem:[#allocation11 + $0x88] sm:$0xff]   ;;  %v11978_v50 = vld [vmem:[#allocation2 + $0xbd8] sm:$0x3f] }
 0x2e3   : > { %14214 = vmatprep.mubr.bf16.mxu1 %v7170_v8  ;;  %v5561_v8 = vsel %vm3825_vm2, %v5559_v60, %v5560_v22  ;;  %v11939_v60 = vld [vmem:[#allocation2 + $0x798] sm:$0xc0]  ;;  %v11940_v22 = vld [vmem:[#allocation2 + $0x7a0] sm:$0x3f] }
 0x2e4   : > { %v5571_v25 = vrot.slane %v11939_v60, 6  ;;  %v5572_v32 = vrot.slane %v11940_v22, 6  ;;  %v15961_v60 = vld [vmem:[#allocation11 + $0xa0] sm:$0xff]  }
 0x2e5   : > { %v15966_v22 = vld [vmem:[#allocation10 + $0x1a0] sm:$0xff]  }
 0x2e6   : > { %v5573_v26 = vsel %vm3825_vm2, %v5571_v25, %v5572_v32  ;;  %v7042_v25 = vld [vmem:[#allocation2 + $0x120] sm:$0xff]  ;;  %v11945_v32 = vld [vmem:[#allocation2 + $0x828] sm:$0xc0] }
 0x2e9   : > { %13975 = vmatmul.mubr.bf16.gmra.mrb[88].mxu0 %v16765_v62  ;;  %v7633_v62 = vld [vmem:[#allocation2 + $0x58] sm:$0xf] }
 0x2ea   : > { %14215 = vmatmul.mubr.bf16.gmra.mrb[56].mxu1 %v7173_v44  ;;  %13978 = vmatprep.mubr.bf16.mxu0 %v16768_v3  ;;  %v5566_v44 = vrot.slane %v11936_v40, 6  ;;  %v7632_v3 = vld [vmem:[#allocation2 + $0x50] sm:$0xf0] }
 0x2eb   : > { %14218 = vmatprep.mubr.bf16.mxu1 %v7176_v1  ;;  %v7037_v1 = vld [vmem:[#allocation2 + $0x30] sm:$0xff] }
 0x2ec   : > { %v5567_v28 = vsel %vm3825_vm2, %v5565_v55, %v5566_v44  ;;  %v7040_v55 = vld [vmem:[#allocation2 + $0xc0] sm:$0xff]  ;;  %v11941_v44 = vld [vmem:[#allocation2 + $0x7c8] sm:$0xc0] }
 0x2f1   : > { %13979 = vmatmul.mubr.bf16.gmra.mrb[92].mxu0 %v16773_v20  ;;  %v15962_v20 = vld [vmem:[#allocation10 + $0x188] sm:$0xff]  }
 0x2f2   : > { %14219 = vmatmul.mubr.bf16.gmra.mrb[60].mxu1 %v7179_v31  ;;  %13998 = vmatprep.mubr.bf16.mxu0 %v5561_v8  ;;  %v5568_v31 = vrot.slane %v11937_v61, 6  ;;  %v5569_v8 = vrot.slane %v11938_v57, 6 }
 0x2f3   : > { %14238 = vmatprep.mubr.bf16.mxu1 %v7036_v43  ;;  %v15958_v43 = vld [vmem:[#allocation11 + $0x90] sm:$0xff]  }
 0x2f4   : > { %v5570_v40 = vsel %vm3825_vm2, %v5568_v31, %v5569_v8  ;;  %v7041_v8 = vld [vmem:[#allocation2 + $0xf0] sm:$0xff] }
 0x2f9   : > { %13999 = vmatmul.mubr.bf16.vlgmr.msra.gmra.mrb[64].mxu0 %v5564_v13  ;;  %v11942_v13 = vld [vmem:[#allocation2 + $0x7d0] sm:$0x3f] }
 0x2fa   : > { %14239 = vmatmul.mubr.bf16.vlgmr.msra.gmra.mrb[32].mxu1 %v7037_v1  ;;  %14002 = vmatprep.mubr.bf16.mxu0 %v5567_v28  ;;  %v11944_v1 = vld [vmem:[#allocation2 + $0x800] sm:$0x3f]  ;;  %v15959_v28 = vld [vmem:[#allocation11 + $0x98] sm:$0xff]   ;;  %v5575_v61 = vrot.slane %v11942_v13, 6 }
 0x2fb   : > { %14271 = vmatpush3.bf16.msra.mxu1 %v17237_v14  ;;  %14242 = vmatprep.mubr.bf16.mxu1 %v7038_v39  ;;  %v11943_v14 = vld [vmem:[#allocation2 + $0x7f8] sm:$0xc0] }
 0x2fc   : > { %14272 = vmatprep.subr.bf16.mxu1 %v15957_v11  ;;  %14031 = vmatpush3.bf16.msra.mxu0 %v17239_v29  ;;  %v15965_v39 = vld [vmem:[#allocation10 + $0x198] sm:$0xff]   ;;  %v5574_v29 = vrot.slane %v11941_v44, 6  ;;  %v5577_v57 = vrot.slane %v11943_v14, 6 }
 0x2fd   : > { %14032 = vmatprep.subr.bf16.mxu0 %v15962_v20 }
 0x2fe   : > { %v5576_v31 = vsel %vm3825_vm2, %v5574_v29, %v5575_v61  ;;  %v7043_v61 = vld [vmem:[#allocation2 + $0x150] sm:$0xff] }
 0x2ff   : > { %14273 = vmatpush3.bf16.msra.mxu1 %v15957_v11  ;;  %v5578_v11 = vrot.slane %v11944_v1, 6  ;;  %v15967_v1 = vld [vmem:[#allocation11 + $0xb0] sm:$0xff]  }
 0x300   : > { %14274 = vmatprep.subr.bf16.mxu1 %v15958_v43  ;;  %14033 = vmatpush3.bf16.msra.mxu0 %v15962_v20 }
 0x301   : > { %14003 = vmatmul.mubr.bf16.gmra.mrb[68].mxu0 %v5570_v40  ;;  %14034 = vmatprep.subr.bf16.mxu0 %v15963_v56  ;;  %v5579_v20 = vsel %vm3825_vm2, %v5577_v57, %v5578_v11  ;;  %v11946_v40 = vld [vmem:[#allocation2 + $0x830] sm:$0x3f]  ;;  %v7044_v57 = vld [vmem:[#allocation2 + $0x180] sm:$0xff]  ;;  %v11949_v11 = vld [vmem:[#allocation2 + $0x888] sm:$0xc0] }
 0x302   : > { %14243 = vmatmul.mubr.bf16.gmra.mrb[36].mxu1 %v7039_v59  ;;  %14006 = vmatprep.mubr.bf16.mxu0 %v5573_v26  ;;  %v11947_v59 = vld [vmem:[#allocation2 + $0x858] sm:$0xc0]  ;;  %v11948_v26 = vld [vmem:[#allocation2 + $0x860] sm:$0x3f]  ;;  %v5581_v44 = vrot.slane %v11946_v40, 6 }
 0x303   : > { %14246 = vmatprep.mubr.bf16.mxu1 %v7040_v55  ;;  %14275 = vmatpush3.bf16.msra.mxu1 %v15958_v43  ;;  %v15964_v43 = vld [vmem:[#allocation11 + $0xa8] sm:$0xff]   ;;  %v5583_v13 = vrot.slane %v11947_v59, 6  ;;  %v5584_v14 = vrot.slane %v11948_v26, 6  ;;  %v17268_v26 = vld [vmem:[#allocation11 + $0xc0] sm:$0xff]  }
 0x304   : > { %14276 = vmatprep.subr.bf16.mxu1 %v15959_v28  ;;  %14035 = vmatpush3.bf16.msra.mxu0 %v15963_v56  ;;  %v15968_v55 = vld [vmem:[#allocation10 + $0x1a8] sm:$0xff]   ;;  %v5580_v56 = vrot.slane %v11945_v32, 6 }
 0x305   : > { %14036 = vmatprep.subr.bf16.mxu0 %v15965_v39 }
 0x306   : > { %v5582_v29 = vsel %vm3825_vm2, %v5580_v56, %v5581_v44  ;;  %v7045_v56 = vld [vmem:[#allocation2 + $0x1b0] sm:$0xff] }
 0x307   : > { %14277 = vmatpush3.bf16.msra.mxu1 %v15959_v28  ;;  %v15969_v28 = vld [vmem:[#allocation10 + $0x1b0] sm:$0xff]  }
 0x308   : > { %14278 = vmatprep.subr.bf16.mxu1 %v15961_v60  ;;  %14037 = vmatpush3.bf16.msra.mxu0 %v15965_v39  ;;  %v5585_v39 = vsel %vm3825_vm2, %v5583_v13, %v5584_v14  ;;  %v11953_v13 = vld [vmem:[#allocation2 + $0x8e8] sm:$0xc0]  ;;  %v11954_v14 = vld [vmem:[#allocation2 + $0x8f0] sm:$0x3f] }
 0x309   : > { %14007 = vmatmul.mubr.bf16.gmra.mrb[72].mxu0 %v5576_v31  ;;  %14038 = vmatprep.subr.bf16.mxu0 %v15966_v22  ;;  %v11950_v31 = vld [vmem:[#allocation2 + $0x890] sm:$0x3f] }
 0x30a   : > { %14247 = vmatmul.mubr.bf16.gmra.mrb[40].mxu1 %v7041_v8  ;;  %14010 = vmatprep.mubr.bf16.mxu0 %v5579_v20  ;;  %v11951_v8 = vld [vmem:[#allocation2 + $0x8b8] sm:$0xc0]  ;;  %v11952_v20 = vld [vmem:[#allocation2 + $0x8c0] sm:$0x3f]  ;;  %v5587_v32 = vrot.slane %v11950_v31, 6 }
 0x30b   : > { %14250 = vmatprep.mubr.bf16.mxu1 %v7042_v25  ;;  %14279 = vmatpush3.bf16.msra.mxu1 %v15961_v60  ;;  %v15970_v25 = vld [vmem:[#allocation11 + $0xb8] sm:$0xff]   ;;  %v5589_v40 = vrot.slane %v11951_v8, 6  ;;  %v5590_v59 = vrot.slane %v11952_v20, 6  ;;  %v7047_v8 = vld [vmem:[#allocation2 + $0x210] sm:$0xff] }
 0x30c   : > { %14280 = vmatprep.subr.bf16.mxu1 %v15964_v43  ;;  %14039 = vmatpush3.bf16.msra.mxu0 %v15966_v22  ;;  %v15971_v60 = vld [vmem:[#allocation10 + $0x1b8] sm:$0xff]   ;;  %v5586_v22 = vrot.slane %v11949_v11, 6 }
 0x30d   : > { %14040 = vmatprep.subr.bf16.mxu0 %v15968_v55  ;;  %v5591_v44 = vsel %vm3825_vm2, %v5589_v40, %v5590_v59  ;;  %v11960_v40 = vld [vmem:[#allocation2 + $0x980] sm:$0x3f] }
 0x30f   : > { %14281 = vmatpush3.bf16.msra.mxu1 %v15964_v43  ;;  %v17270_v43 = vld [vmem:[#allocation10 + $0x1c0] sm:$0xff]  }
 0x310   : > { %14282 = vmatprep.subr.bf16.mxu1 %v15967_v1  ;;  %14041 = vmatpush3.bf16.msra.mxu0 %v15968_v55  ;;  %v5588_v55 = vsel %vm3825_vm2, %v5586_v22, %v5587_v32  ;;  %v11958_v22 = vld [vmem:[#allocation2 + $0x950] sm:$0x3f]  ;;  %v11959_v32 = vld [vmem:[#allocation2 + $0x978] sm:$0xc0] }
 0x311   : > { %14011 = vmatmul.mubr.bf16.gmra.mrb[76].mxu0 %v5582_v29  ;;  %14042 = vmatprep.subr.bf16.mxu0 %v15969_v28  ;;  %v7046_v29 = vld [vmem:[#allocation2 + $0x1e0] sm:$0xff] }
 0x312   : > { %14251 = vmatmul.mubr.bf16.gmra.mrb[44].mxu1 %v7043_v61  ;;  %14014 = vmatprep.mubr.bf16.mxu0 %v5585_v39  ;;  %v11955_v61 = vld [vmem:[#allocation2 + $0x918] sm:$0xc0]  ;;  %v11956_v39 = vld [vmem:[#allocation2 + $0x920] sm:$0x3f] }
 0x313   : > { %14254 = vmatprep.mubr.bf16.mxu1 %v7044_v57  ;;  %14283 = vmatpush3.bf16.msra.mxu1 %v15967_v1  ;;  %v5592_v1 = vrot.slane %v11953_v13, 6  ;;  %v5595_v57 = vrot.slane %v11955_v61, 6  ;;  %v5596_v11 = vrot.slane %v11956_v39, 6  ;;  %v11961_v61 = vld [vmem:[#allocation2 + $0x9a8] sm:$0xc0] }
 0x314   : > { %14284 = vmatprep.subr.bf16.mxu1 %v15970_v25  ;;  %14043 = vmatpush3.bf16.msra.mxu0 %v15969_v28  ;;  %v5593_v28 = vrot.slane %v11954_v14, 6  ;;  %v7049_v14 = vld [vmem:[#allocation2 + $0x270] sm:$0xff] }
 0x315   : > { %14044 = vmatprep.subr.bf16.mxu0 %v15971_v60  ;;  %v5597_v20 = vsel %vm3825_vm2, %v5595_v57, %v5596_v11  ;;  %v11962_v39 = vld [vmem:[#allocation2 + $0x9b0] sm:$0x3f]  ;;  %v11972_v57 = vld [vmem:[#allocation2 + $0xb48] sm:$0x3f]  ;;  %v7630_v11 = vld [vmem:[#allocation2 + $0x20] sm:$0xf0] }
 0x316   : > { %v5594_v31 = vsel %vm3825_vm2, %v5592_v1, %v5593_v28  ;;  %v7050_v1 = vld [vmem:[#allocation2 + $0x2a0] sm:$0xff] }
 0x317   : > { %14285 = vmatpush3.bf16.msra.mxu1 %v15970_v25  ;;  %v11957_v25 = vld [vmem:[#allocation2 + $0x948] sm:$0xc0]  ;;  %v11971_v28 = vld [vmem:[#allocation2 + $0xb40] sm:$0xc0] }
 0x318   : > { %14045 = vmatpush3.bf16.msra.mxu0 %v15971_v60  ;;  %14318 = vmatprep.subr.bf16.mxu1 %v17268_v26  ;;  %v7048_v60 = vld [vmem:[#allocation2 + $0x240] sm:$0xff]  ;;  %v5598_v59 = vrot.slane %v11957_v25, 6  ;;  %v5945_v25 = vrot.slane %v11971_v28, 6 }
 0x319   : > { %14015 = vmatmul.mubr.bf16.gmra.mrb[80].mxu0 %v5588_v55  ;;  %14078 = vmatprep.subr.bf16.mxu0 %v17270_v43  ;;  %v5599_v55 = vrot.slane %v11958_v22, 6  ;;  %v5946_v22 = vrot.slane %v11972_v57, 6  ;;  %v7697_v57 = vrot.slane %v7632_v3, 4  ;;  %v11980_v3 = vld [vmem:[#allocation2 + $0xc08] sm:$0x3f] }
 0x31a   : > { %14255 = vmatmul.mubr.bf16.gmra.mrb[48].mxu1 %v7045_v56  ;;  %14018 = vmatprep.mubr.bf16.mxu0 %v5591_v44  ;;  %v5601_v56 = vrot.slane %v11959_v32, 6  ;;  %v5602_v44 = vrot.slane %v11960_v40, 6 }
 0x31b   : > { %14258 = vmatprep.mubr.bf16.mxu1 %v7046_v29  ;;  %v5600_v13 = vsel %vm3825_vm2, %v5598_v59, %v5599_v55  ;;  %v7051_v59 = vld [vmem:[#allocation2 + $0x2d0] sm:$0xff]  ;;  %v5947_v55 = vsel %vm3825_vm2, %v5945_v25, %v5946_v22 }
 0x31c   : > { %v5603_v29 = vsel %vm3825_vm2, %v5601_v56, %v5602_v44  ;;  %v11973_v56 = vld [vmem:[#allocation2 + $0xb70] sm:$0xc0]  ;;  %v11974_v44 = vld [vmem:[#allocation2 + $0xb78] sm:$0x3f] }
 0x31d   : > { %v5949_v28 = vrot.slane %v11974_v44, 6  ;;  %v11979_v44 = vld [vmem:[#allocation2 + $0xc00] sm:$0xc0] }
 0x321   : > { %14019 = vmatmul.mubr.bf16.gmra.mrb[84].mxu0 %v5594_v31  ;;  %v7631_v31 = vld [vmem:[#allocation2 + $0x28] sm:$0xf] }
 0x322   : > { %14259 = vmatmul.mubr.bf16.gmra.mrb[52].mxu1 %v7047_v8  ;;  %14022 = vmatprep.mubr.bf16.mxu0 %v5597_v20  ;;  %v5604_v8 = vrot.slane %v11961_v61, 6  ;;  %v5605_v20 = vrot.slane %v11962_v39, 6  ;;  %v7695_v32 = vrot.slane %v7631_v31, 4  ;;  %v7634_v61 = vld [vmem:[#allocation2 + $0x80] sm:$0xf0] }
 0x323   : > { %14262 = vmatprep.mubr.bf16.mxu1 %v7048_v60  ;;  %v7694_v60 = vrot.slane %v7630_v11, 4  ;;  %v7635_v39 = vld [vmem:[#allocation2 + $0x88] sm:$0xf]  ;;  %v7698_v11 = vrot.slane %v7633_v62, 4  ;;  %v7638_v62 = vld [vmem:[#allocation2 + $0xe0] sm:$0xf0] }
 0x324   : > { %v5606_v40 = vsel %vm3825_vm2, %v5604_v8, %v5605_v20  ;;  %v7700_v20 = vrot.slane %v7634_v61, 4  ;;  %v7701_v25 = vrot.slane %v7635_v39, 4  ;;  %v5955_v61 = vrot.slane %v11978_v50, 6 }
 0x325   : > { %v7703_v39 = vrot.slane %v7636_v47, 4  ;;  %v11982_v47 = vld [vmem:[#allocation2 + $0xc38] sm:$0x3f] }
 0x329   : > { %14023 = vmatmul.mubr.bf16.gmra.mrb[88].mxu0 %v5600_v13  ;;  %v7696_v13 = vsel %vm885_vm1, %v7694_v60, %v7695_v32  ;;  %v11977_v60 = vld [vmem:[#allocation2 + $0xbd0] sm:$0xc0]  ;;  %v7699_v32 = vsel %vm885_vm1, %v7697_v57, %v7698_v11  ;;  %v5958_v57 = vrot.slane %v11980_v3, 6  ;;  %v7706_v11 = vrot.slane %v7638_v62, 4  ;;  %v7643_v3 = vld [vmem:[#allocation2 + $0x148] sm:$0xf] }
 0x32a   : > { %14263 = vmatmul.mubr.bf16.gmra.mrb[56].mxu1 %v7049_v14  ;;  %14026 = vmatprep.mubr.bf16.mxu0 %v5603_v29  ;;  %v11975_v14 = vld [vmem:[#allocation2 + $0xba0] sm:$0xc0]  ;;  %v11976_v29 = vld [vmem:[#allocation2 + $0xba8] sm:$0x3f]  ;;  %v15981_v62 = vld [vmem:[#allocation10 + $0x1d8] sm:$0xff]  }
 0x32b   : > { %14266 = vmatprep.mubr.bf16.mxu1 %v7050_v1  ;;  %v5948_v1 = vrot.slane %v11973_v56, 6  ;;  %v5951_v31 = vrot.slane %v11975_v14, 6  ;;  %v5952_v8 = vrot.slane %v11976_v29, 6  ;;  %v15973_v56 = vld [vmem:[#allocation11 + $0xc8] sm:$0xff]   ;;  %v5954_v29 = vrot.slane %v11977_v60, 6 }
 0x32c   : > { %v15978_v14 = vld [vmem:[#allocation10 + $0x1c8] sm:$0xff]   ;;  %v7640_v60 = vld [vmem:[#allocation2 + $0x110] sm:$0xf0] }
 0x32d   : > { %v5950_v22 = vsel %vm3825_vm2, %v5948_v1, %v5949_v28  ;;  %v5957_v28 = vrot.slane %v11979_v44, 6  ;;  %v15975_v44 = vld [vmem:[#allocation11 + $0xd8] sm:$0xff]  }
 0x331   : > { %14027 = vmatmul.mubr.bf16.gmra.mrb[92].mxu0 %v5606_v40  ;;  %v5953_v40 = vsel %vm3825_vm2, %v5951_v31, %v5952_v8  ;;  %v15974_v8 = vld [vmem:[#allocation11 + $0xd0] sm:$0xff]  }
 0x332   : > { %14267 = vmatmul.mubr.bf16.gmra.mrb[60].mxu1 %v7051_v59  ;;  %14046 = vmatprep.mubr.bf16.mxu0 %v5947_v55  ;;  %v7637_v59 = vld [vmem:[#allocation2 + $0xb8] sm:$0xf]  ;;  %v7702_v55 = vsel %vm885_vm1, %v7700_v20, %v7701_v25  ;;  %v15979_v20 = vld [vmem:[#allocation10 + $0x1d0] sm:$0xff]   ;;  %v5956_v25 = vsel %vm3825_vm2, %v5954_v29, %v5955_v61  ;;  %v7709_v29 = vrot.slane %v7640_v60, 4 }
 0x333   : > { %14286 = vmatprep.mubr.bf16.mxu1 %v7696_v13  ;;  %v7639_v13 = vld [vmem:[#allocation2 + $0xe8] sm:$0xf]  ;;  %v7704_v1 = vrot.slane %v7637_v59, 4  ;;  %v11983_v59 = vld [vmem:[#allocation2 + $0xc60] sm:$0xc0] }
 0x334   : > { %v7707_v31 = vrot.slane %v7639_v13, 4  ;;  %v5961_v13 = vrot.slane %v11982_v47, 6  ;;  %v7644_v47 = vld [vmem:[#allocation2 + $0x170] sm:$0xf0]  ;;  %v7645_v60 = vld [vmem:[#allocation2 + $0x178] sm:$0xf] }
 0x335   : > { %v7705_v50 = vsel %vm885_vm1, %v7703_v39, %v7704_v1  ;;  %v5963_v39 = vrot.slane %v11983_v59, 6  ;;  %v15980_v59 = vld [vmem:[#allocation11 + $0xe8] sm:$0xff]  }
 0x339   : > { %14047 = vmatmul.mubr.bf16.vlgmr.msra.gmra.mrb[64].mxu0 %v5950_v22  ;;  %v11981_v22 = vld [vmem:[#allocation2 + $0xc30] sm:$0xc0] }
 0x33a   : > { %14287 = vmatmul.mubr.bf16.vlgmr.msra.gmra.mrb[32].mxu1 %v7699_v32  ;;  %14050 = vmatprep.mubr.bf16.mxu0 %v5953_v40  ;;  %v7641_v32 = vld [vmem:[#allocation2 + $0x118] sm:$0xf]  ;;  %v7708_v40 = vsel %vm885_vm1, %v7706_v11, %v7707_v31  ;;  %v15977_v11 = vld [vmem:[#allocation11 + $0xe0] sm:$0xff]  }
 0x33b   : > { %14319 = vmatpush3.bf16.msra.mxu1 %v17268_v26  ;;  %14290 = vmatprep.mubr.bf16.mxu1 %v7702_v55  ;;  %v5959_v26 = vsel %vm3825_vm2, %v5957_v28, %v5958_v57  ;;  %v11984_v55 = vld [vmem:[#allocation2 + $0xc68] sm:$0x3f]  ;;  %v7710_v61 = vrot.slane %v7641_v32, 4  ;;  %v7713_v57 = vrot.slane %v7643_v3, 4  ;;  %v11987_v32 = vld [vmem:[#allocation2 + $0xcc0] sm:$0xc0] }
 0x33c   : > { %14320 = vmatprep.subr.bf16.mxu1 %v15973_v56  ;;  %14079 = vmatpush3.bf16.msra.mxu0 %v17270_v43  ;;  %v7642_v43 = vld [vmem:[#allocation2 + $0x140] sm:$0xf0]  ;;  %v5964_v1 = vrot.slane %v11984_v55, 6  ;;  %v7647_v55 = vld [vmem:[#allocation2 + $0x1a8] sm:$0xf] }
 0x33d   : > { %14080 = vmatprep.subr.bf16.mxu0 %v15978_v14  ;;  %v7712_v28 = vrot.slane %v7642_v43, 4  ;;  %v15984_v43 = vld [vmem:[#allocation10 + $0x1e8] sm:$0xff]  }
 0x33f   : > { %14321 = vmatpush3.bf16.msra.mxu1 %v15973_v56  ;;  %v5960_v56 = vrot.slane %v11981_v22, 6  ;;  %v5965_v22 = vsel %vm3825_vm2, %v5963_v39, %v5964_v1  ;;  %v7719_v1 = vrot.slane %v7647_v55, 4  ;;  %v11991_v55 = vld [vmem:[#allocation2 + $0xd20] sm:$0xc0] }
 0x340   : > { %14322 = vmatprep.subr.bf16.mxu1 %v15974_v8  ;;  %14081 = vmatpush3.bf16.msra.mxu0 %v15978_v14  ;;  %v15982_v14 = vld [vmem:[#allocation10 + $0x1e0] sm:$0xff]  }
 0x341   : > { %14051 = vmatmul.mubr.bf16.gmra.mrb[68].mxu0 %v5956_v25  ;;  %14082 = vmatprep.subr.bf16.mxu0 %v15979_v20  ;;  %v5962_v31 = vsel %vm3825_vm2, %v5960_v56, %v5961_v13  ;;  %v11985_v25 = vld [vmem:[#allocation2 + $0xc90] sm:$0xc0]  ;;  %v7715_v13 = vrot.slane %v7644_v47, 4 }
 0x342   : > { %14291 = vmatmul.mubr.bf16.gmra.mrb[36].mxu1 %v7705_v50  ;;  %14054 = vmatprep.mubr.bf16.mxu0 %v5959_v26  ;;  %v7711_v50 = vsel %vm885_vm1, %v7709_v29, %v7710_v61  ;;  %v11986_v26 = vld [vmem:[#allocation2 + $0xc98] sm:$0x3f]  ;;  %v5966_v3 = vrot.slane %v11985_v25, 6  ;;  %v7716_v29 = vrot.slane %v7645_v60, 4 }
 0x343   : > { %14294 = vmatprep.mubr.bf16.mxu1 %v7708_v40  ;;  %14323 = vmatpush3.bf16.msra.mxu1 %v15974_v8  ;;  %v7714_v8 = vsel %vm885_vm1, %v7712_v28, %v7713_v57  ;;  %v11988_v40 = vld [vmem:[#allocation2 + $0xcc8] sm:$0x3f]  ;;  %v5967_v56 = vrot.slane %v11986_v26, 6  ;;  %v15983_v28 = vld [vmem:[#allocation11 + $0xf0] sm:$0xff]   ;;  %v11990_v26 = vld [vmem:[#allocation2 + $0xcf8] sm:$0x3f] }
 0x344   : > { %14324 = vmatprep.subr.bf16.mxu1 %v15975_v44  ;;  %14083 = vmatpush3.bf16.msra.mxu0 %v15979_v20  ;;  %v7646_v20 = vld [vmem:[#allocation2 + $0x1a0] sm:$0xf0]  ;;  %v5970_v61 = vrot.slane %v11988_v40, 6  ;;  %v15985_v57 = vld [vmem:[#allocation10 + $0x1f0] sm:$0xff]   ;;  %v7717_v60 = vsel %vm885_vm1, %v7715_v13, %v7716_v29  ;;  %v7651_v29 = vld [vmem:[#allocation2 + $0x208] sm:$0xf] }
 0x345   : > { %14084 = vmatprep.subr.bf16.mxu0 %v15981_v62  ;;  %v7718_v39 = vrot.slane %v7646_v20, 4  ;;  %v5968_v25 = vsel %vm3825_vm2, %v5966_v3, %v5967_v56  ;;  %v11992_v3 = vld [vmem:[#allocation2 + $0xd28] sm:$0x3f]  ;;  %v7650_v13 = vld [vmem:[#allocation2 + $0x200] sm:$0xf0] }
 0x347   : > { %14325 = vmatpush3.bf16.msra.mxu1 %v15975_v44  ;;  %v5969_v44 = vrot.slane %v11987_v32, 6  ;;  %v7649_v32 = vld [vmem:[#allocation2 + $0x1d8] sm:$0xf]  ;;  %v7720_v20 = vsel %vm885_vm1, %v7718_v39, %v7719_v1 }
 0x348   : > { %14326 = vmatprep.subr.bf16.mxu1 %v15977_v11  ;;  %14085 = vmatpush3.bf16.msra.mxu0 %v15981_v62  ;;  %v7722_v1 = vrot.slane %v7649_v32, 4  ;;  %v11994_v32 = vld [vmem:[#allocation2 + $0xd58] sm:$0x3f] }
 0x349   : > { %14055 = vmatmul.mubr.bf16.gmra.mrb[72].mxu0 %v5962_v31  ;;  %14086 = vmatprep.subr.bf16.mxu0 %v15982_v14 }
 0x34a   : > { %14295 = vmatmul.mubr.bf16.gmra.mrb[40].mxu1 %v7711_v50  ;;  %14058 = vmatprep.mubr.bf16.mxu0 %v5965_v22  ;;  %v11989_v22 = vld [vmem:[#allocation2 + $0xcf0] sm:$0xc0] }
 0x34b   : > { %14298 = vmatprep.mubr.bf16.mxu1 %v7714_v8  ;;  %14327 = vmatpush3.bf16.msra.mxu1 %v15977_v11  ;;  %v5971_v8 = vsel %vm3825_vm2, %v5969_v44, %v5970_v61  ;;  %v15987_v44 = vld [vmem:[#allocation10 + $0x1f8] sm:$0xff]   ;;  %v5973_v61 = vrot.slane %v11990_v26, 6 }
 0x34c   : > { %14328 = vmatprep.subr.bf16.mxu1 %v15980_v59  ;;  %14087 = vmatpush3.bf16.msra.mxu0 %v15982_v14  ;;  %v7648_v14 = vld [vmem:[#allocation2 + $0x1d0] sm:$0xf0] }
 0x34d   : > { %v13712_v62 = vpop.f32.mrb[0].mxu1  ;;  %14088 = vmatprep.subr.bf16.mxu0 %v15984_v43  ;;  %v7721_v39 = vrot.slane %v7648_v14, 4  ;;  %v11993_v14 = vld [vmem:[#allocation2 + $0xd50] sm:$0xc0] }
 0x34e   : > { %v17298_v31 = vadd.f32 %v13712_v62, %v17105_v0  ;;  %v3601_v50 = vpop.f32.mrb[1].mxu1  ;;  %v5976_v62 = vrot.slane %v11992_v3, 6  ;;  %v7652_v3 = vld [vmem:[#allocation2 + $0x230] sm:$0xf0] }
 0x34f   : > { %v17302_v47 = vadd.f32 %v3601_v50, %v17107_v18  ;;  %v13713_v11 = vpop.f32.mrb[2].mxu1  ;;  %14329 = vmatpush3.bf16.msra.mxu1 %v15980_v59  ;;  %v15986_v18 = vld [vmem:[#allocation11 + $0xf8] sm:$0xff]   ;;  %v5972_v59 = vrot.slane %v11989_v22, 6  ;;  %v7724_v50 = vrot.slane %v7650_v13, 4 }
 0x350   : > { %v17307_v40 = vadd.f32 %v13713_v11, %v17110_v10  ;;  %v3604_v0 = vpop.f32.mrb[3].mxu1  ;;  %14330 = vmatprep.subr.bf16.mxu1 %v15983_v28  ;;  %14089 = vmatpush3.bf16.msra.mxu0 %v15984_v43  ;;  %v17317_v11 = vld [vmem:[#allocation11 + $0x100] sm:$0xff]   ;;  %v7653_v13 = vld [vmem:[#allocation2 + $0x238] sm:$0xf]  ;;  %v15996_v43 = vld [vmem:[#allocation11 + $0x128] sm:$0xff]  }
 0x351   : > { %v17311_v56 = vadd.f32 %v3604_v0, %v17114_v54  ;;  %14059 = vmatmul.mubr.bf16.gmra.mrb[76].mxu0 %v5968_v25  ;;  %14090 = vmatprep.subr.bf16.mxu0 %v15985_v57  ;;  %v5975_v54 = vrot.slane %v11991_v55, 6  ;;  %v7725_v25 = vrot.slane %v7651_v29, 4 }
 0x352   : > { %14299 = vmatmul.mubr.bf16.gmra.mrb[44].mxu1 %v7717_v60  ;;  %14062 = vmatprep.mubr.bf16.mxu0 %v5971_v8  ;;  %v17319_v60 = vld [vmem:[#allocation10 + $0x200] sm:$0xff]   ;;  %v5974_v8 = vsel %vm3825_vm2, %v5972_v59, %v5973_v61  ;;  %v11996_v61 = vld [vmem:[#allocation2 + $0xd88] sm:$0x3f] }
 0x353   : > { %14302 = vmatprep.mubr.bf16.mxu1 %v7720_v20  ;;  %14331 = vmatpush3.bf16.msra.mxu1 %v15983_v28  ;;  %v5977_v55 = vsel %vm3825_vm2, %v5975_v54, %v5976_v62  ;;  %v11995_v59 = vld [vmem:[#allocation2 + $0xd80] sm:$0xc0]  ;;  %v5979_v54 = vrot.slane %v11994_v32, 6  ;;  %v7727_v62 = vrot.slane %v7652_v3, 4 }
 0x354   : > { %14332 = vmatprep.subr.bf16.mxu1 %v15986_v18  ;;  %14091 = vmatpush3.bf16.msra.mxu0 %v15985_v57  ;;  %v7723_v57 = vsel %vm885_vm1, %v7721_v39, %v7722_v1  ;;  %v7654_v39 = vld [vmem:[#allocation2 + $0x260] sm:$0xf0]  ;;  %v7655_v1 = vld [vmem:[#allocation2 + $0x268] sm:$0xf] }
 0x355   : > { %v13716_v0 = vpop.f32.mrb[4].mxu1  ;;  %14092 = vmatprep.subr.bf16.mxu0 %v15987_v44 }
 0x356   : > { %v17322_v22 = vadd.f32 %v13716_v0, %v17119_v30  ;;  %v3617_v26 = vpop.f32.mrb[5].mxu1  ;;  %v7726_v0 = vsel %vm885_vm1, %v7724_v50, %v7725_v25  ;;  %v7728_v50 = vrot.slane %v7653_v13, 4  ;;  %v5982_v25 = vrot.slane %v11996_v61, 6  ;;  %v7657_v61 = vld [vmem:[#allocation2 + $0x298] sm:$0xf] }
 0x357   : > { %v17326_v28 = vadd.f32 %v3617_v26, %v17123_v53  ;;  %v13717_v20 = vpop.f32.mrb[6].mxu1  ;;  %14333 = vmatpush3.bf16.msra.mxu1 %v15986_v18  ;;  %v5978_v18 = vrot.slane %v11993_v14, 6  ;;  %v7730_v26 = vrot.slane %v7654_v39, 4  ;;  %v11998_v14 = vld [vmem:[#allocation2 + $0xdb8] sm:$0x3f] }
 0x358   : > { %v17331_v29 = vadd.f32 %v13717_v20, %v17126_v41  ;;  %v3620_v30 = vpop.f32.mrb[7].mxu1  ;;  %14093 = vmatpush3.bf16.msra.mxu0 %v15987_v44  ;;  %14366 = vmatprep.subr.bf16.mxu1 %v17317_v11 }
 0x359   : > { %v17336_v53 = vadd.f32 %v3620_v30, %v17130_v6  ;;  %14063 = vmatmul.mubr.bf16.gmra.mrb[80].mxu0 %v5974_v8  ;;  %14126 = vmatprep.subr.bf16.mxu0 %v17319_v60  ;;  %v5981_v6 = vrot.slane %v11995_v59, 6  ;;  %v7731_v8 = vrot.slane %v7655_v1, 4  ;;  %v7656_v59 = vld [vmem:[#allocation2 + $0x290] sm:$0xf0] }
 0x35a   : > { %14303 = vmatmul.mubr.bf16.gmra.mrb[48].mxu1 %v7723_v57  ;;  %14066 = vmatprep.mubr.bf16.mxu0 %v5977_v55  ;;  %v5980_v57 = vsel %vm3825_vm2, %v5978_v18, %v5979_v54  ;;  %v11997_v55 = vld [vmem:[#allocation2 + $0xdb0] sm:$0xc0]  ;;  %v12000_v18 = vld [vmem:[#allocation2 + $0xde8] sm:$0x3f] }
 0x35b   : > { %14306 = vmatprep.mubr.bf16.mxu1 %v7726_v0  ;;  %v7729_v0 = vsel %vm885_vm1, %v7727_v62, %v7728_v50  ;;  %v5983_v13 = vsel %vm3825_vm2, %v5981_v6, %v5982_v25  ;;  %v7732_v1 = vsel %vm885_vm1, %v7730_v26, %v7731_v8  ;;  %v5984_v50 = vrot.slane %v11997_v55, 6  ;;  %v12002_v55 = vld [vmem:[#allocation2 + $0xe18] sm:$0x3f] }
 0x35c   : > { %v5985_v6 = vrot.slane %v11998_v14, 6  ;;  %v7734_v26 = vrot.slane %v7657_v61, 4 }
 0x35d   : > { %v13720_v20 = vpop.f32.mrb[8].mxu1 }
 0x35e   : > { %v17344_v30 = vadd.f32 %v13720_v20, %v17135_v27  ;;  %v3633_v10 = vpop.f32.mrb[9].mxu1  ;;  %v11999_v20 = vld [vmem:[#allocation2 + $0xde0] sm:$0xc0] }
 0x35f   : > { %v17348_v32 = vadd.f32 %v3633_v10, %v17137_v9  ;;  %v13721_v3 = vpop.f32.mrb[10].mxu1  ;;  %v7658_v9 = vld [vmem:[#allocation2 + $0x2c0] sm:$0xf0]  ;;  %v7659_v10 = vld [vmem:[#allocation2 + $0x2c8] sm:$0xf]  ;;  %v5987_v8 = vrot.slane %v11999_v20, 6 }
 0x360   : > { %v17353_v39 = vadd.f32 %v13721_v3, %v17140_v42  ;;  %v3636_v27 = vpop.f32.mrb[11].mxu1  ;;  %v7733_v42 = vrot.slane %v7656_v59, 4  ;;  %v5988_v3 = vrot.slane %v12000_v18, 6  ;;  %v7660_v20 = vld [vmem:[#allocation2 + $0x2f0] sm:$0xf0] }
 0x361   : > { %v17357_v54 = vadd.f32 %v3636_v27, %v17144_v7  ;;  %14067 = vmatmul.mubr.bf16.gmra.mrb[84].mxu0 %v5980_v57  ;;  %v7736_v7 = vrot.slane %v7658_v9, 4  ;;  %v7737_v27 = vrot.slane %v7659_v10, 4  ;;  %v7661_v18 = vld [vmem:[#allocation2 + $0x2f8] sm:$0xf] }
 0x362   : > { %14307 = vmatmul.mubr.bf16.gmra.mrb[52].mxu1 %v7729_v0  ;;  %14070 = vmatprep.mubr.bf16.mxu0 %v5983_v13  ;;  %v5986_v0 = vsel %vm3825_vm2, %v5984_v50, %v5985_v6  ;;  %v12001_v13 = vld [vmem:[#allocation2 + $0xe10] sm:$0xc0]  ;;  %v5989_v61 = vsel %vm3825_vm2, %v5987_v8, %v5988_v3  ;;  %v12012_v50 = vld [vmem:[#allocation2 + $0xb58] sm:$0x3]  ;;  %v7740_v8 = vrot.slane %v7661_v18, 4 }
 0x363   : > { %14310 = vmatprep.mubr.bf16.mxu1 %v7732_v1  ;;  %v7735_v1 = vsel %vm885_vm1, %v7733_v42, %v7734_v26  ;;  %v7738_v10 = vsel %vm885_vm1, %v7736_v7, %v7737_v27  ;;  %v5991_v42 = vrot.slane %v12002_v55, 6  ;;  %v7739_v26 = vrot.slane %v7660_v20, 4  ;;  %v12013_v20 = vld [vmem:[#allocation2 + $0xb80] sm:$0xfc] }
 0x364   : > { %v6331_v7 = vrot.slane %v12012_v50, 2  ;;  %v12016_v50 = vld [vmem:[#allocation2 + $0xbb8] sm:$0x3] }
 0x365   : > { %v13724_v57 = vpop.f32.mrb[12].mxu1  ;;  %v7741_v55 = vsel %vm885_vm1, %v7739_v26, %v7740_v8  ;;  %v6337_v8 = vrot.slane %v12016_v50, 2  ;;  %v15989_v50 = vld [vmem:[#allocation11 + $0x108] sm:$0xff]  }
 0x366   : > { %v17364_v41 = vadd.f32 %v13724_v57, %v17147_v21  ;;  %v3649_v44 = vpop.f32.mrb[13].mxu1  ;;  %v12011_v57 = vld [vmem:[#allocation2 + $0xb50] sm:$0xfc] }
 0x367   : > { %v17368_v14 = vadd.f32 %v3649_v44, %v17149_v58  ;;  %v13725_v59 = vpop.f32.mrb[14].mxu1  ;;  %v5990_v44 = vrot.slane %v12001_v13, 6  ;;  %v6330_v3 = vrot.slane %v12011_v57, 2  ;;  %v12115_v57 = vld [vmem:[#allocation2 + $0x6c0] sm:$0xff]  ;;  %v15991_v58 = vld [vmem:[#allocation11 + $0x118] sm:$0xff]  }
 0x368   : > { %v17373_v9 = vadd.f32 %v13725_v59, %v17152_v23  ;;  %v3652_v21 = vpop.f32.mrb[15].mxu1 }
 0x369   : > { %v17377_v6 = vadd.f32 %v3652_v21, %v17156_v12  ;;  %14071 = vmatmul.mubr.bf16.gmra.mrb[88].mxu0 %v5986_v0  ;;  %v5992_v59 = vsel %vm3825_vm2, %v5990_v44, %v5991_v42  ;;  %v12014_v21 = vld [vmem:[#allocation2 + $0xb88] sm:$0x3]  ;;  %v6333_v44 = vrot.slane %v12013_v20, 2  ;;  %v12117_v20 = vld [vmem:[#allocation2 + $0x720] sm:$0xff] }
 0x36a   : > { %14311 = vmatmul.mubr.bf16.gmra.mrb[56].mxu1 %v7735_v1  ;;  %14074 = vmatprep.mubr.bf16.mxu0 %v5989_v61  ;;  %v6332_v61 = vsel %vm530_vm0, %v6330_v3, %v6331_v7  ;;  %v6334_v42 = vrot.slane %v12014_v21, 2  ;;  %v12017_v21 = vld [vmem:[#allocation2 + $0xbe0] sm:$0xfc] }
 0x36b   : > { %14314 = vmatprep.mubr.bf16.mxu1 %v7738_v10 }
 0x36d   : > { %v13728_v27 = vpop.f32.mrb[16].mxu1 }
 0x36e   : > { %v17384_v12 = vadd.f32 %v13728_v27, %v17159_v46  ;;  %v3665_v0 = vpop.f32.mrb[17].mxu1  ;;  %v12015_v46 = vld [vmem:[#allocation2 + $0xbb0] sm:$0xfc] }
 0x36f   : > { %v17388_v1 = vadd.f32 %v3665_v0, %v17161_v63  ;;  %v13729_v13 = vpop.f32.mrb[18].mxu1  ;;  %v6335_v0 = vsel %vm530_vm0, %v6333_v44, %v6334_v42  ;;  %v15994_v44 = vld [vmem:[#allocation10 + $0x208] sm:$0xff]   ;;  %v6339_v42 = vrot.slane %v12017_v21, 2 }
 0x370   : > { %v17393_v18 = vadd.f32 %v13729_v13, %v17164_v34  ;;  %v3668_v10 = vpop.f32.mrb[19].mxu1  ;;  %v6336_v34 = vrot.slane %v12015_v46, 2 }
 0x371   : > { %v17396_v27 = vadd.f32 %v3668_v10, %v17168_v52  ;;  %14075 = vmatmul.mubr.bf16.gmra.mrb[92].mxu0 %v5992_v59  ;;  %v12116_v59 = vld [vmem:[#allocation2 + $0x6f0] sm:$0xff]  ;;  %v12018_v10 = vld [vmem:[#allocation2 + $0xbe8] sm:$0x3] }
 0x372   : > { %14315 = vmatmul.mubr.bf16.gmra.mrb[60].mxu1 %v7741_v55  ;;  %14094 = vmatprep.mubr.bf16.mxu0 %v6332_v61  ;;  %v6338_v61 = vsel %vm530_vm0, %v6336_v34, %v6337_v8  ;;  %v6340_v34 = vrot.slane %v12018_v10, 2  ;;  %v12118_v10 = vld [vmem:[#allocation2 + $0x750] sm:$0xff] }
 0x373   : > { %14334 = vmatprep.mubr.bf16.mxu1 %v12115_v57 }
 0x374   : > { %v6341_v21 = vsel %vm530_vm0, %v6339_v42, %v6340_v34  ;;  %v17885_v42 = vld [vmem:[#allocation67_spill] sm:$0xff] }
 0x375   : > { %v13732_v3 = vpop.f32.mrb[20].mxu1 }
 0x376   : > { %v17403_v7 = vadd.f32 %v13732_v3, %v17170_v49  ;;  %v3681_v52 = vpop.f32.mrb[21].mxu1  ;;  %v12019_v49 = vld [vmem:[#allocation2 + $0xc10] sm:$0xfc]  ;;  %v12020_v3 = vld [vmem:[#allocation2 + $0xc18] sm:$0x3] }
 0x377   : > { %v17407_v13 = vadd.f32 %v3681_v52, %v17172_v24  ;;  %v13733_v55 = vpop.f32.mrb[22].mxu1  ;;  %v6342_v8 = vrot.slane %v12019_v49, 2  ;;  %v6343_v52 = vrot.slane %v12020_v3, 2  ;;  %v12119_v49 = vld [vmem:[#allocation2 + $0x780] sm:$0xff]  ;;  %v17884_v24 = vld [vmem:[#allocation66_spill] sm:$0xff] }
 0x378   : > { %v17411_v57 = vadd.f32 %v13733_v55, %v17175_v45  ;;  %v3684_v46 = vpop.f32.mrb[23].mxu1  ;;  %v15995_v55 = vld [vmem:[#allocation10 + $0x210] sm:$0xff]   ;;  %v12021_v3 = vld [vmem:[#allocation2 + $0xc40] sm:$0xfc] }
 0x379   : > { %v17414_v63 = vadd.f32 %v3684_v46, %v17178_v15  ;;  %14095 = vmatmul.mubr.bf16.vlgmr.msra.gmra.mrb[64].mxu0 %v6335_v0  ;;  %v15990_v15 = vld [vmem:[#allocation11 + $0x110] sm:$0xff]  }
 0x37a   : > { %14335 = vmatmul.mubr.bf16.vlgmr.msra.gmra.mrb[32].mxu1 %v12116_v59  ;;  %14098 = vmatprep.mubr.bf16.mxu0 %v6338_v61 }
 0x37b   : > { %14367 = vmatpush3.bf16.msra.mxu1 %v17317_v11  ;;  %14338 = vmatprep.mubr.bf16.mxu1 %v12117_v20  ;;  %v6344_v20 = vsel %vm530_vm0, %v6342_v8, %v6343_v52  ;;  %v6345_v8 = vrot.slane %v12021_v3, 2  ;;  %v12120_v3 = vld [vmem:[#allocation2 + $0x7b0] sm:$0xff]  ;;  %v12026_v52 = vld [vmem:[#allocation2 + $0xca8] sm:$0x3] }
 0x37c   : > { %14368 = vmatprep.subr.bf16.mxu1 %v15989_v50  ;;  %14127 = vmatpush3.bf16.msra.mxu0 %v17319_v60  ;;  %v12022_v60 = vld [vmem:[#allocation2 + $0xc48] sm:$0x3] }
 0x37d   : > { %v13736_v0 = vpop.f32.mrb[24].mxu1  ;;  %14128 = vmatprep.subr.bf16.mxu0 %v15994_v44 }
 0x37e   : > { %v17423_v59 = vadd.f32 %v13736_v0, %v17182_v4  ;;  %v3697_v61 = vpop.f32.mrb[25].mxu1  ;;  %v12023_v4 = vld [vmem:[#allocation2 + $0xc70] sm:$0xfc]  ;;  %v12024_v0 = vld [vmem:[#allocation2 + $0xc78] sm:$0x3] }
 0x37f   : > { %v17427_v46 = vadd.f32 %v3697_v61, %v17184_v36  ;;  %v13737_v11 = vpop.f32.mrb[26].mxu1  ;;  %14369 = vmatpush3.bf16.msra.mxu1 %v15989_v50  ;;  %v15997_v36 = vld [vmem:[#allocation10 + $0x218] sm:$0xff]   ;;  %v6348_v61 = vrot.slane %v12023_v4, 2  ;;  %v12121_v4 = vld [vmem:[#allocation2 + $0x7e0] sm:$0xff] }
 0x380   : > { %v17431_v45 = vadd.f32 %v13737_v11, %v17884_v24  ;;  %v3700_v26 = vpop.f32.mrb[27].mxu1  ;;  %14370 = vmatprep.subr.bf16.mxu1 %v15990_v15  ;;  %14129 = vmatpush3.bf16.msra.mxu0 %v15994_v44  ;;  %v6346_v24 = vrot.slane %v12022_v60, 2  ;;  %v6349_v44 = vrot.slane %v12024_v0, 2  ;;  %v15998_v11 = vld [vmem:[#allocation10 + $0x220] sm:$0xff]  }
 0x381   : > { %v17434_v34 = vadd.f32 %v3700_v26, %v17885_v42  ;;  %14099 = vmatmul.mubr.bf16.gmra.mrb[68].mxu0 %v6341_v21  ;;  %14130 = vmatprep.subr.bf16.mxu0 %v15995_v55  ;;  %v15993_v26 = vld [vmem:[#allocation11 + $0x120] sm:$0xff]  }
 0x382   : > { %14339 = vmatmul.mubr.bf16.gmra.mrb[36].mxu1 %v12118_v10  ;;  %14102 = vmatprep.mubr.bf16.mxu0 %v6344_v20  ;;  %v17886_v42 = vld [vmem:[#allocation68_spill] sm:$0xff]  ;;  %v6347_v20 = vsel %vm530_vm0, %v6345_v8, %v6346_v24  ;;  %v17888_v60 = vld [vmem:[#allocation69_spill] sm:$0xff]  ;;  %v17890_v8 = vld [vmem:[#allocation71_spill] sm:$0xff] }
 0x383   : > { %14342 = vmatprep.mubr.bf16.mxu1 %v12119_v49  ;;  %14371 = vmatpush3.bf16.msra.mxu1 %v15990_v15  ;;  %v6350_v15 = vsel %vm530_vm0, %v6348_v61, %v6349_v44  ;;  %v12025_v0 = vld [vmem:[#allocation2 + $0xca0] sm:$0xfc]  ;;  %v6352_v44 = vrot.slane %v12026_v52, 2  ;;  %v12030_v52 = vld [vmem:[#allocation2 + $0xd08] sm:$0x3] }
 0x384   : > { %14372 = vmatprep.subr.bf16.mxu1 %v15991_v58  ;;  %14131 = vmatpush3.bf16.msra.mxu0 %v15995_v55  ;;  %v17889_v55 = vld [vmem:[#allocation70_spill] sm:$0xff]  ;;  %v12031_v61 = vld [vmem:[#allocation2 + $0xd30] sm:$0xfc] }
 0x385   : > { %v13740_v21 = vpop.f32.mrb[28].mxu1  ;;  %14132 = vmatprep.subr.bf16.mxu0 %v15997_v36 }
 0x386   : > { %v17441_v23 = vadd.f32 %v13740_v21, %v17886_v42  ;;  %v3713_v10 = vpop.f32.mrb[29].mxu1  ;;  %v12027_v21 = vld [vmem:[#allocation2 + $0xcd0] sm:$0xfc]  ;;  %v12028_v42 = vld [vmem:[#allocation2 + $0xcd8] sm:$0x3] }
 0x387   : > { %v17445_v50 = vadd.f32 %v3713_v10, %v17888_v60  ;;  %v13741_v49 = vpop.f32.mrb[30].mxu1  ;;  %14373 = vmatpush3.bf16.msra.mxu1 %v15991_v58  ;;  %v16000_v10 = vld [vmem:[#allocation10 + $0x228] sm:$0xff]   ;;  %v6351_v58 = vrot.slane %v12025_v0, 2  ;;  %v12029_v0 = vld [vmem:[#allocation2 + $0xd00] sm:$0xfc] }
 0x388   : > { %17887 = vst [vmem:[#allocation66_spill] sm:$0xff] %v17441_v23  ;;  %v17449_v62 = vadd.f32 %v13741_v49, %v17889_v55  ;;  %v3716_v25 = vpop.f32.mrb[31].mxu1  ;;  %14374 = vmatprep.subr.bf16.mxu1 %v15993_v26  ;;  %14133 = vmatpush3.bf16.msra.mxu0 %v15997_v36  ;;  %v6354_v49 = vrot.slane %v12027_v21, 2  ;;  %v6355_v55 = vrot.slane %v12028_v42, 2  ;;  %v16001_v36 = vld [vmem:[#allocation10 + $0x230] sm:$0xff]   ;;  %v6358_v21 = vrot.slane %v12030_v52, 2 }
 0x389   : > { %v17452_v24 = vadd.f32 %v3716_v25, %v17890_v8  ;;  %14103 = vmatmul.mubr.bf16.gmra.mrb[72].mxu0 %v6347_v20  ;;  %14134 = vmatprep.subr.bf16.mxu0 %v15998_v11  ;;  %v15999_v25 = vld [vmem:[#allocation11 + $0x130] sm:$0xff]   ;;  %v6353_v20 = vsel %vm530_vm0, %v6351_v58, %v6352_v44  ;;  %v12032_v60 = vld [vmem:[#allocation2 + $0xd38] sm:$0x3]  ;;  %v6360_v42 = vrot.slane %v12031_v61, 2  ;;  %v17460_v44 = vld [vmem:[#allocation11 + $0x140] sm:$0xff]  }
 0x38a   : > { %14343 = vmatmul.mubr.bf16.gmra.mrb[40].mxu1 %v12120_v3  ;;  %14106 = vmatprep.mubr.bf16.mxu0 %v6350_v15  ;;  %v12122_v8 = vld [vmem:[#allocation2 + $0x810] sm:$0xff]  ;;  %v6356_v3 = vsel %vm530_vm0, %v6354_v49, %v6355_v55  ;;  %v12123_v15 = vld [vmem:[#allocation2 + $0x840] sm:$0xff]  ;;  %v6361_v58 = vrot.slane %v12032_v60, 2  ;;  %v12036_v61 = vld [vmem:[#allocation2 + $0xd98] sm:$0x3] }
 0x38b   : > { %14346 = vmatprep.mubr.bf16.mxu1 %v12121_v4  ;;  %14375 = vmatpush3.bf16.msra.mxu1 %v15993_v26  ;;  %v16002_v4 = vld [vmem:[#allocation11 + $0x138] sm:$0xff]   ;;  %v12124_v49 = vld [vmem:[#allocation2 + $0x870] sm:$0xff] }
 0x38c   : > { %14376 = vmatprep.subr.bf16.mxu1 %v15996_v43  ;;  %14135 = vmatpush3.bf16.msra.mxu0 %v15998_v11  ;;  %v16003_v26 = vld [vmem:[#allocation10 + $0x238] sm:$0xff]   ;;  %v6357_v11 = vrot.slane %v12029_v0, 2  ;;  %v6362_v55 = vsel %vm530_vm0, %v6360_v42, %v6361_v58  ;;  %v6367_v0 = vrot.slane %v12036_v61, 2  ;;  %v12038_v42 = vld [vmem:[#allocation2 + $0xdc8] sm:$0x3] }
 0x38d   : > { %14136 = vmatprep.subr.bf16.mxu0 %v16000_v10  ;;  %v12039_v58 = vld [vmem:[#allocation2 + $0xdf0] sm:$0xfc]  ;;  %v12040_v23 = vld [vmem:[#allocation2 + $0xdf8] sm:$0x3]  ;;  %v12041_v61 = vld [vmem:[#allocation2 + $0xe20] sm:$0xfc] }
 0x38f   : > { %14377 = vmatpush3.bf16.msra.mxu1 %v15996_v43  ;;  %v17462_v43 = vld [vmem:[#allocation13] sm:$0xff]  }
 0x390   : > { %14378 = vmatprep.subr.bf16.mxu1 %v15999_v25  ;;  %14137 = vmatpush3.bf16.msra.mxu0 %v16000_v10  ;;  %v6359_v10 = vsel %vm530_vm0, %v6357_v11, %v6358_v21  ;;  %v12126_v11 = vld [vmem:[#allocation2 + $0x8d0] sm:$0xff]  ;;  %v12037_v21 = vld [vmem:[#allocation2 + $0xdc0] sm:$0xfc] }
 0x391   : > { %14107 = vmatmul.mubr.bf16.gmra.mrb[76].mxu0 %v6353_v20  ;;  %14138 = vmatprep.subr.bf16.mxu0 %v16001_v36  ;;  %v12033_v20 = vld [vmem:[#allocation2 + $0xd60] sm:$0xfc] }
 0x392   : > { %14347 = vmatmul.mubr.bf16.gmra.mrb[44].mxu1 %v12122_v8  ;;  %14110 = vmatprep.mubr.bf16.mxu0 %v6356_v3  ;;  %v12034_v8 = vld [vmem:[#allocation2 + $0xd68] sm:$0x3]  ;;  %v12125_v3 = vld [vmem:[#allocation2 + $0x8a0] sm:$0xff]  ;;  %v6363_v60 = vrot.slane %v12033_v20, 2  ;;  %v6373_v20 = vrot.slane %v12040_v23, 2 }
 0x393   : > { %14350 = vmatprep.mubr.bf16.mxu1 %v12123_v15  ;;  %14379 = vmatpush3.bf16.msra.mxu1 %v15999_v25  ;;  %v12035_v15 = vld [vmem:[#allocation2 + $0xd90] sm:$0xfc]  ;;  %v6364_v25 = vrot.slane %v12034_v8, 2 }
 0x394   : > { %14380 = vmatprep.subr.bf16.mxu1 %v16002_v4  ;;  %14139 = vmatpush3.bf16.msra.mxu0 %v16001_v36  ;;  %v6366_v36 = vrot.slane %v12035_v15, 2 }
 0x395   : > { %14140 = vmatprep.subr.bf16.mxu0 %v16003_v26  ;;  %v6365_v52 = vsel %vm530_vm0, %v6363_v60, %v6364_v25  ;;  %v12042_v60 = vld [vmem:[#allocation2 + $0xe28] sm:$0x3]  ;;  %v12129_v25 = vld [vmem:[#allocation2 + $0x960] sm:$0xff] }
 0x397   : > { %14381 = vmatpush3.bf16.msra.mxu1 %v16002_v4  ;;  %v6368_v4 = vsel %vm530_vm0, %v6366_v36, %v6367_v0  ;;  %v12051_v36 = vld [vmem:[#allocation2 + $0xb58] sm:$0xc0]  ;;  %v12052_v0 = vld [vmem:[#allocation2 + $0xb60] sm:$0x3f] }
 0x398   : > { %14141 = vmatpush3.bf16.msra.mxu0 %v16003_v26  ;;  %14414 = vmatprep.subr.bf16.mxu1 %v17460_v44  ;;  %v12127_v26 = vld [vmem:[#allocation2 + $0x900] sm:$0xff] }
 0x399   : > { %14111 = vmatmul.mubr.bf16.gmra.mrb[80].mxu0 %v6359_v10  ;;  %14606 = vmatprep.subr.bf16.mxu0 %v17462_v43  ;;  %v6369_v10 = vrot.slane %v12037_v21, 2  ;;  %v6716_v21 = vrot.slane %v12052_v0, 6  ;;  %v16005_v0 = vld [vmem:[#allocation11 + $0x148] sm:$0xff]  }
 0x39a   : > { %14351 = vmatmul.mubr.bf16.gmra.mrb[48].mxu1 %v12124_v49  ;;  %14114 = vmatprep.mubr.bf16.mxu0 %v6362_v55  ;;  %v6370_v49 = vrot.slane %v12038_v42, 2  ;;  %v6372_v55 = vrot.slane %v12039_v58, 2  ;;  %v12130_v42 = vld [vmem:[#allocation2 + $0x990] sm:$0xff]  ;;  %v12053_v58 = vld [vmem:[#allocation2 + $0xb88] sm:$0xc0] }
 0x39b   : > { %14354 = vmatprep.mubr.bf16.mxu1 %v12125_v3  ;;  %v12128_v3 = vld [vmem:[#allocation2 + $0x930] sm:$0xff] }
 0x39c   : > { %v6371_v8 = vsel %vm530_vm0, %v6369_v10, %v6370_v49  ;;  %v6374_v15 = vsel %vm530_vm0, %v6372_v55, %v6373_v20  ;;  %v12054_v10 = vld [vmem:[#allocation2 + $0xb90] sm:$0x3f]  ;;  %v12055_v49 = vld [vmem:[#allocation2 + $0xbb8] sm:$0xc0]  ;;  %v12056_v55 = vld [vmem:[#allocation2 + $0xbc0] sm:$0x3f] }
 0x39d   : > { %v6718_v20 = vrot.slane %v12053_v58, 6  ;;  %v16012_v58 = vld [vmem:[#allocation13 + $0x10] sm:$0xff]  }
 0x3a1   : > { %14115 = vmatmul.mubr.bf16.gmra.mrb[84].mxu0 %v6365_v52  ;;  %v6375_v52 = vrot.slane %v12041_v61, 2 }
 0x3a2   : > { %14355 = vmatmul.mubr.bf16.gmra.mrb[52].mxu1 %v12126_v11  ;;  %14118 = vmatprep.mubr.bf16.mxu0 %v6368_v4  ;;  %v6376_v11 = vrot.slane %v12042_v60, 2  ;;  %v6715_v4 = vrot.slane %v12051_v36, 6  ;;  %v12058_v36 = vld [vmem:[#allocation2 + $0xbf0] sm:$0x3f] }
 0x3a3   : > { %14358 = vmatprep.mubr.bf16.mxu1 %v12127_v26 }
 0x3a4   : > { %v6377_v23 = vsel %vm530_vm0, %v6375_v52, %v6376_v11  ;;  %v6717_v26 = vsel %vm3825_vm2, %v6715_v4, %v6716_v21  ;;  %v12059_v52 = vld [vmem:[#allocation2 + $0xc18] sm:$0xc0]  ;;  %v12060_v11 = vld [vmem:[#allocation2 + $0xc20] sm:$0x3f]  ;;  %v16010_v4 = vld [vmem:[#allocation13 + $0x8] sm:$0xff]  }
 0x3a9   : > { %14119 = vmatmul.mubr.bf16.gmra.mrb[88].mxu0 %v6371_v8  ;;  %v6719_v8 = vrot.slane %v12054_v10, 6 }
 0x3aa   : > { %14359 = vmatmul.mubr.bf16.gmra.mrb[56].mxu1 %v12128_v3  ;;  %14122 = vmatprep.mubr.bf16.mxu0 %v6374_v15  ;;  %v6721_v3 = vrot.slane %v12055_v49, 6  ;;  %v6722_v15 = vrot.slane %v12056_v55, 6  ;;  %v12061_v49 = vld [vmem:[#allocation2 + $0xc48] sm:$0xc0]  ;;  %v12062_v55 = vld [vmem:[#allocation2 + $0xc50] sm:$0x3f] }
 0x3ab   : > { %14362 = vmatprep.mubr.bf16.mxu1 %v12129_v25  ;;  %v6720_v61 = vsel %vm3825_vm2, %v6718_v20, %v6719_v8  ;;  %v12057_v25 = vld [vmem:[#allocation2 + $0xbe8] sm:$0xc0]  ;;  %v12063_v20 = vld [vmem:[#allocation2 + $0xc78] sm:$0xc0] }
 0x3ac   : > { %v6723_v60 = vsel %vm3825_vm2, %v6721_v3, %v6722_v15  ;;  %v6724_v21 = vrot.slane %v12057_v25, 6  ;;  %v16007_v8 = vld [vmem:[#allocation11 + $0x158] sm:$0xff]   ;;  %v6731_v3 = vrot.slane %v12062_v55, 6  ;;  %v6733_v15 = vrot.slane %v12063_v20, 6  ;;  %v16015_v25 = vld [vmem:[#allocation13 + $0x20] sm:$0xff]  }
 0x3ad   : > { %v12069_v55 = vld [vmem:[#allocation2 + $0xd08] sm:$0xc0]  ;;  %v12070_v20 = vld [vmem:[#allocation2 + $0xd10] sm:$0x3f] }
 0x3b1   : > { %14123 = vmatmul.mubr.bf16.gmra.mrb[92].mxu0 %v6377_v23  ;;  %v6725_v23 = vrot.slane %v12058_v36, 6 }
 0x3b2   : > { %14363 = vmatmul.mubr.bf16.gmra.mrb[60].mxu1 %v12130_v42  ;;  %14142 = vmatprep.mubr.bf16.mxu0 %v6717_v26  ;;  %v6728_v42 = vrot.slane %v12060_v11, 6  ;;  %v16006_v26 = vld [vmem:[#allocation11 + $0x150] sm:$0xff]  }
 0x3b3   : > { %14382 = vmatprep.mubr.bf16.mxu1 %v16707_v17  ;;  %v6727_v17 = vrot.slane %v12059_v52, 6  ;;  %v6726_v10 = vsel %vm3825_vm2, %v6724_v21, %v6725_v23  ;;  %v12065_v52 = vld [vmem:[#allocation2 + $0xca8] sm:$0xc0]  ;;  %v12066_v11 = vld [vmem:[#allocation2 + $0xcb0] sm:$0x3f] }
 0x3b4   : > { %v16011_v21 = vld [vmem:[#allocation11 + $0x168] sm:$0xff]   ;;  %v6736_v23 = vrot.slane %v12065_v52, 6  ;;  %v12075_v52 = vld [vmem:[#allocation2 + $0xd98] sm:$0xc0] }
 0x3b9   : > { %14143 = vmatmul.mubr.bf16.vlgmr.msra.gmra.mrb[64].mxu0 %v6720_v61 }
 0x3ba   : > { %14383 = vmatmul.mubr.bf16.vlgmr.msra.gmra.mrb[32].mxu1 %v16711_v35  ;;  %14146 = vmatprep.mubr.bf16.mxu0 %v6723_v60  ;;  %v6729_v35 = vsel %vm3825_vm2, %v6727_v17, %v6728_v42  ;;  %v16008_v60 = vld [vmem:[#allocation11 + $0x160] sm:$0xff]   ;;  %v6737_v17 = vrot.slane %v12066_v11, 6 }
 0x3bb   : > { %14415 = vmatpush3.bf16.msra.mxu1 %v17460_v44  ;;  %14386 = vmatprep.mubr.bf16.mxu1 %v16714_v38  ;;  %v12064_v44 = vld [vmem:[#allocation2 + $0xc80] sm:$0x3f]  ;;  %v16013_v38 = vld [vmem:[#allocation13 + $0x18] sm:$0xff]  }
 0x3bc   : > { %14416 = vmatprep.subr.bf16.mxu1 %v16005_v0  ;;  %14607 = vmatpush3.bf16.msra.mxu0 %v17462_v43  ;;  %v6730_v43 = vrot.slane %v12061_v49, 6  ;;  %v6734_v61 = vrot.slane %v12064_v44, 6  ;;  %v12072_v44 = vld [vmem:[#allocation2 + $0xd40] sm:$0x3f] }
 0x3bd   : > { %14608 = vmatprep.subr.bf16.mxu0 %v16010_v4  ;;  %v12076_v11 = vld [vmem:[#allocation2 + $0xda0] sm:$0x3f] }
 0x3be   : > { %v6732_v36 = vsel %vm3825_vm2, %v6730_v43, %v6731_v3  ;;  %v6743_v43 = vrot.slane %v12070_v20, 6 }
 0x3bf   : > { %14417 = vmatpush3.bf16.msra.mxu1 %v16005_v0  ;;  %v6735_v0 = vsel %vm3825_vm2, %v6733_v15, %v6734_v61  ;;  %v6746_v15 = vrot.slane %v12072_v44, 6  ;;  %v17493_v61 = vld [vmem:[#allocation11 + $0x180] sm:$0xff]   ;;  %v12081_v44 = vld [vmem:[#allocation2 + $0xe28] sm:$0xc0] }
 0x3c0   : > { %14418 = vmatprep.subr.bf16.mxu1 %v16006_v26  ;;  %14609 = vmatpush3.bf16.msra.mxu0 %v16010_v4  ;;  %v12068_v4 = vld [vmem:[#allocation2 + $0xce0] sm:$0x3f] }
 0x3c1   : > { %14147 = vmatmul.mubr.bf16.gmra.mrb[68].mxu0 %v6726_v10  ;;  %14610 = vmatprep.subr.bf16.mxu0 %v16012_v58  ;;  %v16018_v10 = vld [vmem:[#allocation13 + $0x30] sm:$0xff]  }
 0x3c2   : > { %14387 = vmatmul.mubr.bf16.gmra.mrb[36].mxu1 %v16719_v48  ;;  %14150 = vmatprep.mubr.bf16.mxu0 %v6729_v35  ;;  %v12067_v48 = vld [vmem:[#allocation2 + $0xcd8] sm:$0xc0]  ;;  %v6738_v35 = vsel %vm3825_vm2, %v6736_v23, %v6737_v17  ;;  %v12077_v17 = vld [vmem:[#allocation2 + $0xdc8] sm:$0xc0] }
 0x3c3   : > { %14390 = vmatprep.mubr.bf16.mxu1 %v16722_v51  ;;  %14419 = vmatpush3.bf16.msra.mxu1 %v16006_v26  ;;  %v16016_v51 = vld [vmem:[#allocation13 + $0x28] sm:$0xff]   ;;  %v6739_v42 = vrot.slane %v12067_v48, 6  ;;  %v6740_v26 = vrot.slane %v12068_v4, 6  ;;  %v6751_v4 = vrot.slane %v12075_v52, 6 }
 0x3c4   : > { %14420 = vmatprep.subr.bf16.mxu1 %v16007_v8  ;;  %14611 = vmatpush3.bf16.msra.mxu0 %v16012_v58  ;;  %v16014_v58 = vld [vmem:[#allocation11 + $0x170] sm:$0xff]  }
 0x3c5   : > { %14612 = vmatprep.subr.bf16.mxu0 %v16013_v38  ;;  %v6741_v49 = vsel %vm3825_vm2, %v6739_v42, %v6740_v26  ;;  %v12078_v42 = vld [vmem:[#allocation2 + $0xdd0] sm:$0x3f]  ;;  %v12079_v26 = vld [vmem:[#allocation2 + $0xdf8] sm:$0xc0] }
 0x3c7   : > { %14421 = vmatpush3.bf16.msra.mxu1 %v16007_v8  ;;  %v16019_v8 = vld [vmem:[#allocation13 + $0x38] sm:$0xff]  }
 0x3c8   : > { %14422 = vmatprep.subr.bf16.mxu1 %v16008_v60  ;;  %14613 = vmatpush3.bf16.msra.mxu0 %v16013_v38  ;;  %v6742_v38 = vrot.slane %v12069_v55, 6  ;;  %v6757_v55 = vrot.slane %v12079_v26, 6 }
 0x3c9   : > { %14151 = vmatmul.mubr.bf16.gmra.mrb[72].mxu0 %v6732_v36  ;;  %14614 = vmatprep.subr.bf16.mxu0 %v16015_v25 }
 0x3ca   : > { %14391 = vmatmul.mubr.bf16.gmra.mrb[40].mxu1 %v16727_v2  ;;  %14154 = vmatprep.mubr.bf16.mxu0 %v6735_v0  ;;  %v12071_v2 = vld [vmem:[#allocation2 + $0xd38] sm:$0xc0]  ;;  %v12074_v0 = vld [vmem:[#allocation2 + $0xd70] sm:$0x3f] }
 0x3cb   : > { %14394 = vmatprep.mubr.bf16.mxu1 %v16730_v5  ;;  %14423 = vmatpush3.bf16.msra.mxu1 %v16008_v60  ;;  %v16017_v5 = vld [vmem:[#allocation11 + $0x178] sm:$0xff]   ;;  %v6745_v3 = vrot.slane %v12071_v2, 6  ;;  %v17495_v60 = vld [vmem:[#allocation13 + $0x40] sm:$0xff]   ;;  %v6749_v48 = vrot.slane %v12074_v0, 6 }
 0x3cc   : > { %14424 = vmatprep.subr.bf16.mxu1 %v16011_v21  ;;  %14615 = vmatpush3.bf16.msra.mxu0 %v16015_v25  ;;  %v6744_v25 = vsel %vm3825_vm2, %v6742_v38, %v6743_v43  ;;  %v12148_v38 = vld [vmem:[#allocation2 + $0x6e8] sm:$0xf]  ;;  %v17893_v43 = vld [vmem:[#allocation31_spill] sm:$0xff] }
 0x3cd   : > { %14616 = vmatprep.subr.bf16.mxu0 %v16016_v51  ;;  %v6747_v36 = vsel %vm3825_vm2, %v6745_v3, %v6746_v15  ;;  %v6760_v3 = vrot.slane %v12081_v44, 6 }
 0x3cf   : > { %14425 = vmatpush3.bf16.msra.mxu1 %v16011_v21  ;;  %v6752_v21 = vrot.slane %v12076_v11, 6  ;;  %v12149_v11 = vld [vmem:[#allocation2 + $0x710] sm:$0xf0] }
 0x3d0   : > { %14426 = vmatprep.subr.bf16.mxu1 %v16014_v58  ;;  %14617 = vmatpush3.bf16.msra.mxu0 %v16016_v51 }
 0x3d1   : > { %14155 = vmatmul.mubr.bf16.gmra.mrb[76].mxu0 %v6738_v35  ;;  %14618 = vmatprep.subr.bf16.mxu0 %v16018_v10  ;;  %v6753_v23 = vsel %vm3825_vm2, %v6751_v4, %v6752_v21  ;;  %v6755_v35 = vrot.slane %v12078_v42, 6  ;;  %v12152_v4 = vld [vmem:[#allocation2 + $0x748] sm:$0xf]  ;;  %v8612_v42 = vrot.slane %v12149_v11, 4  ;;  %v16028_v11 = vld [vmem:[#allocation13 + $0x50] sm:$0xff]  }
 0x3d2   : > { %14395 = vmatmul.mubr.bf16.gmra.mrb[44].mxu1 %v16735_v16  ;;  %14158 = vmatprep.mubr.bf16.mxu0 %v6741_v49  ;;  %v12073_v16 = vld [vmem:[#allocation2 + $0xd68] sm:$0xc0]  ;;  %v17895_v21 = vld [vmem:[#allocation33_spill] sm:$0xff] }
 0x3d3   : > { %14398 = vmatprep.mubr.bf16.mxu1 %v16738_v19  ;;  %14427 = vmatpush3.bf16.msra.mxu1 %v16014_v58  ;;  %v6748_v19 = vrot.slane %v12073_v16, 6  ;;  %v12080_v58 = vld [vmem:[#allocation2 + $0xe00] sm:$0x3f]  ;;  %v17892_v49 = vld [vmem:[#allocation30_spill] sm:$0xff]  ;;  %v8610_v16 = vrot.slane %v12148_v38, 4 }
 0x3d4   : > { %14428 = vmatprep.subr.bf16.mxu1 %v16017_v5  ;;  %14619 = vmatpush3.bf16.msra.mxu0 %v16018_v10  ;;  %v17891_v10 = vld [vmem:[#allocation29_spill] sm:$0xff] }
 0x3d5   : > { %14620 = vmatprep.subr.bf16.mxu0 %v16019_v8  ;;  %v6750_v51 = vsel %vm3825_vm2, %v6748_v19, %v6749_v48  ;;  %v12150_v19 = vld [vmem:[#allocation2 + $0x718] sm:$0xf]  ;;  %v12151_v48 = vld [vmem:[#allocation2 + $0x740] sm:$0xf0]  ;;  %v16026_v38 = vld [vmem:[#allocation13 + $0x48] sm:$0xff]  }
 0x3d6   : > { %v8613_v26 = vrot.slane %v12150_v19, 4 }
 0x3d7   : > { %14429 = vmatpush3.bf16.msra.mxu1 %v16017_v5  ;;  %v12082_v5 = vld [vmem:[#allocation2 + $0xe30] sm:$0x3f] }
 0x3d8   : > { %14621 = vmatpush3.bf16.msra.mxu0 %v16019_v8  ;;  %14462 = vmatprep.subr.bf16.mxu1 %v17493_v61  ;;  %v12147_v8 = vld [vmem:[#allocation2 + $0x6e0] sm:$0xf0]  ;;  %v6761_v15 = vrot.slane %v12082_v5, 6 }
 0x3d9   : > { %14159 = vmatmul.mubr.bf16.gmra.mrb[80].mxu0 %v6744_v25  ;;  %14654 = vmatprep.subr.bf16.mxu0 %v17495_v60  ;;  %v17894_v25 = vld [vmem:[#allocation32_spill] sm:$0xff]  ;;  %v12155_v5 = vld [vmem:[#allocation2 + $0x7a0] sm:$0xf0] }
 0x3da   : > { %14399 = vmatmul.mubr.bf16.gmra.mrb[48].mxu1 %v16747_v33  ;;  %14162 = vmatprep.mubr.bf16.mxu0 %v6747_v36  ;;  %v6754_v33 = vrot.slane %v12077_v17, 6  ;;  %v8609_v36 = vrot.slane %v12147_v8, 4  ;;  %v6762_v0 = vsel %vm3825_vm2, %v6760_v3, %v6761_v15  ;;  %v12156_v8 = vld [vmem:[#allocation2 + $0x7a8] sm:$0xf]  ;;  %v17903_v3 = vld [vmem:[#allocation39_spill] sm:$0xff] }
 0x3db   : > { %14402 = vmatprep.mubr.bf16.mxu1 %v16750_v37  ;;  %v6758_v37 = vrot.slane %v12080_v58, 6  ;;  %v8615_v58 = vrot.slane %v12151_v48, 4 }
 0x3dc   : > { %v6756_v20 = vsel %vm3825_vm2, %v6754_v33, %v6755_v35  ;;  %v8611_v52 = vsel %vm885_vm1, %v8609_v36, %v8610_v16  ;;  %v8614_v33 = vsel %vm885_vm1, %v8612_v42, %v8613_v26  ;;  %v8621_v16 = vrot.slane %v12155_v5, 4  ;;  %v12159_v42 = vld [vmem:[#allocation2 + $0x800] sm:$0xf0]  ;;  %v12160_v26 = vld [vmem:[#allocation2 + $0x808] sm:$0xf] }
 0x3dd   : > { %v6759_v2 = vsel %vm3825_vm2, %v6757_v55, %v6758_v37  ;;  %v12154_v55 = vld [vmem:[#allocation2 + $0x778] sm:$0xf]  ;;  %v16021_v37 = vld [vmem:[#allocation11 + $0x188] sm:$0xff]  }
 0x3de   : > { %v8619_v36 = vrot.slane %v12154_v55, 4  ;;  %v8627_v55 = vrot.slane %v12159_v42, 4 }
 0x3e1   : > { %14163 = vmatmul.mubr.bf16.gmra.mrb[84].mxu0 %v6750_v51  ;;  %v17896_v51 = vld [vmem:[#allocation37_spill] sm:$0xff] }
 0x3e2   : > { %14403 = vmatmul.mubr.bf16.gmra.mrb[52].mxu1 %v17891_v10  ;;  %14166 = vmatprep.mubr.bf16.mxu0 %v6753_v23  ;;  %v17897_v23 = vld [vmem:[#allocation35_spill] sm:$0xff]  ;;  %v8616_v10 = vrot.slane %v12152_v4, 4 }
 0x3e3   : > { %14406 = vmatprep.mubr.bf16.mxu1 %v17892_v49  ;;  %v17898_v17 = vpack.c.bf16 %v17896_v51, %v17897_v23  ;;  %v12153_v49 = vld [vmem:[#allocation2 + $0x770] sm:$0xf0]  ;;  %v17905_v51 = vld [vmem:[#allocation40_spill] sm:$0xff]  ;;  %v17906_v23 = vld [vmem:[#allocation38_spill] sm:$0xff] }
 0x3e4   : > { %v8617_v35 = vsel %vm885_vm1, %v8615_v58, %v8616_v10  ;;  %v12157_v4 = vld [vmem:[#allocation2 + $0x7d0] sm:$0xf0]  ;;  %v17908_v58 = vld [vmem:[#allocation45_spill] sm:$0xff] }
 0x3e5   : > { %v17909_v10 = vld [vmem:[#allocation43_spill] sm:$0xff] }
 0x3e9   : > { %14167 = vmatmul.mubr.bf16.gmra.mrb[88].mxu0 %v6756_v20  ;;  %v17899_v20 = vld [vmem:[#allocation36_spill] sm:$0xff] }
 0x3ea   : > { %14407 = vmatmul.mubr.bf16.gmra.mrb[56].mxu1 %v17893_v43  ;;  %14170 = vmatprep.mubr.bf16.mxu0 %v6759_v2  ;;  %v17900_v2 = vld [vmem:[#allocation34_spill] sm:$0xff]  ;;  %v17902_v43 = vld [vmem:[#allocation41_spill] sm:$0xff] }
 0x3eb   : > { %14410 = vmatprep.mubr.bf16.mxu1 %v17894_v25  ;;  %v17901_v44 = vpack.c.bf16 %v17899_v20, %v17900_v2  ;;  %v17904_v15 = vpack.c.bf16 %v17902_v43, %v17903_v3  ;;  %v8618_v25 = vrot.slane %v12153_v49, 4  ;;  %v16024_v20 = vld [vmem:[#allocation11 + $0x1a0] sm:$0xff]   ;;  %v16027_v43 = vld [vmem:[#allocation11 + $0x1a8] sm:$0xff]  }
 0x3ec   : > { %v16031_v2 = vld [vmem:[#allocation13 + $0x60] sm:$0xff]  }
 0x3ed   : > { %v8620_v19 = vsel %vm885_vm1, %v8618_v25, %v8619_v36  ;;  %v17911_v3 = vld [vmem:[#allocation44_spill] sm:$0xff]  ;;  %v12163_v36 = vld [vmem:[#allocation2 + $0x860] sm:$0xf0] }
 0x3f1   : > { %14171 = vmatmul.mubr.bf16.gmra.mrb[92].mxu0 %v6762_v0  ;;  %v8622_v0 = vrot.slane %v12156_v8, 4  ;;  %v12161_v8 = vld [vmem:[#allocation2 + $0x830] sm:$0xf0] }
 0x3f2   : > { %14411 = vmatmul.mubr.bf16.gmra.mrb[60].mxu1 %v17895_v21  ;;  %14622 = vmatprep.mubr.bf16.mxu0 %v17898_v17  ;;  %v12158_v21 = vld [vmem:[#allocation2 + $0x7d8] sm:$0xf]  ;;  %v17907_v17 = vpack.c.bf16 %v17905_v51, %v17906_v23  ;;  %v16030_v51 = vld [vmem:[#allocation11 + $0x1b0] sm:$0xff]  }
 0x3f3   : > { %14430 = vmatprep.mubr.bf16.mxu1 %v8611_v52  ;;  %v16022_v52 = vld [vmem:[#allocation11 + $0x190] sm:$0xff]   ;;  %v8623_v48 = vsel %vm885_vm1, %v8621_v16, %v8622_v0  ;;  %v8625_v49 = vrot.slane %v12158_v21, 4  ;;  %v12164_v16 = vld [vmem:[#allocation2 + $0x868] sm:$0xf]  ;;  %v8633_v21 = vrot.slane %v12163_v36, 4 }
 0x3f4   : > { %v16032_v0 = vld [vmem:[#allocation13 + $0x68] sm:$0xff]   ;;  %v16034_v23 = vld [vmem:[#allocation13 + $0x70] sm:$0xff]  }
 0x3f9   : > { %14623 = vmatmul.mubr.bf16.vlgmr.msra.gmra.mrb[96].mxu0 %v17901_v44 }
 0x3fa   : > { %14431 = vmatmul.mubr.bf16.vlgmr.msra.gmra.mrb[32].mxu1 %v8614_v33  ;;  %14626 = vmatprep.mubr.bf16.mxu0 %v17904_v15  ;;  %v17910_v33 = vpack.c.bf16 %v17908_v58, %v17909_v10  ;;  %v17912_v15 = vld [vmem:[#allocation42_spill] sm:$0xff]  ;;  %v16033_v58 = vld [vmem:[#allocation11 + $0x1b8] sm:$0xff]  }
 0x3fb   : > { %14463 = vmatpush3.bf16.msra.mxu1 %v17493_v61  ;;  %14434 = vmatprep.mubr.bf16.mxu1 %v8617_v35  ;;  %v16023_v61 = vld [vmem:[#allocation11 + $0x198] sm:$0xff]   ;;  %v8624_v35 = vrot.slane %v12157_v4, 4  ;;  %v17913_v25 = vpack.c.bf16 %v17911_v3, %v17912_v15  ;;  %v16036_v3 = vld [vmem:[#allocation11 + $0x1c0] sm:$0xff]  }
 0x3fc   : > { %14464 = vmatprep.subr.bf16.mxu1 %v16021_v37  ;;  %14655 = vmatpush3.bf16.msra.mxu0 %v17495_v60  ;;  %v16029_v60 = vld [vmem:[#allocation13 + $0x58] sm:$0xff]   ;;  %v16044_v15 = vld [vmem:[#allocation13 + $0x80] sm:$0xff]  }
 0x3fd   : > { %14656 = vmatprep.subr.bf16.mxu0 %v16026_v38  ;;  %v8626_v44 = vsel %vm885_vm1, %v8624_v35, %v8625_v49  ;;  %v17917_v10 = vld [vmem:[#allocation48_spill] sm:$0xff]  ;;  %v12167_v49 = vld [vmem:[#allocation2 + $0x8c0] sm:$0xf0] }
 0x3ff   : > { %14465 = vmatpush3.bf16.msra.mxu1 %v16021_v37  ;;  %v8628_v37 = vrot.slane %v12160_v26, 4  ;;  %v12165_v26 = vld [vmem:[#allocation2 + $0x890] sm:$0xf0] }
 0x400   : > { %14466 = vmatprep.subr.bf16.mxu1 %v16022_v52  ;;  %14657 = vmatpush3.bf16.msra.mxu0 %v16026_v38  ;;  %v12162_v38 = vld [vmem:[#allocation2 + $0x838] sm:$0xf] }
 0x401   : > { %14627 = vmatmul.mubr.bf16.gmra.mrb[100].mxu0 %v17907_v17  ;;  %14658 = vmatprep.subr.bf16.mxu0 %v16028_v11  ;;  %v8629_v5 = vsel %vm885_vm1, %v8627_v55, %v8628_v37  ;;  %v8631_v4 = vrot.slane %v12162_v38, 4  ;;  %v12168_v55 = vld [vmem:[#allocation2 + $0x8c8] sm:$0xf]  ;;  %v16035_v37 = vld [vmem:[#allocation13 + $0x78] sm:$0xff]   ;;  %v8639_v38 = vrot.slane %v12167_v49, 4 }
 0x402   : > { %14435 = vmatmul.mubr.bf16.gmra.mrb[36].mxu1 %v8620_v19  ;;  %14630 = vmatprep.mubr.bf16.mxu0 %v17910_v33  ;;  %v17918_v33 = vld [vmem:[#allocation46_spill] sm:$0xff] }
 0x403   : > { %14438 = vmatprep.mubr.bf16.mxu1 %v8623_v48  ;;  %14467 = vmatpush3.bf16.msra.mxu1 %v16022_v52  ;;  %v17914_v52 = vld [vmem:[#allocation49_spill] sm:$0xff]  ;;  %v8630_v48 = vrot.slane %v12161_v8, 4  ;;  %v17919_v35 = vpack.c.bf16 %v17917_v10, %v17918_v33  ;;  %v12173_v10 = vld [vmem:[#allocation2 + $0x950] sm:$0xf0]  ;;  %v12174_v33 = vld [vmem:[#allocation2 + $0x958] sm:$0xf] }
 0x404   : > { %14468 = vmatprep.subr.bf16.mxu1 %v16023_v61  ;;  %14659 = vmatpush3.bf16.msra.mxu0 %v16028_v11  ;;  %v17915_v11 = vld [vmem:[#allocation47_spill] sm:$0xff]  ;;  %v17930_v49 = vld [vmem:[#allocation54_spill] sm:$0xff] }
 0x405   : > { %14660 = vmatprep.subr.bf16.mxu0 %v16029_v60  ;;  %v17916_v19 = vpack.c.bf16 %v17914_v52, %v17915_v11  ;;  %v8632_v17 = vsel %vm885_vm1, %v8630_v48, %v8631_v4  ;;  %v17923_v52 = vld [vmem:[#allocation52_spill] sm:$0xff]  ;;  %v17924_v11 = vld [vmem:[#allocation50_spill] sm:$0xff]  ;;  %v12171_v48 = vld [vmem:[#allocation2 + $0x920] sm:$0xf0] }
 0x406   : > { %v12172_v4 = vld [vmem:[#allocation2 + $0x928] sm:$0xf] }
 0x407   : > { %14469 = vmatpush3.bf16.msra.mxu1 %v16023_v61  ;;  %v8634_v61 = vrot.slane %v12164_v16, 4  ;;  %v12169_v16 = vld [vmem:[#allocation2 + $0x8f0] sm:$0xf0] }
 0x408   : > { %14470 = vmatprep.subr.bf16.mxu1 %v16024_v20  ;;  %14661 = vmatpush3.bf16.msra.mxu0 %v16029_v60  ;;  %v12166_v60 = vld [vmem:[#allocation2 + $0x898] sm:$0xf] }
 0x409   : > { %14631 = vmatmul.mubr.bf16.gmra.mrb[104].mxu0 %v17913_v25  ;;  %14662 = vmatprep.subr.bf16.mxu0 %v16031_v2  ;;  %v8635_v42 = vsel %vm885_vm1, %v8633_v21, %v8634_v61  ;;  %v8637_v8 = vrot.slane %v12166_v60, 4  ;;  %v17926_v21 = vld [vmem:[#allocation57_spill] sm:$0xff]  ;;  %v17927_v61 = vld [vmem:[#allocation55_spill] sm:$0xff] }
 0x40a   : > { %14439 = vmatmul.mubr.bf16.gmra.mrb[40].mxu1 %v8626_v44  ;;  %14634 = vmatprep.mubr.bf16.mxu0 %v17916_v19  ;;  %v17925_v19 = vpack.c.bf16 %v17923_v52, %v17924_v11  ;;  %v12178_v52 = vld [vmem:[#allocation2 + $0x9b8] sm:$0xf] }
 0x40b   : > { %14442 = vmatprep.mubr.bf16.mxu1 %v8629_v5  ;;  %14471 = vmatpush3.bf16.msra.mxu1 %v16024_v20  ;;  %v17920_v20 = vld [vmem:[#allocation53_spill] sm:$0xff]  ;;  %v8636_v5 = vrot.slane %v12165_v26, 4  ;;  %v8646_v26 = vrot.slane %v12172_v4, 4  ;;  %v17935_v11 = vld [vmem:[#allocation60_spill] sm:$0xff] }
 0x40c   : > { %14472 = vmatprep.subr.bf16.mxu1 %v16027_v43  ;;  %14663 = vmatpush3.bf16.msra.mxu0 %v16031_v2  ;;  %v17921_v2 = vld [vmem:[#allocation51_spill] sm:$0xff]  ;;  %v17938_v4 = vld [vmem:[#allocation65_spill] sm:$0xff] }
 0x40d   : > { %14664 = vmatprep.subr.bf16.mxu0 %v16032_v0  ;;  %v17922_v44 = vpack.c.bf16 %v17920_v20, %v17921_v2  ;;  %v8638_v25 = vsel %vm885_vm1, %v8636_v5, %v8637_v8  ;;  %v12176_v20 = vld [vmem:[#allocation2 + $0x988] sm:$0xf]  ;;  %v8648_v8 = vrot.slane %v12173_v10, 4  ;;  %v17944_v10 = vpack.c.bf16 %v17311_v56, %v17302_v47  ;;  %v16047_v47 = vld [vmem:[#allocation13 + $0x90] sm:$0xff]  }
 0x40e   : > { %v17932_v2 = vld [vmem:[#allocation61_spill] sm:$0xff]  ;;  %v12190_v56 = vld [vmem:[#allocation2 + $0xe10] sm:$0xff] }
 0x40f   : > { %14473 = vmatpush3.bf16.msra.mxu1 %v16027_v43  ;;  %v8640_v43 = vrot.slane %v12168_v55, 4 }
 0x410   : > { %14474 = vmatprep.subr.bf16.mxu1 %v16030_v51  ;;  %14665 = vmatpush3.bf16.msra.mxu0 %v16032_v0  ;;  %v12170_v0 = vld [vmem:[#allocation2 + $0x8f8] sm:$0xf] }
 0x411   : > { %14635 = vmatmul.mubr.bf16.gmra.mrb[108].mxu0 %v17919_v35  ;;  %14666 = vmatprep.subr.bf16.mxu0 %v16034_v23  ;;  %v8641_v36 = vsel %vm885_vm1, %v8639_v38, %v8640_v43  ;;  %v17929_v35 = vld [vmem:[#allocation56_spill] sm:$0xff]  ;;  %v8649_v38 = vrot.slane %v12174_v33, 4  ;;  %v12188_v33 = vld [vmem:[#allocation2 + $0xdb0] sm:$0xff] }
 0x412   : > { %14443 = vmatmul.mubr.bf16.gmra.mrb[44].mxu1 %v8632_v17  ;;  %14638 = vmatprep.mubr.bf16.mxu0 %v17922_v44  ;;  %v8643_v17 = vrot.slane %v12170_v0, 4  ;;  %v17931_v55 = vpack.c.bf16 %v17929_v35, %v17930_v49  ;;  %v17933_v44 = vld [vmem:[#allocation59_spill] sm:$0xff]  ;;  %v12189_v35 = vld [vmem:[#allocation2 + $0xde0] sm:$0xff]  ;;  %v16037_v49 = vld [vmem:[#allocation11 + $0x1c8] sm:$0xff]  }
 0x413   : > { %14446 = vmatprep.mubr.bf16.mxu1 %v8635_v42  ;;  %14475 = vmatpush3.bf16.msra.mxu1 %v16030_v51  ;;  %v17928_v51 = vpack.c.bf16 %v17926_v21, %v17927_v61  ;;  %v8645_v42 = vrot.slane %v12171_v48, 4  ;;  %v17934_v5 = vpack.c.bf16 %v17932_v2, %v17933_v44  ;;  %v12177_v0 = vld [vmem:[#allocation2 + $0x9b0] sm:$0xf0]  ;;  %v12191_v44 = vld [vmem:[#allocation2 + $0xe40] sm:$0xff] }
 0x414   : > { %14476 = vmatprep.subr.bf16.mxu1 %v16033_v58  ;;  %14667 = vmatpush3.bf16.msra.mxu0 %v16034_v23  ;;  %v8642_v23 = vrot.slane %v12169_v16, 4  ;;  %v17939_v21 = vld [vmem:[#allocation63_spill] sm:$0xff] }
 0x415   : > { %14668 = vmatprep.subr.bf16.mxu0 %v16035_v37  ;;  %v17940_v61 = vpack.c.bf16 %v17938_v4, %v17939_v21  ;;  %v16038_v2 = vld [vmem:[#allocation11 + $0x1d0] sm:$0xff]   ;;  %v17958_v4 = vpack.c.bf16 %v17452_v24, %v17445_v50 }
 0x416   : > { %v8644_v60 = vsel %vm885_vm1, %v8642_v23, %v8643_v17  ;;  %v8655_v23 = vrot.slane %v12178_v52, 4  ;;  %v12197_v52 = vld [vmem:[#allocation2 + $0xf60] sm:$0xff]  ;;  %v12202_v21 = vld [vmem:[#allocation2 + $0x1050] sm:$0xff] }
 0x417   : > { %14477 = vmatpush3.bf16.msra.mxu1 %v16033_v58  ;;  %v8647_v58 = vsel %vm885_vm1, %v8645_v42, %v8646_v26  ;;  %v12187_v42 = vld [vmem:[#allocation2 + $0xd80] sm:$0xff] }
 0x418   : > { %14669 = vmatpush3.bf16.msra.mxu0 %v16035_v37  ;;  %14510 = vmatprep.subr.bf16.mxu1 %v16036_v3  ;;  %v12175_v37 = vld [vmem:[#allocation2 + $0x980] sm:$0xf0]  ;;  %v17941_v26 = vld [vmem:[#allocation64_spill] sm:$0xff] }
 0x419   : > { %14639 = vmatmul.mubr.bf16.gmra.mrb[112].mxu0 %v17925_v19  ;;  %14702 = vmatprep.subr.bf16.mxu0 %v16044_v15  ;;  %v8651_v43 = vrot.slane %v12175_v37, 4  ;;  %v17936_v19 = vld [vmem:[#allocation58_spill] sm:$0xff] }
 0x41a   : > { %14447 = vmatmul.mubr.bf16.gmra.mrb[48].mxu1 %v8638_v25  ;;  %14642 = vmatprep.mubr.bf16.mxu0 %v17928_v51  ;;  %v8652_v25 = vrot.slane %v12176_v20, 4  ;;  %v17937_v48 = vpack.c.bf16 %v17935_v11, %v17936_v19  ;;  %v8654_v51 = vrot.slane %v12177_v0, 4  ;;  %v16045_v37 = vld [vmem:[#allocation13 + $0x88] sm:$0xff]   ;;  %v17946_v20 = vpack.c.bf16 %v17336_v53, %v17326_v28  ;;  %v16040_v53 = vld [vmem:[#allocation11 + $0x1e0] sm:$0xff]   ;;  %v12196_v0 = vld [vmem:[#allocation2 + $0xf30] sm:$0xff] }
 0x41b   : > { %14450 = vmatprep.mubr.bf16.mxu1 %v8641_v36  ;;  %v8650_v36 = vsel %vm885_vm1, %v8648_v8, %v8649_v38  ;;  %v17948_v28 = vpack.c.bf16 %v17357_v54, %v17348_v32  ;;  %v12193_v8 = vld [vmem:[#allocation2 + $0xea0] sm:$0xff]  ;;  %v16051_v32 = vld [vmem:[#allocation13 + $0xa8] sm:$0xff]   ;;  %v17950_v54 = vpack.c.bf16 %v17377_v6, %v17368_v14  ;;  %v16042_v38 = vld [vmem:[#allocation11 + $0x1f0] sm:$0xff]   ;;  %v17952_v6 = vpack.c.bf16 %v17396_v27, %v17388_v1 }
 0x41c   : > { %v8653_v16 = vsel %vm885_vm1, %v8651_v43, %v8652_v25  ;;  %v8656_v17 = vsel %vm885_vm1, %v8654_v51, %v8655_v23  ;;  %v16053_v43 = vld [vmem:[#allocation13 + $0xb0] sm:$0xff]   ;;  %v16054_v14 = vld [vmem:[#allocation13 + $0xb8] sm:$0xff]   ;;  %v12199_v27 = vld [vmem:[#allocation2 + $0xfc0] sm:$0xff]  ;;  %v17955_v11 = vpack.c.bf16 %v17411_v57, %v17403_v7  ;;  %v17956_v19 = vpack.c.bf16 %v17434_v34, %v17427_v46 }
 0x41d   : > { %v12194_v25 = vld [vmem:[#allocation2 + $0xed0] sm:$0xff]  ;;  %v12213_v34 = vld [vmem:[#allocation2 + $0xdc0] sm:$0xfc] }
 0x41e   : > { %v12198_v1 = vld [vmem:[#allocation2 + $0xf90] sm:$0xff]  ;;  %v9271_v50 = vrot.slane %v12213_v34, 2 }
 0x41f   : > { %v17959_v51 = vld [vmem:[#allocation66_spill] sm:$0xff] }
 0x420   : > { %v17960_v23 = vpack.c.bf16 %v17449_v62, %v17959_v51  ;;  %v16049_v62 = vld [vmem:[#allocation11 + $0x208] sm:$0xff]  }
 0x421   : > { %14643 = vmatmul.mubr.bf16.gmra.mrb[116].mxu0 %v17931_v55  ;;  %v17945_v55 = vpack.c.bf16 %v17307_v40, %v17298_v31  ;;  %v17947_v31 = vpack.c.bf16 %v17331_v29, %v17322_v22  ;;  %v16048_v40 = vld [vmem:[#allocation13 + $0x98] sm:$0xff]   ;;  %v16041_v22 = vld [vmem:[#allocation11 + $0x1e8] sm:$0xff]   ;;  %v17949_v29 = vpack.c.bf16 %v17353_v39, %v17344_v30  ;;  %v17951_v39 = vpack.c.bf16 %v17373_v9, %v17364_v41 }
 0x422   : > { %14451 = vmatmul.mubr.bf16.gmra.mrb[52].mxu1 %v8644_v60  ;;  %14646 = vmatprep.mubr.bf16.mxu0 %v17934_v5  ;;  %v17942_v60 = vld [vmem:[#allocation62_spill] sm:$0xff]  ;;  %v16039_v5 = vld [vmem:[#allocation11 + $0x1d8] sm:$0xff]   ;;  %v17953_v41 = vpack.c.bf16 %v17393_v18, %v17384_v12  ;;  %v17954_v9 = vpack.c.bf16 %v17414_v63, %v17407_v13  ;;  %v12201_v18 = vld [vmem:[#allocation2 + $0x1020] sm:$0xff] }
 0x423   : > { %14454 = vmatprep.mubr.bf16.mxu1 %v8647_v58  ;;  %v17943_v58 = vpack.c.bf16 %v17941_v26, %v17942_v60  ;;  %v16043_v30 = vld [vmem:[#allocation11 + $0x1f8] sm:$0xff]   ;;  %v12200_v12 = vld [vmem:[#allocation2 + $0xff0] sm:$0xff] }
 0x424   : > { %v12211_v63 = vld [vmem:[#allocation2 + $0xd90] sm:$0xfc]  ;;  %v12212_v13 = vld [vmem:[#allocation2 + $0xd98] sm:$0x3] }
 0x425   : > { %v9268_v7 = vrot.slane %v12211_v63, 2  ;;  %v9269_v57 = vrot.slane %v12212_v13, 2  ;;  %v12231_v63 = vld [vmem:[#allocation2 + $0xf70] sm:$0xfc]  ;;  %v12232_v13 = vld [vmem:[#allocation2 + $0xf78] sm:$0x3] }
 0x426   : > { %v9298_v34 = vrot.slane %v12231_v63, 2 }
 0x427   : > { %v9270_v46 = vsel %vm530_vm0, %v9268_v7, %v9269_v57  ;;  %v16061_v7 = vld [vmem:[#allocation13 + $0xc8] sm:$0xff]  }
 0x429   : > { %14647 = vmatmul.mubr.bf16.gmra.mrb[120].mxu0 %v17937_v48  ;;  %v17957_v48 = vpack.c.bf16 %v17431_v45, %v17423_v59  ;;  %v12215_v45 = vld [vmem:[#allocation2 + $0xdf0] sm:$0xfc]  ;;  %v12216_v59 = vld [vmem:[#allocation2 + $0xdf8] sm:$0x3] }
 0x42a   : > { %14455 = vmatmul.mubr.bf16.gmra.mrb[56].mxu1 %v8650_v36  ;;  %14650 = vmatprep.mubr.bf16.mxu0 %v17940_v61  ;;  %v12195_v36 = vld [vmem:[#allocation2 + $0xf00] sm:$0xff]  ;;  %v12214_v61 = vld [vmem:[#allocation2 + $0xdc8] sm:$0x3]  ;;  %v9275_v26 = vrot.slane %v12216_v59, 2 }
 0x42b   : > { %14458 = vmatprep.mubr.bf16.mxu1 %v8653_v16  ;;  %v16046_v16 = vld [vmem:[#allocation11 + $0x200] sm:$0xff]   ;;  %v9272_v24 = vrot.slane %v12214_v61, 2  ;;  %v9299_v61 = vrot.slane %v12232_v13, 2 }
 0x42d   : > { %v9273_v60 = vsel %vm530_vm0, %v9271_v50, %v9272_v24 }
 0x431   : > { %14651 = vmatmul.mubr.bf16.gmra.mrb[124].mxu0 %v17943_v58 }
 0x432   : > { %14459 = vmatmul.mubr.bf16.gmra.mrb[60].mxu1 %v8656_v17  ;;  %14670 = vmatprep.mubr.bf16.mxu0 %v17944_v10  ;;  %v17628_v17 = vld [vmem:[#allocation13 + $0xc0] sm:$0xff]  }
 0x433   : > { %14478 = vmatprep.mubr.bf16.mxu1 %v12187_v42  ;;  %v9274_v42 = vrot.slane %v12215_v45, 2  ;;  %v12217_v10 = vld [vmem:[#allocation2 + $0xe20] sm:$0xfc] }
 0x435   : > { %v9276_v58 = vsel %vm530_vm0, %v9274_v42, %v9275_v26  ;;  %v9300_v26 = vsel %vm530_vm0, %v9298_v34, %v9299_v61  ;;  %v12254_v34 = vld [vmem:[#allocation2 + $0xdd8] sm:$0xf]  ;;  %v12255_v61 = vld [vmem:[#allocation2 + $0xe00] sm:$0xf0] }
 0x439   : > { %14671 = vmatmul.mubr.bf16.vlgmr.msra.gmra.mrb[96].mxu0 %v17945_v55  ;;  %v9277_v55 = vrot.slane %v12217_v10, 2  ;;  %v12235_v10 = vld [vmem:[#allocation2 + $0xfd0] sm:$0xfc] }
 0x43a   : > { %14479 = vmatmul.mubr.bf16.vlgmr.msra.gmra.mrb[32].mxu1 %v12188_v33  ;;  %14674 = vmatprep.mubr.bf16.mxu0 %v17946_v20  ;;  %v12218_v33 = vld [vmem:[#allocation2 + $0xe28] sm:$0x3] }
 0x43b   : > { %14511 = vmatpush3.bf16.msra.mxu1 %v16036_v3  ;;  %14482 = vmatprep.mubr.bf16.mxu1 %v12189_v35  ;;  %v16050_v3 = vld [vmem:[#allocation13 + $0xa0] sm:$0xff]   ;;  %v12219_v35 = vld [vmem:[#allocation2 + $0xe50] sm:$0xfc] }
 0x43c   : > { %14512 = vmatprep.subr.bf16.mxu1 %v16037_v49  ;;  %14703 = vmatpush3.bf16.msra.mxu0 %v16044_v15  ;;  %v12192_v15 = vld [vmem:[#allocation2 + $0xe70] sm:$0xff]  ;;  %v9280_v20 = vrot.slane %v12219_v35, 2 }
 0x43d   : > { %14704 = vmatprep.subr.bf16.mxu0 %v16045_v37 }
 0x43f   : > { %14513 = vmatpush3.bf16.msra.mxu1 %v16037_v49  ;;  %v12220_v49 = vld [vmem:[#allocation2 + $0xe58] sm:$0x3] }
 0x440   : > { %14514 = vmatprep.subr.bf16.mxu1 %v16038_v2  ;;  %14705 = vmatpush3.bf16.msra.mxu0 %v16045_v37  ;;  %v9278_v37 = vrot.slane %v12218_v33, 2  ;;  %v12236_v33 = vld [vmem:[#allocation2 + $0xfd8] sm:$0x3] }
 0x441   : > { %14675 = vmatmul.mubr.bf16.gmra.mrb[100].mxu0 %v17947_v31  ;;  %14706 = vmatprep.subr.bf16.mxu0 %v16047_v47  ;;  %v12222_v31 = vld [vmem:[#allocation2 + $0xe88] sm:$0x3] }
 0x442   : > { %14483 = vmatmul.mubr.bf16.gmra.mrb[36].mxu1 %v12190_v56  ;;  %14678 = vmatprep.mubr.bf16.mxu0 %v17948_v28  ;;  %v9279_v56 = vsel %vm530_vm0, %v9277_v55, %v9278_v37  ;;  %v12223_v28 = vld [vmem:[#allocation2 + $0xeb0] sm:$0xfc]  ;;  %v9304_v55 = vrot.slane %v12235_v10, 2  ;;  %v9305_v37 = vrot.slane %v12236_v33, 2 }
 0x443   : > { %14486 = vmatprep.mubr.bf16.mxu1 %v12191_v44  ;;  %14515 = vmatpush3.bf16.msra.mxu1 %v16038_v2  ;;  %v9281_v2 = vrot.slane %v12220_v49, 2 }
 0x444   : > { %14516 = vmatprep.subr.bf16.mxu1 %v16039_v5  ;;  %14707 = vmatpush3.bf16.msra.mxu0 %v16047_v47  ;;  %v16052_v47 = vld [vmem:[#allocation11 + $0x210] sm:$0xff]  }
 0x445   : > { %14708 = vmatprep.subr.bf16.mxu0 %v16048_v40  ;;  %v9282_v44 = vsel %vm530_vm0, %v9280_v20, %v9281_v2  ;;  %v16064_v2 = vld [vmem:[#allocation13 + $0xe0] sm:$0xff]  }
 0x447   : > { %14517 = vmatpush3.bf16.msra.mxu1 %v16039_v5  ;;  %v12221_v5 = vld [vmem:[#allocation2 + $0xe80] sm:$0xfc] }
 0x448   : > { %14518 = vmatprep.subr.bf16.mxu1 %v16040_v53  ;;  %14709 = vmatpush3.bf16.msra.mxu0 %v16048_v40  ;;  %v16055_v40 = vld [vmem:[#allocation11 + $0x218] sm:$0xff]  }
 0x449   : > { %14679 = vmatmul.mubr.bf16.gmra.mrb[104].mxu0 %v17949_v29  ;;  %14710 = vmatprep.subr.bf16.mxu0 %v16050_v3  ;;  %v16056_v29 = vld [vmem:[#allocation11 + $0x220] sm:$0xff]  }
 0x44a   : > { %14487 = vmatmul.mubr.bf16.gmra.mrb[40].mxu1 %v12192_v15  ;;  %14682 = vmatprep.mubr.bf16.mxu0 %v17950_v54  ;;  %v9284_v15 = vrot.slane %v12222_v31, 2 }
 0x44b   : > { %14490 = vmatprep.mubr.bf16.mxu1 %v12193_v8  ;;  %14519 = vmatpush3.bf16.msra.mxu1 %v16040_v53  ;;  %v12224_v53 = vld [vmem:[#allocation2 + $0xeb8] sm:$0x3]  ;;  %v9286_v8 = vrot.slane %v12223_v28, 2  ;;  %v12237_v28 = vld [vmem:[#allocation2 + $0x1000] sm:$0xfc] }
 0x44c   : > { %14520 = vmatprep.subr.bf16.mxu1 %v16041_v22  ;;  %14711 = vmatpush3.bf16.msra.mxu0 %v16050_v3  ;;  %v9283_v3 = vrot.slane %v12221_v5, 2 }
 0x44d   : > { %14712 = vmatprep.subr.bf16.mxu0 %v16051_v32 }
 0x44f   : > { %14521 = vmatpush3.bf16.msra.mxu1 %v16041_v22  ;;  %v9287_v22 = vrot.slane %v12224_v53, 2  ;;  %v12238_v53 = vld [vmem:[#allocation2 + $0x1008] sm:$0x3] }
 0x450   : > { %14522 = vmatprep.subr.bf16.mxu1 %v16042_v38  ;;  %14713 = vmatpush3.bf16.msra.mxu0 %v16051_v32  ;;  %v9285_v32 = vsel %vm530_vm0, %v9283_v3, %v9284_v15  ;;  %v12239_v3 = vld [vmem:[#allocation2 + $0x1030] sm:$0xfc]  ;;  %v12240_v15 = vld [vmem:[#allocation2 + $0x1038] sm:$0x3] }
 0x451   : > { %14683 = vmatmul.mubr.bf16.gmra.mrb[108].mxu0 %v17951_v39  ;;  %14714 = vmatprep.subr.bf16.mxu0 %v16053_v43  ;;  %v9288_v54 = vsel %vm530_vm0, %v9286_v8, %v9287_v22  ;;  %v16065_v8 = vld [vmem:[#allocation13 + $0xe8] sm:$0xff]   ;;  %v9307_v22 = vrot.slane %v12237_v28, 2 }
 0x452   : > { %14491 = vmatmul.mubr.bf16.gmra.mrb[44].mxu1 %v12194_v25  ;;  %14686 = vmatprep.mubr.bf16.mxu0 %v17952_v6  ;;  %v16057_v25 = vld [vmem:[#allocation11 + $0x228] sm:$0xff]  }
 0x453   : > { %14494 = vmatprep.mubr.bf16.mxu1 %v12195_v36  ;;  %14523 = vmatpush3.bf16.msra.mxu1 %v16042_v38  ;;  %v12225_v38 = vld [vmem:[#allocation2 + $0xee0] sm:$0xfc]  ;;  %v12227_v36 = vld [vmem:[#allocation2 + $0xf10] sm:$0xfc] }
 0x454   : > { %14524 = vmatprep.subr.bf16.mxu1 %v16043_v30  ;;  %14715 = vmatpush3.bf16.msra.mxu0 %v16053_v43  ;;  %v12226_v43 = vld [vmem:[#allocation2 + $0xee8] sm:$0x3]  ;;  %v9289_v39 = vrot.slane %v12225_v38, 2  ;;  %v9311_v38 = vrot.slane %v12240_v15, 2  ;;  %v12261_v15 = vld [vmem:[#allocation2 + $0xe90] sm:$0xf0] }
 0x455   : > { %14716 = vmatprep.subr.bf16.mxu0 %v16054_v14 }
 0x457   : > { %14525 = vmatpush3.bf16.msra.mxu1 %v16043_v30  ;;  %v12228_v30 = vld [vmem:[#allocation2 + $0xf18] sm:$0x3] }
 0x458   : > { %14558 = vmatprep.subr.bf16.mxu1 %v16046_v16  ;;  %14717 = vmatpush3.bf16.msra.mxu0 %v16054_v14  ;;  %v9290_v14 = vrot.slane %v12226_v43, 2 }
 0x459   : > { %14687 = vmatmul.mubr.bf16.gmra.mrb[112].mxu0 %v17953_v41  ;;  %14750 = vmatprep.subr.bf16.mxu0 %v17628_v17 }
 0x45a   : > { %14495 = vmatmul.mubr.bf16.gmra.mrb[48].mxu1 %v12196_v0  ;;  %14690 = vmatprep.mubr.bf16.mxu0 %v17954_v9  ;;  %v9293_v0 = vrot.slane %v12228_v30, 2 }
 0x45b   : > { %14498 = vmatprep.mubr.bf16.mxu1 %v12197_v52  ;;  %v16058_v52 = vld [vmem:[#allocation11 + $0x230] sm:$0xff]  }
 0x461   : > { %14691 = vmatmul.mubr.bf16.gmra.mrb[116].mxu0 %v17955_v11  ;;  %v9291_v11 = vsel %vm530_vm0, %v9289_v39, %v9290_v14 }
 0x462   : > { %14499 = vmatmul.mubr.bf16.gmra.mrb[52].mxu1 %v12198_v1  ;;  %14694 = vmatprep.mubr.bf16.mxu0 %v17956_v19 }
 0x463   : > { %14502 = vmatprep.mubr.bf16.mxu1 %v12199_v27 }
 0x469   : > { %14695 = vmatmul.mubr.bf16.gmra.mrb[120].mxu0 %v17957_v48  ;;  %v12230_v48 = vld [vmem:[#allocation2 + $0xf48] sm:$0x3] }
 0x46a   : > { %14503 = vmatmul.mubr.bf16.gmra.mrb[56].mxu1 %v12200_v12  ;;  %14698 = vmatprep.mubr.bf16.mxu0 %v17958_v4  ;;  %v16059_v4 = vld [vmem:[#allocation11 + $0x238] sm:$0xff]  }
 0x46b   : > { %14506 = vmatprep.mubr.bf16.mxu1 %v12201_v18  ;;  %v12229_v18 = vld [vmem:[#allocation2 + $0xf40] sm:$0xfc] }
 0x46c   : > { %v9295_v57 = vrot.slane %v12229_v18, 2 }
 0x471   : > { %14699 = vmatmul.mubr.bf16.gmra.mrb[124].mxu0 %v17960_v23  ;;  %v16062_v23 = vld [vmem:[#allocation13 + $0xd0] sm:$0xff]  }
 0x472   : > { %14507 = vmatmul.mubr.bf16.gmra.mrb[60].mxu1 %v12202_v21  ;;  %v9296_v21 = vrot.slane %v12230_v48, 2 }
 0x473   : > { %14526 = vmatprep.mubr.bf16.mxu1 %v9270_v46 }
 0x474   : > { %v9297_v24 = vsel %vm530_vm0, %v9295_v57, %v9296_v21 }
 0x47a   : > { %14527 = vmatmul.mubr.bf16.vlgmr.msra.gmra.mrb[32].mxu1 %v9273_v60  ;;  %v12233_v60 = vld [vmem:[#allocation2 + $0xfa0] sm:$0xfc] }
 0x47b   : > { %14559 = vmatpush3.bf16.msra.mxu1 %v16046_v16  ;;  %14530 = vmatprep.mubr.bf16.mxu1 %v9276_v58  ;;  %v9292_v16 = vrot.slane %v12227_v36, 2  ;;  %v12234_v58 = vld [vmem:[#allocation2 + $0xfa8] sm:$0x3] }
 0x47c   : > { %14560 = vmatprep.subr.bf16.mxu1 %v16049_v62  ;;  %v9302_v35 = vrot.slane %v12234_v58, 2 }
 0x47d   : > { %v9294_v12 = vsel %vm530_vm0, %v9292_v16, %v9293_v0  ;;  %v12241_v0 = vld [vmem:[#allocation2 + $0x1060] sm:$0xfc] }
 0x47f   : > { %14561 = vmatpush3.bf16.msra.mxu1 %v16049_v62  ;;  %v9301_v62 = vrot.slane %v12233_v60, 2 }
 0x480   : > { %14562 = vmatprep.subr.bf16.mxu1 %v16052_v47 }
 0x481   : > { %v9303_v5 = vsel %vm530_vm0, %v9301_v62, %v9302_v35  ;;  %v12257_v62 = vld [vmem:[#allocation2 + $0xe30] sm:$0xf0]  ;;  %v12258_v35 = vld [vmem:[#allocation2 + $0xe38] sm:$0xf] }
 0x482   : > { %14531 = vmatmul.mubr.bf16.gmra.mrb[36].mxu1 %v9279_v56 }
 0x483   : > { %14534 = vmatprep.mubr.bf16.mxu1 %v9282_v44  ;;  %14563 = vmatpush3.bf16.msra.mxu1 %v16052_v47 }
 0x484   : > { %14564 = vmatprep.subr.bf16.mxu1 %v16055_v40 }
 0x487   : > { %14565 = vmatpush3.bf16.msra.mxu1 %v16055_v40  ;;  %v9306_v40 = vsel %vm530_vm0, %v9304_v55, %v9305_v37  ;;  %v12260_v55 = vld [vmem:[#allocation2 + $0xe68] sm:$0xf]  ;;  %v9662_v37 = vrot.slane %v12257_v62, 4  ;;  %v12279_v62 = vld [vmem:[#allocation2 + $0x1040] sm:$0xf0] }
 0x488   : > { %14566 = vmatprep.subr.bf16.mxu1 %v16056_v29 }
 0x48a   : > { %14535 = vmatmul.mubr.bf16.gmra.mrb[40].mxu1 %v9285_v32 }
 0x48b   : > { %14538 = vmatprep.mubr.bf16.mxu1 %v9288_v54  ;;  %14567 = vmatpush3.bf16.msra.mxu1 %v16056_v29  ;;  %v9308_v29 = vrot.slane %v12238_v53, 2  ;;  %v9310_v54 = vrot.slane %v12239_v3, 2 }
 0x48c   : > { %v14144_v6 = vpop.f32.mrb[64].mxu0  ;;  %14568 = vmatprep.subr.bf16.mxu1 %v16057_v25 }
 0x48d   : > { %v6877_v41 = vpop.f32.mrb[65].mxu0  ;;  %v9309_v14 = vsel %vm530_vm0, %v9307_v22, %v9308_v29  ;;  %v9312_v16 = vsel %vm530_vm0, %v9310_v54, %v9311_v38  ;;  %v12263_v22 = vld [vmem:[#allocation2 + $0xec0] sm:$0xf0]  ;;  %v12264_v29 = vld [vmem:[#allocation2 + $0xec8] sm:$0xf] }
 0x48e   : > { %v14145_v9 = vpop.f32.mrb[66].mxu0 }
 0x48f   : > { %v10531_v1 = vpack.c.bf16 %v14145_v9, %v14144_v6  ;;  %v6880_v27 = vpop.f32.mrb[67].mxu0  ;;  %14569 = vmatpush3.bf16.msra.mxu1 %v16057_v25  ;;  %v16066_v25 = vld [vmem:[#allocation13 + $0xf0] sm:$0xff]   ;;  %v12252_v9 = vld [vmem:[#allocation2 + $0xda8] sm:$0xf] }
 0x490   : > { %v10530_v19 = vpack.c.bf16 %v6880_v27, %v6877_v41  ;;  %14570 = vmatprep.subr.bf16.mxu1 %v16058_v52  ;;  %v12251_v41 = vld [vmem:[#allocation2 + $0xda0] sm:$0xf0]  ;;  %v9313_v27 = vrot.slane %v12241_v0, 2  ;;  %v9654_v18 = vrot.slane %v12252_v9, 4 }
 0x491   : > { %v12267_v9 = vld [vmem:[#allocation2 + $0xf20] sm:$0xf0] }
 0x492   : > { %14539 = vmatmul.mubr.bf16.gmra.mrb[44].mxu1 %v9291_v11  ;;  %14718 = vmatprep.mubr.bf16.mxu0 %v10530_v19 }
 0x493   : > { %14719 = vmatmul.mubr.bf16.vlgmr.msra.gmra.mrb[96].mxu0 %v10531_v1  ;;  %14542 = vmatprep.mubr.bf16.mxu1 %v9294_v12  ;;  %v16067_v1 = vld [vmem:[#allocation13 + $0xf8] sm:$0xff]   ;;  %v9653_v12 = vrot.slane %v12251_v41, 4 }
 0x494   : > { %v14148_v46 = vpop.f32.mrb[68].mxu0  ;;  %14571 = vmatpush3.bf16.msra.mxu1 %v16058_v52  ;;  %14751 = vmatpush3.bf16.msra.mxu0 %v17628_v17  ;;  %v16063_v17 = vld [vmem:[#allocation13 + $0xd8] sm:$0xff]   ;;  %v12242_v52 = vld [vmem:[#allocation2 + $0x1068] sm:$0x3] }
 0x495   : > { %v6893_v51 = vpop.f32.mrb[69].mxu0  ;;  %14572 = vmatprep.subr.bf16.mxu1 %v16059_v4  ;;  %14752 = vmatprep.subr.bf16.mxu0 %v16061_v7  ;;  %v9314_v11 = vrot.slane %v12242_v52, 2  ;;  %v9655_v21 = vsel %vm885_vm1, %v9653_v12, %v9654_v18  ;;  %v12265_v52 = vld [vmem:[#allocation2 + $0xef0] sm:$0xf0]  ;;  %v12266_v41 = vld [vmem:[#allocation2 + $0xef8] sm:$0xf] }
 0x496   : > { %v14149_v45 = vpop.f32.mrb[70].mxu0 }
 0x497   : > { %v10533_v59 = vpack.c.bf16 %v14149_v45, %v14148_v46  ;;  %v6896_v50 = vpop.f32.mrb[71].mxu0  ;;  %v12253_v46 = vld [vmem:[#allocation2 + $0xdd0] sm:$0xf0]  ;;  %v9657_v45 = vrot.slane %v12254_v34, 4 }
 0x498   : > { %v10532_v42 = vpack.c.bf16 %v6896_v50, %v6893_v51  ;;  %14573 = vmatpush3.bf16.msra.mxu1 %v16059_v4  ;;  %14753 = vmatpush3.bf16.msra.mxu0 %v16061_v7  ;;  %v9315_v7 = vsel %vm530_vm0, %v9313_v27, %v9314_v11  ;;  %v12256_v51 = vld [vmem:[#allocation2 + $0xe08] sm:$0xf]  ;;  %v9659_v50 = vrot.slane %v12255_v61, 4  ;;  %v9674_v27 = vrot.slane %v12265_v52, 4 }
 0x499   : > { %14754 = vmatprep.subr.bf16.mxu0 %v16062_v23  ;;  %v9675_v11 = vrot.slane %v12266_v41, 4 }
 0x49a   : > { %14543 = vmatmul.mubr.bf16.gmra.mrb[48].mxu1 %v9297_v24  ;;  %14722 = vmatprep.mubr.bf16.mxu0 %v10532_v42  ;;  %v9660_v24 = vrot.slane %v12256_v51, 4 }
 0x49b   : > { %14723 = vmatmul.mubr.bf16.gmra.mrb[100].mxu0 %v10533_v59  ;;  %14546 = vmatprep.mubr.bf16.mxu1 %v9300_v26  ;;  %v9676_v18 = vsel %vm885_vm1, %v9674_v27, %v9675_v11 }
 0x49c   : > { %v14152_v49 = vpop.f32.mrb[72].mxu0  ;;  %14755 = vmatpush3.bf16.msra.mxu0 %v16062_v23  ;;  %v9656_v23 = vrot.slane %v12253_v46, 4 }
 0x49d   : > { %v6909_v20 = vpop.f32.mrb[73].mxu0  ;;  %14756 = vmatprep.subr.bf16.mxu0 %v16063_v17 }
 0x49e   : > { %v14153_v47 = vpop.f32.mrb[74].mxu0  ;;  %v9658_v10 = vsel %vm885_vm1, %v9656_v23, %v9657_v45  ;;  %v12273_v23 = vld [vmem:[#allocation2 + $0xfb0] sm:$0xf0]  ;;  %v12274_v45 = vld [vmem:[#allocation2 + $0xfb8] sm:$0xf] }
 0x49f   : > { %v10535_v56 = vpack.c.bf16 %v14153_v47, %v14152_v49  ;;  %v6912_v44 = vpop.f32.mrb[75].mxu0  ;;  %v12259_v49 = vld [vmem:[#allocation2 + $0xe60] sm:$0xf0] }
 0x4a0   : > { %v10534_v31 = vpack.c.bf16 %v6912_v44, %v6909_v20  ;;  %14757 = vmatpush3.bf16.msra.mxu0 %v16063_v17  ;;  %v9661_v17 = vsel %vm885_vm1, %v9659_v50, %v9660_v24  ;;  %v9663_v20 = vrot.slane %v12258_v35, 4  ;;  %v9665_v47 = vrot.slane %v12259_v49, 4  ;;  %v12276_v50 = vld [vmem:[#allocation2 + $0xfe8] sm:$0xf] }
 0x4a1   : > { %14758 = vmatprep.subr.bf16.mxu0 %v16064_v2  ;;  %v9686_v24 = vrot.slane %v12273_v23, 4  ;;  %v12280_v35 = vld [vmem:[#allocation2 + $0x1048] sm:$0xf] }
 0x4a2   : > { %14547 = vmatmul.mubr.bf16.gmra.mrb[52].mxu1 %v9303_v5  ;;  %14726 = vmatprep.mubr.bf16.mxu0 %v10534_v31  ;;  %v9664_v28 = vsel %vm885_vm1, %v9662_v37, %v9663_v20  ;;  %v9695_v37 = vrot.slane %v12279_v62, 4  ;;  %v9696_v20 = vrot.slane %v12280_v35, 4 }
 0x4a3   : > { %14727 = vmatmul.mubr.bf16.gmra.mrb[104].mxu0 %v10535_v56  ;;  %14550 = vmatprep.mubr.bf16.mxu1 %v9306_v40  ;;  %v9666_v56 = vrot.slane %v12260_v55, 4 }
 0x4a4   : > { %v14156_v32 = vpop.f32.mrb[76].mxu0  ;;  %14759 = vmatpush3.bf16.msra.mxu0 %v16064_v2 }
 0x4a5   : > { %v6925_v43 = vpop.f32.mrb[77].mxu0  ;;  %14760 = vmatprep.subr.bf16.mxu0 %v16065_v8  ;;  %v9667_v3 = vsel %vm885_vm1, %v9665_v47, %v9666_v56  ;;  %v9697_v47 = vsel %vm885_vm1, %v9695_v37, %v9696_v20  ;;  %v12281_v56 = vld [vmem:[#allocation2 + $0x1070] sm:$0xf0] }
 0x4a6   : > { %v14157_v36 = vpop.f32.mrb[78].mxu0 }
 0x4a7   : > { %v10537_v30 = vpack.c.bf16 %v14157_v36, %v14156_v32  ;;  %v6928_v39 = vpop.f32.mrb[79].mxu0  ;;  %v9668_v32 = vrot.slane %v12261_v15, 4 }
 0x4a8   : > { %v10536_v6 = vpack.c.bf16 %v6928_v39, %v6925_v43  ;;  %14761 = vmatpush3.bf16.msra.mxu0 %v16065_v8  ;;  %v12262_v8 = vld [vmem:[#allocation2 + $0xe98] sm:$0xf]  ;;  %v9671_v43 = vrot.slane %v12263_v22, 4 }
 0x4a9   : > { %14762 = vmatprep.subr.bf16.mxu0 %v16066_v25  ;;  %v9669_v54 = vrot.slane %v12262_v8, 4 }
 0x4aa   : > { %14551 = vmatmul.mubr.bf16.gmra.mrb[56].mxu1 %v9309_v14  ;;  %14730 = vmatprep.mubr.bf16.mxu0 %v10536_v6 }
 0x4ab   : > { %14731 = vmatmul.mubr.bf16.gmra.mrb[108].mxu0 %v10537_v30  ;;  %14554 = vmatprep.mubr.bf16.mxu1 %v9312_v16  ;;  %v9670_v6 = vsel %vm885_vm1, %v9668_v32, %v9669_v54 }
 0x4ac   : > { %v14160_v19 = vpop.f32.mrb[80].mxu0  ;;  %14763 = vmatpush3.bf16.msra.mxu0 %v16066_v25  ;;  %v9672_v25 = vrot.slane %v12264_v29, 4 }
 0x4ad   : > { %v6941_v48 = vpop.f32.mrb[81].mxu0  ;;  %14764 = vmatprep.subr.bf16.mxu0 %v16067_v1 }
 0x4ae   : > { %v14161_v63 = vpop.f32.mrb[82].mxu0  ;;  %v9673_v0 = vsel %vm885_vm1, %v9671_v43, %v9672_v25 }
 0x4af   : > { %v10539_v13 = vpack.c.bf16 %v14161_v63, %v14160_v19  ;;  %v6944_v4 = vpop.f32.mrb[83].mxu0  ;;  %v9677_v19 = vrot.slane %v12267_v9, 4  ;;  %v12269_v63 = vld [vmem:[#allocation2 + $0xf50] sm:$0xf0] }
 0x4b0   : > { %v10538_v57 = vpack.c.bf16 %v6944_v4, %v6941_v48  ;;  %14765 = vmatpush3.bf16.msra.mxu0 %v16067_v1  ;;  %v12268_v1 = vld [vmem:[#allocation2 + $0xf28] sm:$0xf]  ;;  %v12271_v4 = vld [vmem:[#allocation2 + $0xf80] sm:$0xf0] }
 0x4b1   : > { %v9678_v12 = vrot.slane %v12268_v1, 4  ;;  %v9683_v46 = vrot.slane %v12271_v4, 4 }
 0x4b2   : > { %14555 = vmatmul.mubr.bf16.gmra.mrb[60].mxu1 %v9315_v7  ;;  %14734 = vmatprep.mubr.bf16.mxu0 %v10538_v57  ;;  %v12272_v7 = vld [vmem:[#allocation2 + $0xf88] sm:$0xf]  ;;  %v9680_v57 = vrot.slane %v12269_v63, 4 }
 0x4b3   : > { %14735 = vmatmul.mubr.bf16.gmra.mrb[112].mxu0 %v10539_v13  ;;  %14574 = vmatprep.mubr.bf16.mxu1 %v9655_v21  ;;  %v9679_v48 = vsel %vm885_vm1, %v9677_v19, %v9678_v12  ;;  %v12270_v13 = vld [vmem:[#allocation2 + $0xf58] sm:$0xf]  ;;  %v9684_v34 = vrot.slane %v12272_v7, 4 }
 0x4b4   : > { %v14164_v59 = vpop.f32.mrb[84].mxu0  ;;  %v9681_v21 = vrot.slane %v12270_v13, 4 }
 0x4b5   : > { %v6957_v42 = vpop.f32.mrb[85].mxu0  ;;  %v9685_v51 = vsel %vm885_vm1, %v9683_v46, %v9684_v34 }
 0x4b6   : > { %v14165_v26 = vpop.f32.mrb[86].mxu0  ;;  %v9682_v61 = vsel %vm885_vm1, %v9680_v57, %v9681_v21 }
 0x4b7   : > { %v10541_v60 = vpack.c.bf16 %v14165_v26, %v14164_v59  ;;  %v6960_v58 = vpop.f32.mrb[87].mxu0  ;;  %v12275_v59 = vld [vmem:[#allocation2 + $0xfe0] sm:$0xf0] }
 0x4b8   : > { %v10540_v33 = vpack.c.bf16 %v6960_v58, %v6957_v42  ;;  %v9687_v42 = vrot.slane %v12274_v45, 4  ;;  %v9689_v26 = vrot.slane %v12275_v59, 4 }
 0x4ba   : > { %14575 = vmatmul.mubr.bf16.vlgmr.msra.gmra.mrb[32].mxu1 %v9658_v10  ;;  %14738 = vmatprep.mubr.bf16.mxu0 %v10540_v33  ;;  %v9688_v58 = vsel %vm885_vm1, %v9686_v24, %v9687_v42  ;;  %v12277_v33 = vld [vmem:[#allocation2 + $0x1010] sm:$0xf0] }
 0x4bb   : > { %14739 = vmatmul.mubr.bf16.gmra.mrb[116].mxu0 %v10541_v60  ;;  %14578 = vmatprep.mubr.bf16.mxu1 %v9661_v17  ;;  %v9690_v60 = vrot.slane %v12276_v50, 4  ;;  %v12278_v17 = vld [vmem:[#allocation2 + $0x1018] sm:$0xf]  ;;  %v9692_v49 = vrot.slane %v12277_v33, 4 }
 0x4bc   : > { %v14168_v2 = vpop.f32.mrb[88].mxu0  ;;  %v9693_v55 = vrot.slane %v12278_v17, 4 }
 0x4bd   : > { %v6973_v44 = vpop.f32.mrb[89].mxu0  ;;  %v9691_v10 = vsel %vm885_vm1, %v9689_v26, %v9690_v60 }
 0x4be   : > { %v14169_v5 = vpop.f32.mrb[90].mxu0 }
 0x4bf   : > { %v10543_v31 = vpack.c.bf16 %v14169_v5, %v14168_v2  ;;  %v6976_v40 = vpop.f32.mrb[91].mxu0  ;;  %v9694_v2 = vsel %vm885_vm1, %v9692_v49, %v9693_v55  ;;  %v9698_v5 = vrot.slane %v12281_v56, 4 }
 0x4c0   : > { %v10542_v53 = vpack.c.bf16 %v6976_v40, %v6973_v44  ;;  %v12282_v44 = vld [vmem:[#allocation2 + $0x1078] sm:$0xf] }
 0x4c2   : > { %14579 = vmatmul.mubr.bf16.gmra.mrb[36].mxu1 %v9664_v28  ;;  %14742 = vmatprep.mubr.bf16.mxu0 %v10542_v53 }
 0x4c3   : > { %14743 = vmatmul.mubr.bf16.gmra.mrb[120].mxu0 %v10543_v31  ;;  %14582 = vmatprep.mubr.bf16.mxu1 %v9667_v3  ;;  %v9699_v31 = vrot.slane %v12282_v44, 4 }
 0x4c4   : > { %v14172_v38 = vpop.f32.mrb[92].mxu0 }
 0x4c5   : > { %v6989_v36 = vpop.f32.mrb[93].mxu0  ;;  %v9700_v40 = vsel %vm885_vm1, %v9698_v5, %v9699_v31 }
 0x4c6   : > { %v14173_v30 = vpop.f32.mrb[94].mxu0 }
 0x4c7   : > { %v10545_v39 = vpack.c.bf16 %v14173_v30, %v14172_v38  ;;  %v6992_v14 = vpop.f32.mrb[95].mxu0 }
 0x4c8   : > { %v10544_v16 = vpack.c.bf16 %v6992_v14, %v6989_v36 }
 0x4ca   : > { %14583 = vmatmul.mubr.bf16.gmra.mrb[40].mxu1 %v9670_v6  ;;  %14746 = vmatprep.mubr.bf16.mxu0 %v10544_v16 }
 0x4cb   : > { %14747 = vmatmul.mubr.bf16.gmra.mrb[124].mxu0 %v10545_v39  ;;  %14586 = vmatprep.mubr.bf16.mxu1 %v9673_v0 }
 0x4d2   : > { %14587 = vmatmul.mubr.bf16.gmra.mrb[44].mxu1 %v9676_v18 }
 0x4d3   : > { %14590 = vmatprep.mubr.bf16.mxu1 %v9679_v48 }
 0x4da   : > { %14591 = vmatmul.mubr.bf16.gmra.mrb[48].mxu1 %v9682_v61 }
 0x4db   : > { %14594 = vmatprep.mubr.bf16.mxu1 %v9685_v51 }
 0x4e2   : > { %14595 = vmatmul.mubr.bf16.gmra.mrb[52].mxu1 %v9688_v58 }
 0x4e3   : > { %14598 = vmatprep.mubr.bf16.mxu1 %v9691_v10  ;;  %v17665_v10 = vld [vmem:[%s17961_s16] ss:$0 sm:$0xff] }
 0x4ea   : > { %14599 = vmatmul.mubr.bf16.gmra.mrb[56].mxu1 %v9694_v2 }
 0x4eb   : > { %14602 = vmatprep.mubr.bf16.mxu1 %v9697_v47 }
 0x4f2   : > { %14603 = vmatmul.mubr.bf16.gmra.mrb[60].mxu1 %v9700_v40 }
 0x58d   : > { %v14576_v28 = vpop.f32.mrb[32].mxu1 }
 0x58e   : > { %v9815_v53 = vpop.f32.mrb[33].mxu1 }
 0x58f   : > { %v14577_v3 = vpop.f32.mrb[34].mxu1 }
 0x590   : > { %v10804_v15 = vpack.c.bf16 %v14577_v3, %v14576_v28  ;;  %v9818_v8 = vpop.f32.mrb[35].mxu1 }
 0x591   : > { %v10803_v22 = vpack.c.bf16 %v9818_v8, %v9815_v53 }
 0x593   : > { %14766 = vmatprep.mubr.bf16.mxu0 %v10803_v22 }
 0x594   : > { %14767 = vmatmul.mubr.bf16.vlgmr.msra.gmra.mrb[96].mxu0 %v10804_v15 }
 0x595   : > { %v14580_v29 = vpop.f32.mrb[36].mxu1 }
 0x596   : > { %v9831_v32 = vpop.f32.mrb[37].mxu1 }
 0x597   : > { %v14581_v54 = vpop.f32.mrb[38].mxu1 }
 0x598   : > { %v10806_v38 = vpack.c.bf16 %v14581_v54, %v14580_v29  ;;  %v9834_v43 = vpop.f32.mrb[39].mxu1 }
 0x599   : > { %v10805_v25 = vpack.c.bf16 %v9834_v43, %v9831_v32 }
 0x59b   : > { %14770 = vmatprep.mubr.bf16.mxu0 %v10805_v25 }
 0x59c   : > { %14771 = vmatmul.mubr.bf16.gmra.mrb[100].mxu0 %v10806_v38 }
 0x59d   : > { %v14584_v36 = vpop.f32.mrb[40].mxu1 }
 0x59e   : > { %v9847_v30 = vpop.f32.mrb[41].mxu1 }
 0x59f   : > { %v14585_v39 = vpop.f32.mrb[42].mxu1 }
 0x5a0   : > { %v10808_v14 = vpack.c.bf16 %v14585_v39, %v14584_v36  ;;  %v9850_v6 = vpop.f32.mrb[43].mxu1 }
 0x5a1   : > { %v10807_v16 = vpack.c.bf16 %v9850_v6, %v9847_v30 }
 0x5a3   : > { %14774 = vmatprep.mubr.bf16.mxu0 %v10807_v16 }
 0x5a4   : > { %14775 = vmatmul.mubr.bf16.gmra.mrb[104].mxu0 %v10808_v14 }
 0x5a5   : > { %v14588_v0 = vpop.f32.mrb[44].mxu1 }
 0x5a6   : > { %v9863_v52 = vpop.f32.mrb[45].mxu1 }
 0x5a7   : > { %v14589_v41 = vpop.f32.mrb[46].mxu1 }
 0x5a8   : > { %v10810_v9 = vpack.c.bf16 %v14589_v41, %v14588_v0  ;;  %v9866_v1 = vpop.f32.mrb[47].mxu1 }
 0x5a9   : > { %v10809_v27 = vpack.c.bf16 %v9866_v1, %v9863_v52 }
 0x5ab   : > { %14778 = vmatprep.mubr.bf16.mxu0 %v10809_v27 }
 0x5ac   : > { %14779 = vmatmul.mubr.bf16.gmra.mrb[108].mxu0 %v10810_v9 }
 0x5ad   : > { %v14592_v11 = vpop.f32.mrb[48].mxu1 }
 0x5ae   : > { %v9879_v19 = vpop.f32.mrb[49].mxu1 }
 0x5af   : > { %v14593_v12 = vpop.f32.mrb[50].mxu1 }
 0x5b0   : > { %v10812_v18 = vpack.c.bf16 %v14593_v12, %v14592_v11  ;;  %v9882_v48 = vpop.f32.mrb[51].mxu1 }
 0x5b1   : > { %v10811_v63 = vpack.c.bf16 %v9882_v48, %v9879_v19 }
 0x5b3   : > { %14782 = vmatprep.mubr.bf16.mxu0 %v10811_v63 }
 0x5b4   : > { %14783 = vmatmul.mubr.bf16.gmra.mrb[112].mxu0 %v10812_v18 }
 0x5b5   : > { %v14596_v13 = vpop.f32.mrb[52].mxu1 }
 0x5b6   : > { %v9895_v4 = vpop.f32.mrb[53].mxu1 }
 0x5b7   : > { %v14597_v7 = vpop.f32.mrb[54].mxu1 }
 0x5b8   : > { %v10814_v57 = vpack.c.bf16 %v14597_v7, %v14596_v13  ;;  %v9898_v21 = vpop.f32.mrb[55].mxu1 }
 0x5b9   : > { %v10813_v46 = vpack.c.bf16 %v9898_v21, %v9895_v4 }
 0x5bb   : > { %14786 = vmatprep.mubr.bf16.mxu0 %v10813_v46 }
 0x5bc   : > { %14787 = vmatmul.mubr.bf16.gmra.mrb[116].mxu0 %v10814_v57 }
 0x5bd   : > { %v14600_v34 = vpop.f32.mrb[56].mxu1 }
 0x5be   : > { %v9911_v61 = vpop.f32.mrb[57].mxu1 }
 0x5bf   : > { %v14601_v51 = vpop.f32.mrb[58].mxu1 }
 0x5c0   : > { %v10816_v23 = vpack.c.bf16 %v14601_v51, %v14600_v34  ;;  %v9914_v45 = vpop.f32.mrb[59].mxu1 }
 0x5c1   : > { %v10815_v59 = vpack.c.bf16 %v9914_v45, %v9911_v61 }
 0x5c3   : > { %14790 = vmatprep.mubr.bf16.mxu0 %v10815_v59 }
 0x5c4   : > { %14791 = vmatmul.mubr.bf16.gmra.mrb[120].mxu0 %v10816_v23 }
 0x5c5   : > { %v14604_v50 = vpop.f32.mrb[60].mxu1 }
 0x5c6   : > { %v9927_v24 = vpop.f32.mrb[61].mxu1 }
 0x5c7   : > { %v14605_v42 = vpop.f32.mrb[62].mxu1 }
 0x5c8   : > { %v10818_v26 = vpack.c.bf16 %v14605_v42, %v14604_v50  ;;  %v9930_v60 = vpop.f32.mrb[63].mxu1 }
 0x5c9   : > { %v10817_v58 = vpack.c.bf16 %v9930_v60, %v9927_v24 }
 0x5cb   : > { %14794 = vmatprep.mubr.bf16.mxu0 %v10817_v58 }
 0x5cc   : > { %14795 = vmatmul.mubr.bf16.gmra.mrb[124].mxu0 %v10818_v26 }
 0x667   : > { %v14768_v33 = vpop.f32.mrb[96].mxu0 }
 0x668   : > { %v10917_v17 = vpop.f32.mrb[97].mxu0  ;;  %v14830_v35 = vadd.f32 %v14768_v33, %v17665_v10 }
 0x669   : > { %v14769_v62 = vpop.f32.mrb[98].mxu0  ;;  %v14831_v37 = vadd.f32 %v17665_v10, %v10917_v17 }
 0x66a   : > { %v14832_v49 = vadd.f32 %v14769_v62, %v17665_v10  ;;  %v10920_v55 = vpop.f32.mrb[99].mxu0 }
 0x66b   : > { %v14833_v20 = vadd.f32 %v17665_v10, %v10920_v55 }
 0x66c   : > { %v12407_v2 = vpack.c.bf16 %v14832_v49, %v14830_v35 }
 0x66d   : > { %v12402_v47 = vpack.c.bf16 %v14833_v20, %v14831_v37 }
 0x66e   : > { %12479 = vst [vmem:[%s16704_s17 + $0x8] sm:$0xff] %v12407_v2  }
 0x66f   : > { %12403 = vst [vmem:[%s16704_s17] sm:$0xff] %v12402_v47   ;;  %v14772_v56 = vpop.f32.mrb[100].mxu0 }
 0x670   : > { %v10933_v44 = vpop.f32.mrb[101].mxu0  ;;  %v14834_v31 = vadd.f32 %v14772_v56, %v17665_v10 }
 0x671   : > { %v14773_v5 = vpop.f32.mrb[102].mxu0  ;;  %v14835_v53 = vadd.f32 %v17665_v10, %v10933_v44 }
 0x672   : > { %v14836_v40 = vadd.f32 %v14773_v5, %v17665_v10  ;;  %v10936_v28 = vpop.f32.mrb[103].mxu0 }
 0x673   : > { %v14837_v3 = vadd.f32 %v17665_v10, %v10936_v28 }
 0x674   : > { %v12417_v15 = vpack.c.bf16 %v14836_v40, %v14834_v31 }
 0x675   : > { %v12412_v8 = vpack.c.bf16 %v14837_v3, %v14835_v53 }
 0x676   : > { %12481 = vst [vmem:[%s16704_s17 + $0x18] sm:$0xff] %v12417_v15  }
 0x677   : > { %12480 = vst [vmem:[%s16704_s17 + $0x10] sm:$0xff] %v12412_v8   ;;  %v14776_v22 = vpop.f32.mrb[104].mxu0 }
 0x678   : > { %v10949_v29 = vpop.f32.mrb[105].mxu0  ;;  %v14838_v54 = vadd.f32 %v14776_v22, %v17665_v10 }
 0x679   : > { %v14777_v32 = vpop.f32.mrb[106].mxu0  ;;  %v14839_v25 = vadd.f32 %v17665_v10, %v10949_v29 }
 0x67a   : > { %v14840_v38 = vadd.f32 %v14777_v32, %v17665_v10  ;;  %v10952_v43 = vpop.f32.mrb[107].mxu0 }
 0x67b   : > { %v14841_v36 = vadd.f32 %v17665_v10, %v10952_v43 }
 0x67c   : > { %v12427_v30 = vpack.c.bf16 %v14840_v38, %v14838_v54 }
 0x67d   : > { %v12422_v39 = vpack.c.bf16 %v14841_v36, %v14839_v25 }
 0x67e   : > { %12483 = vst [vmem:[%s16704_s17 + $0x28] sm:$0xff] %v12427_v30  }
 0x67f   : > { %12482 = vst [vmem:[%s16704_s17 + $0x20] sm:$0xff] %v12422_v39   ;;  %v14780_v14 = vpop.f32.mrb[108].mxu0 }
 0x680   : > { %v10965_v6 = vpop.f32.mrb[109].mxu0  ;;  %v14842_v0 = vadd.f32 %v14780_v14, %v17665_v10 }
 0x681   : > { %v14781_v16 = vpop.f32.mrb[110].mxu0  ;;  %v14843_v9 = vadd.f32 %v17665_v10, %v10965_v6 }
 0x682   : > { %v14844_v52 = vadd.f32 %v14781_v16, %v17665_v10  ;;  %v10968_v41 = vpop.f32.mrb[111].mxu0 }
 0x683   : > { %v14845_v1 = vadd.f32 %v17665_v10, %v10968_v41 }
 0x684   : > { %v12437_v27 = vpack.c.bf16 %v14844_v52, %v14842_v0 }
 0x685   : > { %v12432_v11 = vpack.c.bf16 %v14845_v1, %v14843_v9 }
 0x686   : > { %12485 = vst [vmem:[%s16704_s17 + $0x38] sm:$0xff] %v12437_v27  }
 0x687   : > { %12484 = vst [vmem:[%s16704_s17 + $0x30] sm:$0xff] %v12432_v11   ;;  %v14784_v19 = vpop.f32.mrb[112].mxu0 }
 0x688   : > { %v10981_v12 = vpop.f32.mrb[113].mxu0  ;;  %v14846_v48 = vadd.f32 %v14784_v19, %v17665_v10 }
 0x689   : > { %v14785_v18 = vpop.f32.mrb[114].mxu0  ;;  %v14847_v4 = vadd.f32 %v17665_v10, %v10981_v12 }
 0x68a   : > { %v14848_v63 = vadd.f32 %v14785_v18, %v17665_v10  ;;  %v10984_v13 = vpop.f32.mrb[115].mxu0 }
 0x68b   : > { %v14849_v7 = vadd.f32 %v17665_v10, %v10984_v13 }
 0x68c   : > { %v12447_v57 = vpack.c.bf16 %v14848_v63, %v14846_v48 }
 0x68d   : > { %v12442_v21 = vpack.c.bf16 %v14849_v7, %v14847_v4 }
 0x68e   : > { %12487 = vst [vmem:[%s16704_s17 + $0x48] sm:$0xff] %v12447_v57  }
 0x68f   : > { %12486 = vst [vmem:[%s16704_s17 + $0x40] sm:$0xff] %v12442_v21   ;;  %v14788_v46 = vpop.f32.mrb[116].mxu0 }
 0x690   : > { %v10997_v34 = vpop.f32.mrb[117].mxu0  ;;  %v14850_v51 = vadd.f32 %v14788_v46, %v17665_v10 }
 0x691   : > { %v14789_v61 = vpop.f32.mrb[118].mxu0  ;;  %v14851_v59 = vadd.f32 %v17665_v10, %v10997_v34 }
 0x692   : > { %v14852_v23 = vadd.f32 %v14789_v61, %v17665_v10  ;;  %v11000_v45 = vpop.f32.mrb[119].mxu0 }
 0x693   : > { %v14853_v50 = vadd.f32 %v17665_v10, %v11000_v45 }
 0x694   : > { %v12457_v24 = vpack.c.bf16 %v14852_v23, %v14850_v51 }
 0x695   : > { %v12452_v42 = vpack.c.bf16 %v14853_v50, %v14851_v59 }
 0x696   : > { %12489 = vst [vmem:[%s16704_s17 + $0x58] sm:$0xff] %v12457_v24  }
 0x697   : > { %12488 = vst [vmem:[%s16704_s17 + $0x50] sm:$0xff] %v12452_v42   ;;  %v14792_v26 = vpop.f32.mrb[120].mxu0 }
 0x698   : > { %v11013_v60 = vpop.f32.mrb[121].mxu0  ;;  %v14854_v33 = vadd.f32 %v14792_v26, %v17665_v10 }
 0x699   : > { %v14793_v58 = vpop.f32.mrb[122].mxu0  ;;  %v14855_v35 = vadd.f32 %v17665_v10, %v11013_v60 }
 0x69a   : > { %v14856_v17 = vadd.f32 %v14793_v58, %v17665_v10  ;;  %v11016_v62 = vpop.f32.mrb[123].mxu0 }
 0x69b   : > { %v14857_v49 = vadd.f32 %v17665_v10, %v11016_v62 }
 0x69c   : > { %v12467_v55 = vpack.c.bf16 %v14856_v17, %v14854_v33 }
 0x69d   : > { %v12462_v37 = vpack.c.bf16 %v14857_v49, %v14855_v35 }
 0x69e   : > { %12491 = vst [vmem:[%s16704_s17 + $0x68] sm:$0xff] %v12467_v55  }
 0x69f   : > { %12490 = vst [vmem:[%s16704_s17 + $0x60] sm:$0xff] %v12462_v37   ;;  %v14796_v20 = vpop.f32.mrb[124].mxu0 }
 0x6a0   : > { %v11029_v2 = vpop.f32.mrb[125].mxu0  ;;  %v14858_v56 = vadd.f32 %v14796_v20, %v17665_v10 }
 0x6a1   : > { %v14797_v47 = vpop.f32.mrb[126].mxu0  ;;  %v14859_v31 = vadd.f32 %v17665_v10, %v11029_v2 }
 0x6a2   : > { %v14860_v44 = vadd.f32 %v14797_v47, %v17665_v10  ;;  %v11032_v5 = vpop.f32.mrb[127].mxu0 }
 0x6a3   : > { %v14861_v40 = vadd.f32 %v17665_v10, %v11032_v5 }
 0x6a4   : > { %v12477_v28 = vpack.c.bf16 %v14860_v44, %v14858_v56 }
 0x6a5   : > { %v12472_v53 = vpack.c.bf16 %v14861_v40, %v14859_v31 }
 0x6a6   : > { %12493 = vst [vmem:[%s16704_s17 + $0x78] sm:$0xff] %v12477_v28  }
 0x6a7   : > { %12492 = vst [vmem:[%s16704_s17 + $0x70] sm:$0xff] %v12472_v53  }
 0x6a8   : > { %16277 = shalt.err (!%p16274_p5)
}
 0x6a9   : > { %s16278_s11 = scalar_lea.hbm %s17718_s23, 2048  ;;  %s16282_s16 = scalar_lea.hbm %s17962_s13, 4096 }
 0x6aa   : > { %p16279_p9 = scmp.ne.s32.totalorder %s17718_s23, %s16278_s11  ;;  %p16283_p12 = scmp.lt.u32.totalorder %s17718_s23, %s17962_s13 }
 0x6ab   : > { %p16284_p13 = scmp.lt.u32.totalorder %s16282_s16, %s16278_s11  ;;  %p16286_p11 = scmp.lt.u32.totalorder %s16278_s11, %s17718_s23 }
 0x6ac   : > { %p16280_p8 = pnand %p16279_p9, %p17963_p1 }
 0x6ad   : > { %p16285_p0 = por %p16284_p13, %p16283_p12 }
 0x6ae   : > { %p16281_p3 = pneg %p16280_p8 }
 0x6af   : > { %p16287_p7 = por %p16286_p11, %p16285_p0 }
 0x6b1   : > { %p16288_p6 = pnand %p16287_p7, %p16281_p3 }
 0x6b3   : > { %16291 = shalt.err (!%p16288_p6)
}
 0x6b4   : > { %s16372_s7 = smov 64   ;;  %s16373_s18 = smov 4  }
 0x6b5   : > { %15716 = dma.vmem_to_hbm [thread:$0]  (%p17963_p1), %s17720_s8, 2048, %s17718_s23, %s11237_s27, %s16372_s7, %s16372_s7, %s16373_s18  }
 0x6b6 PF: > { %s11267_s20 = sand.u32 1, %s16340_s24   ;;  %p17964_p4 = scmp.ne.s32.totalorder %s17835_s21, 0 }
 0x6b7   : > { %p17965_p10 = scmp.ge.s32.totalorder %s16360_s29, 2  ;;  %s11268_s10 = scalar_lea.sflag [#allocation7], %s11267_s20 }
 0x6b9   : > { %p15739_p2 = pnand %p17965_p10, %p17964_p4 }
 0x6bb   : > { %16335 = dma.done.wait (!%p15739_p2), %s11268_s10, 2048  }
 0x6bc   : > { %16337 = vsyncadd (!%p15739_p2), %s11268_s10, 4294965248  ;;  %s26_s29 = sadd.s32 1, %s16360_s29   ;;  %s17966_s24 = smov %s16344_s25 }
 0x6bd   : > { %p23_p5 = scmp.ge.s32.totalorder %s26_s29, 4   ;;  %s17967_s25 = smov %s16348_s26 }
 0x6be   : > { %s17968_s26 = smov %s16624_s19  ;;  %s17969_s27 = smov %s16356_s28 }
 0x6bf   : > { %s17970_s28 = smov %s17972_s22  ;;  %25 = sbr.rel (!%p23_p5) target bundleno = 12 (0xc), region = 147 }
 0x6c6   :  { %11273 = vsyncpa [#allocation6], 1 }
 0x6c7   :  { %11275 = vsyncpa [#allocation6 + $0x1], 1 }
 0x6c8   :  { %11276 = vsyncpa [#allocation9], 1 }
 0x6c9   :  { %11277 = vsyncpa [#allocation12], 1 }
 0x6ca   :  { %11278 = vsyncpa [#allocation15], 1 }
 0x6cb   :  { %11280 = vsyncpa [#allocation15 + $0x1], 1 }
 0x6cc   :  { %11281 = vsyncpa [#allocation7], 1 }
 0x6cd   :  { %11283 = vsyncpa [#allocation7 + $0x1], 1 }
 0x6ce   :  { %11284 = vsyncmov [#allocation3] }
 0x6d1   :  { %s11285_s30 = vpop.sfrf %11284 }
 0x6d2   :  { %p12361_p1 = scmp.ne.s32.totalorder %s11285_s30, 0 }
 0x6d4   :  { %11289 = shalt.err (%p12361_p1)  }
 0x6d5   :  { %11291 = vsyncmov [#allocation3 + $0x1] }
 0x6d8   :  { %s11292_s19 = vpop.sfrf %11291 }
 0x6d9   :  { %p12362_p9 = scmp.ne.s32.totalorder %s11292_s19, 0 }
 0x6db   :  { %11296 = shalt.err (%p12362_p9)  }

</bundles_post_ra>
